<compile_context>
chip_gen: v6e
topology: v6e:2x2x1
jax: 0.10.0
libtpu: 0.0.40
codegen_flags: <defaults>
</compile_context>

<pallas_src>
import numpy as np
import jax
import jax.numpy as jnp
from jax.experimental import pallas as pl
from jax.experimental.pallas import tpu as pltpu


_ENC_CHANNELS = [(3, 8), (8, 16), (16, 32), (32, 64), (64, 96)]
_DEC_CHANNELS = [(96, 64), (64, 32), (32, 16), (16, 8), (8, 8)]
_K = 5  # conv tap count along W


# --------------------------------------------------------------------------
# Constant spatial matrices (numpy, built at trace time from static shapes).
# --------------------------------------------------------------------------

def _subsample_matrix(w_in):
    """(w_in, w_out) with S[2*w, w] = 1: stride-2 subsample as a matmul."""
    w_out = (w_in - 1) // 2 + 1
    s = np.zeros((w_in, w_out), np.float32)
    for w in range(w_out):
        s[2 * w, w] = 1.0
    return s


def _bilinear_pad_matrix(w_in):
    """(w_in, 2*w_in + 4): align_corners=True bilinear 2x upsample (transposed,
    so `a @ B` upsamples along the lane/W axis), with 2 zero columns on each
    side realizing the following conv's zero padding."""
    w_out = 2 * w_in
    b = np.zeros((w_in, w_out + 4), np.float32)
    if w_in == 1:
        b[0, 2:2 + w_out] = 1.0
        return b
    for j in range(w_out):
        src = j * (w_in - 1) / (w_out - 1)
        i0 = min(int(np.floor(src)), w_in - 1)
        i1 = min(i0 + 1, w_in - 1)
        f = src - i0
        b[i0, 2 + j] += 1.0 - f
        b[i1, 2 + j] += f
    return b


# --------------------------------------------------------------------------
# The single fused Pallas kernel: the whole forward pass for B_TILE samples.
# --------------------------------------------------------------------------

def _whole_net_kernel(*refs):
    """refs = (x, <5 enc blocks x 7>, <5 dec blocks x 3>, <final x 2>, out)."""
    x_ref = refs[0]
    out_ref = refs[-1]
    wrefs = refs[1:-1]

    def conv5(act_pad, w_packed):
        # act_pad: (C, W+4) f32, zero padded by 2 on each side along W (lanes).
        # w_packed: (Co, 5*C) bf16, column order = (tap-major, channel-minor).
        # Stack the 5 shifted copies along sublanes -> ONE wide-contraction dot.
        wv = act_pad.shape[1] - 4
        cat = jnp.concatenate([act_pad[:, k:k + wv] for k in range(_K)], axis=0)
        return jnp.dot(w_packed, cat.astype(jnp.bfloat16),
                       preferred_element_type=jnp.float32)

    def pad_w(a):
        z = jnp.zeros((a.shape[0], 2), a.dtype)
        return jnp.concatenate([z, a, z], axis=1)

    def cdot(w_packed, act):  # 1x1 channel-mixing conv: (Co, Ci) @ (Ci, W)
        return jnp.dot(w_packed, act.astype(jnp.bfloat16),
                       preferred_element_type=jnp.float32)

    b_tile = x_ref.shape[0]
    for b in range(b_tile):                  # unrolled samples per grid step
        a = x_ref[b].astype(jnp.float32)     # (3, W) channels-first, lane-dense
        idx = 0

        # ---- encoder: 5 x QInvertedResidual(expand_ratio=2, stride=2) ----
        for _ in range(len(_ENC_CHANNELS)):
            we, se, wdw, sd, ssub, wp, sp = wrefs[idx:idx + 7]
            idx += 7
            # 1x1 expand conv + BN + tanh
            h = jnp.tanh(cdot(we[...], a) + se[...])
            # 5-tap conv at stride 1 (groups=1 per the source), one wide matmul
            full = conv5(pad_w(h), wdw[...])                      # (hid, W)
            # stride-2 subsample as a single small matmul, then BN + tanh
            sub = jnp.dot(full.astype(jnp.bfloat16), ssub[...],
                          preferred_element_type=jnp.float32)     # (hid, W/2)
            h = jnp.tanh(sub + sd[...])
            # 1x1 projection conv + BN (no activation)
            a = cdot(wp[...], h) + sp[...]

        # ---- decoder: 5 x (bilinear 2x upsample + 5-tap conv + bias+BN + tanh) ----
        for _ in range(len(_DEC_CHANNELS)):
            bpt, wd, sdv = wrefs[idx:idx + 3]
            idx += 3
            # upsample along W (conv padding folded into the zero edge columns)
            u_pad = jnp.dot(a.astype(jnp.bfloat16), bpt[...],
                            preferred_element_type=jnp.float32)   # (C, 2W+4)
            a = jnp.tanh(conv5(u_pad, wd[...]) + sdv[...])

        # ---- final 5-tap conv (bias, no BN / activation) ----
        wf, bfin = wrefs[idx], wrefs[idx + 1]
        y = conv5(pad_w(a), wf[...]) + bfin[...]
        out_ref[b] = y.astype(out_ref.dtype)


# --------------------------------------------------------------------------
# Host-side BN folding + weight packing (channels-first, taps pre-packed).
# --------------------------------------------------------------------------

def _fold_bn(bn):
    gamma, beta, mean, var, eps = bn
    scale = gamma / jnp.sqrt(var + eps)
    shift = beta - mean * scale
    return scale, shift


def _pack_taps(w, scale):
    """(Co, Ci, K) conv weight -> (Co, K*Ci) with tap-major column order."""
    co, ci, k = w.shape
    wp = jnp.transpose(w, (0, 2, 1)).reshape(co, k * ci)
    if scale is not None:
        wp = wp * scale[:, None]
    return wp


def _build_kernel_inputs(params, w0):
    bf16 = lambda a: a.astype(jnp.bfloat16)
    inputs = []
    w_cur = w0

    for blk in params['enc']:
        scale_e, shift_e = _fold_bn(blk['expand_bn'])
        scale_d, shift_d = _fold_bn(blk['dw_bn'])
        scale_p, shift_p = _fold_bn(blk['proj_bn'])
        we = bf16(blk['expand_w'][:, :, 0] * scale_e[:, None])      # (hid, Ci)
        wdw = bf16(_pack_taps(blk['dw_w'], scale_d))                # (hid, 5*hid)
        wp = bf16(blk['proj_w'][:, :, 0] * scale_p[:, None])        # (Co, hid)
        ssub = bf16(jnp.asarray(_subsample_matrix(w_cur)))          # (W, W/2)
        inputs += [we, shift_e.reshape(-1, 1),
                   wdw, shift_d.reshape(-1, 1),
                   ssub,
                   wp, shift_p.reshape(-1, 1)]
        w_cur = (w_cur - 1) // 2 + 1

    for blk in params['dec']:
        scale, shift = _fold_bn(blk['bn'])
        bpt = bf16(jnp.asarray(_bilinear_pad_matrix(w_cur)))        # (W, 2W+4)
        wd = bf16(_pack_taps(blk['w'], scale))                      # (Co, 5*Ci)
        sd = (shift + blk['b'] * scale).reshape(-1, 1)
        inputs += [bpt, wd, sd]
        w_cur = 2 * w_cur

    wf = bf16(_pack_taps(params['final_w'], None))                  # (3, 40)
    bfin = params['final_b'].reshape(-1, 1)
    inputs += [wf, bfin]
    assert w_cur == w0
    return inputs


def _const_spec(arr):
    nd = arr.ndim
    return pl.BlockSpec(arr.shape, lambda i, _nd=nd: (0,) * _nd)


@jax.jit
def model_forward(params, x):
    """x: (N, 3, W) float32 -> (N, 3, W).  W must be a multiple of 32."""
    n, c_in, w0 = x.shape
    assert c_in == 3 and w0 % 32 == 0 and w0 >= 32

    weight_inputs = _build_kernel_inputs(params, w0)

    # Several samples per grid step; keep >= 2 grid steps when possible so
    # both TensorCores get work on megacore parts.
    b_tile = min(4, max(1, n // 2))
    n_pad = ((n + b_tile - 1) // b_tile) * b_tile
    x_in = x.astype(jnp.float32)
    if n_pad != n:
        x_in = jnp.concatenate(
            [x_in, jnp.zeros((n_pad - n, c_in, w0), jnp.float32)], axis=0)

    in_specs = [pl.BlockSpec((b_tile, c_in, w0), lambda i: (i, 0, 0))]
    in_specs += [_const_spec(a) for a in weight_inputs]
    out_spec = pl.BlockSpec((b_tile, 3, w0), lambda i: (i, 0, 0))

    out = pl.pallas_call(
        _whole_net_kernel,
        out_shape=jax.ShapeDtypeStruct((n_pad, 3, w0), jnp.float32),
        grid_spec=pltpu.PrefetchScalarGridSpec(
            num_scalar_prefetch=0,
            grid=(n_pad // b_tile,),
            in_specs=in_specs,
            out_specs=out_spec,
        ),
        compiler_params=pltpu.CompilerParams(
            dimension_semantics=("parallel",),
            vmem_limit_bytes=32 * 1024 * 1024,
        ),
    )(x_in, *weight_inputs)

    return out[:n]


# --------------------------------------------------------------------------
# Pure-JAX/XLA reference of the same inference-mode model (sanity check only).
# --------------------------------------------------------------------------

def _reference_forward(params, x):
    def conv1d(x, weight, bias, bn, apply_tanh, stride=1, padding=0):
        n, ci, w_in = x.shape
        co, _, k = weight.shape
        x_pad = jnp.pad(x, ((0, 0), (0, 0), (padding, padding)))
        w_out = (w_in + 2 * padding - k) // stride + 1
        cols = [x_pad[:, :, kk: kk + stride * w_out: stride] for kk in range(k)]
        patches = jnp.stack(cols, axis=-1).transpose(0, 2, 1, 3).reshape(n * w_out, ci * k)
        w2 = weight.reshape(co, ci * k).T
        if bn is not None:
            gamma, beta, mean, var, eps = bn
            scale = gamma / jnp.sqrt(var + eps)
            shift = beta - mean * scale
        else:
            scale = jnp.ones((co,), jnp.float32)
            shift = jnp.zeros((co,), jnp.float32)
        if bias is not None:
            shift = shift + bias * scale
        y = (patches @ w2) * scale[None, :] + shift[None, :]
        if apply_tanh:
            y = jnp.tanh(y)
        return y.reshape(n, w_out, co).transpose(0, 2, 1)

    def upsample2x(x):
        n, c, w_in = x.shape
        w_out = 2 * w_in
        j = jnp.arange(w_out, dtype=jnp.float32)
        src = j * (w_in - 1) / (w_out - 1) if w_in > 1 else jnp.zeros_like(j)
        i0 = jnp.clip(jnp.floor(src).astype(jnp.int32), 0, w_in - 1)
        i1 = jnp.minimum(i0 + 1, w_in - 1)
        frac = src - i0.astype(jnp.float32)
        x2 = x.reshape(n * c, w_in)
        out = jnp.take(x2, i0, axis=1) * (1.0 - frac) + jnp.take(x2, i1, axis=1) * frac
        return out.reshape(n, c, w_out)

    for blk in params['enc']:
        x = conv1d(x, blk['expand_w'], None, blk['expand_bn'], True, 1, 0)
        x = conv1d(x, blk['dw_w'], None, blk['dw_bn'], True, 2, 2)
        x = conv1d(x, blk['proj_w'], None, blk['proj_bn'], False, 1, 0)
    for blk in params['dec']:
        x = upsample2x(x)
        x = conv1d(x, blk['w'], blk['b'], blk['bn'], True, 1, 2)
    x = conv1d(x, params['final_w'], params['final_b'], None, False, 1, 2)
    return x


# --------------------------------------------------------------------------
# Parameters
# --------------------------------------------------------------------------

def _init_bn(key, c):
    k1, k2, k3, k4 = jax.random.split(key, 4)
    gamma = 1.0 + 0.1 * jax.random.normal(k1, (c,), jnp.float32)
    beta = 0.1 * jax.random.normal(k2, (c,), jnp.float32)
    mean = 0.1 * jax.random.normal(k3, (c,), jnp.float32)
    var = 1.0 + 0.1 * jax.random.uniform(k4, (c,), jnp.float32)
    return (gamma, beta, mean, var, jnp.float32(1e-5))


def _init_conv(key, co, ci, k, bias):
    k1, k2 = jax.random.split(key)
    w = jax.random.normal(k1, (co, ci, k), jnp.float32) / jnp.sqrt(float(ci * k))
    b = 0.1 * jax.random.normal(k2, (co,), jnp.float32) if bias else None
    return w, b


def init_params(key):
    keys = iter(jax.random.split(key, 64))
    enc = []
    for ci, co in _ENC_CHANNELS:
        hidden = int(round(ci * 2))
        blk = {}
        blk['expand_w'], _ = _init_conv(next(keys), hidden, ci, 1, False)
        blk['expand_bn'] = _init_bn(next(keys), hidden)
        blk['dw_w'], _ = _init_conv(next(keys), hidden, hidden, 5, False)
        blk['dw_bn'] = _init_bn(next(keys), hidden)
        blk['proj_w'], _ = _init_conv(next(keys), co, hidden, 1, False)
        blk['proj_bn'] = _init_bn(next(keys), co)
        enc.append(blk)
    dec = []
    for ci, co in _DEC_CHANNELS:
        blk = {}
        blk['w'], blk['b'] = _init_conv(next(keys), co, ci, 5, True)
        blk['bn'] = _init_bn(next(keys), co)
        dec.append(blk)
    fw, fb = _init_conv(next(keys), 3, 8, 5, True)
    return {'enc': enc, 'dec': dec, 'final_w': fw, 'final_b': fb}


if __name__ == "__main__":
    key = jax.random.PRNGKey(0)
    pkey, xkey = jax.random.split(key)
    params = init_params(pkey)

    N, C, W = 4, 3, 64  # W must be a multiple of 32 (five stride-2 encoder stages)
    x = jax.random.normal(xkey, (N, C, W), jnp.float32)

    y = model_forward(params, x)
    y = jax.block_until_ready(y)
    assert y.shape == (N, 3, W), y.shape
    assert bool(jnp.all(jnp.isfinite(y)))

    # Sanity check against a pure-JAX f32 reference of the same inference-mode
    # model (tolerance covers the bf16 MXU operands; accumulation is f32).
    y_ref = jax.jit(_reference_forward)(params, x)
    max_err = float(jnp.max(jnp.abs(y - y_ref)))
    assert max_err < 0.2, f"kernel/reference mismatch: max|diff| = {max_err}"

    print("KERNEL_OK")
</pallas_src>

<mosaic_0001>
module attributes {stable_mosaic.version = 11 : i64} {
  func.func @_whole_net_kernel(%arg0: i32, %arg1: memref<2x3x64xf32, #tpu.memory_space<vmem>>, %arg2: memref<6x3xbf16, #tpu.memory_space<vmem>>, %arg3: memref<6x1xf32, #tpu.memory_space<vmem>>, %arg4: memref<6x30xbf16, #tpu.memory_space<vmem>>, %arg5: memref<6x1xf32, #tpu.memory_space<vmem>>, %arg6: memref<64x32xbf16, #tpu.memory_space<vmem>>, %arg7: memref<8x6xbf16, #tpu.memory_space<vmem>>, %arg8: memref<8x1xf32, #tpu.memory_space<vmem>>, %arg9: memref<16x8xbf16, #tpu.memory_space<vmem>>, %arg10: memref<16x1xf32, #tpu.memory_space<vmem>>, %arg11: memref<16x80xbf16, #tpu.memory_space<vmem>>, %arg12: memref<16x1xf32, #tpu.memory_space<vmem>>, %arg13: memref<32x16xbf16, #tpu.memory_space<vmem>>, %arg14: memref<16x16xbf16, #tpu.memory_space<vmem>>, %arg15: memref<16x1xf32, #tpu.memory_space<vmem>>, %arg16: memref<32x16xbf16, #tpu.memory_space<vmem>>, %arg17: memref<32x1xf32, #tpu.memory_space<vmem>>, %arg18: memref<32x160xbf16, #tpu.memory_space<vmem>>, %arg19: memref<32x1xf32, #tpu.memory_space<vmem>>, %arg20: memref<16x8xbf16, #tpu.memory_space<vmem>>, %arg21: memref<32x32xbf16, #tpu.memory_space<vmem>>, %arg22: memref<32x1xf32, #tpu.memory_space<vmem>>, %arg23: memref<64x32xbf16, #tpu.memory_space<vmem>>, %arg24: memref<64x1xf32, #tpu.memory_space<vmem>>, %arg25: memref<64x320xbf16, #tpu.memory_space<vmem>>, %arg26: memref<64x1xf32, #tpu.memory_space<vmem>>, %arg27: memref<8x4xbf16, #tpu.memory_space<vmem>>, %arg28: memref<64x64xbf16, #tpu.memory_space<vmem>>, %arg29: memref<64x1xf32, #tpu.memory_space<vmem>>, %arg30: memref<128x64xbf16, #tpu.memory_space<vmem>>, %arg31: memref<128x1xf32, #tpu.memory_space<vmem>>, %arg32: memref<128x640xbf16, #tpu.memory_space<vmem>>, %arg33: memref<128x1xf32, #tpu.memory_space<vmem>>, %arg34: memref<4x2xbf16, #tpu.memory_space<vmem>>, %arg35: memref<96x128xbf16, #tpu.memory_space<vmem>>, %arg36: memref<96x1xf32, #tpu.memory_space<vmem>>, %arg37: memref<2x8xbf16, #tpu.memory_space<vmem>>, %arg38: memref<64x480xbf16, #tpu.memory_space<vmem>>, %arg39: memref<64x1xf32, #tpu.memory_space<vmem>>, %arg40: memref<4x12xbf16, #tpu.memory_space<vmem>>, %arg41: memref<32x320xbf16, #tpu.memory_space<vmem>>, %arg42: memref<32x1xf32, #tpu.memory_space<vmem>>, %arg43: memref<8x20xbf16, #tpu.memory_space<vmem>>, %arg44: memref<16x160xbf16, #tpu.memory_space<vmem>>, %arg45: memref<16x1xf32, #tpu.memory_space<vmem>>, %arg46: memref<16x36xbf16, #tpu.memory_space<vmem>>, %arg47: memref<8x80xbf16, #tpu.memory_space<vmem>>, %arg48: memref<8x1xf32, #tpu.memory_space<vmem>>, %arg49: memref<32x68xbf16, #tpu.memory_space<vmem>>, %arg50: memref<8x40xbf16, #tpu.memory_space<vmem>>, %arg51: memref<8x1xf32, #tpu.memory_space<vmem>>, %arg52: memref<3x40xbf16, #tpu.memory_space<vmem>>, %arg53: memref<3x1xf32, #tpu.memory_space<vmem>>, %arg54: memref<2x3x64xf32, #tpu.memory_space<vmem>>) attributes {dimension_semantics = [#tpu.dimension_semantics<parallel>], iteration_bounds = array<i64: 2>, scalar_prefetch = 0 : i64, scratch_operands = 0 : i64, tpu.core_type = #tpu.core_type<tc>, window_params = [{transform_indices = @transform_0, window_bounds = array<i64: 2, 3, 64>}, {pipeline_mode = #tpu.pipeline_mode<synchronous>, transform_indices = @transform_1, window_bounds = array<i64: 6, 3>}, {pipeline_mode = #tpu.pipeline_mode<synchronous>, transform_indices = @transform_2, window_bounds = array<i64: 6, 1>}, {pipeline_mode = #tpu.pipeline_mode<synchronous>, transform_indices = @transform_3, window_bounds = array<i64: 6, 30>}, {pipeline_mode = #tpu.pipeline_mode<synchronous>, transform_indices = @transform_4, window_bounds = array<i64: 6, 1>}, {pipeline_mode = #tpu.pipeline_mode<synchronous>, transform_indices = @transform_5, window_bounds = array<i64: 64, 32>}, {pipeline_mode = #tpu.pipeline_mode<synchronous>, transform_indices = @transform_6, window_bounds = array<i64: 8, 6>}, {pipeline_mode = #tpu.pipeline_mode<synchronous>, transform_indices = @transform_7, window_bounds = array<i64: 8, 1>}, {pipeline_mode = #tpu.pipeline_mode<synchronous>, transform_indices = @transform_8, window_bounds = array<i64: 16, 8>}, {pipeline_mode = #tpu.pipeline_mode<synchronous>, transform_indices = @transform_9, window_bounds = array<i64: 16, 1>}, {pipeline_mode = #tpu.pipeline_mode<synchronous>, transform_indices = @transform_10, window_bounds = array<i64: 16, 80>}, {pipeline_mode = #tpu.pipeline_mode<synchronous>, transform_indices = @transform_11, window_bounds = array<i64: 16, 1>}, {pipeline_mode = #tpu.pipeline_mode<synchronous>, transform_indices = @transform_12, window_bounds = array<i64: 32, 16>}, {pipeline_mode = #tpu.pipeline_mode<synchronous>, transform_indices = @transform_13, window_bounds = array<i64: 16, 16>}, {pipeline_mode = #tpu.pipeline_mode<synchronous>, transform_indices = @transform_14, window_bounds = array<i64: 16, 1>}, {pipeline_mode = #tpu.pipeline_mode<synchronous>, transform_indices = @transform_15, window_bounds = array<i64: 32, 16>}, {pipeline_mode = #tpu.pipeline_mode<synchronous>, transform_indices = @transform_16, window_bounds = array<i64: 32, 1>}, {pipeline_mode = #tpu.pipeline_mode<synchronous>, transform_indices = @transform_17, window_bounds = array<i64: 32, 160>}, {pipeline_mode = #tpu.pipeline_mode<synchronous>, transform_indices = @transform_18, window_bounds = array<i64: 32, 1>}, {pipeline_mode = #tpu.pipeline_mode<synchronous>, transform_indices = @transform_19, window_bounds = array<i64: 16, 8>}, {pipeline_mode = #tpu.pipeline_mode<synchronous>, transform_indices = @transform_20, window_bounds = array<i64: 32, 32>}, {pipeline_mode = #tpu.pipeline_mode<synchronous>, transform_indices = @transform_21, window_bounds = array<i64: 32, 1>}, {pipeline_mode = #tpu.pipeline_mode<synchronous>, transform_indices = @transform_22, window_bounds = array<i64: 64, 32>}, {pipeline_mode = #tpu.pipeline_mode<synchronous>, transform_indices = @transform_23, window_bounds = array<i64: 64, 1>}, {pipeline_mode = #tpu.pipeline_mode<synchronous>, transform_indices = @transform_24, window_bounds = array<i64: 64, 320>}, {pipeline_mode = #tpu.pipeline_mode<synchronous>, transform_indices = @transform_25, window_bounds = array<i64: 64, 1>}, {pipeline_mode = #tpu.pipeline_mode<synchronous>, transform_indices = @transform_26, window_bounds = array<i64: 8, 4>}, {pipeline_mode = #tpu.pipeline_mode<synchronous>, transform_indices = @transform_27, window_bounds = array<i64: 64, 64>}, {pipeline_mode = #tpu.pipeline_mode<synchronous>, transform_indices = @transform_28, window_bounds = array<i64: 64, 1>}, {pipeline_mode = #tpu.pipeline_mode<synchronous>, transform_indices = @transform_29, window_bounds = array<i64: 128, 64>}, {pipeline_mode = #tpu.pipeline_mode<synchronous>, transform_indices = @transform_30, window_bounds = array<i64: 128, 1>}, {pipeline_mode = #tpu.pipeline_mode<synchronous>, transform_indices = @transform_31, window_bounds = array<i64: 128, 640>}, {pipeline_mode = #tpu.pipeline_mode<synchronous>, transform_indices = @transform_32, window_bounds = array<i64: 128, 1>}, {pipeline_mode = #tpu.pipeline_mode<synchronous>, transform_indices = @transform_33, window_bounds = array<i64: 4, 2>}, {pipeline_mode = #tpu.pipeline_mode<synchronous>, transform_indices = @transform_34, window_bounds = array<i64: 96, 128>}, {pipeline_mode = #tpu.pipeline_mode<synchronous>, transform_indices = @transform_35, window_bounds = array<i64: 96, 1>}, {pipeline_mode = #tpu.pipeline_mode<synchronous>, transform_indices = @transform_36, window_bounds = array<i64: 2, 8>}, {pipeline_mode = #tpu.pipeline_mode<synchronous>, transform_indices = @transform_37, window_bounds = array<i64: 64, 480>}, {pipeline_mode = #tpu.pipeline_mode<synchronous>, transform_indices = @transform_38, window_bounds = array<i64: 64, 1>}, {pipeline_mode = #tpu.pipeline_mode<synchronous>, transform_indices = @transform_39, window_bounds = array<i64: 4, 12>}, {pipeline_mode = #tpu.pipeline_mode<synchronous>, transform_indices = @transform_40, window_bounds = array<i64: 32, 320>}, {pipeline_mode = #tpu.pipeline_mode<synchronous>, transform_indices = @transform_41, window_bounds = array<i64: 32, 1>}, {pipeline_mode = #tpu.pipeline_mode<synchronous>, transform_indices = @transform_42, window_bounds = array<i64: 8, 20>}, {pipeline_mode = #tpu.pipeline_mode<synchronous>, transform_indices = @transform_43, window_bounds = array<i64: 16, 160>}, {pipeline_mode = #tpu.pipeline_mode<synchronous>, transform_indices = @transform_44, window_bounds = array<i64: 16, 1>}, {pipeline_mode = #tpu.pipeline_mode<synchronous>, transform_indices = @transform_45, window_bounds = array<i64: 16, 36>}, {pipeline_mode = #tpu.pipeline_mode<synchronous>, transform_indices = @transform_46, window_bounds = array<i64: 8, 80>}, {pipeline_mode = #tpu.pipeline_mode<synchronous>, transform_indices = @transform_47, window_bounds = array<i64: 8, 1>}, {pipeline_mode = #tpu.pipeline_mode<synchronous>, transform_indices = @transform_48, window_bounds = array<i64: 32, 68>}, {pipeline_mode = #tpu.pipeline_mode<synchronous>, transform_indices = @transform_49, window_bounds = array<i64: 8, 40>}, {pipeline_mode = #tpu.pipeline_mode<synchronous>, transform_indices = @transform_50, window_bounds = array<i64: 8, 1>}, {pipeline_mode = #tpu.pipeline_mode<synchronous>, transform_indices = @transform_51, window_bounds = array<i64: 3, 40>}, {pipeline_mode = #tpu.pipeline_mode<synchronous>, transform_indices = @transform_52, window_bounds = array<i64: 3, 1>}, {transform_indices = @transform_53, window_bounds = array<i64: 2, 3, 64>}]} {
    %c0 = arith.constant 0 : index
    %c0_0 = arith.constant 0 : index
    %c0_1 = arith.constant 0 : index
    %0 = vector.load %arg1[%c0, %c0_0, %c0_1] : memref<2x3x64xf32, #tpu.memory_space<vmem>>, vector<1x3x64xf32>
    %1 = vector.shape_cast %0 : vector<1x3x64xf32> to vector<3x64xf32>
    %c0_2 = arith.constant 0 : index
    %c0_3 = arith.constant 0 : index
    %2 = vector.load %arg2[%c0_2, %c0_3] : memref<6x3xbf16, #tpu.memory_space<vmem>>, vector<6x3xbf16>
    %3 = arith.truncf %1 : vector<3x64xf32> to vector<3x64xbf16>
    %cst = arith.constant dense<0.000000e+00> : vector<6x64xf32>
    %4 = tpu.matmul %2, %3, %cst {dimension_numbers = #tpu.dot_dimension_numbers<[1], [0], [0], [1], [0, 0, 1, 1], [], []>} : vector<6x3xbf16>, vector<3x64xbf16>, vector<6x64xf32> -> vector<6x64xf32>
    %c0_4 = arith.constant 0 : index
    %c0_5 = arith.constant 0 : index
    %5 = vector.load %arg3[%c0_4, %c0_5] : memref<6x1xf32, #tpu.memory_space<vmem>>, vector<6x1xf32>
    %6 = vector.broadcast %5 : vector<6x1xf32> to vector<6x64xf32>
    %7 = arith.addf %4, %6 : vector<6x64xf32>
    %8 = math.tanh %7 : vector<6x64xf32>
    %cst_6 = arith.constant 0.000000e+00 : f32
    %9 = vector.broadcast %cst_6 : f32 to vector<6x2xf32>
    %10 = tpu.concatenate %9, %8, %9 in 1 : vector<6x2xf32>, vector<6x64xf32>, vector<6x2xf32> -> vector<6x68xf32>
    %c0_7 = arith.constant 0 : index
    %c0_8 = arith.constant 0 : index
    %11 = vector.load %arg4[%c0_7, %c0_8] : memref<6x30xbf16, #tpu.memory_space<vmem>>, vector<6x30xbf16>
    %12 = vector.extract_strided_slice %10 {offsets = [0, 0], sizes = [6, 64], strides = [1, 1]} : vector<6x68xf32> to vector<6x64xf32>
    %13 = vector.extract_strided_slice %10 {offsets = [0, 1], sizes = [6, 64], strides = [1, 1]} : vector<6x68xf32> to vector<6x64xf32>
    %14 = vector.extract_strided_slice %10 {offsets = [0, 2], sizes = [6, 64], strides = [1, 1]} : vector<6x68xf32> to vector<6x64xf32>
    %15 = vector.extract_strided_slice %10 {offsets = [0, 3], sizes = [6, 64], strides = [1, 1]} : vector<6x68xf32> to vector<6x64xf32>
    %16 = vector.extract_strided_slice %10 {offsets = [0, 4], sizes = [6, 64], strides = [1, 1]} : vector<6x68xf32> to vector<6x64xf32>
    %17 = tpu.concatenate %12, %13, %14, %15, %16 in 0 : vector<6x64xf32>, vector<6x64xf32>, vector<6x64xf32>, vector<6x64xf32>, vector<6x64xf32> -> vector<30x64xf32>
    %18 = arith.truncf %17 : vector<30x64xf32> to vector<30x64xbf16>
    %cst_9 = arith.constant dense<0.000000e+00> : vector<6x64xf32>
    %19 = tpu.matmul %11, %18, %cst_9 {dimension_numbers = #tpu.dot_dimension_numbers<[1], [0], [0], [1], [0, 0, 1, 1], [], []>} : vector<6x30xbf16>, vector<30x64xbf16>, vector<6x64xf32> -> vector<6x64xf32>
    %20 = arith.truncf %19 : vector<6x64xf32> to vector<6x64xbf16>
    %c0_10 = arith.constant 0 : index
    %c0_11 = arith.constant 0 : index
    %21 = vector.load %arg6[%c0_10, %c0_11] : memref<64x32xbf16, #tpu.memory_space<vmem>>, vector<64x32xbf16>
    %cst_12 = arith.constant dense<0.000000e+00> : vector<6x32xf32>
    %22 = tpu.matmul %20, %21, %cst_12 {dimension_numbers = #tpu.dot_dimension_numbers<[1], [0], [0], [1], [0, 0, 1, 1], [], []>} : vector<6x64xbf16>, vector<64x32xbf16>, vector<6x32xf32> -> vector<6x32xf32>
    %c0_13 = arith.constant 0 : index
    %c0_14 = arith.constant 0 : index
    %23 = vector.load %arg5[%c0_13, %c0_14] : memref<6x1xf32, #tpu.memory_space<vmem>>, vector<6x1xf32>
    %24 = vector.broadcast %23 : vector<6x1xf32> to vector<6x32xf32>
    %25 = arith.addf %22, %24 : vector<6x32xf32>
    %26 = math.tanh %25 : vector<6x32xf32>
    %c0_15 = arith.constant 0 : index
    %c0_16 = arith.constant 0 : index
    %27 = vector.load %arg7[%c0_15, %c0_16] : memref<8x6xbf16, #tpu.memory_space<vmem>>, vector<8x6xbf16>
    %28 = arith.truncf %26 : vector<6x32xf32> to vector<6x32xbf16>
    %cst_17 = arith.constant dense<0.000000e+00> : vector<8x32xf32>
    %29 = tpu.matmul %27, %28, %cst_17 {dimension_numbers = #tpu.dot_dimension_numbers<[1], [0], [0], [1], [0, 0, 1, 1], [], []>} : vector<8x6xbf16>, vector<6x32xbf16>, vector<8x32xf32> -> vector<8x32xf32>
    %c0_18 = arith.constant 0 : index
    %c0_19 = arith.constant 0 : index
    %30 = vector.load %arg8[%c0_18, %c0_19] : memref<8x1xf32, #tpu.memory_space<vmem>>, vector<8x1xf32>
    %31 = vector.broadcast %30 : vector<8x1xf32> to vector<8x32xf32>
    %32 = arith.addf %29, %31 : vector<8x32xf32>
    %c0_20 = arith.constant 0 : index
    %c0_21 = arith.constant 0 : index
    %33 = vector.load %arg9[%c0_20, %c0_21] : memref<16x8xbf16, #tpu.memory_space<vmem>>, vector<16x8xbf16>
    %34 = arith.truncf %32 : vector<8x32xf32> to vector<8x32xbf16>
    %cst_22 = arith.constant dense<0.000000e+00> : vector<16x32xf32>
    %35 = tpu.matmul %33, %34, %cst_22 {dimension_numbers = #tpu.dot_dimension_numbers<[1], [0], [0], [1], [0, 0, 1, 1], [], []>} : vector<16x8xbf16>, vector<8x32xbf16>, vector<16x32xf32> -> vector<16x32xf32>
    %c0_23 = arith.constant 0 : index
    %c0_24 = arith.constant 0 : index
    %36 = vector.load %arg10[%c0_23, %c0_24] : memref<16x1xf32, #tpu.memory_space<vmem>>, vector<16x1xf32>
    %37 = vector.broadcast %36 : vector<16x1xf32> to vector<16x32xf32>
    %38 = arith.addf %35, %37 : vector<16x32xf32>
    %39 = math.tanh %38 : vector<16x32xf32>
    %cst_25 = arith.constant 0.000000e+00 : f32
    %40 = vector.broadcast %cst_25 : f32 to vector<16x2xf32>
    %41 = tpu.concatenate %40, %39, %40 in 1 : vector<16x2xf32>, vector<16x32xf32>, vector<16x2xf32> -> vector<16x36xf32>
    %c0_26 = arith.constant 0 : index
    %c0_27 = arith.constant 0 : index
    %42 = vector.load %arg11[%c0_26, %c0_27] : memref<16x80xbf16, #tpu.memory_space<vmem>>, vector<16x80xbf16>
    %43 = vector.extract_strided_slice %41 {offsets = [0, 0], sizes = [16, 32], strides = [1, 1]} : vector<16x36xf32> to vector<16x32xf32>
    %44 = vector.extract_strided_slice %41 {offsets = [0, 1], sizes = [16, 32], strides = [1, 1]} : vector<16x36xf32> to vector<16x32xf32>
    %45 = vector.extract_strided_slice %41 {offsets = [0, 2], sizes = [16, 32], strides = [1, 1]} : vector<16x36xf32> to vector<16x32xf32>
    %46 = vector.extract_strided_slice %41 {offsets = [0, 3], sizes = [16, 32], strides = [1, 1]} : vector<16x36xf32> to vector<16x32xf32>
    %47 = vector.extract_strided_slice %41 {offsets = [0, 4], sizes = [16, 32], strides = [1, 1]} : vector<16x36xf32> to vector<16x32xf32>
    %48 = tpu.concatenate %43, %44, %45, %46, %47 in 0 : vector<16x32xf32>, vector<16x32xf32>, vector<16x32xf32>, vector<16x32xf32>, vector<16x32xf32> -> vector<80x32xf32>
    %49 = arith.truncf %48 : vector<80x32xf32> to vector<80x32xbf16>
    %cst_28 = arith.constant dense<0.000000e+00> : vector<16x32xf32>
    %50 = tpu.matmul %42, %49, %cst_28 {dimension_numbers = #tpu.dot_dimension_numbers<[1], [0], [0], [1], [0, 0, 1, 1], [], []>} : vector<16x80xbf16>, vector<80x32xbf16>, vector<16x32xf32> -> vector<16x32xf32>
    %51 = arith.truncf %50 : vector<16x32xf32> to vector<16x32xbf16>
    %c0_29 = arith.constant 0 : index
    %c0_30 = arith.constant 0 : index
    %52 = vector.load %arg13[%c0_29, %c0_30] : memref<32x16xbf16, #tpu.memory_space<vmem>>, vector<32x16xbf16>
    %cst_31 = arith.constant dense<0.000000e+00> : vector<16x16xf32>
    %53 = tpu.matmul %51, %52, %cst_31 {dimension_numbers = #tpu.dot_dimension_numbers<[1], [0], [0], [1], [0, 0, 1, 1], [], []>} : vector<16x32xbf16>, vector<32x16xbf16>, vector<16x16xf32> -> vector<16x16xf32>
    %c0_32 = arith.constant 0 : index
    %c0_33 = arith.constant 0 : index
    %54 = vector.load %arg12[%c0_32, %c0_33] : memref<16x1xf32, #tpu.memory_space<vmem>>, vector<16x1xf32>
    %55 = vector.broadcast %54 : vector<16x1xf32> to vector<16x16xf32>
    %56 = arith.addf %53, %55 : vector<16x16xf32>
    %57 = math.tanh %56 : vector<16x16xf32>
    %c0_34 = arith.constant 0 : index
    %c0_35 = arith.constant 0 : index
    %58 = vector.load %arg14[%c0_34, %c0_35] : memref<16x16xbf16, #tpu.memory_space<vmem>>, vector<16x16xbf16>
    %59 = arith.truncf %57 : vector<16x16xf32> to vector<16x16xbf16>
    %cst_36 = arith.constant dense<0.000000e+00> : vector<16x16xf32>
    %60 = tpu.matmul %58, %59, %cst_36 {dimension_numbers = #tpu.dot_dimension_numbers<[1], [0], [0], [1], [0, 0, 1, 1], [], []>} : vector<16x16xbf16>, vector<16x16xbf16>, vector<16x16xf32> -> vector<16x16xf32>
    %c0_37 = arith.constant 0 : index
    %c0_38 = arith.constant 0 : index
    %61 = vector.load %arg15[%c0_37, %c0_38] : memref<16x1xf32, #tpu.memory_space<vmem>>, vector<16x1xf32>
    %62 = vector.broadcast %61 : vector<16x1xf32> to vector<16x16xf32>
    %63 = arith.addf %60, %62 : vector<16x16xf32>
    %c0_39 = arith.constant 0 : index
    %c0_40 = arith.constant 0 : index
    %64 = vector.load %arg16[%c0_39, %c0_40] : memref<32x16xbf16, #tpu.memory_space<vmem>>, vector<32x16xbf16>
    %65 = arith.truncf %63 : vector<16x16xf32> to vector<16x16xbf16>
    %cst_41 = arith.constant dense<0.000000e+00> : vector<32x16xf32>
    %66 = tpu.matmul %64, %65, %cst_41 {dimension_numbers = #tpu.dot_dimension_numbers<[1], [0], [0], [1], [0, 0, 1, 1], [], []>} : vector<32x16xbf16>, vector<16x16xbf16>, vector<32x16xf32> -> vector<32x16xf32>
    %c0_42 = arith.constant 0 : index
    %c0_43 = arith.constant 0 : index
    %67 = vector.load %arg17[%c0_42, %c0_43] : memref<32x1xf32, #tpu.memory_space<vmem>>, vector<32x1xf32>
    %68 = vector.broadcast %67 : vector<32x1xf32> to vector<32x16xf32>
    %69 = arith.addf %66, %68 : vector<32x16xf32>
    %70 = math.tanh %69 : vector<32x16xf32>
    %cst_44 = arith.constant 0.000000e+00 : f32
    %71 = vector.broadcast %cst_44 : f32 to vector<32x2xf32>
    %72 = tpu.concatenate %71, %70, %71 in 1 : vector<32x2xf32>, vector<32x16xf32>, vector<32x2xf32> -> vector<32x20xf32>
    %c0_45 = arith.constant 0 : index
    %c0_46 = arith.constant 0 : index
    %73 = vector.load %arg18[%c0_45, %c0_46] : memref<32x160xbf16, #tpu.memory_space<vmem>>, vector<32x160xbf16>
    %74 = vector.extract_strided_slice %72 {offsets = [0, 0], sizes = [32, 16], strides = [1, 1]} : vector<32x20xf32> to vector<32x16xf32>
    %75 = vector.extract_strided_slice %72 {offsets = [0, 1], sizes = [32, 16], strides = [1, 1]} : vector<32x20xf32> to vector<32x16xf32>
    %76 = vector.extract_strided_slice %72 {offsets = [0, 2], sizes = [32, 16], strides = [1, 1]} : vector<32x20xf32> to vector<32x16xf32>
    %77 = vector.extract_strided_slice %72 {offsets = [0, 3], sizes = [32, 16], strides = [1, 1]} : vector<32x20xf32> to vector<32x16xf32>
    %78 = vector.extract_strided_slice %72 {offsets = [0, 4], sizes = [32, 16], strides = [1, 1]} : vector<32x20xf32> to vector<32x16xf32>
    %79 = tpu.concatenate %74, %75, %76, %77, %78 in 0 : vector<32x16xf32>, vector<32x16xf32>, vector<32x16xf32>, vector<32x16xf32>, vector<32x16xf32> -> vector<160x16xf32>
    %80 = arith.truncf %79 : vector<160x16xf32> to vector<160x16xbf16>
    %cst_47 = arith.constant dense<0.000000e+00> : vector<32x16xf32>
    %81 = tpu.matmul %73, %80, %cst_47 {dimension_numbers = #tpu.dot_dimension_numbers<[1], [0], [0], [1], [0, 0, 1, 1], [], []>} : vector<32x160xbf16>, vector<160x16xbf16>, vector<32x16xf32> -> vector<32x16xf32>
    %82 = arith.truncf %81 : vector<32x16xf32> to vector<32x16xbf16>
    %c0_48 = arith.constant 0 : index
    %c0_49 = arith.constant 0 : index
    %83 = vector.load %arg20[%c0_48, %c0_49] : memref<16x8xbf16, #tpu.memory_space<vmem>>, vector<16x8xbf16>
    %cst_50 = arith.constant dense<0.000000e+00> : vector<32x8xf32>
    %84 = tpu.matmul %82, %83, %cst_50 {dimension_numbers = #tpu.dot_dimension_numbers<[1], [0], [0], [1], [0, 0, 1, 1], [], []>} : vector<32x16xbf16>, vector<16x8xbf16>, vector<32x8xf32> -> vector<32x8xf32>
    %c0_51 = arith.constant 0 : index
    %c0_52 = arith.constant 0 : index
    %85 = vector.load %arg19[%c0_51, %c0_52] : memref<32x1xf32, #tpu.memory_space<vmem>>, vector<32x1xf32>
    %86 = vector.broadcast %85 : vector<32x1xf32> to vector<32x8xf32>
    %87 = arith.addf %84, %86 : vector<32x8xf32>
    %88 = math.tanh %87 : vector<32x8xf32>
    %c0_53 = arith.constant 0 : index
    %c0_54 = arith.constant 0 : index
    %89 = vector.load %arg21[%c0_53, %c0_54] : memref<32x32xbf16, #tpu.memory_space<vmem>>, vector<32x32xbf16>
    %90 = arith.truncf %88 : vector<32x8xf32> to vector<32x8xbf16>
    %cst_55 = arith.constant dense<0.000000e+00> : vector<32x8xf32>
    %91 = tpu.matmul %89, %90, %cst_55 {dimension_numbers = #tpu.dot_dimension_numbers<[1], [0], [0], [1], [0, 0, 1, 1], [], []>} : vector<32x32xbf16>, vector<32x8xbf16>, vector<32x8xf32> -> vector<32x8xf32>
    %c0_56 = arith.constant 0 : index
    %c0_57 = arith.constant 0 : index
    %92 = vector.load %arg22[%c0_56, %c0_57] : memref<32x1xf32, #tpu.memory_space<vmem>>, vector<32x1xf32>
    %93 = vector.broadcast %92 : vector<32x1xf32> to vector<32x8xf32>
    %94 = arith.addf %91, %93 : vector<32x8xf32>
    %c0_58 = arith.constant 0 : index
    %c0_59 = arith.constant 0 : index
    %95 = vector.load %arg23[%c0_58, %c0_59] : memref<64x32xbf16, #tpu.memory_space<vmem>>, vector<64x32xbf16>
    %96 = arith.truncf %94 : vector<32x8xf32> to vector<32x8xbf16>
    %cst_60 = arith.constant dense<0.000000e+00> : vector<64x8xf32>
    %97 = tpu.matmul %95, %96, %cst_60 {dimension_numbers = #tpu.dot_dimension_numbers<[1], [0], [0], [1], [0, 0, 1, 1], [], []>} : vector<64x32xbf16>, vector<32x8xbf16>, vector<64x8xf32> -> vector<64x8xf32>
    %c0_61 = arith.constant 0 : index
    %c0_62 = arith.constant 0 : index
    %98 = vector.load %arg24[%c0_61, %c0_62] : memref<64x1xf32, #tpu.memory_space<vmem>>, vector<64x1xf32>
    %99 = vector.broadcast %98 : vector<64x1xf32> to vector<64x8xf32>
    %100 = arith.addf %97, %99 : vector<64x8xf32>
    %101 = math.tanh %100 : vector<64x8xf32>
    %cst_63 = arith.constant 0.000000e+00 : f32
    %102 = vector.broadcast %cst_63 : f32 to vector<64x2xf32>
    %103 = tpu.concatenate %102, %101, %102 in 1 : vector<64x2xf32>, vector<64x8xf32>, vector<64x2xf32> -> vector<64x12xf32>
    %c0_64 = arith.constant 0 : index
    %c0_65 = arith.constant 0 : index
    %104 = vector.load %arg25[%c0_64, %c0_65] : memref<64x320xbf16, #tpu.memory_space<vmem>>, vector<64x320xbf16>
    %105 = vector.extract_strided_slice %103 {offsets = [0, 0], sizes = [64, 8], strides = [1, 1]} : vector<64x12xf32> to vector<64x8xf32>
    %106 = vector.extract_strided_slice %103 {offsets = [0, 1], sizes = [64, 8], strides = [1, 1]} : vector<64x12xf32> to vector<64x8xf32>
    %107 = vector.extract_strided_slice %103 {offsets = [0, 2], sizes = [64, 8], strides = [1, 1]} : vector<64x12xf32> to vector<64x8xf32>
    %108 = vector.extract_strided_slice %103 {offsets = [0, 3], sizes = [64, 8], strides = [1, 1]} : vector<64x12xf32> to vector<64x8xf32>
    %109 = vector.extract_strided_slice %103 {offsets = [0, 4], sizes = [64, 8], strides = [1, 1]} : vector<64x12xf32> to vector<64x8xf32>
    %110 = tpu.concatenate %105, %106, %107, %108, %109 in 0 : vector<64x8xf32>, vector<64x8xf32>, vector<64x8xf32>, vector<64x8xf32>, vector<64x8xf32> -> vector<320x8xf32>
    %111 = arith.truncf %110 : vector<320x8xf32> to vector<320x8xbf16>
    %cst_66 = arith.constant dense<0.000000e+00> : vector<64x8xf32>
    %112 = tpu.matmul %104, %111, %cst_66 {dimension_numbers = #tpu.dot_dimension_numbers<[1], [0], [0], [1], [0, 0, 1, 1], [], []>} : vector<64x320xbf16>, vector<320x8xbf16>, vector<64x8xf32> -> vector<64x8xf32>
    %113 = arith.truncf %112 : vector<64x8xf32> to vector<64x8xbf16>
    %c0_67 = arith.constant 0 : index
    %c0_68 = arith.constant 0 : index
    %114 = vector.load %arg27[%c0_67, %c0_68] : memref<8x4xbf16, #tpu.memory_space<vmem>>, vector<8x4xbf16>
    %cst_69 = arith.constant dense<0.000000e+00> : vector<64x4xf32>
    %115 = tpu.matmul %113, %114, %cst_69 {dimension_numbers = #tpu.dot_dimension_numbers<[1], [0], [0], [1], [0, 0, 1, 1], [], []>} : vector<64x8xbf16>, vector<8x4xbf16>, vector<64x4xf32> -> vector<64x4xf32>
    %c0_70 = arith.constant 0 : index
    %c0_71 = arith.constant 0 : index
    %116 = vector.load %arg26[%c0_70, %c0_71] : memref<64x1xf32, #tpu.memory_space<vmem>>, vector<64x1xf32>
    %117 = vector.broadcast %116 : vector<64x1xf32> to vector<64x4xf32>
    %118 = arith.addf %115, %117 : vector<64x4xf32>
    %119 = math.tanh %118 : vector<64x4xf32>
    %c0_72 = arith.constant 0 : index
    %c0_73 = arith.constant 0 : index
    %120 = vector.load %arg28[%c0_72, %c0_73] : memref<64x64xbf16, #tpu.memory_space<vmem>>, vector<64x64xbf16>
    %121 = arith.truncf %119 : vector<64x4xf32> to vector<64x4xbf16>
    %cst_74 = arith.constant dense<0.000000e+00> : vector<64x4xf32>
    %122 = tpu.matmul %120, %121, %cst_74 {dimension_numbers = #tpu.dot_dimension_numbers<[1], [0], [0], [1], [0, 0, 1, 1], [], []>} : vector<64x64xbf16>, vector<64x4xbf16>, vector<64x4xf32> -> vector<64x4xf32>
    %c0_75 = arith.constant 0 : index
    %c0_76 = arith.constant 0 : index
    %123 = vector.load %arg29[%c0_75, %c0_76] : memref<64x1xf32, #tpu.memory_space<vmem>>, vector<64x1xf32>
    %124 = vector.broadcast %123 : vector<64x1xf32> to vector<64x4xf32>
    %125 = arith.addf %122, %124 : vector<64x4xf32>
    %c0_77 = arith.constant 0 : index
    %c0_78 = arith.constant 0 : index
    %126 = vector.load %arg30[%c0_77, %c0_78] : memref<128x64xbf16, #tpu.memory_space<vmem>>, vector<128x64xbf16>
    %127 = arith.truncf %125 : vector<64x4xf32> to vector<64x4xbf16>
    %cst_79 = arith.constant dense<0.000000e+00> : vector<128x4xf32>
    %128 = tpu.matmul %126, %127, %cst_79 {dimension_numbers = #tpu.dot_dimension_numbers<[1], [0], [0], [1], [0, 0, 1, 1], [], []>} : vector<128x64xbf16>, vector<64x4xbf16>, vector<128x4xf32> -> vector<128x4xf32>
    %c0_80 = arith.constant 0 : index
    %c0_81 = arith.constant 0 : index
    %129 = vector.load %arg31[%c0_80, %c0_81] : memref<128x1xf32, #tpu.memory_space<vmem>>, vector<128x1xf32>
    %130 = vector.broadcast %129 : vector<128x1xf32> to vector<128x4xf32>
    %131 = arith.addf %128, %130 : vector<128x4xf32>
    %132 = math.tanh %131 : vector<128x4xf32>
    %cst_82 = arith.constant 0.000000e+00 : f32
    %133 = vector.broadcast %cst_82 : f32 to vector<128x2xf32>
    %134 = tpu.concatenate %133, %132, %133 in 1 : vector<128x2xf32>, vector<128x4xf32>, vector<128x2xf32> -> vector<128x8xf32>
    %c0_83 = arith.constant 0 : index
    %c0_84 = arith.constant 0 : index
    %135 = vector.load %arg32[%c0_83, %c0_84] : memref<128x640xbf16, #tpu.memory_space<vmem>>, vector<128x640xbf16>
    %136 = vector.extract_strided_slice %134 {offsets = [0, 0], sizes = [128, 4], strides = [1, 1]} : vector<128x8xf32> to vector<128x4xf32>
    %137 = vector.extract_strided_slice %134 {offsets = [0, 1], sizes = [128, 4], strides = [1, 1]} : vector<128x8xf32> to vector<128x4xf32>
    %138 = vector.extract_strided_slice %134 {offsets = [0, 2], sizes = [128, 4], strides = [1, 1]} : vector<128x8xf32> to vector<128x4xf32>
    %139 = vector.extract_strided_slice %134 {offsets = [0, 3], sizes = [128, 4], strides = [1, 1]} : vector<128x8xf32> to vector<128x4xf32>
    %140 = vector.extract_strided_slice %134 {offsets = [0, 4], sizes = [128, 4], strides = [1, 1]} : vector<128x8xf32> to vector<128x4xf32>
    %141 = tpu.concatenate %136, %137, %138, %139, %140 in 0 : vector<128x4xf32>, vector<128x4xf32>, vector<128x4xf32>, vector<128x4xf32>, vector<128x4xf32> -> vector<640x4xf32>
    %142 = arith.truncf %141 : vector<640x4xf32> to vector<640x4xbf16>
    %cst_85 = arith.constant dense<0.000000e+00> : vector<128x4xf32>
    %143 = tpu.matmul %135, %142, %cst_85 {dimension_numbers = #tpu.dot_dimension_numbers<[1], [0], [0], [1], [0, 0, 1, 1], [], []>} : vector<128x640xbf16>, vector<640x4xbf16>, vector<128x4xf32> -> vector<128x4xf32>
    %144 = arith.truncf %143 : vector<128x4xf32> to vector<128x4xbf16>
    %c0_86 = arith.constant 0 : index
    %c0_87 = arith.constant 0 : index
    %145 = vector.load %arg34[%c0_86, %c0_87] : memref<4x2xbf16, #tpu.memory_space<vmem>>, vector<4x2xbf16>
    %cst_88 = arith.constant dense<0.000000e+00> : vector<128x2xf32>
    %146 = tpu.matmul %144, %145, %cst_88 {dimension_numbers = #tpu.dot_dimension_numbers<[1], [0], [0], [1], [0, 0, 1, 1], [], []>} : vector<128x4xbf16>, vector<4x2xbf16>, vector<128x2xf32> -> vector<128x2xf32>
    %c0_89 = arith.constant 0 : index
    %c0_90 = arith.constant 0 : index
    %147 = vector.load %arg33[%c0_89, %c0_90] : memref<128x1xf32, #tpu.memory_space<vmem>>, vector<128x1xf32>
    %148 = vector.broadcast %147 : vector<128x1xf32> to vector<128x2xf32>
    %149 = arith.addf %146, %148 : vector<128x2xf32>
    %150 = math.tanh %149 : vector<128x2xf32>
    %c0_91 = arith.constant 0 : index
    %c0_92 = arith.constant 0 : index
    %151 = vector.load %arg35[%c0_91, %c0_92] : memref<96x128xbf16, #tpu.memory_space<vmem>>, vector<96x128xbf16>
    %152 = arith.truncf %150 : vector<128x2xf32> to vector<128x2xbf16>
    %cst_93 = arith.constant dense<0.000000e+00> : vector<96x2xf32>
    %153 = tpu.matmul %151, %152, %cst_93 {dimension_numbers = #tpu.dot_dimension_numbers<[1], [0], [0], [1], [0, 0, 1, 1], [], []>} : vector<96x128xbf16>, vector<128x2xbf16>, vector<96x2xf32> -> vector<96x2xf32>
    %c0_94 = arith.constant 0 : index
    %c0_95 = arith.constant 0 : index
    %154 = vector.load %arg36[%c0_94, %c0_95] : memref<96x1xf32, #tpu.memory_space<vmem>>, vector<96x1xf32>
    %155 = vector.broadcast %154 : vector<96x1xf32> to vector<96x2xf32>
    %156 = arith.addf %153, %155 : vector<96x2xf32>
    %157 = arith.truncf %156 : vector<96x2xf32> to vector<96x2xbf16>
    %c0_96 = arith.constant 0 : index
    %c0_97 = arith.constant 0 : index
    %158 = vector.load %arg37[%c0_96, %c0_97] : memref<2x8xbf16, #tpu.memory_space<vmem>>, vector<2x8xbf16>
    %cst_98 = arith.constant dense<0.000000e+00> : vector<96x8xf32>
    %159 = tpu.matmul %157, %158, %cst_98 {dimension_numbers = #tpu.dot_dimension_numbers<[1], [0], [0], [1], [0, 0, 1, 1], [], []>} : vector<96x2xbf16>, vector<2x8xbf16>, vector<96x8xf32> -> vector<96x8xf32>
    %c0_99 = arith.constant 0 : index
    %c0_100 = arith.constant 0 : index
    %160 = vector.load %arg38[%c0_99, %c0_100] : memref<64x480xbf16, #tpu.memory_space<vmem>>, vector<64x480xbf16>
    %161 = vector.extract_strided_slice %159 {offsets = [0, 0], sizes = [96, 4], strides = [1, 1]} : vector<96x8xf32> to vector<96x4xf32>
    %162 = vector.extract_strided_slice %159 {offsets = [0, 1], sizes = [96, 4], strides = [1, 1]} : vector<96x8xf32> to vector<96x4xf32>
    %163 = vector.extract_strided_slice %159 {offsets = [0, 2], sizes = [96, 4], strides = [1, 1]} : vector<96x8xf32> to vector<96x4xf32>
    %164 = vector.extract_strided_slice %159 {offsets = [0, 3], sizes = [96, 4], strides = [1, 1]} : vector<96x8xf32> to vector<96x4xf32>
    %165 = vector.extract_strided_slice %159 {offsets = [0, 4], sizes = [96, 4], strides = [1, 1]} : vector<96x8xf32> to vector<96x4xf32>
    %166 = tpu.concatenate %161, %162, %163, %164, %165 in 0 : vector<96x4xf32>, vector<96x4xf32>, vector<96x4xf32>, vector<96x4xf32>, vector<96x4xf32> -> vector<480x4xf32>
    %167 = arith.truncf %166 : vector<480x4xf32> to vector<480x4xbf16>
    %cst_101 = arith.constant dense<0.000000e+00> : vector<64x4xf32>
    %168 = tpu.matmul %160, %167, %cst_101 {dimension_numbers = #tpu.dot_dimension_numbers<[1], [0], [0], [1], [0, 0, 1, 1], [], []>} : vector<64x480xbf16>, vector<480x4xbf16>, vector<64x4xf32> -> vector<64x4xf32>
    %c0_102 = arith.constant 0 : index
    %c0_103 = arith.constant 0 : index
    %169 = vector.load %arg39[%c0_102, %c0_103] : memref<64x1xf32, #tpu.memory_space<vmem>>, vector<64x1xf32>
    %170 = vector.broadcast %169 : vector<64x1xf32> to vector<64x4xf32>
    %171 = arith.addf %168, %170 : vector<64x4xf32>
    %172 = math.tanh %171 : vector<64x4xf32>
    %173 = arith.truncf %172 : vector<64x4xf32> to vector<64x4xbf16>
    %c0_104 = arith.constant 0 : index
    %c0_105 = arith.constant 0 : index
    %174 = vector.load %arg40[%c0_104, %c0_105] : memref<4x12xbf16, #tpu.memory_space<vmem>>, vector<4x12xbf16>
    %cst_106 = arith.constant dense<0.000000e+00> : vector<64x12xf32>
    %175 = tpu.matmul %173, %174, %cst_106 {dimension_numbers = #tpu.dot_dimension_numbers<[1], [0], [0], [1], [0, 0, 1, 1], [], []>} : vector<64x4xbf16>, vector<4x12xbf16>, vector<64x12xf32> -> vector<64x12xf32>
    %c0_107 = arith.constant 0 : index
    %c0_108 = arith.constant 0 : index
    %176 = vector.load %arg41[%c0_107, %c0_108] : memref<32x320xbf16, #tpu.memory_space<vmem>>, vector<32x320xbf16>
    %177 = vector.extract_strided_slice %175 {offsets = [0, 0], sizes = [64, 8], strides = [1, 1]} : vector<64x12xf32> to vector<64x8xf32>
    %178 = vector.extract_strided_slice %175 {offsets = [0, 1], sizes = [64, 8], strides = [1, 1]} : vector<64x12xf32> to vector<64x8xf32>
    %179 = vector.extract_strided_slice %175 {offsets = [0, 2], sizes = [64, 8], strides = [1, 1]} : vector<64x12xf32> to vector<64x8xf32>
    %180 = vector.extract_strided_slice %175 {offsets = [0, 3], sizes = [64, 8], strides = [1, 1]} : vector<64x12xf32> to vector<64x8xf32>
    %181 = vector.extract_strided_slice %175 {offsets = [0, 4], sizes = [64, 8], strides = [1, 1]} : vector<64x12xf32> to vector<64x8xf32>
    %182 = tpu.concatenate %177, %178, %179, %180, %181 in 0 : vector<64x8xf32>, vector<64x8xf32>, vector<64x8xf32>, vector<64x8xf32>, vector<64x8xf32> -> vector<320x8xf32>
    %183 = arith.truncf %182 : vector<320x8xf32> to vector<320x8xbf16>
    %cst_109 = arith.constant dense<0.000000e+00> : vector<32x8xf32>
    %184 = tpu.matmul %176, %183, %cst_109 {dimension_numbers = #tpu.dot_dimension_numbers<[1], [0], [0], [1], [0, 0, 1, 1], [], []>} : vector<32x320xbf16>, vector<320x8xbf16>, vector<32x8xf32> -> vector<32x8xf32>
    %c0_110 = arith.constant 0 : index
    %c0_111 = arith.constant 0 : index
    %185 = vector.load %arg42[%c0_110, %c0_111] : memref<32x1xf32, #tpu.memory_space<vmem>>, vector<32x1xf32>
    %186 = vector.broadcast %185 : vector<32x1xf32> to vector<32x8xf32>
    %187 = arith.addf %184, %186 : vector<32x8xf32>
    %188 = math.tanh %187 : vector<32x8xf32>
    %189 = arith.truncf %188 : vector<32x8xf32> to vector<32x8xbf16>
    %c0_112 = arith.constant 0 : index
    %c0_113 = arith.constant 0 : index
    %190 = vector.load %arg43[%c0_112, %c0_113] : memref<8x20xbf16, #tpu.memory_space<vmem>>, vector<8x20xbf16>
    %cst_114 = arith.constant dense<0.000000e+00> : vector<32x20xf32>
    %191 = tpu.matmul %189, %190, %cst_114 {dimension_numbers = #tpu.dot_dimension_numbers<[1], [0], [0], [1], [0, 0, 1, 1], [], []>} : vector<32x8xbf16>, vector<8x20xbf16>, vector<32x20xf32> -> vector<32x20xf32>
    %c0_115 = arith.constant 0 : index
    %c0_116 = arith.constant 0 : index
    %192 = vector.load %arg44[%c0_115, %c0_116] : memref<16x160xbf16, #tpu.memory_space<vmem>>, vector<16x160xbf16>
    %193 = vector.extract_strided_slice %191 {offsets = [0, 0], sizes = [32, 16], strides = [1, 1]} : vector<32x20xf32> to vector<32x16xf32>
    %194 = vector.extract_strided_slice %191 {offsets = [0, 1], sizes = [32, 16], strides = [1, 1]} : vector<32x20xf32> to vector<32x16xf32>
    %195 = vector.extract_strided_slice %191 {offsets = [0, 2], sizes = [32, 16], strides = [1, 1]} : vector<32x20xf32> to vector<32x16xf32>
    %196 = vector.extract_strided_slice %191 {offsets = [0, 3], sizes = [32, 16], strides = [1, 1]} : vector<32x20xf32> to vector<32x16xf32>
    %197 = vector.extract_strided_slice %191 {offsets = [0, 4], sizes = [32, 16], strides = [1, 1]} : vector<32x20xf32> to vector<32x16xf32>
    %198 = tpu.concatenate %193, %194, %195, %196, %197 in 0 : vector<32x16xf32>, vector<32x16xf32>, vector<32x16xf32>, vector<32x16xf32>, vector<32x16xf32> -> vector<160x16xf32>
    %199 = arith.truncf %198 : vector<160x16xf32> to vector<160x16xbf16>
    %cst_117 = arith.constant dense<0.000000e+00> : vector<16x16xf32>
    %200 = tpu.matmul %192, %199, %cst_117 {dimension_numbers = #tpu.dot_dimension_numbers<[1], [0], [0], [1], [0, 0, 1, 1], [], []>} : vector<16x160xbf16>, vector<160x16xbf16>, vector<16x16xf32> -> vector<16x16xf32>
    %c0_118 = arith.constant 0 : index
    %c0_119 = arith.constant 0 : index
    %201 = vector.load %arg45[%c0_118, %c0_119] : memref<16x1xf32, #tpu.memory_space<vmem>>, vector<16x1xf32>
    %202 = vector.broadcast %201 : vector<16x1xf32> to vector<16x16xf32>
    %203 = arith.addf %200, %202 : vector<16x16xf32>
    %204 = math.tanh %203 : vector<16x16xf32>
    %205 = arith.truncf %204 : vector<16x16xf32> to vector<16x16xbf16>
    %c0_120 = arith.constant 0 : index
    %c0_121 = arith.constant 0 : index
    %206 = vector.load %arg46[%c0_120, %c0_121] : memref<16x36xbf16, #tpu.memory_space<vmem>>, vector<16x36xbf16>
    %cst_122 = arith.constant dense<0.000000e+00> : vector<16x36xf32>
    %207 = tpu.matmul %205, %206, %cst_122 {dimension_numbers = #tpu.dot_dimension_numbers<[1], [0], [0], [1], [0, 0, 1, 1], [], []>} : vector<16x16xbf16>, vector<16x36xbf16>, vector<16x36xf32> -> vector<16x36xf32>
    %c0_123 = arith.constant 0 : index
    %c0_124 = arith.constant 0 : index
    %208 = vector.load %arg47[%c0_123, %c0_124] : memref<8x80xbf16, #tpu.memory_space<vmem>>, vector<8x80xbf16>
    %209 = vector.extract_strided_slice %207 {offsets = [0, 0], sizes = [16, 32], strides = [1, 1]} : vector<16x36xf32> to vector<16x32xf32>
    %210 = vector.extract_strided_slice %207 {offsets = [0, 1], sizes = [16, 32], strides = [1, 1]} : vector<16x36xf32> to vector<16x32xf32>
    %211 = vector.extract_strided_slice %207 {offsets = [0, 2], sizes = [16, 32], strides = [1, 1]} : vector<16x36xf32> to vector<16x32xf32>
    %212 = vector.extract_strided_slice %207 {offsets = [0, 3], sizes = [16, 32], strides = [1, 1]} : vector<16x36xf32> to vector<16x32xf32>
    %213 = vector.extract_strided_slice %207 {offsets = [0, 4], sizes = [16, 32], strides = [1, 1]} : vector<16x36xf32> to vector<16x32xf32>
    %214 = tpu.concatenate %209, %210, %211, %212, %213 in 0 : vector<16x32xf32>, vector<16x32xf32>, vector<16x32xf32>, vector<16x32xf32>, vector<16x32xf32> -> vector<80x32xf32>
    %215 = arith.truncf %214 : vector<80x32xf32> to vector<80x32xbf16>
    %cst_125 = arith.constant dense<0.000000e+00> : vector<8x32xf32>
    %216 = tpu.matmul %208, %215, %cst_125 {dimension_numbers = #tpu.dot_dimension_numbers<[1], [0], [0], [1], [0, 0, 1, 1], [], []>} : vector<8x80xbf16>, vector<80x32xbf16>, vector<8x32xf32> -> vector<8x32xf32>
    %c0_126 = arith.constant 0 : index
    %c0_127 = arith.constant 0 : index
    %217 = vector.load %arg48[%c0_126, %c0_127] : memref<8x1xf32, #tpu.memory_space<vmem>>, vector<8x1xf32>
    %218 = vector.broadcast %217 : vector<8x1xf32> to vector<8x32xf32>
    %219 = arith.addf %216, %218 : vector<8x32xf32>
    %220 = math.tanh %219 : vector<8x32xf32>
    %221 = arith.truncf %220 : vector<8x32xf32> to vector<8x32xbf16>
    %c0_128 = arith.constant 0 : index
    %c0_129 = arith.constant 0 : index
    %222 = vector.load %arg49[%c0_128, %c0_129] : memref<32x68xbf16, #tpu.memory_space<vmem>>, vector<32x68xbf16>
    %cst_130 = arith.constant dense<0.000000e+00> : vector<8x68xf32>
    %223 = tpu.matmul %221, %222, %cst_130 {dimension_numbers = #tpu.dot_dimension_numbers<[1], [0], [0], [1], [0, 0, 1, 1], [], []>} : vector<8x32xbf16>, vector<32x68xbf16>, vector<8x68xf32> -> vector<8x68xf32>
    %c0_131 = arith.constant 0 : index
    %c0_132 = arith.constant 0 : index
    %224 = vector.load %arg50[%c0_131, %c0_132] : memref<8x40xbf16, #tpu.memory_space<vmem>>, vector<8x40xbf16>
    %225 = vector.extract_strided_slice %223 {offsets = [0, 0], sizes = [8, 64], strides = [1, 1]} : vector<8x68xf32> to vector<8x64xf32>
    %226 = vector.extract_strided_slice %223 {offsets = [0, 1], sizes = [8, 64], strides = [1, 1]} : vector<8x68xf32> to vector<8x64xf32>
    %227 = vector.extract_strided_slice %223 {offsets = [0, 2], sizes = [8, 64], strides = [1, 1]} : vector<8x68xf32> to vector<8x64xf32>
    %228 = vector.extract_strided_slice %223 {offsets = [0, 3], sizes = [8, 64], strides = [1, 1]} : vector<8x68xf32> to vector<8x64xf32>
    %229 = vector.extract_strided_slice %223 {offsets = [0, 4], sizes = [8, 64], strides = [1, 1]} : vector<8x68xf32> to vector<8x64xf32>
    %230 = tpu.concatenate %225, %226, %227, %228, %229 in 0 : vector<8x64xf32>, vector<8x64xf32>, vector<8x64xf32>, vector<8x64xf32>, vector<8x64xf32> -> vector<40x64xf32>
    %231 = arith.truncf %230 : vector<40x64xf32> to vector<40x64xbf16>
    %cst_133 = arith.constant dense<0.000000e+00> : vector<8x64xf32>
    %232 = tpu.matmul %224, %231, %cst_133 {dimension_numbers = #tpu.dot_dimension_numbers<[1], [0], [0], [1], [0, 0, 1, 1], [], []>} : vector<8x40xbf16>, vector<40x64xbf16>, vector<8x64xf32> -> vector<8x64xf32>
    %c0_134 = arith.constant 0 : index
    %c0_135 = arith.constant 0 : index
    %233 = vector.load %arg51[%c0_134, %c0_135] : memref<8x1xf32, #tpu.memory_space<vmem>>, vector<8x1xf32>
    %234 = vector.broadcast %233 : vector<8x1xf32> to vector<8x64xf32>
    %235 = arith.addf %232, %234 : vector<8x64xf32>
    %236 = math.tanh %235 : vector<8x64xf32>
    %cst_136 = arith.constant 0.000000e+00 : f32
    %237 = vector.broadcast %cst_136 : f32 to vector<8x2xf32>
    %238 = tpu.concatenate %237, %236, %237 in 1 : vector<8x2xf32>, vector<8x64xf32>, vector<8x2xf32> -> vector<8x68xf32>
    %c0_137 = arith.constant 0 : index
    %c0_138 = arith.constant 0 : index
    %239 = vector.load %arg52[%c0_137, %c0_138] : memref<3x40xbf16, #tpu.memory_space<vmem>>, vector<3x40xbf16>
    %240 = vector.extract_strided_slice %238 {offsets = [0, 0], sizes = [8, 64], strides = [1, 1]} : vector<8x68xf32> to vector<8x64xf32>
    %241 = vector.extract_strided_slice %238 {offsets = [0, 1], sizes = [8, 64], strides = [1, 1]} : vector<8x68xf32> to vector<8x64xf32>
    %242 = vector.extract_strided_slice %238 {offsets = [0, 2], sizes = [8, 64], strides = [1, 1]} : vector<8x68xf32> to vector<8x64xf32>
    %243 = vector.extract_strided_slice %238 {offsets = [0, 3], sizes = [8, 64], strides = [1, 1]} : vector<8x68xf32> to vector<8x64xf32>
    %244 = vector.extract_strided_slice %238 {offsets = [0, 4], sizes = [8, 64], strides = [1, 1]} : vector<8x68xf32> to vector<8x64xf32>
    %245 = tpu.concatenate %240, %241, %242, %243, %244 in 0 : vector<8x64xf32>, vector<8x64xf32>, vector<8x64xf32>, vector<8x64xf32>, vector<8x64xf32> -> vector<40x64xf32>
    %246 = arith.truncf %245 : vector<40x64xf32> to vector<40x64xbf16>
    %cst_139 = arith.constant dense<0.000000e+00> : vector<3x64xf32>
    %247 = tpu.matmul %239, %246, %cst_139 {dimension_numbers = #tpu.dot_dimension_numbers<[1], [0], [0], [1], [0, 0, 1, 1], [], []>} : vector<3x40xbf16>, vector<40x64xbf16>, vector<3x64xf32> -> vector<3x64xf32>
    %c0_140 = arith.constant 0 : index
    %c0_141 = arith.constant 0 : index
    %248 = vector.load %arg53[%c0_140, %c0_141] : memref<3x1xf32, #tpu.memory_space<vmem>>, vector<3x1xf32>
    %249 = vector.broadcast %248 : vector<3x1xf32> to vector<3x64xf32>
    %250 = arith.addf %247, %249 : vector<3x64xf32>
    %c0_142 = arith.constant 0 : index
    %c0_143 = arith.constant 0 : index
    %c0_144 = arith.constant 0 : index
    %251 = vector.load %arg54[%c0_142, %c0_143, %c0_144] : memref<2x3x64xf32, #tpu.memory_space<vmem>>, vector<1x3x64xf32>
    %252 = vector.shape_cast %251 : vector<1x3x64xf32> to vector<3x64xf32>
    %253 = vector.shape_cast %250 : vector<3x64xf32> to vector<1x3x64xf32>
    tpu.vector_store %arg54[%c0_142, %c0_143, %c0_144], %253 {strides = array<i32>} : memref<2x3x64xf32, #tpu.memory_space<vmem>>, vector<1x3x64xf32>,
    %c1 = arith.constant 1 : index
    %c0_145 = arith.constant 0 : index
    %c0_146 = arith.constant 0 : index
    %254 = vector.load %arg1[%c1, %c0_145, %c0_146] : memref<2x3x64xf32, #tpu.memory_space<vmem>>, vector<1x3x64xf32>
    %255 = vector.shape_cast %254 : vector<1x3x64xf32> to vector<3x64xf32>
    %c0_147 = arith.constant 0 : index
    %c0_148 = arith.constant 0 : index
    %256 = vector.load %arg2[%c0_147, %c0_148] : memref<6x3xbf16, #tpu.memory_space<vmem>>, vector<6x3xbf16>
    %257 = arith.truncf %255 : vector<3x64xf32> to vector<3x64xbf16>
    %cst_149 = arith.constant dense<0.000000e+00> : vector<6x64xf32>
    %258 = tpu.matmul %256, %257, %cst_149 {dimension_numbers = #tpu.dot_dimension_numbers<[1], [0], [0], [1], [0, 0, 1, 1], [], []>} : vector<6x3xbf16>, vector<3x64xbf16>, vector<6x64xf32> -> vector<6x64xf32>
    %c0_150 = arith.constant 0 : index
    %c0_151 = arith.constant 0 : index
    %259 = vector.load %arg3[%c0_150, %c0_151] : memref<6x1xf32, #tpu.memory_space<vmem>>, vector<6x1xf32>
    %260 = vector.broadcast %259 : vector<6x1xf32> to vector<6x64xf32>
    %261 = arith.addf %258, %260 : vector<6x64xf32>
    %262 = math.tanh %261 : vector<6x64xf32>
    %cst_152 = arith.constant 0.000000e+00 : f32
    %263 = vector.broadcast %cst_152 : f32 to vector<6x2xf32>
    %264 = tpu.concatenate %263, %262, %263 in 1 : vector<6x2xf32>, vector<6x64xf32>, vector<6x2xf32> -> vector<6x68xf32>
    %c0_153 = arith.constant 0 : index
    %c0_154 = arith.constant 0 : index
    %265 = vector.load %arg4[%c0_153, %c0_154] : memref<6x30xbf16, #tpu.memory_space<vmem>>, vector<6x30xbf16>
    %266 = vector.extract_strided_slice %264 {offsets = [0, 0], sizes = [6, 64], strides = [1, 1]} : vector<6x68xf32> to vector<6x64xf32>
    %267 = vector.extract_strided_slice %264 {offsets = [0, 1], sizes = [6, 64], strides = [1, 1]} : vector<6x68xf32> to vector<6x64xf32>
    %268 = vector.extract_strided_slice %264 {offsets = [0, 2], sizes = [6, 64], strides = [1, 1]} : vector<6x68xf32> to vector<6x64xf32>
    %269 = vector.extract_strided_slice %264 {offsets = [0, 3], sizes = [6, 64], strides = [1, 1]} : vector<6x68xf32> to vector<6x64xf32>
    %270 = vector.extract_strided_slice %264 {offsets = [0, 4], sizes = [6, 64], strides = [1, 1]} : vector<6x68xf32> to vector<6x64xf32>
    %271 = tpu.concatenate %266, %267, %268, %269, %270 in 0 : vector<6x64xf32>, vector<6x64xf32>, vector<6x64xf32>, vector<6x64xf32>, vector<6x64xf32> -> vector<30x64xf32>
    %272 = arith.truncf %271 : vector<30x64xf32> to vector<30x64xbf16>
    %cst_155 = arith.constant dense<0.000000e+00> : vector<6x64xf32>
    %273 = tpu.matmul %265, %272, %cst_155 {dimension_numbers = #tpu.dot_dimension_numbers<[1], [0], [0], [1], [0, 0, 1, 1], [], []>} : vector<6x30xbf16>, vector<30x64xbf16>, vector<6x64xf32> -> vector<6x64xf32>
    %274 = arith.truncf %273 : vector<6x64xf32> to vector<6x64xbf16>
    %c0_156 = arith.constant 0 : index
    %c0_157 = arith.constant 0 : index
    %275 = vector.load %arg6[%c0_156, %c0_157] : memref<64x32xbf16, #tpu.memory_space<vmem>>, vector<64x32xbf16>
    %cst_158 = arith.constant dense<0.000000e+00> : vector<6x32xf32>
    %276 = tpu.matmul %274, %275, %cst_158 {dimension_numbers = #tpu.dot_dimension_numbers<[1], [0], [0], [1], [0, 0, 1, 1], [], []>} : vector<6x64xbf16>, vector<64x32xbf16>, vector<6x32xf32> -> vector<6x32xf32>
    %c0_159 = arith.constant 0 : index
    %c0_160 = arith.constant 0 : index
    %277 = vector.load %arg5[%c0_159, %c0_160] : memref<6x1xf32, #tpu.memory_space<vmem>>, vector<6x1xf32>
    %278 = vector.broadcast %277 : vector<6x1xf32> to vector<6x32xf32>
    %279 = arith.addf %276, %278 : vector<6x32xf32>
    %280 = math.tanh %279 : vector<6x32xf32>
    %c0_161 = arith.constant 0 : index
    %c0_162 = arith.constant 0 : index
    %281 = vector.load %arg7[%c0_161, %c0_162] : memref<8x6xbf16, #tpu.memory_space<vmem>>, vector<8x6xbf16>
    %282 = arith.truncf %280 : vector<6x32xf32> to vector<6x32xbf16>
    %cst_163 = arith.constant dense<0.000000e+00> : vector<8x32xf32>
    %283 = tpu.matmul %281, %282, %cst_163 {dimension_numbers = #tpu.dot_dimension_numbers<[1], [0], [0], [1], [0, 0, 1, 1], [], []>} : vector<8x6xbf16>, vector<6x32xbf16>, vector<8x32xf32> -> vector<8x32xf32>
    %c0_164 = arith.constant 0 : index
    %c0_165 = arith.constant 0 : index
    %284 = vector.load %arg8[%c0_164, %c0_165] : memref<8x1xf32, #tpu.memory_space<vmem>>, vector<8x1xf32>
    %285 = vector.broadcast %284 : vector<8x1xf32> to vector<8x32xf32>
    %286 = arith.addf %283, %285 : vector<8x32xf32>
    %c0_166 = arith.constant 0 : index
    %c0_167 = arith.constant 0 : index
    %287 = vector.load %arg9[%c0_166, %c0_167] : memref<16x8xbf16, #tpu.memory_space<vmem>>, vector<16x8xbf16>
    %288 = arith.truncf %286 : vector<8x32xf32> to vector<8x32xbf16>
    %cst_168 = arith.constant dense<0.000000e+00> : vector<16x32xf32>
    %289 = tpu.matmul %287, %288, %cst_168 {dimension_numbers = #tpu.dot_dimension_numbers<[1], [0], [0], [1], [0, 0, 1, 1], [], []>} : vector<16x8xbf16>, vector<8x32xbf16>, vector<16x32xf32> -> vector<16x32xf32>
    %c0_169 = arith.constant 0 : index
    %c0_170 = arith.constant 0 : index
    %290 = vector.load %arg10[%c0_169, %c0_170] : memref<16x1xf32, #tpu.memory_space<vmem>>, vector<16x1xf32>
    %291 = vector.broadcast %290 : vector<16x1xf32> to vector<16x32xf32>
    %292 = arith.addf %289, %291 : vector<16x32xf32>
    %293 = math.tanh %292 : vector<16x32xf32>
    %cst_171 = arith.constant 0.000000e+00 : f32
    %294 = vector.broadcast %cst_171 : f32 to vector<16x2xf32>
    %295 = tpu.concatenate %294, %293, %294 in 1 : vector<16x2xf32>, vector<16x32xf32>, vector<16x2xf32> -> vector<16x36xf32>
    %c0_172 = arith.constant 0 : index
    %c0_173 = arith.constant 0 : index
    %296 = vector.load %arg11[%c0_172, %c0_173] : memref<16x80xbf16, #tpu.memory_space<vmem>>, vector<16x80xbf16>
    %297 = vector.extract_strided_slice %295 {offsets = [0, 0], sizes = [16, 32], strides = [1, 1]} : vector<16x36xf32> to vector<16x32xf32>
    %298 = vector.extract_strided_slice %295 {offsets = [0, 1], sizes = [16, 32], strides = [1, 1]} : vector<16x36xf32> to vector<16x32xf32>
    %299 = vector.extract_strided_slice %295 {offsets = [0, 2], sizes = [16, 32], strides = [1, 1]} : vector<16x36xf32> to vector<16x32xf32>
    %300 = vector.extract_strided_slice %295 {offsets = [0, 3], sizes = [16, 32], strides = [1, 1]} : vector<16x36xf32> to vector<16x32xf32>
    %301 = vector.extract_strided_slice %295 {offsets = [0, 4], sizes = [16, 32], strides = [1, 1]} : vector<16x36xf32> to vector<16x32xf32>
    %302 = tpu.concatenate %297, %298, %299, %300, %301 in 0 : vector<16x32xf32>, vector<16x32xf32>, vector<16x32xf32>, vector<16x32xf32>, vector<16x32xf32> -> vector<80x32xf32>
    %303 = arith.truncf %302 : vector<80x32xf32> to vector<80x32xbf16>
    %cst_174 = arith.constant dense<0.000000e+00> : vector<16x32xf32>
    %304 = tpu.matmul %296, %303, %cst_174 {dimension_numbers = #tpu.dot_dimension_numbers<[1], [0], [0], [1], [0, 0, 1, 1], [], []>} : vector<16x80xbf16>, vector<80x32xbf16>, vector<16x32xf32> -> vector<16x32xf32>
    %305 = arith.truncf %304 : vector<16x32xf32> to vector<16x32xbf16>
    %c0_175 = arith.constant 0 : index
    %c0_176 = arith.constant 0 : index
    %306 = vector.load %arg13[%c0_175, %c0_176] : memref<32x16xbf16, #tpu.memory_space<vmem>>, vector<32x16xbf16>
    %cst_177 = arith.constant dense<0.000000e+00> : vector<16x16xf32>
    %307 = tpu.matmul %305, %306, %cst_177 {dimension_numbers = #tpu.dot_dimension_numbers<[1], [0], [0], [1], [0, 0, 1, 1], [], []>} : vector<16x32xbf16>, vector<32x16xbf16>, vector<16x16xf32> -> vector<16x16xf32>
    %c0_178 = arith.constant 0 : index
    %c0_179 = arith.constant 0 : index
    %308 = vector.load %arg12[%c0_178, %c0_179] : memref<16x1xf32, #tpu.memory_space<vmem>>, vector<16x1xf32>
    %309 = vector.broadcast %308 : vector<16x1xf32> to vector<16x16xf32>
    %310 = arith.addf %307, %309 : vector<16x16xf32>
    %311 = math.tanh %310 : vector<16x16xf32>
    %c0_180 = arith.constant 0 : index
    %c0_181 = arith.constant 0 : index
    %312 = vector.load %arg14[%c0_180, %c0_181] : memref<16x16xbf16, #tpu.memory_space<vmem>>, vector<16x16xbf16>
    %313 = arith.truncf %311 : vector<16x16xf32> to vector<16x16xbf16>
    %cst_182 = arith.constant dense<0.000000e+00> : vector<16x16xf32>
    %314 = tpu.matmul %312, %313, %cst_182 {dimension_numbers = #tpu.dot_dimension_numbers<[1], [0], [0], [1], [0, 0, 1, 1], [], []>} : vector<16x16xbf16>, vector<16x16xbf16>, vector<16x16xf32> -> vector<16x16xf32>
    %c0_183 = arith.constant 0 : index
    %c0_184 = arith.constant 0 : index
    %315 = vector.load %arg15[%c0_183, %c0_184] : memref<16x1xf32, #tpu.memory_space<vmem>>, vector<16x1xf32>
    %316 = vector.broadcast %315 : vector<16x1xf32> to vector<16x16xf32>
    %317 = arith.addf %314, %316 : vector<16x16xf32>
    %c0_185 = arith.constant 0 : index
    %c0_186 = arith.constant 0 : index
    %318 = vector.load %arg16[%c0_185, %c0_186] : memref<32x16xbf16, #tpu.memory_space<vmem>>, vector<32x16xbf16>
    %319 = arith.truncf %317 : vector<16x16xf32> to vector<16x16xbf16>
    %cst_187 = arith.constant dense<0.000000e+00> : vector<32x16xf32>
    %320 = tpu.matmul %318, %319, %cst_187 {dimension_numbers = #tpu.dot_dimension_numbers<[1], [0], [0], [1], [0, 0, 1, 1], [], []>} : vector<32x16xbf16>, vector<16x16xbf16>, vector<32x16xf32> -> vector<32x16xf32>
    %c0_188 = arith.constant 0 : index
    %c0_189 = arith.constant 0 : index
    %321 = vector.load %arg17[%c0_188, %c0_189] : memref<32x1xf32, #tpu.memory_space<vmem>>, vector<32x1xf32>
    %322 = vector.broadcast %321 : vector<32x1xf32> to vector<32x16xf32>
    %323 = arith.addf %320, %322 : vector<32x16xf32>
    %324 = math.tanh %323 : vector<32x16xf32>
    %cst_190 = arith.constant 0.000000e+00 : f32
    %325 = vector.broadcast %cst_190 : f32 to vector<32x2xf32>
    %326 = tpu.concatenate %325, %324, %325 in 1 : vector<32x2xf32>, vector<32x16xf32>, vector<32x2xf32> -> vector<32x20xf32>
    %c0_191 = arith.constant 0 : index
    %c0_192 = arith.constant 0 : index
    %327 = vector.load %arg18[%c0_191, %c0_192] : memref<32x160xbf16, #tpu.memory_space<vmem>>, vector<32x160xbf16>
    %328 = vector.extract_strided_slice %326 {offsets = [0, 0], sizes = [32, 16], strides = [1, 1]} : vector<32x20xf32> to vector<32x16xf32>
    %329 = vector.extract_strided_slice %326 {offsets = [0, 1], sizes = [32, 16], strides = [1, 1]} : vector<32x20xf32> to vector<32x16xf32>
    %330 = vector.extract_strided_slice %326 {offsets = [0, 2], sizes = [32, 16], strides = [1, 1]} : vector<32x20xf32> to vector<32x16xf32>
    %331 = vector.extract_strided_slice %326 {offsets = [0, 3], sizes = [32, 16], strides = [1, 1]} : vector<32x20xf32> to vector<32x16xf32>
    %332 = vector.extract_strided_slice %326 {offsets = [0, 4], sizes = [32, 16], strides = [1, 1]} : vector<32x20xf32> to vector<32x16xf32>
    %333 = tpu.concatenate %328, %329, %330, %331, %332 in 0 : vector<32x16xf32>, vector<32x16xf32>, vector<32x16xf32>, vector<32x16xf32>, vector<32x16xf32> -> vector<160x16xf32>
    %334 = arith.truncf %333 : vector<160x16xf32> to vector<160x16xbf16>
    %cst_193 = arith.constant dense<0.000000e+00> : vector<32x16xf32>
    %335 = tpu.matmul %327, %334, %cst_193 {dimension_numbers = #tpu.dot_dimension_numbers<[1], [0], [0], [1], [0, 0, 1, 1], [], []>} : vector<32x160xbf16>, vector<160x16xbf16>, vector<32x16xf32> -> vector<32x16xf32>
    %336 = arith.truncf %335 : vector<32x16xf32> to vector<32x16xbf16>
    %c0_194 = arith.constant 0 : index
    %c0_195 = arith.constant 0 : index
    %337 = vector.load %arg20[%c0_194, %c0_195] : memref<16x8xbf16, #tpu.memory_space<vmem>>, vector<16x8xbf16>
    %cst_196 = arith.constant dense<0.000000e+00> : vector<32x8xf32>
    %338 = tpu.matmul %336, %337, %cst_196 {dimension_numbers = #tpu.dot_dimension_numbers<[1], [0], [0], [1], [0, 0, 1, 1], [], []>} : vector<32x16xbf16>, vector<16x8xbf16>, vector<32x8xf32> -> vector<32x8xf32>
    %c0_197 = arith.constant 0 : index
    %c0_198 = arith.constant 0 : index
    %339 = vector.load %arg19[%c0_197, %c0_198] : memref<32x1xf32, #tpu.memory_space<vmem>>, vector<32x1xf32>
    %340 = vector.broadcast %339 : vector<32x1xf32> to vector<32x8xf32>
    %341 = arith.addf %338, %340 : vector<32x8xf32>
    %342 = math.tanh %341 : vector<32x8xf32>
    %c0_199 = arith.constant 0 : index
    %c0_200 = arith.constant 0 : index
    %343 = vector.load %arg21[%c0_199, %c0_200] : memref<32x32xbf16, #tpu.memory_space<vmem>>, vector<32x32xbf16>
    %344 = arith.truncf %342 : vector<32x8xf32> to vector<32x8xbf16>
    %cst_201 = arith.constant dense<0.000000e+00> : vector<32x8xf32>
    %345 = tpu.matmul %343, %344, %cst_201 {dimension_numbers = #tpu.dot_dimension_numbers<[1], [0], [0], [1], [0, 0, 1, 1], [], []>} : vector<32x32xbf16>, vector<32x8xbf16>, vector<32x8xf32> -> vector<32x8xf32>
    %c0_202 = arith.constant 0 : index
    %c0_203 = arith.constant 0 : index
    %346 = vector.load %arg22[%c0_202, %c0_203] : memref<32x1xf32, #tpu.memory_space<vmem>>, vector<32x1xf32>
    %347 = vector.broadcast %346 : vector<32x1xf32> to vector<32x8xf32>
    %348 = arith.addf %345, %347 : vector<32x8xf32>
    %c0_204 = arith.constant 0 : index
    %c0_205 = arith.constant 0 : index
    %349 = vector.load %arg23[%c0_204, %c0_205] : memref<64x32xbf16, #tpu.memory_space<vmem>>, vector<64x32xbf16>
    %350 = arith.truncf %348 : vector<32x8xf32> to vector<32x8xbf16>
    %cst_206 = arith.constant dense<0.000000e+00> : vector<64x8xf32>
    %351 = tpu.matmul %349, %350, %cst_206 {dimension_numbers = #tpu.dot_dimension_numbers<[1], [0], [0], [1], [0, 0, 1, 1], [], []>} : vector<64x32xbf16>, vector<32x8xbf16>, vector<64x8xf32> -> vector<64x8xf32>
    %c0_207 = arith.constant 0 : index
    %c0_208 = arith.constant 0 : index
    %352 = vector.load %arg24[%c0_207, %c0_208] : memref<64x1xf32, #tpu.memory_space<vmem>>, vector<64x1xf32>
    %353 = vector.broadcast %352 : vector<64x1xf32> to vector<64x8xf32>
    %354 = arith.addf %351, %353 : vector<64x8xf32>
    %355 = math.tanh %354 : vector<64x8xf32>
    %cst_209 = arith.constant 0.000000e+00 : f32
    %356 = vector.broadcast %cst_209 : f32 to vector<64x2xf32>
    %357 = tpu.concatenate %356, %355, %356 in 1 : vector<64x2xf32>, vector<64x8xf32>, vector<64x2xf32> -> vector<64x12xf32>
    %c0_210 = arith.constant 0 : index
    %c0_211 = arith.constant 0 : index
    %358 = vector.load %arg25[%c0_210, %c0_211] : memref<64x320xbf16, #tpu.memory_space<vmem>>, vector<64x320xbf16>
    %359 = vector.extract_strided_slice %357 {offsets = [0, 0], sizes = [64, 8], strides = [1, 1]} : vector<64x12xf32> to vector<64x8xf32>
    %360 = vector.extract_strided_slice %357 {offsets = [0, 1], sizes = [64, 8], strides = [1, 1]} : vector<64x12xf32> to vector<64x8xf32>
    %361 = vector.extract_strided_slice %357 {offsets = [0, 2], sizes = [64, 8], strides = [1, 1]} : vector<64x12xf32> to vector<64x8xf32>
    %362 = vector.extract_strided_slice %357 {offsets = [0, 3], sizes = [64, 8], strides = [1, 1]} : vector<64x12xf32> to vector<64x8xf32>
    %363 = vector.extract_strided_slice %357 {offsets = [0, 4], sizes = [64, 8], strides = [1, 1]} : vector<64x12xf32> to vector<64x8xf32>
    %364 = tpu.concatenate %359, %360, %361, %362, %363 in 0 : vector<64x8xf32>, vector<64x8xf32>, vector<64x8xf32>, vector<64x8xf32>, vector<64x8xf32> -> vector<320x8xf32>
    %365 = arith.truncf %364 : vector<320x8xf32> to vector<320x8xbf16>
    %cst_212 = arith.constant dense<0.000000e+00> : vector<64x8xf32>
    %366 = tpu.matmul %358, %365, %cst_212 {dimension_numbers = #tpu.dot_dimension_numbers<[1], [0], [0], [1], [0, 0, 1, 1], [], []>} : vector<64x320xbf16>, vector<320x8xbf16>, vector<64x8xf32> -> vector<64x8xf32>
    %367 = arith.truncf %366 : vector<64x8xf32> to vector<64x8xbf16>
    %c0_213 = arith.constant 0 : index
    %c0_214 = arith.constant 0 : index
    %368 = vector.load %arg27[%c0_213, %c0_214] : memref<8x4xbf16, #tpu.memory_space<vmem>>, vector<8x4xbf16>
    %cst_215 = arith.constant dense<0.000000e+00> : vector<64x4xf32>
    %369 = tpu.matmul %367, %368, %cst_215 {dimension_numbers = #tpu.dot_dimension_numbers<[1], [0], [0], [1], [0, 0, 1, 1], [], []>} : vector<64x8xbf16>, vector<8x4xbf16>, vector<64x4xf32> -> vector<64x4xf32>
    %c0_216 = arith.constant 0 : index
    %c0_217 = arith.constant 0 : index
    %370 = vector.load %arg26[%c0_216, %c0_217] : memref<64x1xf32, #tpu.memory_space<vmem>>, vector<64x1xf32>
    %371 = vector.broadcast %370 : vector<64x1xf32> to vector<64x4xf32>
    %372 = arith.addf %369, %371 : vector<64x4xf32>
    %373 = math.tanh %372 : vector<64x4xf32>
    %c0_218 = arith.constant 0 : index
    %c0_219 = arith.constant 0 : index
    %374 = vector.load %arg28[%c0_218, %c0_219] : memref<64x64xbf16, #tpu.memory_space<vmem>>, vector<64x64xbf16>
    %375 = arith.truncf %373 : vector<64x4xf32> to vector<64x4xbf16>
    %cst_220 = arith.constant dense<0.000000e+00> : vector<64x4xf32>
    %376 = tpu.matmul %374, %375, %cst_220 {dimension_numbers = #tpu.dot_dimension_numbers<[1], [0], [0], [1], [0, 0, 1, 1], [], []>} : vector<64x64xbf16>, vector<64x4xbf16>, vector<64x4xf32> -> vector<64x4xf32>
    %c0_221 = arith.constant 0 : index
    %c0_222 = arith.constant 0 : index
    %377 = vector.load %arg29[%c0_221, %c0_222] : memref<64x1xf32, #tpu.memory_space<vmem>>, vector<64x1xf32>
    %378 = vector.broadcast %377 : vector<64x1xf32> to vector<64x4xf32>
    %379 = arith.addf %376, %378 : vector<64x4xf32>
    %c0_223 = arith.constant 0 : index
    %c0_224 = arith.constant 0 : index
    %380 = vector.load %arg30[%c0_223, %c0_224] : memref<128x64xbf16, #tpu.memory_space<vmem>>, vector<128x64xbf16>
    %381 = arith.truncf %379 : vector<64x4xf32> to vector<64x4xbf16>
    %cst_225 = arith.constant dense<0.000000e+00> : vector<128x4xf32>
    %382 = tpu.matmul %380, %381, %cst_225 {dimension_numbers = #tpu.dot_dimension_numbers<[1], [0], [0], [1], [0, 0, 1, 1], [], []>} : vector<128x64xbf16>, vector<64x4xbf16>, vector<128x4xf32> -> vector<128x4xf32>
    %c0_226 = arith.constant 0 : index
    %c0_227 = arith.constant 0 : index
    %383 = vector.load %arg31[%c0_226, %c0_227] : memref<128x1xf32, #tpu.memory_space<vmem>>, vector<128x1xf32>
    %384 = vector.broadcast %383 : vector<128x1xf32> to vector<128x4xf32>
    %385 = arith.addf %382, %384 : vector<128x4xf32>
    %386 = math.tanh %385 : vector<128x4xf32>
    %cst_228 = arith.constant 0.000000e+00 : f32
    %387 = vector.broadcast %cst_228 : f32 to vector<128x2xf32>
    %388 = tpu.concatenate %387, %386, %387 in 1 : vector<128x2xf32>, vector<128x4xf32>, vector<128x2xf32> -> vector<128x8xf32>
    %c0_229 = arith.constant 0 : index
    %c0_230 = arith.constant 0 : index
    %389 = vector.load %arg32[%c0_229, %c0_230] : memref<128x640xbf16, #tpu.memory_space<vmem>>, vector<128x640xbf16>
    %390 = vector.extract_strided_slice %388 {offsets = [0, 0], sizes = [128, 4], strides = [1, 1]} : vector<128x8xf32> to vector<128x4xf32>
    %391 = vector.extract_strided_slice %388 {offsets = [0, 1], sizes = [128, 4], strides = [1, 1]} : vector<128x8xf32> to vector<128x4xf32>
    %392 = vector.extract_strided_slice %388 {offsets = [0, 2], sizes = [128, 4], strides = [1, 1]} : vector<128x8xf32> to vector<128x4xf32>
    %393 = vector.extract_strided_slice %388 {offsets = [0, 3], sizes = [128, 4], strides = [1, 1]} : vector<128x8xf32> to vector<128x4xf32>
    %394 = vector.extract_strided_slice %388 {offsets = [0, 4], sizes = [128, 4], strides = [1, 1]} : vector<128x8xf32> to vector<128x4xf32>
    %395 = tpu.concatenate %390, %391, %392, %393, %394 in 0 : vector<128x4xf32>, vector<128x4xf32>, vector<128x4xf32>, vector<128x4xf32>, vector<128x4xf32> -> vector<640x4xf32>
    %396 = arith.truncf %395 : vector<640x4xf32> to vector<640x4xbf16>
    %cst_231 = arith.constant dense<0.000000e+00> : vector<128x4xf32>
    %397 = tpu.matmul %389, %396, %cst_231 {dimension_numbers = #tpu.dot_dimension_numbers<[1], [0], [0], [1], [0, 0, 1, 1], [], []>} : vector<128x640xbf16>, vector<640x4xbf16>, vector<128x4xf32> -> vector<128x4xf32>
    %398 = arith.truncf %397 : vector<128x4xf32> to vector<128x4xbf16>
    %c0_232 = arith.constant 0 : index
    %c0_233 = arith.constant 0 : index
    %399 = vector.load %arg34[%c0_232, %c0_233] : memref<4x2xbf16, #tpu.memory_space<vmem>>, vector<4x2xbf16>
    %cst_234 = arith.constant dense<0.000000e+00> : vector<128x2xf32>
    %400 = tpu.matmul %398, %399, %cst_234 {dimension_numbers = #tpu.dot_dimension_numbers<[1], [0], [0], [1], [0, 0, 1, 1], [], []>} : vector<128x4xbf16>, vector<4x2xbf16>, vector<128x2xf32> -> vector<128x2xf32>
    %c0_235 = arith.constant 0 : index
    %c0_236 = arith.constant 0 : index
    %401 = vector.load %arg33[%c0_235, %c0_236] : memref<128x1xf32, #tpu.memory_space<vmem>>, vector<128x1xf32>
    %402 = vector.broadcast %401 : vector<128x1xf32> to vector<128x2xf32>
    %403 = arith.addf %400, %402 : vector<128x2xf32>
    %404 = math.tanh %403 : vector<128x2xf32>
    %c0_237 = arith.constant 0 : index
    %c0_238 = arith.constant 0 : index
    %405 = vector.load %arg35[%c0_237, %c0_238] : memref<96x128xbf16, #tpu.memory_space<vmem>>, vector<96x128xbf16>
    %406 = arith.truncf %404 : vector<128x2xf32> to vector<128x2xbf16>
    %cst_239 = arith.constant dense<0.000000e+00> : vector<96x2xf32>
    %407 = tpu.matmul %405, %406, %cst_239 {dimension_numbers = #tpu.dot_dimension_numbers<[1], [0], [0], [1], [0, 0, 1, 1], [], []>} : vector<96x128xbf16>, vector<128x2xbf16>, vector<96x2xf32> -> vector<96x2xf32>
    %c0_240 = arith.constant 0 : index
    %c0_241 = arith.constant 0 : index
    %408 = vector.load %arg36[%c0_240, %c0_241] : memref<96x1xf32, #tpu.memory_space<vmem>>, vector<96x1xf32>
    %409 = vector.broadcast %408 : vector<96x1xf32> to vector<96x2xf32>
    %410 = arith.addf %407, %409 : vector<96x2xf32>
    %411 = arith.truncf %410 : vector<96x2xf32> to vector<96x2xbf16>
    %c0_242 = arith.constant 0 : index
    %c0_243 = arith.constant 0 : index
    %412 = vector.load %arg37[%c0_242, %c0_243] : memref<2x8xbf16, #tpu.memory_space<vmem>>, vector<2x8xbf16>
    %cst_244 = arith.constant dense<0.000000e+00> : vector<96x8xf32>
    %413 = tpu.matmul %411, %412, %cst_244 {dimension_numbers = #tpu.dot_dimension_numbers<[1], [0], [0], [1], [0, 0, 1, 1], [], []>} : vector<96x2xbf16>, vector<2x8xbf16>, vector<96x8xf32> -> vector<96x8xf32>
    %c0_245 = arith.constant 0 : index
    %c0_246 = arith.constant 0 : index
    %414 = vector.load %arg38[%c0_245, %c0_246] : memref<64x480xbf16, #tpu.memory_space<vmem>>, vector<64x480xbf16>
    %415 = vector.extract_strided_slice %413 {offsets = [0, 0], sizes = [96, 4], strides = [1, 1]} : vector<96x8xf32> to vector<96x4xf32>
    %416 = vector.extract_strided_slice %413 {offsets = [0, 1], sizes = [96, 4], strides = [1, 1]} : vector<96x8xf32> to vector<96x4xf32>
    %417 = vector.extract_strided_slice %413 {offsets = [0, 2], sizes = [96, 4], strides = [1, 1]} : vector<96x8xf32> to vector<96x4xf32>
    %418 = vector.extract_strided_slice %413 {offsets = [0, 3], sizes = [96, 4], strides = [1, 1]} : vector<96x8xf32> to vector<96x4xf32>
    %419 = vector.extract_strided_slice %413 {offsets = [0, 4], sizes = [96, 4], strides = [1, 1]} : vector<96x8xf32> to vector<96x4xf32>
    %420 = tpu.concatenate %415, %416, %417, %418, %419 in 0 : vector<96x4xf32>, vector<96x4xf32>, vector<96x4xf32>, vector<96x4xf32>, vector<96x4xf32> -> vector<480x4xf32>
    %421 = arith.truncf %420 : vector<480x4xf32> to vector<480x4xbf16>
    %cst_247 = arith.constant dense<0.000000e+00> : vector<64x4xf32>
    %422 = tpu.matmul %414, %421, %cst_247 {dimension_numbers = #tpu.dot_dimension_numbers<[1], [0], [0], [1], [0, 0, 1, 1], [], []>} : vector<64x480xbf16>, vector<480x4xbf16>, vector<64x4xf32> -> vector<64x4xf32>
    %c0_248 = arith.constant 0 : index
    %c0_249 = arith.constant 0 : index
    %423 = vector.load %arg39[%c0_248, %c0_249] : memref<64x1xf32, #tpu.memory_space<vmem>>, vector<64x1xf32>
    %424 = vector.broadcast %423 : vector<64x1xf32> to vector<64x4xf32>
    %425 = arith.addf %422, %424 : vector<64x4xf32>
    %426 = math.tanh %425 : vector<64x4xf32>
    %427 = arith.truncf %426 : vector<64x4xf32> to vector<64x4xbf16>
    %c0_250 = arith.constant 0 : index
    %c0_251 = arith.constant 0 : index
    %428 = vector.load %arg40[%c0_250, %c0_251] : memref<4x12xbf16, #tpu.memory_space<vmem>>, vector<4x12xbf16>
    %cst_252 = arith.constant dense<0.000000e+00> : vector<64x12xf32>
    %429 = tpu.matmul %427, %428, %cst_252 {dimension_numbers = #tpu.dot_dimension_numbers<[1], [0], [0], [1], [0, 0, 1, 1], [], []>} : vector<64x4xbf16>, vector<4x12xbf16>, vector<64x12xf32> -> vector<64x12xf32>
    %c0_253 = arith.constant 0 : index
    %c0_254 = arith.constant 0 : index
    %430 = vector.load %arg41[%c0_253, %c0_254] : memref<32x320xbf16, #tpu.memory_space<vmem>>, vector<32x320xbf16>
    %431 = vector.extract_strided_slice %429 {offsets = [0, 0], sizes = [64, 8], strides = [1, 1]} : vector<64x12xf32> to vector<64x8xf32>
    %432 = vector.extract_strided_slice %429 {offsets = [0, 1], sizes = [64, 8], strides = [1, 1]} : vector<64x12xf32> to vector<64x8xf32>
    %433 = vector.extract_strided_slice %429 {offsets = [0, 2], sizes = [64, 8], strides = [1, 1]} : vector<64x12xf32> to vector<64x8xf32>
    %434 = vector.extract_strided_slice %429 {offsets = [0, 3], sizes = [64, 8], strides = [1, 1]} : vector<64x12xf32> to vector<64x8xf32>
    %435 = vector.extract_strided_slice %429 {offsets = [0, 4], sizes = [64, 8], strides = [1, 1]} : vector<64x12xf32> to vector<64x8xf32>
    %436 = tpu.concatenate %431, %432, %433, %434, %435 in 0 : vector<64x8xf32>, vector<64x8xf32>, vector<64x8xf32>, vector<64x8xf32>, vector<64x8xf32> -> vector<320x8xf32>
    %437 = arith.truncf %436 : vector<320x8xf32> to vector<320x8xbf16>
    %cst_255 = arith.constant dense<0.000000e+00> : vector<32x8xf32>
    %438 = tpu.matmul %430, %437, %cst_255 {dimension_numbers = #tpu.dot_dimension_numbers<[1], [0], [0], [1], [0, 0, 1, 1], [], []>} : vector<32x320xbf16>, vector<320x8xbf16>, vector<32x8xf32> -> vector<32x8xf32>
    %c0_256 = arith.constant 0 : index
    %c0_257 = arith.constant 0 : index
    %439 = vector.load %arg42[%c0_256, %c0_257] : memref<32x1xf32, #tpu.memory_space<vmem>>, vector<32x1xf32>
    %440 = vector.broadcast %439 : vector<32x1xf32> to vector<32x8xf32>
    %441 = arith.addf %438, %440 : vector<32x8xf32>
    %442 = math.tanh %441 : vector<32x8xf32>
    %443 = arith.truncf %442 : vector<32x8xf32> to vector<32x8xbf16>
    %c0_258 = arith.constant 0 : index
    %c0_259 = arith.constant 0 : index
    %444 = vector.load %arg43[%c0_258, %c0_259] : memref<8x20xbf16, #tpu.memory_space<vmem>>, vector<8x20xbf16>
    %cst_260 = arith.constant dense<0.000000e+00> : vector<32x20xf32>
    %445 = tpu.matmul %443, %444, %cst_260 {dimension_numbers = #tpu.dot_dimension_numbers<[1], [0], [0], [1], [0, 0, 1, 1], [], []>} : vector<32x8xbf16>, vector<8x20xbf16>, vector<32x20xf32> -> vector<32x20xf32>
    %c0_261 = arith.constant 0 : index
    %c0_262 = arith.constant 0 : index
    %446 = vector.load %arg44[%c0_261, %c0_262] : memref<16x160xbf16, #tpu.memory_space<vmem>>, vector<16x160xbf16>
    %447 = vector.extract_strided_slice %445 {offsets = [0, 0], sizes = [32, 16], strides = [1, 1]} : vector<32x20xf32> to vector<32x16xf32>
    %448 = vector.extract_strided_slice %445 {offsets = [0, 1], sizes = [32, 16], strides = [1, 1]} : vector<32x20xf32> to vector<32x16xf32>
    %449 = vector.extract_strided_slice %445 {offsets = [0, 2], sizes = [32, 16], strides = [1, 1]} : vector<32x20xf32> to vector<32x16xf32>
    %450 = vector.extract_strided_slice %445 {offsets = [0, 3], sizes = [32, 16], strides = [1, 1]} : vector<32x20xf32> to vector<32x16xf32>
    %451 = vector.extract_strided_slice %445 {offsets = [0, 4], sizes = [32, 16], strides = [1, 1]} : vector<32x20xf32> to vector<32x16xf32>
    %452 = tpu.concatenate %447, %448, %449, %450, %451 in 0 : vector<32x16xf32>, vector<32x16xf32>, vector<32x16xf32>, vector<32x16xf32>, vector<32x16xf32> -> vector<160x16xf32>
    %453 = arith.truncf %452 : vector<160x16xf32> to vector<160x16xbf16>
    %cst_263 = arith.constant dense<0.000000e+00> : vector<16x16xf32>
    %454 = tpu.matmul %446, %453, %cst_263 {dimension_numbers = #tpu.dot_dimension_numbers<[1], [0], [0], [1], [0, 0, 1, 1], [], []>} : vector<16x160xbf16>, vector<160x16xbf16>, vector<16x16xf32> -> vector<16x16xf32>
    %c0_264 = arith.constant 0 : index
    %c0_265 = arith.constant 0 : index
    %455 = vector.load %arg45[%c0_264, %c0_265] : memref<16x1xf32, #tpu.memory_space<vmem>>, vector<16x1xf32>
    %456 = vector.broadcast %455 : vector<16x1xf32> to vector<16x16xf32>
    %457 = arith.addf %454, %456 : vector<16x16xf32>
    %458 = math.tanh %457 : vector<16x16xf32>
    %459 = arith.truncf %458 : vector<16x16xf32> to vector<16x16xbf16>
    %c0_266 = arith.constant 0 : index
    %c0_267 = arith.constant 0 : index
    %460 = vector.load %arg46[%c0_266, %c0_267] : memref<16x36xbf16, #tpu.memory_space<vmem>>, vector<16x36xbf16>
    %cst_268 = arith.constant dense<0.000000e+00> : vector<16x36xf32>
    %461 = tpu.matmul %459, %460, %cst_268 {dimension_numbers = #tpu.dot_dimension_numbers<[1], [0], [0], [1], [0, 0, 1, 1], [], []>} : vector<16x16xbf16>, vector<16x36xbf16>, vector<16x36xf32> -> vector<16x36xf32>
    %c0_269 = arith.constant 0 : index
    %c0_270 = arith.constant 0 : index
    %462 = vector.load %arg47[%c0_269, %c0_270] : memref<8x80xbf16, #tpu.memory_space<vmem>>, vector<8x80xbf16>
    %463 = vector.extract_strided_slice %461 {offsets = [0, 0], sizes = [16, 32], strides = [1, 1]} : vector<16x36xf32> to vector<16x32xf32>
    %464 = vector.extract_strided_slice %461 {offsets = [0, 1], sizes = [16, 32], strides = [1, 1]} : vector<16x36xf32> to vector<16x32xf32>
    %465 = vector.extract_strided_slice %461 {offsets = [0, 2], sizes = [16, 32], strides = [1, 1]} : vector<16x36xf32> to vector<16x32xf32>
    %466 = vector.extract_strided_slice %461 {offsets = [0, 3], sizes = [16, 32], strides = [1, 1]} : vector<16x36xf32> to vector<16x32xf32>
    %467 = vector.extract_strided_slice %461 {offsets = [0, 4], sizes = [16, 32], strides = [1, 1]} : vector<16x36xf32> to vector<16x32xf32>
    %468 = tpu.concatenate %463, %464, %465, %466, %467 in 0 : vector<16x32xf32>, vector<16x32xf32>, vector<16x32xf32>, vector<16x32xf32>, vector<16x32xf32> -> vector<80x32xf32>
    %469 = arith.truncf %468 : vector<80x32xf32> to vector<80x32xbf16>
    %cst_271 = arith.constant dense<0.000000e+00> : vector<8x32xf32>
    %470 = tpu.matmul %462, %469, %cst_271 {dimension_numbers = #tpu.dot_dimension_numbers<[1], [0], [0], [1], [0, 0, 1, 1], [], []>} : vector<8x80xbf16>, vector<80x32xbf16>, vector<8x32xf32> -> vector<8x32xf32>
    %c0_272 = arith.constant 0 : index
    %c0_273 = arith.constant 0 : index
    %471 = vector.load %arg48[%c0_272, %c0_273] : memref<8x1xf32, #tpu.memory_space<vmem>>, vector<8x1xf32>
    %472 = vector.broadcast %471 : vector<8x1xf32> to vector<8x32xf32>
    %473 = arith.addf %470, %472 : vector<8x32xf32>
    %474 = math.tanh %473 : vector<8x32xf32>
    %475 = arith.truncf %474 : vector<8x32xf32> to vector<8x32xbf16>
    %c0_274 = arith.constant 0 : index
    %c0_275 = arith.constant 0 : index
    %476 = vector.load %arg49[%c0_274, %c0_275] : memref<32x68xbf16, #tpu.memory_space<vmem>>, vector<32x68xbf16>
    %cst_276 = arith.constant dense<0.000000e+00> : vector<8x68xf32>
    %477 = tpu.matmul %475, %476, %cst_276 {dimension_numbers = #tpu.dot_dimension_numbers<[1], [0], [0], [1], [0, 0, 1, 1], [], []>} : vector<8x32xbf16>, vector<32x68xbf16>, vector<8x68xf32> -> vector<8x68xf32>
    %c0_277 = arith.constant 0 : index
    %c0_278 = arith.constant 0 : index
    %478 = vector.load %arg50[%c0_277, %c0_278] : memref<8x40xbf16, #tpu.memory_space<vmem>>, vector<8x40xbf16>
    %479 = vector.extract_strided_slice %477 {offsets = [0, 0], sizes = [8, 64], strides = [1, 1]} : vector<8x68xf32> to vector<8x64xf32>
    %480 = vector.extract_strided_slice %477 {offsets = [0, 1], sizes = [8, 64], strides = [1, 1]} : vector<8x68xf32> to vector<8x64xf32>
    %481 = vector.extract_strided_slice %477 {offsets = [0, 2], sizes = [8, 64], strides = [1, 1]} : vector<8x68xf32> to vector<8x64xf32>
    %482 = vector.extract_strided_slice %477 {offsets = [0, 3], sizes = [8, 64], strides = [1, 1]} : vector<8x68xf32> to vector<8x64xf32>
    %483 = vector.extract_strided_slice %477 {offsets = [0, 4], sizes = [8, 64], strides = [1, 1]} : vector<8x68xf32> to vector<8x64xf32>
    %484 = tpu.concatenate %479, %480, %481, %482, %483 in 0 : vector<8x64xf32>, vector<8x64xf32>, vector<8x64xf32>, vector<8x64xf32>, vector<8x64xf32> -> vector<40x64xf32>
    %485 = arith.truncf %484 : vector<40x64xf32> to vector<40x64xbf16>
    %cst_279 = arith.constant dense<0.000000e+00> : vector<8x64xf32>
    %486 = tpu.matmul %478, %485, %cst_279 {dimension_numbers = #tpu.dot_dimension_numbers<[1], [0], [0], [1], [0, 0, 1, 1], [], []>} : vector<8x40xbf16>, vector<40x64xbf16>, vector<8x64xf32> -> vector<8x64xf32>
    %c0_280 = arith.constant 0 : index
    %c0_281 = arith.constant 0 : index
    %487 = vector.load %arg51[%c0_280, %c0_281] : memref<8x1xf32, #tpu.memory_space<vmem>>, vector<8x1xf32>
    %488 = vector.broadcast %487 : vector<8x1xf32> to vector<8x64xf32>
    %489 = arith.addf %486, %488 : vector<8x64xf32>
    %490 = math.tanh %489 : vector<8x64xf32>
    %cst_282 = arith.constant 0.000000e+00 : f32
    %491 = vector.broadcast %cst_282 : f32 to vector<8x2xf32>
    %492 = tpu.concatenate %491, %490, %491 in 1 : vector<8x2xf32>, vector<8x64xf32>, vector<8x2xf32> -> vector<8x68xf32>
    %c0_283 = arith.constant 0 : index
    %c0_284 = arith.constant 0 : index
    %493 = vector.load %arg52[%c0_283, %c0_284] : memref<3x40xbf16, #tpu.memory_space<vmem>>, vector<3x40xbf16>
    %494 = vector.extract_strided_slice %492 {offsets = [0, 0], sizes = [8, 64], strides = [1, 1]} : vector<8x68xf32> to vector<8x64xf32>
    %495 = vector.extract_strided_slice %492 {offsets = [0, 1], sizes = [8, 64], strides = [1, 1]} : vector<8x68xf32> to vector<8x64xf32>
    %496 = vector.extract_strided_slice %492 {offsets = [0, 2], sizes = [8, 64], strides = [1, 1]} : vector<8x68xf32> to vector<8x64xf32>
    %497 = vector.extract_strided_slice %492 {offsets = [0, 3], sizes = [8, 64], strides = [1, 1]} : vector<8x68xf32> to vector<8x64xf32>
    %498 = vector.extract_strided_slice %492 {offsets = [0, 4], sizes = [8, 64], strides = [1, 1]} : vector<8x68xf32> to vector<8x64xf32>
    %499 = tpu.concatenate %494, %495, %496, %497, %498 in 0 : vector<8x64xf32>, vector<8x64xf32>, vector<8x64xf32>, vector<8x64xf32>, vector<8x64xf32> -> vector<40x64xf32>
    %500 = arith.truncf %499 : vector<40x64xf32> to vector<40x64xbf16>
    %cst_285 = arith.constant dense<0.000000e+00> : vector<3x64xf32>
    %501 = tpu.matmul %493, %500, %cst_285 {dimension_numbers = #tpu.dot_dimension_numbers<[1], [0], [0], [1], [0, 0, 1, 1], [], []>} : vector<3x40xbf16>, vector<40x64xbf16>, vector<3x64xf32> -> vector<3x64xf32>
    %c0_286 = arith.constant 0 : index
    %c0_287 = arith.constant 0 : index
    %502 = vector.load %arg53[%c0_286, %c0_287] : memref<3x1xf32, #tpu.memory_space<vmem>>, vector<3x1xf32>
    %503 = vector.broadcast %502 : vector<3x1xf32> to vector<3x64xf32>
    %504 = arith.addf %501, %503 : vector<3x64xf32>
    %c1_288 = arith.constant 1 : index
    %c0_289 = arith.constant 0 : index
    %c0_290 = arith.constant 0 : index
    %505 = vector.load %arg54[%c1_288, %c0_289, %c0_290] : memref<2x3x64xf32, #tpu.memory_space<vmem>>, vector<1x3x64xf32>
    %506 = vector.shape_cast %505 : vector<1x3x64xf32> to vector<3x64xf32>
    %507 = vector.shape_cast %504 : vector<3x64xf32> to vector<1x3x64xf32>
    tpu.vector_store %arg54[%c1_288, %c0_289, %c0_290], %507 {strides = array<i32>} : memref<2x3x64xf32, #tpu.memory_space<vmem>>, vector<1x3x64xf32>,
    return
  }
  func.func @transform_0(%arg0: i32) -> (i32, i32, i32) {
    %c0_i32 = arith.constant 0 : i32
    %c0_i32_0 = arith.constant 0 : i32
    %c0_i32_1 = arith.constant 0 : i32
    return %arg0, %c0_i32, %c0_i32_0 : i32, i32, i32
  }
  func.func @transform_1(%arg0: i32) -> (i32, i32) {
    %c0_i32 = arith.constant 0 : i32
    %c0_i32_0 = arith.constant 0 : i32
    %c0_i32_1 = arith.constant 0 : i32
    return %c0_i32, %c0_i32_0 : i32, i32
  }
  func.func @transform_2(%arg0: i32) -> (i32, i32) {
    %c0_i32 = arith.constant 0 : i32
    %c0_i32_0 = arith.constant 0 : i32
    %c0_i32_1 = arith.constant 0 : i32
    return %c0_i32, %c0_i32_0 : i32, i32
  }
  func.func @transform_3(%arg0: i32) -> (i32, i32) {
    %c0_i32 = arith.constant 0 : i32
    %c0_i32_0 = arith.constant 0 : i32
    %c0_i32_1 = arith.constant 0 : i32
    return %c0_i32, %c0_i32_0 : i32, i32
  }
  func.func @transform_4(%arg0: i32) -> (i32, i32) {
    %c0_i32 = arith.constant 0 : i32
    %c0_i32_0 = arith.constant 0 : i32
    %c0_i32_1 = arith.constant 0 : i32
    return %c0_i32, %c0_i32_0 : i32, i32
  }
  func.func @transform_5(%arg0: i32) -> (i32, i32) {
    %c0_i32 = arith.constant 0 : i32
    %c0_i32_0 = arith.constant 0 : i32
    %c0_i32_1 = arith.constant 0 : i32
    return %c0_i32, %c0_i32_0 : i32, i32
  }
  func.func @transform_6(%arg0: i32) -> (i32, i32) {
    %c0_i32 = arith.constant 0 : i32
    %c0_i32_0 = arith.constant 0 : i32
    %c0_i32_1 = arith.constant 0 : i32
    return %c0_i32, %c0_i32_0 : i32, i32
  }
  func.func @transform_7(%arg0: i32) -> (i32, i32) {
    %c0_i32 = arith.constant 0 : i32
    %c0_i32_0 = arith.constant 0 : i32
    %c0_i32_1 = arith.constant 0 : i32
    return %c0_i32, %c0_i32_0 : i32, i32
  }
  func.func @transform_8(%arg0: i32) -> (i32, i32) {
    %c0_i32 = arith.constant 0 : i32
    %c0_i32_0 = arith.constant 0 : i32
    %c0_i32_1 = arith.constant 0 : i32
    return %c0_i32, %c0_i32_0 : i32, i32
  }
  func.func @transform_9(%arg0: i32) -> (i32, i32) {
    %c0_i32 = arith.constant 0 : i32
    %c0_i32_0 = arith.constant 0 : i32
    %c0_i32_1 = arith.constant 0 : i32
    return %c0_i32, %c0_i32_0 : i32, i32
  }
  func.func @transform_10(%arg0: i32) -> (i32, i32) {
    %c0_i32 = arith.constant 0 : i32
    %c0_i32_0 = arith.constant 0 : i32
    %c0_i32_1 = arith.constant 0 : i32
    return %c0_i32, %c0_i32_0 : i32, i32
  }
  func.func @transform_11(%arg0: i32) -> (i32, i32) {
    %c0_i32 = arith.constant 0 : i32
    %c0_i32_0 = arith.constant 0 : i32
    %c0_i32_1 = arith.constant 0 : i32
    return %c0_i32, %c0_i32_0 : i32, i32
  }
  func.func @transform_12(%arg0: i32) -> (i32, i32) {
    %c0_i32 = arith.constant 0 : i32
    %c0_i32_0 = arith.constant 0 : i32
    %c0_i32_1 = arith.constant 0 : i32
    return %c0_i32, %c0_i32_0 : i32, i32
  }
  func.func @transform_13(%arg0: i32) -> (i32, i32) {
    %c0_i32 = arith.constant 0 : i32
    %c0_i32_0 = arith.constant 0 : i32
    %c0_i32_1 = arith.constant 0 : i32
    return %c0_i32, %c0_i32_0 : i32, i32
  }
  func.func @transform_14(%arg0: i32) -> (i32, i32) {
    %c0_i32 = arith.constant 0 : i32
    %c0_i32_0 = arith.constant 0 : i32
    %c0_i32_1 = arith.constant 0 : i32
    return %c0_i32, %c0_i32_0 : i32, i32
  }
  func.func @transform_15(%arg0: i32) -> (i32, i32) {
    %c0_i32 = arith.constant 0 : i32
    %c0_i32_0 = arith.constant 0 : i32
    %c0_i32_1 = arith.constant 0 : i32
    return %c0_i32, %c0_i32_0 : i32, i32
  }
  func.func @transform_16(%arg0: i32) -> (i32, i32) {
    %c0_i32 = arith.constant 0 : i32
    %c0_i32_0 = arith.constant 0 : i32
    %c0_i32_1 = arith.constant 0 : i32
    return %c0_i32, %c0_i32_0 : i32, i32
  }
  func.func @transform_17(%arg0: i32) -> (i32, i32) {
    %c0_i32 = arith.constant 0 : i32
    %c0_i32_0 = arith.constant 0 : i32
    %c0_i32_1 = arith.constant 0 : i32
    return %c0_i32, %c0_i32_0 : i32, i32
  }
  func.func @transform_18(%arg0: i32) -> (i32, i32) {
    %c0_i32 = arith.constant 0 : i32
    %c0_i32_0 = arith.constant 0 : i32
    %c0_i32_1 = arith.constant 0 : i32
    return %c0_i32, %c0_i32_0 : i32, i32
  }
  func.func @transform_19(%arg0: i32) -> (i32, i32) {
    %c0_i32 = arith.constant 0 : i32
    %c0_i32_0 = arith.constant 0 : i32
    %c0_i32_1 = arith.constant 0 : i32
    return %c0_i32, %c0_i32_0 : i32, i32
  }
  func.func @transform_20(%arg0: i32) -> (i32, i32) {
    %c0_i32 = arith.constant 0 : i32
    %c0_i32_0 = arith.constant 0 : i32
    %c0_i32_1 = arith.constant 0 : i32
    return %c0_i32, %c0_i32_0 : i32, i32
  }
  func.func @transform_21(%arg0: i32) -> (i32, i32) {
    %c0_i32 = arith.constant 0 : i32
    %c0_i32_0 = arith.constant 0 : i32
    %c0_i32_1 = arith.constant 0 : i32
    return %c0_i32, %c0_i32_0 : i32, i32
  }
  func.func @transform_22(%arg0: i32) -> (i32, i32) {
    %c0_i32 = arith.constant 0 : i32
    %c0_i32_0 = arith.constant 0 : i32
    %c0_i32_1 = arith.constant 0 : i32
    return %c0_i32, %c0_i32_0 : i32, i32
  }
  func.func @transform_23(%arg0: i32) -> (i32, i32) {
    %c0_i32 = arith.constant 0 : i32
    %c0_i32_0 = arith.constant 0 : i32
    %c0_i32_1 = arith.constant 0 : i32
    return %c0_i32, %c0_i32_0 : i32, i32
  }
  func.func @transform_24(%arg0: i32) -> (i32, i32) {
    %c0_i32 = arith.constant 0 : i32
    %c0_i32_0 = arith.constant 0 : i32
    %c0_i32_1 = arith.constant 0 : i32
    return %c0_i32, %c0_i32_0 : i32, i32
  }
  func.func @transform_25(%arg0: i32) -> (i32, i32) {
    %c0_i32 = arith.constant 0 : i32
    %c0_i32_0 = arith.constant 0 : i32
    %c0_i32_1 = arith.constant 0 : i32
    return %c0_i32, %c0_i32_0 : i32, i32
  }
  func.func @transform_26(%arg0: i32) -> (i32, i32) {
    %c0_i32 = arith.constant 0 : i32
    %c0_i32_0 = arith.constant 0 : i32
    %c0_i32_1 = arith.constant 0 : i32
    return %c0_i32, %c0_i32_0 : i32, i32
  }
  func.func @transform_27(%arg0: i32) -> (i32, i32) {
    %c0_i32 = arith.constant 0 : i32
    %c0_i32_0 = arith.constant 0 : i32
    %c0_i32_1 = arith.constant 0 : i32
    return %c0_i32, %c0_i32_0 : i32, i32
  }
  func.func @transform_28(%arg0: i32) -> (i32, i32) {
    %c0_i32 = arith.constant 0 : i32
    %c0_i32_0 = arith.constant 0 : i32
    %c0_i32_1 = arith.constant 0 : i32
    return %c0_i32, %c0_i32_0 : i32, i32
  }
  func.func @transform_29(%arg0: i32) -> (i32, i32) {
    %c0_i32 = arith.constant 0 : i32
    %c0_i32_0 = arith.constant 0 : i32
    %c0_i32_1 = arith.constant 0 : i32
    return %c0_i32, %c0_i32_0 : i32, i32
  }
  func.func @transform_30(%arg0: i32) -> (i32, i32) {
    %c0_i32 = arith.constant 0 : i32
    %c0_i32_0 = arith.constant 0 : i32
    %c0_i32_1 = arith.constant 0 : i32
    return %c0_i32, %c0_i32_0 : i32, i32
  }
  func.func @transform_31(%arg0: i32) -> (i32, i32) {
    %c0_i32 = arith.constant 0 : i32
    %c0_i32_0 = arith.constant 0 : i32
    %c0_i32_1 = arith.constant 0 : i32
    return %c0_i32, %c0_i32_0 : i32, i32
  }
  func.func @transform_32(%arg0: i32) -> (i32, i32) {
    %c0_i32 = arith.constant 0 : i32
    %c0_i32_0 = arith.constant 0 : i32
    %c0_i32_1 = arith.constant 0 : i32
    return %c0_i32, %c0_i32_0 : i32, i32
  }
  func.func @transform_33(%arg0: i32) -> (i32, i32) {
    %c0_i32 = arith.constant 0 : i32
    %c0_i32_0 = arith.constant 0 : i32
    %c0_i32_1 = arith.constant 0 : i32
    return %c0_i32, %c0_i32_0 : i32, i32
  }
  func.func @transform_34(%arg0: i32) -> (i32, i32) {
    %c0_i32 = arith.constant 0 : i32
    %c0_i32_0 = arith.constant 0 : i32
    %c0_i32_1 = arith.constant 0 : i32
    return %c0_i32, %c0_i32_0 : i32, i32
  }
  func.func @transform_35(%arg0: i32) -> (i32, i32) {
    %c0_i32 = arith.constant 0 : i32
    %c0_i32_0 = arith.constant 0 : i32
    %c0_i32_1 = arith.constant 0 : i32
    return %c0_i32, %c0_i32_0 : i32, i32
  }
  func.func @transform_36(%arg0: i32) -> (i32, i32) {
    %c0_i32 = arith.constant 0 : i32
    %c0_i32_0 = arith.constant 0 : i32
    %c0_i32_1 = arith.constant 0 : i32
    return %c0_i32, %c0_i32_0 : i32, i32
  }
  func.func @transform_37(%arg0: i32) -> (i32, i32) {
    %c0_i32 = arith.constant 0 : i32
    %c0_i32_0 = arith.constant 0 : i32
    %c0_i32_1 = arith.constant 0 : i32
    return %c0_i32, %c0_i32_0 : i32, i32
  }
  func.func @transform_38(%arg0: i32) -> (i32, i32) {
    %c0_i32 = arith.constant 0 : i32
    %c0_i32_0 = arith.constant 0 : i32
    %c0_i32_1 = arith.constant 0 : i32
    return %c0_i32, %c0_i32_0 : i32, i32
  }
  func.func @transform_39(%arg0: i32) -> (i32, i32) {
    %c0_i32 = arith.constant 0 : i32
    %c0_i32_0 = arith.constant 0 : i32
    %c0_i32_1 = arith.constant 0 : i32
    return %c0_i32, %c0_i32_0 : i32, i32
  }
  func.func @transform_40(%arg0: i32) -> (i32, i32) {
    %c0_i32 = arith.constant 0 : i32
    %c0_i32_0 = arith.constant 0 : i32
    %c0_i32_1 = arith.constant 0 : i32
    return %c0_i32, %c0_i32_0 : i32, i32
  }
  func.func @transform_41(%arg0: i32) -> (i32, i32) {
    %c0_i32 = arith.constant 0 : i32
    %c0_i32_0 = arith.constant 0 : i32
    %c0_i32_1 = arith.constant 0 : i32
    return %c0_i32, %c0_i32_0 : i32, i32
  }
  func.func @transform_42(%arg0: i32) -> (i32, i32) {
    %c0_i32 = arith.constant 0 : i32
    %c0_i32_0 = arith.constant 0 : i32
    %c0_i32_1 = arith.constant 0 : i32
    return %c0_i32, %c0_i32_0 : i32, i32
  }
  func.func @transform_43(%arg0: i32) -> (i32, i32) {
    %c0_i32 = arith.constant 0 : i32
    %c0_i32_0 = arith.constant 0 : i32
    %c0_i32_1 = arith.constant 0 : i32
    return %c0_i32, %c0_i32_0 : i32, i32
  }
  func.func @transform_44(%arg0: i32) -> (i32, i32) {
    %c0_i32 = arith.constant 0 : i32
    %c0_i32_0 = arith.constant 0 : i32
    %c0_i32_1 = arith.constant 0 : i32
    return %c0_i32, %c0_i32_0 : i32, i32
  }
  func.func @transform_45(%arg0: i32) -> (i32, i32) {
    %c0_i32 = arith.constant 0 : i32
    %c0_i32_0 = arith.constant 0 : i32
    %c0_i32_1 = arith.constant 0 : i32
    return %c0_i32, %c0_i32_0 : i32, i32
  }
  func.func @transform_46(%arg0: i32) -> (i32, i32) {
    %c0_i32 = arith.constant 0 : i32
    %c0_i32_0 = arith.constant 0 : i32
    %c0_i32_1 = arith.constant 0 : i32
    return %c0_i32, %c0_i32_0 : i32, i32
  }
  func.func @transform_47(%arg0: i32) -> (i32, i32) {
    %c0_i32 = arith.constant 0 : i32
    %c0_i32_0 = arith.constant 0 : i32
    %c0_i32_1 = arith.constant 0 : i32
    return %c0_i32, %c0_i32_0 : i32, i32
  }
  func.func @transform_48(%arg0: i32) -> (i32, i32) {
    %c0_i32 = arith.constant 0 : i32
    %c0_i32_0 = arith.constant 0 : i32
    %c0_i32_1 = arith.constant 0 : i32
    return %c0_i32, %c0_i32_0 : i32, i32
  }
  func.func @transform_49(%arg0: i32) -> (i32, i32) {
    %c0_i32 = arith.constant 0 : i32
    %c0_i32_0 = arith.constant 0 : i32
    %c0_i32_1 = arith.constant 0 : i32
    return %c0_i32, %c0_i32_0 : i32, i32
  }
  func.func @transform_50(%arg0: i32) -> (i32, i32) {
    %c0_i32 = arith.constant 0 : i32
    %c0_i32_0 = arith.constant 0 : i32
    %c0_i32_1 = arith.constant 0 : i32
    return %c0_i32, %c0_i32_0 : i32, i32
  }
  func.func @transform_51(%arg0: i32) -> (i32, i32) {
    %c0_i32 = arith.constant 0 : i32
    %c0_i32_0 = arith.constant 0 : i32
    %c0_i32_1 = arith.constant 0 : i32
    return %c0_i32, %c0_i32_0 : i32, i32
  }
  func.func @transform_52(%arg0: i32) -> (i32, i32) {
    %c0_i32 = arith.constant 0 : i32
    %c0_i32_0 = arith.constant 0 : i32
    %c0_i32_1 = arith.constant 0 : i32
    return %c0_i32, %c0_i32_0 : i32, i32
  }
  func.func @transform_53(%arg0: i32) -> (i32, i32, i32) {
    %c0_i32 = arith.constant 0 : i32
    %c0_i32_0 = arith.constant 0 : i32
    %c0_i32_1 = arith.constant 0 : i32
    return %arg0, %c0_i32, %c0_i32_0 : i32, i32, i32
  }
}

</mosaic_0001>

<bundles_post_ra>
// kernel: model_forward.1
= control target key start
LH: loop header
LB: loop body
LE: loop exit
PB: predicated region body
PF: predicated region fallthrough
CT: control target
= control target key end

     0   :  { %s15633_s6 = smov 1   ;;  %s15634_s10 = smov 2   ;;  %s18087_s0 = inlined_call_operand.smem [shape: u32[54], index: -1, kind: input, shape index: {}] }
   0x1   :  { %s15704_s5 = sld [smem:[%s18087_s0]]   ;;  %s15635_s14 = smov 3  }
   0x2   :  { %s15709_s9 = sld [smem:[%s18087_s0 + %s15633_s6]]   ;;  %s15636_s18 = smov 4  }
   0x3   :  { %s15714_s13 = sld [smem:[%s18087_s0 + %s15634_s10]]   ;;  %s15637_s22 = smov 5  }
   0x4   :  { %s15719_s17 = sld [smem:[%s18087_s0 + %s15635_s14]]   ;;  %s15638_s26 = smov 6  }
   0x5   :  { %s15724_s21 = sld [smem:[%s18087_s0 + %s15636_s18]]   ;;  %s15639_s30 = smov 7  }
   0x6   :  { %s15729_s25 = sld [smem:[%s18087_s0 + %s15637_s22]]   ;;  %s15640_s4 = smov 8  }
   0x7   :  { %18204 = sst [smem:[#allocation2_spill]] %s15704_s5  ;;  %s15641_s10 = smov 9  }
   0x8   :  { %s15734_s29 = sld [smem:[%s18087_s0 + %s15638_s26]]   ;;  %s15642_s15 = smov 10  }
   0x9   :  { %s15739_s3 = sld [smem:[%s18087_s0 + %s15639_s30]]   ;;  %s15643_s20 = smov 11  }
   0xa   :  { %s15744_s8 = sld [smem:[%s18087_s0 + %s15640_s4]]   ;;  %s15644_s26 = smov 12  }
   0xb   :  { %s15749_s14 = sld [smem:[%s18087_s0 + %s15641_s10]]   ;;  %s15645_s1 = smov 13  }
   0xc   :  { %s15754_s19 = sld [smem:[%s18087_s0 + %s15642_s15]]   ;;  %s15646_s7 = smov 14  }
   0xd   :  { %s15759_s24 = sld [smem:[%s18087_s0 + %s15643_s20]]   ;;  %s15647_s15 = smov 15  }
   0xe   :  { %s15764_s30 = sld [smem:[%s18087_s0 + %s15644_s26]]   ;;  %s15648_s22 = smov 16  }
   0xf   :  { %s15769_s6 = sld [smem:[%s18087_s0 + %s15645_s1]]   ;;  %s15649_s28 = smov 17  }
  0x10   :  { %s15774_s12 = sld [smem:[%s18087_s0 + %s15646_s7]]   ;;  %s15650_s7 = smov 18  }
  0x11   :  { %s15779_s20 = sld [smem:[%s18087_s0 + %s15647_s15]]   ;;  %s15651_s15 = smov 19  }
  0x12   :  { %s15784_s27 = sld [smem:[%s18087_s0 + %s15648_s22]]   ;;  %s15652_s22 = smov 20  }
  0x13   :  { %s15789_s4 = sld [smem:[%s18087_s0 + %s15649_s28]]   ;;  %s15653_s28 = smov 21  }
  0x14   :  { %18205 = sst [smem:[#allocation3_spill]] %s15764_s30 }
  0x15   :  { %18206 = sst [smem:[#allocation4_spill]] %s15769_s6 }
  0x16   :  { %s15794_s6 = sld [smem:[%s18087_s0 + %s15650_s7]]   ;;  %s15654_s7 = smov 22  }
  0x17   :  { %18207 = sst [smem:[#allocation5_spill]] %s15779_s20 }
  0x18   :  { %s15799_s20 = sld [smem:[%s18087_s0 + %s15651_s15]]   ;;  %s15655_s15 = smov 23  }
  0x19   :  { %18208 = sst [smem:[#allocation6_spill]] %s15789_s4 }
  0x1a   :  { %s15804_s30 = sld [smem:[%s18087_s0 + %s15652_s22]]   ;;  %s15656_s22 = smov 24  }
  0x1b   :  { %s15809_s4 = sld [smem:[%s18087_s0 + %s15653_s28]]   ;;  %s15657_s28 = smov 25  }
  0x1c   :  { %18209 = sst [smem:[#allocation7_spill]] %s15794_s6 }
  0x1d   :  { %s15814_s6 = sld [smem:[%s18087_s0 + %s15654_s7]]   ;;  %s15658_s7 = smov 26  }
  0x1e   :  { %18210 = sst [smem:[#allocation8_spill]] %s15799_s20 }
  0x1f   :  { %s15819_s20 = sld [smem:[%s18087_s0 + %s15655_s15]]   ;;  %s15659_s15 = smov 27  }
  0x20   :  { %18211 = sst [smem:[#allocation9_spill]] %s15804_s30 }
  0x21   :  { %18212 = sst [smem:[#allocation10_spill]] %s15809_s4 }
  0x22   :  { %s15824_s30 = sld [smem:[%s18087_s0 + %s15656_s22]]   ;;  %s15660_s22 = smov 28  }
  0x23   :  { %18213 = sst [smem:[#allocation11_spill]] %s15814_s6 }
  0x24   :  { %s15829_s4 = sld [smem:[%s18087_s0 + %s15657_s28]]   ;;  %s15661_s28 = smov 29  }
  0x25   :  { %18214 = sst [smem:[#allocation12_spill]] %s15819_s20 }
  0x26   :  { %s15834_s6 = sld [smem:[%s18087_s0 + %s15658_s7]]   ;;  %s15662_s7 = smov 30  }
  0x27   :  { %s15839_s20 = sld [smem:[%s18087_s0 + %s15659_s15]]   ;;  %s15663_s15 = smov 31  }
  0x28   :  { %18215 = sst [smem:[#allocation13_spill]] %s15824_s30 }
  0x29   :  { %s15844_s30 = sld [smem:[%s18087_s0 + %s15660_s22]]   ;;  %s15664_s22 = smov 32  }
  0x2a   :  { %18216 = sst [smem:[#allocation14_spill]] %s15829_s4 }
  0x2b   :  { %s15849_s4 = sld [smem:[%s18087_s0 + %s15661_s28]]   ;;  %s15665_s28 = smov 33  }
  0x2c   :  { %18217 = sst [smem:[#allocation15_spill]] %s15834_s6 }
  0x2d   :  { %18218 = sst [smem:[#allocation16_spill]] %s15839_s20 }
  0x2e   :  { %s15854_s6 = sld [smem:[%s18087_s0 + %s15662_s7]]   ;;  %s15666_s7 = smov 34  }
  0x2f   :  { %18219 = sst [smem:[#allocation17_spill]] %s15844_s30 }
  0x30   :  { %s15859_s20 = sld [smem:[%s18087_s0 + %s15663_s15]]   ;;  %s15667_s15 = smov 35  }
  0x31   :  { %18220 = sst [smem:[#allocation18_spill]] %s15849_s4 }
  0x32   :  { %s15864_s30 = sld [smem:[%s18087_s0 + %s15664_s22]]   ;;  %s15668_s22 = smov 36  }
  0x33   :  { %s15869_s4 = sld [smem:[%s18087_s0 + %s15665_s28]]   ;;  %s15669_s28 = smov 37  }
  0x34   :  { %18221 = sst [smem:[#allocation19_spill]] %s15854_s6 }
  0x35   :  { %s15874_s6 = sld [smem:[%s18087_s0 + %s15666_s7]]   ;;  %s15670_s7 = smov 38  }
  0x36   :  { %18222 = sst [smem:[#allocation20_spill]] %s15859_s20 }
  0x37   :  { %s15879_s20 = sld [smem:[%s18087_s0 + %s15667_s15]]   ;;  %s15671_s15 = smov 39  }
  0x38   :  { %18223 = sst [smem:[#allocation21_spill]] %s15864_s30 }
  0x39   :  { %18224 = sst [smem:[#allocation22_spill]] %s15869_s4 }
  0x3a   :  { %s15884_s30 = sld [smem:[%s18087_s0 + %s15668_s22]]   ;;  %s15672_s22 = smov 40  }
  0x3b   :  { %18225 = sst [smem:[#allocation23_spill]] %s15874_s6 }
  0x3c   :  { %s15889_s4 = sld [smem:[%s18087_s0 + %s15669_s28]]   ;;  %s15673_s28 = smov 41  }
  0x3d   :  { %18226 = sst [smem:[#allocation24_spill]] %s15879_s20 }
  0x3e   :  { %s15894_s6 = sld [smem:[%s18087_s0 + %s15670_s7]]   ;;  %s15674_s7 = smov 42  }
  0x3f   :  { %s15899_s20 = sld [smem:[%s18087_s0 + %s15671_s15]]   ;;  %s15675_s15 = smov 43  }
  0x40   :  { %18227 = sst [smem:[#allocation25_spill]] %s15884_s30 }
  0x41   :  { %s15904_s30 = sld [smem:[%s18087_s0 + %s15672_s22]]   ;;  %s15676_s22 = smov 44  }
  0x42   :  { %18228 = sst [smem:[#allocation26_spill]] %s15889_s4 }
  0x43   :  { %s15909_s4 = sld [smem:[%s18087_s0 + %s15673_s28]]   ;;  %s15677_s28 = smov 45  }
  0x44   :  { %18229 = sst [smem:[#allocation27_spill]] %s15894_s6 }
  0x45   :  { %18230 = sst [smem:[#allocation28_spill]] %s15899_s20 }
  0x46   :  { %s15914_s6 = sld [smem:[%s18087_s0 + %s15674_s7]]   ;;  %s15678_s7 = smov 46  }
  0x47   :  { %18231 = sst [smem:[#allocation29_spill]] %s15904_s30 }
  0x48   :  { %s15919_s20 = sld [smem:[%s18087_s0 + %s15675_s15]]   ;;  %s15679_s15 = smov 47  }
  0x49   :  { %18232 = sst [smem:[#allocation30_spill]] %s15909_s4 }
  0x4a   :  { %s15924_s30 = sld [smem:[%s18087_s0 + %s15676_s22]]   ;;  %s15680_s22 = smov 48  }
  0x4b   :  { %s15929_s4 = sld [smem:[%s18087_s0 + %s15677_s28]]   ;;  %s15681_s28 = smov 49  }
  0x4c   :  { %18233 = sst [smem:[#allocation31_spill]] %s15914_s6 }
  0x4d   :  { %s15934_s6 = sld [smem:[%s18087_s0 + %s15678_s7]]   ;;  %s15682_s7 = smov 50  }
  0x4e   :  { %18234 = sst [smem:[#allocation32_spill]] %s15919_s20 }
  0x4f   :  { %s15939_s20 = sld [smem:[%s18087_s0 + %s15679_s15]]   ;;  %s15683_s15 = smov 51  }
  0x50   :  { %18235 = sst [smem:[#allocation33_spill]] %s15924_s30 }
  0x51   :  { %18236 = sst [smem:[#allocation34_spill]] %s15929_s4 }
  0x52   :  { %s15944_s30 = sld [smem:[%s18087_s0 + %s15680_s22]]   ;;  %s15684_s22 = smov 52  }
  0x53   :  { %18237 = sst [smem:[#allocation35_spill]] %s15934_s6 }
  0x54   :  { %s15949_s4 = sld [smem:[%s18087_s0 + %s15681_s28]]   ;;  %s15685_s28 = smov 53  }
  0x55   :  { %18238 = sst [smem:[#allocation36_spill]] %s15939_s20 }
  0x56   :  { %s15954_s6 = sld [smem:[%s18087_s0 + %s15682_s7]]   ;;  %s15971_s7 = smov 0  }
  0x57   :  { %s15959_s20 = sld [smem:[%s18087_s0 + %s15683_s15]]  }
  0x58   :  { %18239 = sst [smem:[#allocation37_spill]] %s15944_s30 }
  0x59   :  { %s15964_s30 = sld [smem:[%s18087_s0 + %s15684_s22]]  }
  0x5a   :  { %18240 = sst [smem:[#allocation38_spill]] %s15949_s4 }
  0x5b   :  { %s15969_s4 = sld [smem:[%s18087_s0 + %s15685_s28]]  }
  0x5f   :  { %18241 = sst [smem:[#allocation39_spill]] %s15964_s30 }
  0x61   :  { %18242 = sst [smem:[#allocation40_spill]] %s15969_s4 }
  0x62 LB: > { %18243 = sst [smem:[#allocation41_spill]] %s15631_s7  ;;  %s11723_s10 = sadd.s32 4294967295, %s15631_s7   ;;  %s15631_s7 = sphi %s15971_s7, %s117_s7  }
  0x63   : > { %p11727_p0 = scmp.ge.s32.totalorder %s15631_s7, 1  ;;  %p1442_p1 = scmp.lt.s32.totalorder %s15631_s7, 3 }
  0x65   : > { %p1443_p2 = pnand %p11727_p0, %p1442_p1 }
  0x67   : > { %1446 = sbr.rel (%p1443_p2) target bundleno = 17550 (0x448e), region = 232 }
  0x6c   : > { %s11728_s11 = sshll.u32 %s11723_s10, 1  ;;  %vm18168_vm0 = vcmask 1040384   ;;  %vm1593_vm1 = vcmask 1041408   ;;  %v18154_v0 = vmov 0.0   ;;  %s18244_s5 = sld [smem:[#allocation2_spill]]  ;;  %v15687_v1 = vmov 65535  }
  0x6d   : > { %12992 = vmatprep.subr.bf16.mxu0 %v18154_v0  ;;  %p1567_p3 = scmp.lt.s32.totalorder %s11728_s11, 3  ;;  %v1594_v2 = vsel %vm18168_vm0, 4294967295, %v15687_v1  ;;  %12998 = vmatprep.subr.bf16.mxu1 %v18154_v0  ;;  %vm15688_vm2 = vmmov 0   ;;  %v1582_v4 = vld [vmem:[%s15714_s13] sm:$0x3f]  ;;  %v18156_v5 = vmov 0  }
  0x6e   : > { %v1595_v3 = vsel %vm1593_vm1, %v1594_v2, 0  ;;  %12994 = vmatprep.mubr.msk.bf16.mxu0 %vm15688_vm2, %v18154_v0  ;;  %13002 = vmatprep.mubr.msk.bf16.mxu1 %vm15688_vm2, %v18154_v0  ;;  %v1580_v12 = vld [vmem:[%s15709_s9] sm:$0x7]  ;;  %vm1588_vm3 = vcmask 23552   ;;  %s18129_s16 = smov 2   ;;  %vm1644_vm4 = vcmask 15360  }
  0x6f   : > { %s18436_s11 = smov (!%p1567_p3, %s11728_s11), 3  ;;  %13737 = vset.pattern.permute.xlu0 %v18156_v5  ;;  %13738 = vset.pattern.permute.xlu1 %v18156_v5  ;;  %vm18146_vm5 = vcmask 539648   ;;  %s18132_s18 = smov 124   ;;  %v1729_v24 = vld [vmem:[%s15724_s21] sm:$0x3f]  ;;  %v15009_v26 = vld [vmem:[%s15729_s25 + $0x18] sm:$0xff]  }
  0x70   : > { %18245 = sst [smem:[#allocation42_spill]] %s18436_s11  ;;  %1585 = vperm.xlu0 %13737, %v1582_v4   ;;  %s18128_s0 = sshll.u32 %s18436_s11, 2  ;;  %v1863_v27 = vld [vmem:[%s15749_s14] sm:$0xff]  ;;  %v15010_v28 = vld [vmem:[%s15729_s25 + $0x10] sm:$0xff]   ;;  %v15011_v30 = vld [vmem:[%s15729_s25 + $0x8] sm:$0xff]   ;;  %vm18127_vm6 = vcmask 1046528  }
  0x71   : > { %s18134_s22 = smov 126   ;;  %s18138_s23 = smov 125   ;;  %vm18131_vm7 = vcmask 1045504   ;;  %vm1667_vm8 = vcmask 1043456   ;;  %v1648_v41 = vld [vmem:[%s15719_s17] sm:$0x7] }
  0x72   : > { %s1570_s15 = scalar_lea.vmem %s18244_s5, %s18128_s0  ;;  %s18136_s26 = smov 127   ;;  %vm18126_vm9 = vcmask 244736   ;;  %v15012_v42 = vld [vmem:[%s15729_s25] sm:$0xff]   ;;  %vm1759_vm10 = vcmask 523264   ;;  %v1864_v49 = vld [vmem:[%s15749_s14 + $0x8] sm:$0xff]  ;;  %vm18124_vm11 = vcmask 1042432  }
  0x73   : > { %v1579_v6 = vld [vmem:[%s1570_s15] sm:$0x7]  ;;  %v11971_v7 = vld [vmem:[%s1570_s15 + $0x4] sm:$0x7]  ;;  %vm18165_vm12 = vcmask 48128   ;;  %vm1880_vm13 = vcmask 64512  }
  0x74   : > { %v1581_v8 = vpack.c.bf16 %v1579_v6, %v1579_v6  ;;  %v6611_v9 = vpack.c.bf16 %v11971_v7, %v11971_v7  ;;  %v1806_v48 = vld [vmem:[%s15739_s3] sm:$0xff]  ;;  %vm18125_vm14 = vcmask 277504   ;;  %s18247_s28 = sld [smem:[#allocation3_spill]]  ;;  %s18264_s5 = smov 125  }
  0x75   : > { %v1804_v59 = vld [vmem:[%s15734_s29] sm:$0xf]  ;;  %vm16070_vm15 = vmpackc.low %vm18125_vm14, %vm18125_vm14  ;;  %s18251_s1 = sld [smem:[#allocation4_spill]]  ;;  %s18265_s7 = smov 127  }
  0x76   : > { %v1597_v10 = vand.u32 %v1595_v3, %v1581_v8  ;;  %v15996_v11 = vand.u32 %v6611_v9, %v1595_v3  ;;  %v15013_v4 = vld [vmem:[%s15744_s8] sm:$0xff]   ;;  %s18252_s2 = sld [smem:[#allocation5_spill]]  ;;  %s18268_s30 = smov 126  }
  0x77   : > { %s18253_s10 = sld [smem:[#allocation7_spill]] }
  0x78   : > { %18246 = vst [vmem:[#allocation43_spill] sm:$0xff] %v15996_v11  ;;  %12993 = vmatpush3.bf16.msra.mxu0 %v1597_v10  ;;  %s18254_s15 = sld [smem:[#allocation10_spill]] }
  0x79   : > { %13006 = vmatprep.subr.bf16.mxu0 %v18154_v0  ;;  %s18255_s0 = sld [smem:[#allocation6_spill]] }
  0x7a   : > { %s18266_s4 = sld [smem:[#allocation13_spill]] }
  0x7b   : > { %12995 = vmatmul.mubr.msk.bf16.vlgmr.msra.gmra.mxu0 %vm1588_vm3, %v1580_v12  ;;  %s18267_s11 = sld [smem:[#allocation14_spill]] }
  0x7c   : > { %13014 = vmatprep.mubr.msk.bf16.mxu0 %vm15688_vm2, %v18154_v0  ;;  %13007 = vmatpush3.bf16.msra.mxu0 %v15009_v26 }
  0x7d   : > { %13008 = vmatprep.subr.bf16.mxu0 %v18154_v0 }
  0x80   : > { %13009 = vmatpush3.bf16.msra.mxu0 %v15010_v28  ;;  %v2032_v28 = vld [vmem:[%s15759_s24 + $0x8] sm:$0xff] }
  0x81   : > { %13010 = vmatprep.subr.bf16.mxu0 %v18154_v0 }
  0x84   : > { %13011 = vmatpush3.bf16.msra.mxu0 %v15011_v30  ;;  %v2106_v30 = vld [vmem:[%s15774_s12 + $0x8] sm:$0xff] }
  0x85   : > { %13012 = vmatprep.subr.bf16.mxu0 %v18154_v0 }
  0x88   : > { %13013 = vmatpush3.bf16.msra.mxu0 %v15012_v42 }
  0x89   : > { %13030 = vmatprep.subr.bf16.mxu0 %v18154_v0 }
  0xeb   : > { %v1586_v13 = vpop.permute.xlu0 %1585 }
 0x13b   : > { %v1633_v14 = vpop.f32.mrf.mxu0 }
 0x13c   : > { %v1634_v15 = vadd.f32 %v1633_v14, %v1586_v13 }
 0x13d   : > { %v12996_v16 = vpop.f32.mrf.mxu0 }
 0x13e   : > { %15313 = vtanh.f32 %v1634_v15 }
 0x13f   : > { %v1636_v17 = vpop.f32.mrf.mxu0 }
 0x141   : > { %v12997_v18 = vpop.f32.mrf.mxu0 }
 0x14b   : > { %v15314_v19 = vpop.eup %15313 }
 0x14c   : > { %1641 = vrot.lane.b32.xlu0 %v15314_v19, %s18129_s16 }
 0x1be   : > { %v1642_v20 = vpop.permute.xlu0 %1641 }
 0x1bf   : > { %v1645_v21 = vsel %vm1644_vm4, 0.0, %v1642_v20 }
 0x1c0   : > { %v1647_v22 = vsel %vm18146_vm5, %v1645_v21, 0.0 }
 0x1c1   : > { %1662 = vrot.lane.b32.xlu0 %v1647_v22, %s18132_s18  ;;  %v1654_v23 = vrot.slane %v1647_v22, 4  ;;  %v1658_v25 = vrot.slane %v1647_v22, 6  ;;  %v1650_v29 = vrot.slane %v1647_v22, 2 }
 0x1c3   : > { %1655 = vrot.lane.b32.xlu1 %v1654_v23, %s18134_s22 }
 0x1c5   : > { %1732 = vperm.xlu0 %13737, %v1729_v24  }
 0x1c7   : > { %1659 = vrot.lane.b32.xlu1 %v1658_v25, %s18138_s23 }
 0x1c9   : > { %1867 = vperm.xlu0 %13737, %v1863_v27  }
 0x1cb   : > { %1651 = vrot.lane.b32.xlu1 %v1650_v29, %s18136_s26  ;;  %v2031_v29 = vld [vmem:[%s15759_s24] sm:$0xff] }
 0x1cf   : > { %1809 = vperm.xlu1 %13738, %v1806_v48  }
 0x1d3   : > { %1872 = vperm.xlu1 %13738, %v1864_v49  }
 0x233   : > { %v1663_v33 = vpop.permute.xlu0 %1662 }
 0x235   : > { %v1656_v31 = vpop.permute.xlu1 %1655 }
 0x239   : > { %v1660_v32 = vpop.permute.xlu1 %1659 }
 0x23a   : > { %v1669_v34 = vsel %vm1593_vm1, %v1656_v31, %v1660_v32  ;;  %v2175_v32 = vld [vmem:[%s15784_s27 + $0x18] sm:$0xff] }
 0x23b   : > { %v1671_v35 = vpack.c.bf16 %v1663_v33, %v1669_v34  ;;  %v2174_v33 = vld [vmem:[%s15784_s27 + $0x10] sm:$0xff]  ;;  %v2173_v34 = vld [vmem:[%s15784_s27 + $0x8] sm:$0xff] }
 0x23d   : > { %v1652_v36 = vpop.permute.xlu1 %1651  ;;  %v1678_v37 = vsel %vm18127_vm6, %v1671_v35, 0  ;;  %v2172_v35 = vld [vmem:[%s15784_s27] sm:$0xff]  ;;  %vm18140_vm6 = vcmask 146432  }
 0x23e   : > { %v1666_v38 = vsel %vm18131_vm7, %v1647_v22, %v1652_v36  ;;  %v1668_v39 = vsel %vm1667_vm8, %v1652_v36, %v1656_v31  ;;  %12999 = vmatpush3.bf16.msra.mxu1 %v1678_v37  ;;  %v2105_v31 = vld [vmem:[%s15774_s12] sm:$0xff]  ;;  %vm16152_vm7 = vmpackc.low %vm18140_vm6, %vm18140_vm6 }
 0x23f   : > { %13000 = vmatprep.subr.bf16.mxu1 %v18154_v0  ;;  %v1670_v40 = vpack.c.bf16 %v1668_v39, %v1666_v38 }
 0x240   : > { %v1733_v50 = vpop.permute.xlu0 %1732 }
 0x242   : > { %13001 = vmatpush3.bf16.msra.mxu1 %v1670_v40 }
 0x243   : > { %13018 = vmatprep.subr.bf16.mxu1 %v18154_v0 }
 0x244   : > { %v1868_v8 = vpop.permute.xlu0 %1867 }
 0x245   : > { %13003 = vmatmul.mubr.msk.bf16.vlgmr.msra.gmra.mxu1 %vm18126_vm9, %v1648_v41  ;;  %vm18179_vm9 = vcmask 130048  }
 0x246   : > { %13020 = vmatprep.mubr.msk.bf16.mxu1 %vm15688_vm2, %v18154_v0 }
 0x24a   : > { %v1810_v60 = vpop.permute.xlu1 %1809 }
 0x24e   : > { %v1873_v12 = vpop.permute.xlu1 %1872 }
 0x305   : > { %v1714_v43 = vpop.f32.mrf.mxu1 }
 0x306   : > { %v1720_v44 = vpack.c.bf16 %v1714_v43, %v1714_v43 }
 0x307   : > { %v13004_v45 = vpop.f32.mrf.mxu1 }
 0x308   : > { %13015 = vmatmul.mubr.msk.bf16.vlgmr.msra.gmra.mxu0 %vm1759_vm10, %v1720_v44 }
 0x309   : > { %v1717_v46 = vpop.f32.mrf.mxu1  ;;  %13040 = vmatprep.mubr.msk.bf16.mxu0 %vm15688_vm2, %v18154_v0 }
 0x30b   : > { %v13005_v47 = vpop.f32.mrf.mxu1 }
 0x3c8   : > { %v1797_v51 = vpop.f32.mrf.mxu0 }
 0x3c9   : > { %v1798_v52 = vadd.f32 %v1797_v51, %v1733_v50 }
 0x3ca   : > { %v13016_v53 = vpop.f32.mrf.mxu0 }
 0x3cb   : > { %15315 = vtanh.f32 %v1798_v52  ;;  %v18248_v52 = vmov 0  ;;  %v15014_v53 = vld [vmem:[%s15754_s19] sm:$0xff]  }
 0x3cc   : > { %v1800_v54 = vpop.f32.mrf.mxu0  ;;  %v18249_v52 = vsel %vm16070_vm15, 4294967295, %v18248_v52 }
 0x3cd   : > { %18250 = vst [vmem:[#allocation44_spill] sm:$0xff] %v18249_v52  ;;  %v15015_v54 = vld [vmem:[%s18247_s28 + $0x8] sm:$0xff]  }
 0x3ce   : > { %v13017_v55 = vpop.f32.mrf.mxu0 }
 0x3cf   : > { %v15016_v55 = vld [vmem:[%s18247_s28] sm:$0xff]  }
 0x3d8   : > { %v15316_v56 = vpop.eup %15315 }
 0x3d9   : > { %v1805_v57 = vpack.c.bf16 %v15316_v56, %v15316_v56 }
 0x3db   : > { %v1818_v58 = vsel %vm18124_vm11, %v1805_v57, 0  ;;  %vm1981_vm11 = vcmask 654336  }
 0x3dc   : > { %13019 = vmatpush3.bf16.msra.mxu1 %v1818_v58 }
 0x3dd   : > { %13024 = vmatprep.subr.bf16.mxu1 %v18154_v0 }
 0x3df   : > { %13021 = vmatmul.mubr.msk.bf16.vlgmr.msra.gmra.mxu1 %vm18165_vm12, %v1804_v59 }
 0x3e0   : > { %13026 = vmatprep.mubr.msk.bf16.mxu1 %vm15688_vm2, %v18154_v0 }
 0x49f   : > { %v1854_v61 = vpop.f32.mrf.mxu1 }
 0x4a0   : > { %v1855_v62 = vadd.f32 %v1854_v61, %v1810_v60 }
 0x4a1   : > { %v13022_v63 = vpop.f32.mrf.mxu1 }
 0x4a2   : > { %v1862_v1 = vpack.c.bf16 %v1855_v62, %v1855_v62 }
 0x4a3   : > { %v1857_v2 = vpop.f32.mrf.mxu1 }
 0x4a4   : > { %v1885_v3 = vsel %vm1667_vm8, %v1862_v1, 0 }
 0x4a5   : > { %v13023_v6 = vpop.f32.mrf.mxu1  ;;  %13025 = vmatpush3.bf16.msra.mxu1 %v1885_v3 }
 0x4a6   : > { %13044 = vmatprep.subr.bf16.mxu1 %v18154_v0 }
 0x4a8   : > { %13027 = vmatmul.mubr.msk.bf16.vlgmr.msra.gmra.mxu1 %vm1880_vm13, %v15013_v4 }
 0x4a9   : > { %13048 = vmatprep.mubr.msk.bf16.mxu1 %vm15688_vm2, %v18154_v0  ;;  %13045 = vmatpush3.bf16.msra.mxu1 %v15015_v54 }
 0x4aa   : > { %13046 = vmatprep.subr.bf16.mxu1 %v18154_v0 }
 0x4ad   : > { %13047 = vmatpush3.bf16.msra.mxu1 %v15016_v55 }
 0x4ae   : > { %13052 = vmatprep.subr.bf16.mxu1 %v18154_v0 }
 0x568   : > { %v1921_v7 = vpop.f32.mrf.mxu1 }
 0x569   : > { %v1922_v9 = vadd.f32 %v1921_v7, %v1868_v8 }
 0x56a   : > { %v13028_v10 = vpop.f32.mrf.mxu1 }
 0x56b   : > { %15317 = vtanh.f32 %v1922_v9  ;;  %v15017_v10 = vld [vmem:[%s18251_s1] sm:$0xff]  }
 0x56c   : > { %v1924_v13 = vpop.f32.mrf.mxu1 }
 0x56d   : > { %v1925_v14 = vadd.f32 %v1924_v13, %v1873_v12  ;;  %v15018_v12 = vld [vmem:[%s18252_s2] sm:$0xff]  }
 0x56e   : > { %v13029_v15 = vpop.f32.mrf.mxu1 }
 0x56f   : > { %15319 = vtanh.f32 %v1925_v14 }
 0x578   : > { %v15318_v16 = vpop.eup %15317 }
 0x57c   : > { %v15320_v17 = vpop.eup %15319 }
 0x57d   : > { %v13739_v18 = vpack.i.bf16 %v15320_v17, %v15318_v16 }
 0x57f   : > { %13740 = vrot.lane.b32.xlu0 %v13739_v18, %s18129_s16 }
 0x5f1   : > { %v13741_v19 = vpop.permute.xlu0 %13740 }
 0x5f2   : > { %v13743_v20 = vunpack.i.h.bf16 %v13741_v19  ;;  %v13742_v21 = vunpack.i.l.bf16 %v13741_v19 }
 0x5f4   : > { %v1939_v22 = vsel %vm1644_vm4, 0.0, %v13743_v20  ;;  %v1938_v23 = vsel %vm1644_vm4, 0.0, %v13742_v21 }
 0x5f5   : > { %v1942_v24 = vsel %vm18125_vm14, %v1939_v22, 0.0  ;;  %v1941_v25 = vsel %vm18125_vm14, %v1938_v23, 0.0  ;;  %v11744_v26 = vpack.c.bf16 %v1939_v22, %v1938_v23  ;;  %vm2055_vm14 = vcmask 261120   ;;  %v15019_v22 = vld [vmem:[%s18252_s2 + $0x8] sm:$0xff]  }
 0x5f6   : > { %v13749_v27 = vpack.i.bf16 %v1942_v24, %v1941_v25 }
 0x5f8   : > { %13750 = vrot.lane.b32.xlu0 %v13749_v27, %s18138_s23  ;;  %13745 = vrot.lane.b32.xlu1 %v13749_v27, %s18132_s18 }
 0x5fc   : > { %13760 = vrot.lane.b32.xlu0 %v13749_v27, %s18136_s26  ;;  %13755 = vrot.lane.b32.xlu1 %v13749_v27, %s18134_s22 }
 0x600   : > { %2040 = vperm.xlu0 %13737, %v2032_v28   ;;  %2035 = vperm.xlu1 %13738, %v2031_v29  }
 0x604   : > { %2114 = vperm.xlu0 %13737, %v2106_v30   ;;  %2109 = vperm.xlu1 %13738, %v2105_v31  }
 0x608   : > { %2193 = vperm.xlu0 %13737, %v2175_v32   ;;  %2188 = vperm.xlu1 %13738, %v2174_v33  }
 0x60c   : > { %2183 = vperm.xlu0 %13737, %v2173_v34   ;;  %2178 = vperm.xlu1 %13738, %v2172_v35  }
 0x66a   : > { %v13751_v36 = vpop.permute.xlu0 %13750  ;;  %v13746_v37 = vpop.permute.xlu1 %13745 }
 0x66b   : > { %v13748_v38 = vunpack.i.h.bf16 %v13746_v37  ;;  %v13747_v39 = vunpack.i.l.bf16 %v13746_v37  ;;  %v13753_v40 = vunpack.i.h.bf16 %v13751_v36  ;;  %v13752_v41 = vunpack.i.l.bf16 %v13751_v36 }
 0x66d   : > { %v1975_v42 = vpack.c.bf16 %v13748_v38, %v13747_v39  ;;  %v1974_v44 = vpack.c.bf16 %v13753_v40, %v13752_v41 }
 0x66e   : > { %v13756_v43 = vpop.permute.xlu1 %13755  ;;  %v13761_v47 = vpop.permute.xlu0 %13760 }
 0x66f   : > { %13031 = vmatpush3.bf16.msra.mxu0 %v1975_v42  ;;  %v13758_v45 = vunpack.i.h.bf16 %v13756_v43  ;;  %v13757_v46 = vunpack.i.l.bf16 %v13756_v43  ;;  %v13763_v48 = vunpack.i.h.bf16 %v13761_v47  ;;  %v13762_v49 = vunpack.i.l.bf16 %v13761_v47 }
 0x670   : > { %13032 = vmatprep.subr.bf16.mxu0 %v18154_v0 }
 0x671   : > { %v1973_v50 = vpack.c.bf16 %v13758_v45, %v13757_v46  ;;  %v1972_v51 = vpack.c.bf16 %v13763_v48, %v13762_v49 }
 0x673   : > { %13033 = vmatpush3.bf16.msra.mxu0 %v1974_v44 }
 0x674   : > { %13034 = vmatprep.subr.bf16.mxu0 %v18154_v0 }
 0x677   : > { %13035 = vmatpush3.bf16.msra.mxu0 %v1973_v50 }
 0x678   : > { %13036 = vmatprep.subr.bf16.mxu0 %v18154_v0 }
 0x67b   : > { %13037 = vmatpush3.bf16.msra.mxu0 %v1972_v51  ;;  %v2036_v62 = vpop.permute.xlu1 %2035  ;;  %v2041_v2 = vpop.permute.xlu0 %2040 }
 0x67c   : > { %13038 = vmatprep.subr.bf16.mxu0 %v18154_v0 }
 0x67f   : > { %13039 = vmatpush3.bf16.msk.msra.mxu0 %vm16070_vm15, %v11744_v26  ;;  %v2115_v15 = vpop.permute.xlu0 %2114  ;;  %v2110_v16 = vpop.permute.xlu1 %2109 }
 0x682   : > { %13041 = vmatmul.mubr.msk.bf16.vlgmr.msra.gmra.mxu0 %vm1981_vm11, %v15014_v53 }
 0x683   : > { %13060 = vmatprep.mubr.msk.bf16.mxu0 %vm18179_vm9, %v15018_v12  ;;  %v2189_v23 = vpop.permute.xlu1 %2188  ;;  %v2194_v24 = vpop.permute.xlu0 %2193 }
 0x687   : > { %v2179_v28 = vpop.permute.xlu1 %2178  ;;  %v2184_v32 = vpop.permute.xlu0 %2183 }
 0x742   : > { %v2019_v56 = vpop.f32.mrf.mxu0 }
 0x744   : > { %v13042_v57 = vpop.f32.mrf.mxu0 }
 0x746   : > { %v2022_v58 = vpop.f32.mrf.mxu0 }
 0x747   : > { %v2026_v59 = vpack.c.bf16 %v2022_v58, %v2019_v56 }
 0x748   : > { %v13043_v60 = vpop.f32.mrf.mxu0 }
 0x749   : > { %13049 = vmatmul.mubr.msk.bf16.vlgmr.msra.gmra.mxu1 %vm2055_vm14, %v2026_v59  ;;  %v2435_v60 = vld [vmem:[%s18253_s10 + $0x10] sm:$0xff] }
 0x74a   : > { %13054 = vmatprep.mubr.msk.bf16.mxu1 %vm15688_vm2, %v18154_v0 }
 0x809   : > { %v2093_v61 = vpop.f32.mrf.mxu1 }
 0x80a   : > { %v2094_v63 = vadd.f32 %v2093_v61, %v2036_v62  ;;  %v2436_v61 = vld [vmem:[%s18253_s10 + $0x18] sm:$0xff]  ;;  %v2433_v62 = vld [vmem:[%s18253_s10] sm:$0xff] }
 0x80b   : > { %v13050_v1 = vpop.f32.mrf.mxu1 }
 0x80c   : > { %15321 = vtanh.f32 %v2094_v63  ;;  %v2434_v63 = vld [vmem:[%s18253_s10 + $0x8] sm:$0xff]  ;;  %v2530_v1 = vld [vmem:[%s18254_s15 + $0x10] sm:$0xff] }
 0x80d   : > { %v2096_v3 = vpop.f32.mrf.mxu1 }
 0x80e   : > { %v2097_v4 = vadd.f32 %v2096_v3, %v2041_v2  ;;  %v2531_v2 = vld [vmem:[%s18254_s15 + $0x18] sm:$0xff]  ;;  %v2528_v3 = vld [vmem:[%s18254_s15] sm:$0xff] }
 0x80f   : > { %v13051_v6 = vpop.f32.mrf.mxu1 }
 0x810   : > { %15323 = vtanh.f32 %v2097_v4  ;;  %v2529_v4 = vld [vmem:[%s18254_s15 + $0x8] sm:$0xff] }
 0x811   : > { %v15020_v6 = vld [vmem:[%s18255_s0 + $0x4] ss:$8 sps:$4 sm:$0xff]  }
 0x819   : > { %v15322_v7 = vpop.eup %15321 }
 0x81d   : > { %v15324_v8 = vpop.eup %15323 }
 0x81e   : > { %v2104_v9 = vpack.c.bf16 %v15324_v8, %v15322_v7 }
 0x820   : > { %13053 = vmatpush3.bf16.msra.mxu1 %v2104_v9 }
 0x821   : > { %2380 = vmatprep.subr.bf16.mxu1 %v18156_v5 }
 0x823   : > { %13055 = vmatmul.mubr.msk.bf16.vlgmr.msra.gmra.mxu1 %vm18179_vm9, %v15017_v10 }
 0x824   : > { %11766 = vmatprep.mubr.msk.bf16.mxu1 %vm2055_vm14, %v15020_v6 }
 0x8e3   : > { %v2160_v13 = vpop.f32.mrf.mxu1 }
 0x8e4   : > { %v2161_v18 = vadd.f32 %v2160_v13, %v2110_v16 }
 0x8e5   : > { %v13056_v14 = vpop.f32.mrf.mxu1 }
 0x8e7   : > { %v2163_v17 = vpop.f32.mrf.mxu1 }
 0x8e8   : > { %v2164_v19 = vadd.f32 %v2163_v17, %v2115_v15 }
 0x8e9   : > { %v13057_v20 = vpop.f32.mrf.mxu1 }
 0x8ea   : > { %v2171_v21 = vpack.c.bf16 %v2164_v19, %v2161_v18 }
 0x8ec   : > { %13058 = vmatprep.subr.bf16.mxu0 %v2171_v21 }
 0x8ed   : > { %13059 = vmatpush3.bf16.msra.mxu0 %v2171_v21 }
 0x8f0   : > { %13061 = vmatmul.mubr.msk.bf16.vlgmr.msra.gmra.mxu0 %vm18179_vm9, %v15019_v22 }
 0x9b0   : > { %v13062_v25 = vpop.f32.mrf.mxu0 }
 0x9b1   : > { %v2255_v26 = vadd.f32 %v13062_v25, %v2189_v23 }
 0x9b2   : > { %v2246_v27 = vpop.f32.mrf.mxu0 }
 0x9b3   : > { %v2247_v29 = vadd.f32 %v2246_v27, %v2179_v28  ;;  %15325 = vtanh.f32 %v2255_v26 }
 0x9b4   : > { %v13063_v30 = vpop.f32.mrf.mxu0 }
 0x9b5   : > { %v2258_v31 = vadd.f32 %v13063_v30, %v2194_v24 }
 0x9b6   : > { %v2249_v33 = vpop.f32.mrf.mxu0 }
 0x9b7   : > { %15327 = vtanh.f32 %v2258_v31  ;;  %v2250_v34 = vadd.f32 %v2249_v33, %v2184_v32 }
 0x9b8   : > { %15329 = vtanh.f32 %v2247_v29 }
 0x9b9   : > { %15331 = vtanh.f32 %v2250_v34 }
 0x9c0   : > { %v15326_v35 = vpop.eup %15325 }
 0x9c4   : > { %v15328_v36 = vpop.eup %15327 }
 0x9c5   : > { %v15330_v37 = vpop.eup %15329  ;;  %v13764_v38 = vpack.i.bf16 %v15328_v36, %v15326_v35 }
 0x9c6   : > { %v15332_v39 = vpop.eup %15331 }
 0x9c7   : > { %13765 = vrot.lane.b32.xlu1 %v13764_v38, %s18129_s16  ;;  %v13769_v40 = vpack.i.bf16 %v15332_v39, %v15330_v37 }
 0x9c9   : > { %13770 = vrot.lane.b32.xlu0 %v13769_v40, %s18129_s16  ;;  %s18256_s16 = sld [smem:[#allocation12_spill]]  ;;  %v18257_v40 = vmov 0 }
 0x9ca   : > { %v18258_v40 = vsel %vm16152_vm7, 4294967295, %v18257_v40 }
 0x9cb   : > { %18259 = vst [vmem:[#allocation45_spill] sm:$0xff] %v18258_v40 }
 0x9cf   : > { %v2633_v7 = vld [vmem:[%s18256_s16 + $0x30] sm:$0xff]  ;;  %v2634_v8 = vld [vmem:[%s18256_s16 + $0x38] sm:$0xff]  ;;  %v2631_v9 = vld [vmem:[%s18256_s16 + $0x20] sm:$0xff] }
 0x9d0   : > { %v2632_v10 = vld [vmem:[%s18256_s16 + $0x28] sm:$0xff]  ;;  %v2629_v12 = vld [vmem:[%s18256_s16 + $0x10] sm:$0xff]  ;;  %v2630_v13 = vld [vmem:[%s18256_s16 + $0x18] sm:$0xff] }
 0x9d1   : > { %v2627_v14 = vld [vmem:[%s18256_s16] sm:$0xff]  ;;  %v2628_v15 = vld [vmem:[%s18256_s16 + $0x8] sm:$0xff] }
 0xa39   : > { %v13766_v41 = vpop.permute.xlu1 %13765 }
 0xa3a   : > { %v13768_v42 = vunpack.i.h.bf16 %v13766_v41  ;;  %v13767_v43 = vunpack.i.l.bf16 %v13766_v41 }
 0xa3b   : > { %v13771_v44 = vpop.permute.xlu0 %13770 }
 0xa3c   : > { %v16095_v45 = vsel %vm1644_vm4, 0.0, %v13768_v42  ;;  %v16098_v46 = vsel %vm1644_vm4, 0.0, %v13767_v43  ;;  %v13773_v47 = vunpack.i.h.bf16 %v13771_v44  ;;  %v13772_v48 = vunpack.i.l.bf16 %v13771_v44 }
 0xa3d   : > { %v2289_v49 = vsel %vm18140_vm6, %v16095_v45, 0.0  ;;  %v2288_v50 = vsel %vm18140_vm6, %v16098_v46, 0.0  ;;  %v11761_v51 = vpack.c.bf16 %v16095_v45, %v16098_v46 }
 0xa3e   : > { %v16107_v53 = vsel %vm1644_vm4, 0.0, %v13773_v47  ;;  %v16110_v54 = vsel %vm1644_vm4, 0.0, %v13772_v48  ;;  %v13774_v55 = vpack.i.bf16 %v2289_v49, %v2288_v50  ;;  %v15022_v49 = vld [vmem:[%s18255_s0] ss:$8 sps:$4 sm:$0xff]   ;;  %v15023_v50 = vld [vmem:[%s18255_s0 + $0x14] ss:$8 sps:$4 sm:$0xff]  }
 0xa3f   : > { %v2287_v56 = vsel %vm18140_vm6, %v16107_v53, 0.0  ;;  %v2286_v57 = vsel %vm18140_vm6, %v16110_v54, 0.0  ;;  %v11764_v58 = vpack.c.bf16 %v16107_v53, %v16110_v54  ;;  %vm18152_vm6 = vcmask 80896  }
 0xa40   : > { %13775 = vrot.lane.b32.xlu1 %v13774_v55, %s18138_s23  ;;  %v13779_v59 = vpack.i.bf16 %v2287_v56, %v2286_v57  ;;  %vm16293_vm5 = vmpackc.low %vm18152_vm6, %vm18152_vm6 }
 0xa42   : > { %13780 = vrot.lane.b32.xlu0 %v13779_v59, %s18138_s23  ;;  %s18263_s23 = smov 2  }
 0xa44   : > { %13785 = vrot.lane.b32.xlu1 %v13774_v55, %s18134_s22 }
 0xa46   : > { %13790 = vrot.lane.b32.xlu0 %v13779_v59, %s18134_s22  ;;  %s18261_s22 = sld [smem:[#allocation9_spill]] }
 0xa48   : > { %13795 = vrot.lane.b32.xlu1 %v13774_v55, %s18136_s26 }
 0xa4a   : > { %13800 = vrot.lane.b32.xlu0 %v13779_v59, %s18136_s26  ;;  %s18262_s26 = sld [smem:[#allocation11_spill]] }
 0xa4c   : > { %13805 = vrot.lane.b32.xlu1 %v13774_v55, %s18132_s18 }
 0xa4e   : > { %13810 = vrot.lane.b32.xlu0 %v13779_v59, %s18132_s18  ;;  %s18260_s18 = sld [smem:[#allocation8_spill]] }
 0xa50   : > { %2449 = vperm.xlu1 %13738, %v2435_v60  }
 0xa52   : > { %2454 = vperm.xlu0 %13737, %v2436_v61  }
 0xa54   : > { %2439 = vperm.xlu1 %13738, %v2433_v62   ;;  %v15026_v53 = vld [vmem:[%s18260_s18] sm:$0xff]   ;;  %s18271_s18 = sld [smem:[#allocation19_spill]] }
 0xa55   : > { %13064 = vmatprep.subr.bf16.mxu0 %v15026_v53 }
 0xa56   : > { %2444 = vperm.xlu0 %13737, %v2434_v63   ;;  %13065 = vmatpush3.bf16.msra.mxu0 %v15026_v53 }
 0xa58   : > { %2544 = vperm.xlu1 %13738, %v2530_v1   ;;  %v15027_v1 = vld [vmem:[%s18261_s22] sm:$0xff]  }
 0xa5a   : > { %2549 = vperm.xlu0 %13737, %v2531_v2  }
 0xa5c   : > { %2534 = vperm.xlu1 %13738, %v2528_v3  }
 0xa5e   : > { %2539 = vperm.xlu0 %13737, %v2529_v4  }
 0xa60   : > { %2667 = vperm.xlu1 %13738, %v2633_v7  }
 0xa62   : > { %2672 = vperm.xlu0 %13737, %v2634_v8  }
 0xa64   : > { %2657 = vperm.xlu1 %13738, %v2631_v9  }
 0xa66   : > { %2662 = vperm.xlu0 %13737, %v2632_v10  }
 0xa68   : > { %2647 = vperm.xlu1 %13738, %v2629_v12  }
 0xa6a   : > { %2652 = vperm.xlu0 %13737, %v2630_v13  }
 0xa6c   : > { %2637 = vperm.xlu1 %13738, %v2627_v14  }
 0xa6e   : > { %2642 = vperm.xlu0 %13737, %v2628_v15  }
 0xab2   : > { %v13776_v16 = vpop.permute.xlu1 %13775 }
 0xab3   : > { %v13778_v17 = vunpack.i.h.bf16 %v13776_v16  ;;  %v13777_v18 = vunpack.i.l.bf16 %v13776_v16 }
 0xab4   : > { %v13781_v19 = vpop.permute.xlu0 %13780 }
 0xab5   : > { %v2353_v20 = vpack.c.bf16 %v13778_v17, %v13777_v18  ;;  %v13783_v21 = vunpack.i.h.bf16 %v13781_v19  ;;  %v13782_v22 = vunpack.i.l.bf16 %v13781_v19 }
 0xab6   : > { %v13786_v23 = vpop.permute.xlu1 %13785 }
 0xab7   : > { %2381 = vmatpush1.bf16.msra.mxu1 %v2353_v20  ;;  %v2352_v24 = vpack.c.bf16 %v13783_v21, %v13782_v22  ;;  %v13788_v25 = vunpack.i.h.bf16 %v13786_v23  ;;  %v13787_v26 = vunpack.i.l.bf16 %v13786_v23  ;;  %v15028_v22 = vld [vmem:[%s18261_s22 + $0x8] sm:$0xff]   ;;  %v15029_v23 = vld [vmem:[%s18262_s26] sm:$0xff]   ;;  %s18270_s22 = sld [smem:[#allocation17_spill]] }
 0xab8   : > { %2382 = vmatprep.subr.bf16.mxu1 %v18156_v5  ;;  %v13791_v27 = vpop.permute.xlu0 %13790 }
 0xab9   : > { %v2351_v28 = vpack.c.bf16 %v13788_v25, %v13787_v26  ;;  %v13793_v29 = vunpack.i.h.bf16 %v13791_v27  ;;  %v13792_v30 = vunpack.i.l.bf16 %v13791_v27 }
 0xaba   : > { %v13796_v31 = vpop.permute.xlu1 %13795 }
 0xabb   : > { %2383 = vmatpush1.bf16.msra.mxu1 %v2352_v24  ;;  %v2350_v32 = vpack.c.bf16 %v13793_v29, %v13792_v30  ;;  %v13798_v33 = vunpack.i.h.bf16 %v13796_v31  ;;  %v13797_v34 = vunpack.i.l.bf16 %v13796_v31 }
 0xabc   : > { %2384 = vmatprep.subr.bf16.mxu1 %v18156_v5  ;;  %v13801_v35 = vpop.permute.xlu0 %13800 }
 0xabd   : > { %v2349_v36 = vpack.c.bf16 %v13798_v33, %v13797_v34  ;;  %v13803_v37 = vunpack.i.h.bf16 %v13801_v35  ;;  %v13802_v38 = vunpack.i.l.bf16 %v13801_v35 }
 0xabe   : > { %v13806_v41 = vpop.permute.xlu1 %13805 }
 0xabf   : > { %2385 = vmatpush1.bf16.msra.mxu1 %v2351_v28  ;;  %v2348_v39 = vpack.c.bf16 %v13803_v37, %v13802_v38  ;;  %v13808_v42 = vunpack.i.h.bf16 %v13806_v41  ;;  %v13807_v43 = vunpack.i.l.bf16 %v13806_v41  ;;  %v15030_v38 = vld [vmem:[%s18262_s26 + $0x8] sm:$0xff]   ;;  %v15032_v41 = vld [vmem:[%s18262_s26 + $0x18] sm:$0xff]  }
 0xac0   : > { %2386 = vmatprep.subr.bf16.mxu1 %v18156_v5  ;;  %v13811_v44 = vpop.permute.xlu0 %13810 }
 0xac1   : > { %v2355_v45 = vpack.c.bf16 %v13808_v42, %v13807_v43  ;;  %v13813_v46 = vunpack.i.h.bf16 %v13811_v44  ;;  %v13812_v47 = vunpack.i.l.bf16 %v13811_v44 }
 0xac3   : > { %2387 = vmatpush1.bf16.msra.mxu1 %v2350_v32  ;;  %v2354_v48 = vpack.c.bf16 %v13813_v46, %v13812_v47 }
 0xac4   : > { %2388 = vmatprep.subr.bf16.mxu1 %v18156_v5 }
 0xac7   : > { %2389 = vmatpush1.bf16.msra.mxu1 %v2349_v36 }
 0xac8   : > { %2390 = vmatprep.subr.bf16.mxu1 %v18156_v5 }
 0xacb   : > { %2391 = vmatpush1.bf16.msra.mxu1 %v2348_v39  ;;  %v2450_v2 = vpop.permute.xlu1 %2449  ;;  %v15031_v39 = vld [vmem:[%s18262_s26 + $0x10] sm:$0xff]   ;;  %s18269_s26 = smov 124  }
 0xacc   : > { %2392 = vmatprep.subr.bf16.mxu1 %v18156_v5 }
 0xacd   : > { %v2455_v3 = vpop.permute.xlu0 %2454 }
 0xacf   : > { %11762 = vmatpush1.bf16.msk.msra.mxu1 %vm16152_vm7, %v11761_v51  ;;  %v15025_v51 = vld [vmem:[%s18255_s0 + $0x10] ss:$8 sps:$4 sm:$0xff]   ;;  %v2440_v8 = vpop.permute.xlu1 %2439 }
 0xad0   : > { %2394 = vmatprep.subr.bf16.mxu1 %v18156_v5 }
 0xad1   : > { %v2445_v13 = vpop.permute.xlu0 %2444 }
 0xad3   : > { %11765 = vmatpush1.bf16.msk.msra.mxu1 %vm16152_vm7, %v11764_v58  ;;  %v2545_v24 = vpop.permute.xlu1 %2544 }
 0xad4   : > { %2408 = vmatprep.subr.bf16.mxu1 %v18156_v5 }
 0xad5   : > { %v2550_v25 = vpop.permute.xlu0 %2549 }
 0xad7   : > { %2409 = vmatpush2.bf16.msra.mxu1 %v2355_v45  ;;  %v2535_v29 = vpop.permute.xlu1 %2534 }
 0xad8   : > { %2410 = vmatprep.subr.bf16.mxu1 %v18156_v5 }
 0xad9   : > { %v2540_v32 = vpop.permute.xlu0 %2539 }
 0xadb   : > { %2411 = vmatpush2.bf16.msra.mxu1 %v2354_v48  ;;  %v2668_v43 = vpop.permute.xlu1 %2667 }
 0xadd   : > { %v2673_v42 = vpop.permute.xlu0 %2672 }
 0xade   : > { %2413 = vmatmul.mubr.bf16.vlgmr.msra.gmra.mxu1 %v15022_v49 }
 0xadf   : > { %11767 = vmatprep.mubr.msk.bf16.mxu1 %vm2055_vm14, %v15023_v50  ;;  %v2658_v47 = vpop.permute.xlu1 %2657 }
 0xae1   : > { %v2663_v45 = vpop.permute.xlu0 %2662 }
 0xae5   : > { %v2653_v50 = vpop.permute.xlu0 %2652 }
 0xae6   : > { %2421 = vmatmul.mubr.bf16.gmra.mxu1 %v15025_v51 }
 0xb9e   : > { %v2414_v54 = vpop.f32.mrf.mxu1 }
 0xba0   : > { %v2416_v55 = vpop.f32.mrf.mxu1 }
 0xba2   : > { %v2417_v56 = vpop.f32.mrf.mxu1 }
 0xba3   : > { %v2429_v57 = vpack.c.bf16 %v2417_v56, %v2414_v54  ;;  %v2648_v54 = vpop.permute.xlu1 %2647 }
 0xba4   : > { %v2419_v58 = vpop.f32.mrf.mxu1 }
 0xba5   : > { %13066 = vmatprep.mubr.msk.bf16.mxu0 %vm18179_vm9, %v2429_v57 }
 0xba6   : > { %v2422_v59 = vpop.f32.mrf.mxu1 }
 0xba8   : > { %v2424_v60 = vpop.f32.mrf.mxu1 }
 0xba9   : > { %v2643_v60 = vpop.permute.xlu0 %2642 }
 0xbaa   : > { %v2425_v61 = vpop.f32.mrf.mxu1 }
 0xbab   : > { %v2430_v62 = vpack.c.bf16 %v2425_v61, %v2422_v59 }
 0xbac   : > { %v2427_v63 = vpop.f32.mrf.mxu1 }
 0xbad   : > { %13067 = vmatmul.mubr.msk.bf16.vlgmr.msra.gmra.mxu0 %vm18179_vm9, %v2430_v62 }
 0xbae   : > { %13074 = vmatprep.mubr.msk.bf16.mxu0 %vm2055_vm14, %v15027_v1 }
 0xc6d   : > { %v13068_v4 = vpop.f32.mrf.mxu0 }
 0xc6e   : > { %v2512_v6 = vadd.f32 %v13068_v4, %v2450_v2  ;;  %v2638_v2 = vpop.permute.xlu1 %2637 }
 0xc6f   : > { %v2503_v7 = vpop.f32.mrf.mxu0 }
 0xc70   : > { %v2504_v9 = vadd.f32 %v2503_v7, %v2440_v8  ;;  %15333 = vtanh.f32 %v2512_v6 }
 0xc71   : > { %v13069_v10 = vpop.f32.mrf.mxu0 }
 0xc72   : > { %v2515_v12 = vadd.f32 %v13069_v10, %v2455_v3 }
 0xc73   : > { %v2506_v14 = vpop.f32.mrf.mxu0 }
 0xc74   : > { %15335 = vtanh.f32 %v2515_v12  ;;  %v2507_v15 = vadd.f32 %v2506_v14, %v2445_v13 }
 0xc75   : > { %15337 = vtanh.f32 %v2504_v9 }
 0xc76   : > { %15339 = vtanh.f32 %v2507_v15 }
 0xc7d   : > { %v15334_v16 = vpop.eup %15333 }
 0xc81   : > { %v15336_v17 = vpop.eup %15335 }
 0xc82   : > { %v15338_v18 = vpop.eup %15337  ;;  %v2527_v19 = vpack.c.bf16 %v15336_v17, %v15334_v16 }
 0xc83   : > { %v15340_v20 = vpop.eup %15339 }
 0xc84   : > { %13070 = vmatprep.subr.bf16.mxu0 %v2527_v19  ;;  %v2526_v21 = vpack.c.bf16 %v15340_v20, %v15338_v18 }
 0xc85   : > { %13071 = vmatpush3.bf16.msra.mxu0 %v2527_v19 }
 0xc86   : > { %13072 = vmatprep.subr.bf16.mxu0 %v2526_v21 }
 0xc89   : > { %13073 = vmatpush3.bf16.msra.mxu0 %v2526_v21 }
 0xc8c   : > { %13075 = vmatmul.mubr.msk.bf16.vlgmr.msra.gmra.mxu0 %vm2055_vm14, %v15028_v22 }
 0xc8d   : > { %13082 = vmatprep.mubr.msk.bf16.mxu0 %vm2055_vm14, %v15029_v23 }
 0xd4c   : > { %v13076_v26 = vpop.f32.mrf.mxu0 }
 0xd4d   : > { %v2611_v30 = vadd.f32 %v13076_v26, %v2545_v24 }
 0xd4e   : > { %v2602_v27 = vpop.f32.mrf.mxu0 }
 0xd4f   : > { %v2603_v34 = vadd.f32 %v2602_v27, %v2535_v29 }
 0xd50   : > { %v13077_v28 = vpop.f32.mrf.mxu0 }
 0xd51   : > { %v2614_v31 = vadd.f32 %v13077_v28, %v2550_v25 }
 0xd52   : > { %v2605_v33 = vpop.f32.mrf.mxu0 }
 0xd53   : > { %v2626_v35 = vpack.c.bf16 %v2614_v31, %v2611_v30  ;;  %v2606_v36 = vadd.f32 %v2605_v33, %v2540_v32 }
 0xd55   : > { %v2625_v37 = vpack.c.bf16 %v2606_v36, %v2603_v34  ;;  %13078 = vmatprep.subr.bf16.mxu0 %v2626_v35 }
 0xd56   : > { %13079 = vmatpush3.bf16.msra.mxu0 %v2626_v35 }
 0xd57   : > { %13080 = vmatprep.subr.bf16.mxu0 %v2625_v37 }
 0xd5a   : > { %13081 = vmatpush3.bf16.msra.mxu0 %v2625_v37 }
 0xd5d   : > { %13083 = vmatmul.mubr.msk.bf16.vlgmr.msra.gmra.mxu0 %vm2055_vm14, %v15030_v38 }
 0xd5e   : > { %13086 = vmatprep.mubr.msk.bf16.mxu0 %vm2055_vm14, %v15031_v39 }
 0xd65   : > { %13087 = vmatmul.mubr.msk.bf16.gmra.mxu0 %vm2055_vm14, %v15032_v41 }
 0xe1d   : > { %v13084_v44 = vpop.f32.mrf.mxu0 }
 0xe1e   : > { %v2750_v61 = vadd.f32 %v13084_v44, %v2648_v54 }
 0xe1f   : > { %v2741_v46 = vpop.f32.mrf.mxu0 }
 0xe20   : > { %v2742_v3 = vadd.f32 %v2741_v46, %v2638_v2  ;;  %v3177_v2 = vld [vmem:[%s18267_s11 + $0x8] sm:$0xff] }
 0xe21   : > { %v13085_v48 = vpop.f32.mrf.mxu0 }
 0xe22   : > { %v2753_v53 = vadd.f32 %v13085_v48, %v2653_v50 }
 0xe23   : > { %v2744_v49 = vpop.f32.mrf.mxu0 }
 0xe24   : > { %15341 = vtanh.f32 %v2753_v53  ;;  %v2745_v63 = vadd.f32 %v2744_v49, %v2643_v60  ;;  %v3180_v60 = vld [vmem:[%s18267_s11 + $0x20] sm:$0xff] }
 0xe25   : > { %v13088_v51 = vpop.f32.mrf.mxu0 }
 0xe26   : > { %v2766_v55 = vadd.f32 %v13088_v51, %v2668_v43 }
 0xe27   : > { %v2757_v56 = vpop.f32.mrf.mxu0 }
 0xe28   : > { %v2758_v57 = vadd.f32 %v2757_v56, %v2658_v47  ;;  %15343 = vtanh.f32 %v2766_v55  ;;  %v15035_v56 = vld [vmem:[%s18266_s4 + $0x4] ss:$12 sps:$4 sm:$0xff]  }
 0xe29   : > { %v13089_v58 = vpop.f32.mrf.mxu0  ;;  %3073 = vmatprep.mubr.bf16.mxu0 %v15035_v56 }
 0xe2a   : > { %v2769_v59 = vadd.f32 %v13089_v58, %v2673_v42  ;;  %v15038_v58 = vld [vmem:[%s18266_s4 + $0x8] ss:$12 sps:$4 sm:$0xff]  }
 0xe2b   : > { %v2760_v62 = vpop.f32.mrf.mxu0  ;;  %13098 = vmatprep.mubr.msk.bf16.mxu1 %vm1759_vm10, %v15038_v58 }
 0xe2c   : > { %15345 = vtanh.f32 %v2769_v59  ;;  %v2761_v1 = vadd.f32 %v2760_v62, %v2663_v45  ;;  %v3183_v59 = vld [vmem:[%s18267_s11 + $0x38] sm:$0xff]  ;;  %v3178_v62 = vld [vmem:[%s18267_s11 + $0x10] sm:$0xff] }
 0xe2d   : > { %15347 = vtanh.f32 %v2758_v57  ;;  %v3182_v57 = vld [vmem:[%s18267_s11 + $0x30] sm:$0xff] }
 0xe2e   : > { %15349 = vtanh.f32 %v2761_v1  ;;  %v3176_v1 = vld [vmem:[%s18267_s11] sm:$0xff] }
 0xe2f   : > { %15351 = vtanh.f32 %v2750_v61  ;;  %v3181_v61 = vld [vmem:[%s18267_s11 + $0x28] sm:$0xff] }
 0xe30   : > { %15353 = vtanh.f32 %v2745_v63  ;;  %v3179_v63 = vld [vmem:[%s18267_s11 + $0x18] sm:$0xff]  ;;  %s18280_s11 = sld [smem:[#allocation24_spill]] }
 0xe31   : > { %15355 = vtanh.f32 %v2742_v3  ;;  %v15342_v4 = vpop.eup %15341  ;;  %v3330_v3 = vld [vmem:[%s18270_s22 + $0x30] sm:$0xff] }
 0xe35   : > { %v15344_v6 = vpop.eup %15343 }
 0xe39   : > { %v15346_v7 = vpop.eup %15345 }
 0xe3a   : > { %v15348_v8 = vpop.eup %15347  ;;  %v13814_v9 = vpack.i.bf16 %v15346_v7, %v15344_v6  ;;  %v3328_v6 = vld [vmem:[%s18270_s22 + $0x20] sm:$0xff]  ;;  %v3329_v7 = vld [vmem:[%s18270_s22 + $0x28] sm:$0xff] }
 0xe3b   : > { %v15350_v10 = vpop.eup %15349 }
 0xe3c   : > { %v15352_v12 = vpop.eup %15351  ;;  %13815 = vrot.lane.b32.xlu1 %v13814_v9, %s18263_s23  ;;  %v13819_v13 = vpack.i.bf16 %v15350_v10, %v15348_v8  ;;  %v3326_v8 = vld [vmem:[%s18270_s22 + $0x10] sm:$0xff]  ;;  %v3327_v9 = vld [vmem:[%s18270_s22 + $0x18] sm:$0xff]  ;;  %v3324_v10 = vld [vmem:[%s18270_s22] sm:$0xff] }
 0xe3d   : > { %v15354_v14 = vpop.eup %15353  ;;  %v13824_v15 = vpack.i.bf16 %v15342_v4, %v15352_v12  ;;  %v3331_v4 = vld [vmem:[%s18270_s22 + $0x38] sm:$0xff]  ;;  %v3325_v12 = vld [vmem:[%s18270_s22 + $0x8] sm:$0xff]  ;;  %s18277_s22 = sld [smem:[#allocation18_spill]] }
 0xe3e   : > { %13820 = vrot.lane.b32.xlu0 %v13819_v13, %s18263_s23  ;;  %v15356_v16 = vpop.eup %15355  ;;  %v3503_v13 = vld [vmem:[%s18271_s18 + $0x70] sm:$0xff] }
 0xe3f   : > { %v13829_v17 = vpack.i.bf16 %v15354_v14, %v15356_v16  ;;  %v3504_v14 = vld [vmem:[%s18271_s18 + $0x78] sm:$0xff]  ;;  %v3502_v16 = vld [vmem:[%s18271_s18 + $0x68] sm:$0xff] }
 0xe40   : > { %13825 = vrot.lane.b32.xlu1 %v13824_v15, %s18263_s23  ;;  %v3501_v15 = vld [vmem:[%s18271_s18 + $0x60] sm:$0xff] }
 0xe42   : > { %13830 = vrot.lane.b32.xlu0 %v13829_v17, %s18263_s23  ;;  %v3499_v17 = vld [vmem:[%s18271_s18 + $0x50] sm:$0xff] }
 0xeae   : > { %v13816_v18 = vpop.permute.xlu1 %13815 }
 0xeaf   : > { %v13818_v19 = vunpack.i.h.bf16 %v13816_v18  ;;  %v13817_v20 = vunpack.i.l.bf16 %v13816_v18  ;;  %v3500_v18 = vld [vmem:[%s18271_s18 + $0x58] sm:$0xff] }
 0xeb0   : > { %v13821_v21 = vpop.permute.xlu0 %13820 }
 0xeb1   : > { %v16193_v22 = vsel %vm1644_vm4, 0.0, %v13818_v19  ;;  %v16196_v23 = vsel %vm1644_vm4, 0.0, %v13817_v20  ;;  %v13823_v24 = vunpack.i.h.bf16 %v13821_v21  ;;  %v13822_v25 = vunpack.i.l.bf16 %v13821_v21  ;;  %v3497_v19 = vld [vmem:[%s18271_s18 + $0x40] sm:$0xff]  ;;  %v3498_v20 = vld [vmem:[%s18271_s18 + $0x48] sm:$0xff]  ;;  %v3495_v21 = vld [vmem:[%s18271_s18 + $0x30] sm:$0xff] }
 0xeb2   : > { %v2828_v26 = vsel %vm18152_vm6, %v16193_v22, 0.0  ;;  %v2827_v27 = vsel %vm18152_vm6, %v16196_v23, 0.0  ;;  %v11796_v28 = vpack.c.bf16 %v16193_v22, %v16196_v23  ;;  %v13826_v29 = vpop.permute.xlu1 %13825 }
 0xeb3   : > { %v16205_v30 = vsel %vm1644_vm4, 0.0, %v13823_v24  ;;  %v16208_v31 = vsel %vm1644_vm4, 0.0, %v13822_v25  ;;  %v13828_v32 = vunpack.i.h.bf16 %v13826_v29  ;;  %v13827_v33 = vunpack.i.l.bf16 %v13826_v29  ;;  %v3496_v24 = vld [vmem:[%s18271_s18 + $0x38] sm:$0xff]  ;;  %v3493_v25 = vld [vmem:[%s18271_s18 + $0x20] sm:$0xff] }
 0xeb4   : > { %v2826_v34 = vsel %vm18152_vm6, %v16205_v30, 0.0  ;;  %v2825_v35 = vsel %vm18152_vm6, %v16208_v31, 0.0  ;;  %v11799_v36 = vpack.c.bf16 %v16205_v30, %v16208_v31  ;;  %v13831_v37 = vpop.permute.xlu0 %13830  ;;  %v13834_v38 = vpack.i.bf16 %v2828_v26, %v2827_v27  ;;  %v3494_v26 = vld [vmem:[%s18271_s18 + $0x28] sm:$0xff]  ;;  %v3491_v27 = vld [vmem:[%s18271_s18 + $0x10] sm:$0xff]  ;;  %v3492_v29 = vld [vmem:[%s18271_s18 + $0x18] sm:$0xff] }
 0xeb5   : > { %v16217_v39 = vsel %vm1644_vm4, 0.0, %v13828_v32  ;;  %v16220_v41 = vsel %vm1644_vm4, 0.0, %v13827_v33  ;;  %v13833_v42 = vunpack.i.h.bf16 %v13831_v37  ;;  %v13832_v43 = vunpack.i.l.bf16 %v13831_v37  ;;  %v3489_v32 = vld [vmem:[%s18271_s18] sm:$0xff]  ;;  %v3490_v33 = vld [vmem:[%s18271_s18 + $0x8] sm:$0xff]  ;;  %s18275_s18 = sld [smem:[#allocation15_spill]] }
 0xeb6   : > { %v11802_v44 = vpack.c.bf16 %v16217_v39, %v16220_v41  ;;  %13835 = vrot.lane.b32.xlu1 %v13834_v38, %s18264_s5  ;;  %13840 = vrot.lane.b32.xlu0 %v13834_v38, %s18265_s7  ;;  %v13844_v48 = vpack.i.bf16 %v2826_v34, %v2825_v35  ;;  %v2824_v49 = vsel %vm18152_vm6, %v16217_v39, 0.0  ;;  %v2823_v50 = vsel %vm18152_vm6, %v16220_v41, 0.0  ;;  %v15036_v39 = vld [vmem:[%s18266_s4 + $0x1c] ss:$12 sps:$4 sm:$0xff]  }
 0xeb7   : > { %v16226_v45 = vsel %vm1644_vm4, 0.0, %v13833_v42  ;;  %v16229_v46 = vsel %vm1644_vm4, 0.0, %v13832_v43  ;;  %v13849_v51 = vpack.i.bf16 %v2824_v49, %v2823_v50 }
 0xeb8   : > { %v11805_v47 = vpack.c.bf16 %v16226_v45, %v16229_v46  ;;  %v2822_v53 = vsel %vm18152_vm6, %v16226_v45, 0.0  ;;  %v2821_v54 = vsel %vm18152_vm6, %v16229_v46, 0.0  ;;  %v15041_v45 = vld [vmem:[%s18266_s4 + $0x34] ss:$12 sps:$4 sm:$0xff]   ;;  %v15045_v46 = vld [vmem:[%s18266_s4 + $0x50] ss:$12 sps:$4 sm:$0xff]   ;;  %vm16541_vm6 = vmpackc.low %vm18165_vm12, %vm18165_vm12 }
 0xeb9   : > { %v13864_v55 = vpack.i.bf16 %v2822_v53, %v2821_v54 }
 0xeba   : > { %13845 = vrot.lane.b32.xlu1 %v13844_v48, %s18264_s5  ;;  %13855 = vrot.lane.b32.xlu0 %v13844_v48, %s18265_s7 }
 0xebe   : > { %13850 = vrot.lane.b32.xlu1 %v13849_v51, %s18264_s5  ;;  %13860 = vrot.lane.b32.xlu0 %v13849_v51, %s18265_s7 }
 0xec2   : > { %13865 = vrot.lane.b32.xlu1 %v13864_v55, %s18264_s5  ;;  %13870 = vrot.lane.b32.xlu0 %v13864_v55, %s18265_s7 }
 0xec6   : > { %13875 = vrot.lane.b32.xlu1 %v13834_v38, %s18268_s30  ;;  %13880 = vrot.lane.b32.xlu0 %v13844_v48, %s18268_s30 }
 0xeca   : > { %13885 = vrot.lane.b32.xlu1 %v13849_v51, %s18268_s30  ;;  %13890 = vrot.lane.b32.xlu0 %v13864_v55, %s18268_s30 }
 0xece   : > { %13895 = vrot.lane.b32.xlu1 %v13834_v38, %s18269_s26  ;;  %13900 = vrot.lane.b32.xlu0 %v13844_v48, %s18269_s26 }
 0xed2   : > { %13905 = vrot.lane.b32.xlu1 %v13849_v51, %s18269_s26  ;;  %13910 = vrot.lane.b32.xlu0 %v13864_v55, %s18269_s26 }
 0xed6   : > { %3216 = vperm.xlu1 %13738, %v3182_v57   ;;  %3221 = vperm.xlu0 %13737, %v3183_v59  }
 0xeda   : > { %3206 = vperm.xlu1 %13738, %v3180_v60   ;;  %3211 = vperm.xlu0 %13737, %v3181_v61  }
 0xede   : > { %3196 = vperm.xlu1 %13738, %v3178_v62   ;;  %3201 = vperm.xlu0 %13737, %v3179_v63  }
 0xee2   : > { %3186 = vperm.xlu1 %13738, %v3176_v1   ;;  %3191 = vperm.xlu0 %13737, %v3177_v2  }
 0xee6   : > { %3364 = vperm.xlu1 %13738, %v3330_v3   ;;  %3369 = vperm.xlu0 %13737, %v3331_v4  }
 0xeea   : > { %3354 = vperm.xlu1 %13738, %v3328_v6   ;;  %3359 = vperm.xlu0 %13737, %v3329_v7  }
 0xeee   : > { %3344 = vperm.xlu1 %13738, %v3326_v8   ;;  %3349 = vperm.xlu0 %13737, %v3327_v9  }
 0xef2   : > { %3334 = vperm.xlu1 %13738, %v3324_v10   ;;  %3339 = vperm.xlu0 %13737, %v3325_v12  }
 0xef6   : > { %3577 = vperm.xlu1 %13738, %v3503_v13   ;;  %3582 = vperm.xlu0 %13737, %v3504_v14  }
 0xefa   : > { %3567 = vperm.xlu1 %13738, %v3501_v15   ;;  %3572 = vperm.xlu0 %13737, %v3502_v16  }
 0xefe   : > { %3557 = vperm.xlu1 %13738, %v3499_v17   ;;  %3562 = vperm.xlu0 %13737, %v3500_v18  }
 0xf02   : > { %3547 = vperm.xlu1 %13738, %v3497_v19   ;;  %3552 = vperm.xlu0 %13737, %v3498_v20  }
 0xf06   : > { %3537 = vperm.xlu1 %13738, %v3495_v21   ;;  %3542 = vperm.xlu0 %13737, %v3496_v24   ;;  %v18272_v24 = vmov 0 }
 0xf07   : > { %v18273_v24 = vsel %vm16293_vm5, 4294967295, %v18272_v24 }
 0xf08   : > { %18274 = vst [vmem:[#allocation46_spill] sm:$0xff] %v18273_v24 }
 0xf0a   : > { %3527 = vperm.xlu1 %13738, %v3493_v25   ;;  %3532 = vperm.xlu0 %13737, %v3494_v26  }
 0xf0e   : > { %3517 = vperm.xlu1 %13738, %v3491_v27   ;;  %3522 = vperm.xlu0 %13737, %v3492_v29  }
 0xf12   : > { %3507 = vperm.xlu1 %13738, %v3489_v32   ;;  %3512 = vperm.xlu0 %13737, %v3490_v33  }
 0xf28   : > { %v13836_v34 = vpop.permute.xlu1 %13835  ;;  %v13841_v38 = vpop.permute.xlu0 %13840 }
 0xf29   : > { %v13838_v35 = vunpack.i.h.bf16 %v13836_v34  ;;  %v13837_v37 = vunpack.i.l.bf16 %v13836_v34  ;;  %v13843_v42 = vunpack.i.h.bf16 %v13841_v38  ;;  %v13842_v43 = vunpack.i.l.bf16 %v13841_v38 }
 0xf2b   : > { %v2964_v48 = vpack.c.bf16 %v13838_v35, %v13837_v37  ;;  %v2956_v50 = vpack.c.bf16 %v13843_v42, %v13842_v43 }
 0xf2c   : > { %v13846_v49 = vpop.permute.xlu1 %13845  ;;  %v13856_v54 = vpop.permute.xlu0 %13855 }
 0xf2d   : > { %v13848_v51 = vunpack.i.h.bf16 %v13846_v49  ;;  %v13847_v53 = vunpack.i.l.bf16 %v13846_v49  ;;  %12255 = vmatprep.subr.bf16.mxu0 %v2964_v48  ;;  %v13858_v55 = vunpack.i.h.bf16 %v13856_v54  ;;  %v13857_v56 = vunpack.i.l.bf16 %v13856_v54  ;;  %v15033_v54 = vld [vmem:[%s18266_s4] ss:$12 sps:$4 sm:$0xff]  }
 0xf2e   : > { %12256 = vmatpush3.bf16.msra.mxu0 %v2956_v50 }
 0xf2f   : > { %v2963_v57 = vpack.c.bf16 %v13848_v51, %v13847_v53  ;;  %v2955_v59 = vpack.c.bf16 %v13858_v55, %v13857_v56  ;;  %v15039_v55 = vld [vmem:[%s18266_s4 + $0x18] ss:$12 sps:$4 sm:$0xff]  }
 0xf30   : > { %v13851_v58 = vpop.permute.xlu1 %13850  ;;  %v13861_v62 = vpop.permute.xlu0 %13860  ;;  %v15044_v56 = vld [vmem:[%s18266_s4 + $0x38] ss:$12 sps:$4 sm:$0xff]  }
 0xf31   : > { %v13853_v60 = vunpack.i.h.bf16 %v13851_v58  ;;  %v13852_v61 = vunpack.i.l.bf16 %v13851_v58  ;;  %12257 = vmatprep.subr.bf16.mxu0 %v2963_v57  ;;  %v13863_v63 = vunpack.i.h.bf16 %v13861_v62  ;;  %v13862_v1 = vunpack.i.l.bf16 %v13861_v62  ;;  %v15046_v57 = vld [vmem:[%s18266_s4 + $0x4c] ss:$12 sps:$4 sm:$0xff]   ;;  %v15048_v58 = vld [vmem:[%s18266_s4 + $0x48] ss:$12 sps:$4 sm:$0xff]  }
 0xf32   : > { %12258 = vmatpush3.bf16.msra.mxu0 %v2955_v59  ;;  %v3175_v59 = vld [vmem:[%s18275_s18] sm:$0xf]  ;;  %s18276_s18 = sld [smem:[#allocation16_spill]] }
 0xf33   : > { %v2962_v2 = vpack.c.bf16 %v13853_v60, %v13852_v61  ;;  %v2954_v4 = vpack.c.bf16 %v13863_v63, %v13862_v1  ;;  %v3237_v60 = vsel %vm1667_vm8, %v3175_v59, 0 }
 0xf34   : > { %v13866_v3 = vpop.permute.xlu1 %13865  ;;  %v13871_v8 = vpop.permute.xlu0 %13870 }
 0xf35   : > { %v13868_v6 = vunpack.i.h.bf16 %v13866_v3  ;;  %v13867_v7 = vunpack.i.l.bf16 %v13866_v3  ;;  %12259 = vmatprep.subr.bf16.mxu0 %v2962_v2  ;;  %v13873_v9 = vunpack.i.h.bf16 %v13871_v8  ;;  %v13872_v10 = vunpack.i.l.bf16 %v13871_v8 }
 0xf36   : > { %12260 = vmatpush3.bf16.msra.mxu0 %v2954_v4 }
 0xf37   : > { %v2961_v12 = vpack.c.bf16 %v13868_v6, %v13867_v7  ;;  %v2953_v14 = vpack.c.bf16 %v13873_v9, %v13872_v10 }
 0xf38   : > { %v13876_v13 = vpop.permute.xlu1 %13875  ;;  %v13881_v17 = vpop.permute.xlu0 %13880 }
 0xf39   : > { %v13878_v15 = vunpack.i.h.bf16 %v13876_v13  ;;  %v13877_v16 = vunpack.i.l.bf16 %v13876_v13  ;;  %12261 = vmatprep.subr.bf16.mxu0 %v2961_v12  ;;  %v13883_v18 = vunpack.i.h.bf16 %v13881_v17  ;;  %v13882_v19 = vunpack.i.l.bf16 %v13881_v17 }
 0xf3a   : > { %12262 = vmatpush3.bf16.msra.mxu0 %v2953_v14 }
 0xf3b   : > { %v2960_v20 = vpack.c.bf16 %v13878_v15, %v13877_v16  ;;  %v2959_v29 = vpack.c.bf16 %v13883_v18, %v13882_v19 }
 0xf3c   : > { %v13886_v21 = vpop.permute.xlu1 %13885  ;;  %v13891_v25 = vpop.permute.xlu0 %13890 }
 0xf3d   : > { %12263 = vmatprep.subr.bf16.mxu0 %v2960_v20  ;;  %v13888_v26 = vunpack.i.h.bf16 %v13886_v21  ;;  %v13887_v27 = vunpack.i.l.bf16 %v13886_v21  ;;  %v13893_v35 = vunpack.i.h.bf16 %v13891_v25  ;;  %v13892_v37 = vunpack.i.l.bf16 %v13891_v25 }
 0xf3e   : > { %12264 = vmatpush3.bf16.msk.msra.mxu0 %vm16293_vm5, %v11796_v28 }
 0xf3f   : > { %12265 = vmatprep.subr.bf16.mxu0 %v2959_v29  ;;  %v2958_v42 = vpack.c.bf16 %v13888_v26, %v13887_v27  ;;  %v2957_v53 = vpack.c.bf16 %v13893_v35, %v13892_v37 }
 0xf40   : > { %v13896_v32 = vpop.permute.xlu1 %13895  ;;  %v13901_v38 = vpop.permute.xlu0 %13900 }
 0xf41   : > { %v13898_v33 = vunpack.i.h.bf16 %v13896_v32  ;;  %v13897_v34 = vunpack.i.l.bf16 %v13896_v32  ;;  %v13903_v43 = vunpack.i.h.bf16 %v13901_v38  ;;  %v13902_v48 = vunpack.i.l.bf16 %v13901_v38 }
 0xf42   : > { %12266 = vmatpush3.bf16.msk.msra.mxu0 %vm16293_vm5, %v11799_v36 }
 0xf43   : > { %v2968_v22 = vpack.c.bf16 %v13898_v33, %v13897_v34  ;;  %12267 = vmatprep.subr.bf16.mxu0 %v2958_v42  ;;  %v2967_v50 = vpack.c.bf16 %v13903_v43, %v13902_v48 }
 0xf44   : > { %v13906_v23 = vpop.permute.xlu1 %13905  ;;  %v13911_v51 = vpop.permute.xlu0 %13910 }
 0xf45   : > { %v13908_v28 = vunpack.i.h.bf16 %v13906_v23  ;;  %v13907_v49 = vunpack.i.l.bf16 %v13906_v23  ;;  %13090 = vmatprep.subr.bf16.mxu1 %v2968_v22  ;;  %v13913_v30 = vunpack.i.h.bf16 %v13911_v51  ;;  %v13912_v31 = vunpack.i.l.bf16 %v13911_v51 }
 0xf46   : > { %13091 = vmatpush3.bf16.msra.mxu1 %v2968_v22  ;;  %12268 = vmatpush3.bf16.msk.msra.mxu0 %vm16293_vm5, %v11802_v44  ;;  %v15040_v44 = vld [vmem:[%s18266_s4 + $0x20] ss:$12 sps:$4 sm:$0xff]  }
 0xf47   : > { %13092 = vmatprep.subr.bf16.mxu1 %v2967_v50  ;;  %12269 = vmatprep.subr.bf16.mxu0 %v2957_v53  ;;  %v2966_v36 = vpack.c.bf16 %v13908_v28, %v13907_v49  ;;  %v2965_v41 = vpack.c.bf16 %v13913_v30, %v13912_v31 }
 0xf4a   : > { %13093 = vmatpush3.bf16.msra.mxu1 %v2967_v50  ;;  %12270 = vmatpush3.bf16.msk.msra.mxu0 %vm16293_vm5, %v11805_v47  ;;  %v15043_v47 = vld [vmem:[%s18266_s4 + $0x30] ss:$12 sps:$4 sm:$0xff]  }
 0xf4b   : > { %13094 = vmatprep.subr.bf16.mxu1 %v2966_v36 }
 0xf4d   : > { %3074 = vmatmul.mubr.bf16.vlgmr.msra.gmra.mxu0 %v15033_v54 }
 0xf4e   : > { %13095 = vmatpush3.bf16.msra.mxu1 %v2966_v36  ;;  %3081 = vmatprep.mubr.bf16.mxu0 %v15036_v39  ;;  %v15049_v36 = vld [vmem:[%s18276_s18] sm:$0xff]  }
 0xf4f   : > { %13096 = vmatprep.subr.bf16.mxu1 %v2965_v41 }
 0xf52   : > { %13097 = vmatpush3.bf16.msra.mxu1 %v2965_v41  ;;  %v3222_v41 = vpop.permute.xlu0 %3221 }
 0xf53   : > { %13656 = vmatprep.subr.msk.bf16.mxu1 %vm1667_vm8, %v3175_v59 }
 0xf55   : > { %13099 = vmatmul.mubr.msk.bf16.vlgmr.msra.gmra.mxu1 %vm1759_vm10, %v15040_v44  ;;  %3082 = vmatmul.mubr.bf16.gmra.mxu0 %v15039_v55  ;;  %v3217_v44 = vpop.permute.xlu1 %3216 }
 0xf56   : > { %13102 = vmatprep.mubr.msk.bf16.mxu1 %vm1759_vm10, %v15044_v56  ;;  %3089 = vmatprep.mubr.bf16.mxu0 %v15041_v45  ;;  %v3212_v56 = vpop.permute.xlu0 %3211 }
 0xf57   : > { %13107 = vmatpush3.bf16.msra.mxu1 %v3237_v60 }
 0xf5a   : > { %v3202_v59 = vpop.permute.xlu0 %3201 }
 0xf5d   : > { %13103 = vmatmul.mubr.msk.bf16.gmra.mxu1 %vm1759_vm10, %v15045_v46  ;;  %3090 = vmatmul.mubr.bf16.gmra.mxu0 %v15043_v47  ;;  %v3207_v46 = vpop.permute.xlu1 %3206 }
 0xf5e   : > { %3097 = vmatprep.mubr.bf16.mxu0 %v15046_v57 }
 0xf65   : > { %3098 = vmatmul.mubr.bf16.gmra.mxu0 %v15048_v58 }
0x100d   : > { %v12271_v61 = vpop.f32.mrf.mxu0 }
0x100f   : > { %v12272_v62 = vpop.f32.mrf.mxu0 }
0x1010   : > { %v12273_v8 = vadd.f32 %v12272_v62, %v12271_v61 }
0x1011   : > { %v12274_v63 = vpop.f32.mrf.mxu0 }
0x1013   : > { %v12275_v1 = vpop.f32.mrf.mxu0 }
0x1014   : > { %v12276_v9 = vadd.f32 %v12275_v1, %v12274_v63  ;;  %v3197_v63 = vpop.permute.xlu1 %3196 }
0x1015   : > { %v13100_v2 = vpop.f32.mrf.mxu1  ;;  %v12277_v3 = vpop.f32.mrf.mxu0 }
0x1017   : > { %v3140_v4 = vpop.f32.mrf.mxu1  ;;  %v12278_v6 = vpop.f32.mrf.mxu0 }
0x1018   : > { %v12279_v12 = vadd.f32 %v12278_v6, %v12277_v3  ;;  %v3141_v14 = vadd.f32 %v12273_v8, %v3140_v4  ;;  %v3192_v6 = vpop.permute.xlu0 %3191  ;;  %v3187_v8 = vpop.permute.xlu1 %3186 }
0x1019   : > { %v13101_v7 = vpop.f32.mrf.mxu1  ;;  %v12280_v10 = vpop.f32.mrf.mxu0 }
0x101a   : > { %v3149_v21 = vadd.f32 %v13100_v2, %v12279_v12 }
0x101b   : > { %v3143_v13 = vpop.f32.mrf.mxu1  ;;  %v12281_v15 = vpop.f32.mrf.mxu0 }
0x101c   : > { %v3144_v16 = vadd.f32 %v12276_v9, %v3143_v13  ;;  %v12282_v17 = vadd.f32 %v12281_v15, %v12280_v10 }
0x101d   : > { %v13104_v18 = vpop.f32.mrf.mxu1  ;;  %v12283_v20 = vpop.f32.mrf.mxu0 }
0x101e   : > { %v3171_v19 = vpack.c.bf16 %v3144_v16, %v3141_v14  ;;  %v3152_v25 = vadd.f32 %v13101_v7, %v12282_v17 }
0x101f   : > { %v3156_v26 = vpop.f32.mrf.mxu1  ;;  %v12284_v27 = vpop.f32.mrf.mxu0 }
0x1020   : > { %13108 = vmatprep.mubr.msk.bf16.mxu1 %vm1880_vm13, %v3171_v19  ;;  %v3172_v29 = vpack.c.bf16 %v3152_v25, %v3149_v21  ;;  %v12285_v34 = vadd.f32 %v12284_v27, %v12283_v20  ;;  %v15051_v27 = vld [vmem:[%s18276_s18 + $0x10] sm:$0xff]  }
0x1021   : > { %v13105_v32 = vpop.f32.mrf.mxu1  ;;  %v12286_v33 = vpop.f32.mrf.mxu0 }
0x1022   : > { %13109 = vmatmul.mubr.msk.bf16.vlgmr.msra.gmra.mxu1 %vm1880_vm13, %v3172_v29  ;;  %v3157_v43 = vadd.f32 %v12285_v34, %v3156_v26  ;;  %v15050_v26 = vld [vmem:[%s18276_s18 + $0x8] sm:$0xff]   ;;  %v15052_v29 = vld [vmem:[%s18276_s18 + $0x18] sm:$0xff]   ;;  %v3370_v34 = vpop.permute.xlu0 %3369  ;;  %s18279_s18 = sld [smem:[#allocation21_spill]] }
0x1023   : > { %v12287_v35 = vpop.f32.mrf.mxu0  ;;  %v3159_v37 = vpop.f32.mrf.mxu1 }
0x1024   : > { %v12288_v38 = vadd.f32 %v12287_v35, %v12286_v33 }
0x1025   : > { %v12289_v42 = vpop.f32.mrf.mxu0 }
0x1026   : > { %v3160_v48 = vadd.f32 %v12288_v38, %v3159_v37  ;;  %v3365_v37 = vpop.permute.xlu1 %3364 }
0x1027   : > { %v12290_v22 = vpop.f32.mrf.mxu0 }
0x1028   : > { %v3173_v23 = vpack.c.bf16 %v3160_v48, %v3157_v43  ;;  %v12291_v49 = vadd.f32 %v12290_v22, %v12289_v42  ;;  %v3360_v43 = vpop.permute.xlu0 %3359 }
0x1029   : > { %v12292_v28 = vpop.f32.mrf.mxu0 }
0x102a   : > { %13112 = vmatprep.mubr.msk.bf16.mxu1 %vm1880_vm13, %v3173_v23  ;;  %v3165_v53 = vadd.f32 %v13104_v18, %v12291_v49  ;;  %v3355_v22 = vpop.permute.xlu1 %3354 }
0x102b   : > { %v12293_v50 = vpop.f32.mrf.mxu0 }
0x102c   : > { %v12294_v51 = vadd.f32 %v12293_v50, %v12292_v28 }
0x102e   : > { %v3168_v30 = vadd.f32 %v13105_v32, %v12294_v51  ;;  %v15053_v32 = vld [vmem:[%s18277_s22] sm:$0xff]   ;;  %v3350_v51 = vpop.permute.xlu0 %3349 }
0x102f   : > { %13140 = vmatprep.mubr.msk.bf16.mxu0 %vm1759_vm10, %v15053_v32 }
0x1030   : > { %v3174_v31 = vpack.c.bf16 %v3168_v30, %v3165_v53 }
0x1032   : > { %13113 = vmatmul.mubr.msk.bf16.gmra.mxu1 %vm1880_vm13, %v3174_v31 }
0x1033   : > { %13124 = vmatprep.mubr.msk.bf16.mxu1 %vm1759_vm10, %v15049_v36 }
0x10e2   : > { %v13110_v54 = vpop.f32.mrf.mxu1 }
0x10e3   : > { %v3282_v4 = vadd.f32 %v13110_v54, %v3197_v63  ;;  %v3345_v54 = vpop.permute.xlu1 %3344  ;;  %v15059_v63 = vld [vmem:[%s18277_s22 + $0x30] sm:$0xff]  }
0x10e4   : > { %v3273_v39 = vpop.f32.mrf.mxu1 }
0x10e5   : > { %v3274_v9 = vadd.f32 %v3273_v39, %v3187_v8 }
0x10e6   : > { %v13111_v55 = vpop.f32.mrf.mxu1 }
0x10e7   : > { %v3285_v2 = vadd.f32 %v13111_v55, %v3202_v59  ;;  %v3340_v55 = vpop.permute.xlu0 %3339  ;;  %v15055_v59 = vld [vmem:[%s18277_s22 + $0x10] sm:$0xff]  }
0x10e8   : > { %v3276_v45 = vpop.f32.mrf.mxu1 }
0x10e9   : > { %v3277_v7 = vadd.f32 %v3276_v45, %v3192_v6 }
0x10f2   : > { %v13114_v47 = vpop.f32.mrf.mxu1 }
0x10f3   : > { %v3298_v57 = vadd.f32 %v13114_v47, %v3217_v44 }
0x10f4   : > { %v3289_v58 = vpop.f32.mrf.mxu1 }
0x10f5   : > { %v3290_v60 = vadd.f32 %v3289_v58, %v3207_v46  ;;  %15357 = vtanh.f32 %v3298_v57  ;;  %v3335_v46 = vpop.permute.xlu1 %3334  ;;  %v15054_v58 = vld [vmem:[%s18277_s22 + $0x8] sm:$0xff]  }
0x10f6   : > { %v13115_v61 = vpop.f32.mrf.mxu1 }
0x10f7   : > { %v3301_v62 = vadd.f32 %v13115_v61, %v3222_v41  ;;  %v15057_v61 = vld [vmem:[%s18277_s22 + $0x20] sm:$0xff]  }
0x10f8   : > { %v3292_v1 = vpop.f32.mrf.mxu1 }
0x10f9   : > { %15359 = vtanh.f32 %v3301_v62  ;;  %v3293_v3 = vadd.f32 %v3292_v1, %v3212_v56  ;;  %v15058_v62 = vld [vmem:[%s18277_s22 + $0x28] sm:$0xff]   ;;  %v15060_v1 = vld [vmem:[%s18277_s22 + $0x38] sm:$0xff]  }
0x10fa   : > { %15361 = vtanh.f32 %v3290_v60  ;;  %v15056_v60 = vld [vmem:[%s18277_s22 + $0x18] sm:$0xff]   ;;  %s18278_s22 = sld [smem:[#allocation20_spill]] }
0x10fb   : > { %15363 = vtanh.f32 %v3293_v3  ;;  %v3578_v3 = vpop.permute.xlu1 %3577 }
0x10fc   : > { %15365 = vtanh.f32 %v3285_v2  ;;  %v3583_v2 = vpop.permute.xlu0 %3582 }
0x10fd   : > { %15367 = vtanh.f32 %v3282_v4 }
0x10fe   : > { %15369 = vtanh.f32 %v3277_v7 }
0x10ff   : > { %15371 = vtanh.f32 %v3274_v9  ;;  %v3568_v8 = vpop.permute.xlu1 %3567 }
0x1100   : > { %v3573_v6 = vpop.permute.xlu0 %3572 }
0x1102   : > { %v15358_v10 = vpop.eup %15357 }
0x1106   : > { %v15360_v12 = vpop.eup %15359 }
0x1107   : > { %v15362_v13 = vpop.eup %15361  ;;  %v3323_v14 = vpack.c.bf16 %v15360_v12, %v15358_v10  ;;  %v3563_v12 = vpop.permute.xlu0 %3562 }
0x1108   : > { %v15364_v15 = vpop.eup %15363 }
0x1109   : > { %13116 = vmatprep.subr.bf16.mxu1 %v3323_v14  ;;  %v3322_v16 = vpack.c.bf16 %v15364_v15, %v15362_v13  ;;  %v15366_v17 = vpop.eup %15365 }
0x110a   : > { %13117 = vmatpush3.bf16.msra.mxu1 %v3323_v14  ;;  %v15368_v18 = vpop.eup %15367  ;;  %v3558_v14 = vpop.permute.xlu1 %3557 }
0x110b   : > { %13118 = vmatprep.subr.bf16.mxu1 %v3322_v16  ;;  %v3321_v19 = vpack.c.bf16 %v15366_v17, %v15368_v18  ;;  %v15370_v20 = vpop.eup %15369  ;;  %v3553_v17 = vpop.permute.xlu0 %3552 }
0x110c   : > { %v15372_v21 = vpop.eup %15371 }
0x110d   : > { %v3320_v25 = vpack.c.bf16 %v15370_v20, %v15372_v21 }
0x110e   : > { %13119 = vmatpush3.bf16.msra.mxu1 %v3322_v16 }
0x110f   : > { %13120 = vmatprep.subr.bf16.mxu1 %v3321_v19 }
0x1112   : > { %13121 = vmatpush3.bf16.msra.mxu1 %v3321_v19  ;;  %v3548_v19 = vpop.permute.xlu1 %3547 }
0x1113   : > { %13122 = vmatprep.subr.bf16.mxu1 %v3320_v25 }
0x1116   : > { %13123 = vmatpush3.bf16.msra.mxu1 %v3320_v25  ;;  %v3543_v25 = vpop.permute.xlu0 %3542 }
0x1119   : > { %13125 = vmatmul.mubr.msk.bf16.vlgmr.msra.gmra.mxu1 %vm1759_vm10, %v15050_v26 }
0x111a   : > { %13128 = vmatprep.mubr.msk.bf16.mxu1 %vm1759_vm10, %v15051_v27  ;;  %v3538_v27 = vpop.permute.xlu1 %3537 }
0x1121   : > { %13129 = vmatmul.mubr.msk.bf16.gmra.mxu1 %vm1759_vm10, %v15052_v29 }
0x11d9   : > { %v13126_v33 = vpop.f32.mrf.mxu1 }
0x11da   : > { %v3447_v44 = vadd.f32 %v13126_v33, %v3345_v54 }
0x11db   : > { %v3438_v35 = vpop.f32.mrf.mxu1 }
0x11dc   : > { %v3439_v47 = vadd.f32 %v3438_v35, %v3335_v46 }
0x11dd   : > { %v13127_v38 = vpop.f32.mrf.mxu1 }
0x11de   : > { %v3450_v39 = vadd.f32 %v13127_v38, %v3350_v51  ;;  %v3528_v38 = vpop.permute.xlu1 %3527 }
0x11df   : > { %v3441_v42 = vpop.f32.mrf.mxu1 }
0x11e0   : > { %v3486_v56 = vpack.c.bf16 %v3450_v39, %v3447_v44  ;;  %v3442_v45 = vadd.f32 %v3441_v42, %v3340_v55 }
0x11e1   : > { %v13130_v48 = vpop.f32.mrf.mxu1 }
0x11e2   : > { %v3463_v49 = vadd.f32 %v13130_v48, %v3365_v37  ;;  %v3485_v57 = vpack.c.bf16 %v3442_v45, %v3439_v47 }
0x11e3   : > { %v3454_v23 = vpop.f32.mrf.mxu1 }
0x11e4   : > { %v3455_v30 = vadd.f32 %v3454_v23, %v3355_v22 }
0x11e5   : > { %v13131_v28 = vpop.f32.mrf.mxu1 }
0x11e6   : > { %v3466_v50 = vadd.f32 %v13131_v28, %v3370_v34  ;;  %v3533_v34 = vpop.permute.xlu0 %3532 }
0x11e7   : > { %v3457_v53 = vpop.f32.mrf.mxu1 }
0x11e8   : > { %v3488_v31 = vpack.c.bf16 %v3466_v50, %v3463_v49  ;;  %v3458_v36 = vadd.f32 %v3457_v53, %v3360_v43 }
0x11ea   : > { %v3487_v41 = vpack.c.bf16 %v3458_v36, %v3455_v30  ;;  %13132 = vmatprep.subr.bf16.mxu0 %v3488_v31  ;;  %v3523_v50 = vpop.permute.xlu0 %3522  ;;  %v3518_v30 = vpop.permute.xlu1 %3517 }
0x11eb   : > { %13133 = vmatpush3.bf16.msra.mxu0 %v3488_v31 }
0x11ec   : > { %13134 = vmatprep.subr.bf16.mxu0 %v3487_v41 }
0x11ef   : > { %13135 = vmatpush3.bf16.msra.mxu0 %v3487_v41  ;;  %v3513_v41 = vpop.permute.xlu0 %3512 }
0x11f0   : > { %13136 = vmatprep.subr.bf16.mxu0 %v3486_v56 }
0x11f3   : > { %13137 = vmatpush3.bf16.msra.mxu0 %v3486_v56  ;;  %v3508_v56 = vpop.permute.xlu1 %3507 }
0x11f4   : > { %13138 = vmatprep.subr.bf16.mxu0 %v3485_v57 }
0x11f7   : > { %13139 = vmatpush3.bf16.msra.mxu0 %v3485_v57 }
0x11fa   : > { %13141 = vmatmul.mubr.msk.bf16.vlgmr.msra.gmra.mxu0 %vm1759_vm10, %v15054_v58 }
0x11fb   : > { %13144 = vmatprep.mubr.msk.bf16.mxu0 %vm1759_vm10, %v15055_v59 }
0x1202   : > { %13145 = vmatmul.mubr.msk.bf16.gmra.mxu0 %vm1759_vm10, %v15056_v60 }
0x1203   : > { %13148 = vmatprep.mubr.msk.bf16.mxu0 %vm1759_vm10, %v15057_v61 }
0x120a   : > { %13149 = vmatmul.mubr.msk.bf16.gmra.mxu0 %vm1759_vm10, %v15058_v62 }
0x120b   : > { %13152 = vmatprep.mubr.msk.bf16.mxu0 %vm1759_vm10, %v15059_v63 }
0x1212   : > { %13153 = vmatmul.mubr.msk.bf16.gmra.mxu0 %vm1759_vm10, %v15060_v1 }
0x12ba   : > { %v13142_v4 = vpop.f32.mrf.mxu0 }
0x12bb   : > { %v3692_v44 = vadd.f32 %v13142_v4, %v3518_v30 }
0x12bc   : > { %v3683_v7 = vpop.f32.mrf.mxu0 }
0x12bd   : > { %v3684_v45 = vadd.f32 %v3683_v7, %v3508_v56 }
0x12be   : > { %v13143_v9 = vpop.f32.mrf.mxu0 }
0x12bf   : > { %v3695_v54 = vadd.f32 %v13143_v9, %v3523_v50 }
0x12c0   : > { %v3686_v10 = vpop.f32.mrf.mxu0 }
0x12c1   : > { %v3687_v55 = vadd.f32 %v3686_v10, %v3513_v41 }
0x12c2   : > { %v13146_v13 = vpop.f32.mrf.mxu0 }
0x12c3   : > { %v3708_v31 = vadd.f32 %v13146_v13, %v3538_v27 }
0x12c4   : > { %v3699_v15 = vpop.f32.mrf.mxu0 }
0x12c5   : > { %v3700_v39 = vadd.f32 %v3699_v15, %v3528_v38 }
0x12c6   : > { %v13147_v16 = vpop.f32.mrf.mxu0 }
0x12c7   : > { %v3711_v51 = vadd.f32 %v13147_v16, %v3543_v25 }
0x12c8   : > { %v3702_v18 = vpop.f32.mrf.mxu0 }
0x12c9   : > { %v3703_v36 = vadd.f32 %v3702_v18, %v3533_v34 }
0x12ca   : > { %v13150_v20 = vpop.f32.mrf.mxu0 }
0x12cb   : > { %v3724_v22 = vadd.f32 %v13150_v20, %v3558_v14 }
0x12cc   : > { %v3715_v21 = vpop.f32.mrf.mxu0 }
0x12cd   : > { %v3716_v53 = vadd.f32 %v3715_v21, %v3548_v19 }
0x12ce   : > { %v13151_v26 = vpop.f32.mrf.mxu0 }
0x12cf   : > { %v3727_v33 = vadd.f32 %v13151_v26, %v3563_v12 }
0x12d0   : > { %v3718_v29 = vpop.f32.mrf.mxu0 }
0x12d1   : > { %15373 = vtanh.f32 %v3727_v33  ;;  %v3719_v28 = vadd.f32 %v3718_v29, %v3553_v17 }
0x12d2   : > { %v13154_v32 = vpop.f32.mrf.mxu0 }
0x12d3   : > { %v3740_v35 = vadd.f32 %v13154_v32, %v3578_v3 }
0x12d4   : > { %v3731_v37 = vpop.f32.mrf.mxu0 }
0x12d5   : > { %v3732_v42 = vadd.f32 %v3731_v37, %v3568_v8  ;;  %15375 = vtanh.f32 %v3740_v35 }
0x12d6   : > { %v13155_v43 = vpop.f32.mrf.mxu0 }
0x12d7   : > { %v3743_v48 = vadd.f32 %v13155_v43, %v3583_v2 }
0x12d8   : > { %v3734_v23 = vpop.f32.mrf.mxu0 }
0x12d9   : > { %15377 = vtanh.f32 %v3743_v48  ;;  %v3735_v49 = vadd.f32 %v3734_v23, %v3573_v6 }
0x12da   : > { %15379 = vtanh.f32 %v3732_v42 }
0x12db   : > { %15381 = vtanh.f32 %v3735_v49 }
0x12dc   : > { %15383 = vtanh.f32 %v3724_v22 }
0x12dd   : > { %15385 = vtanh.f32 %v3719_v28 }
0x12de   : > { %15387 = vtanh.f32 %v3711_v51  ;;  %v15374_v46 = vpop.eup %15373 }
0x12df   : > { %15389 = vtanh.f32 %v3716_v53 }
0x12e0   : > { %15391 = vtanh.f32 %v3708_v31 }
0x12e1   : > { %15393 = vtanh.f32 %v3703_v36 }
0x12e2   : > { %15395 = vtanh.f32 %v3695_v54  ;;  %v15376_v47 = vpop.eup %15375 }
0x12e3   : > { %15397 = vtanh.f32 %v3700_v39 }
0x12e4   : > { %15399 = vtanh.f32 %v3692_v44 }
0x12e5   : > { %15401 = vtanh.f32 %v3687_v55 }
0x12e6   : > { %v15378_v57 = vpop.eup %15377  ;;  %15403 = vtanh.f32 %v3684_v45 }
0x12e7   : > { %v15380_v58 = vpop.eup %15379  ;;  %v13914_v59 = vpack.i.bf16 %v15378_v57, %v15376_v47 }
0x12e8   : > { %v15382_v60 = vpop.eup %15381 }
0x12e9   : > { %v15384_v61 = vpop.eup %15383  ;;  %13915 = vrot.lane.b32.xlu1 %v13914_v59, %s18263_s23  ;;  %v13919_v62 = vpack.i.bf16 %v15382_v60, %v15380_v58 }
0x12ea   : > { %v15386_v63 = vpop.eup %15385  ;;  %v13924_v2 = vpack.i.bf16 %v15374_v46, %v15384_v61 }
0x12eb   : > { %v15388_v1 = vpop.eup %15387  ;;  %13920 = vrot.lane.b32.xlu0 %v13919_v62, %s18263_s23 }
0x12ec   : > { %v15390_v3 = vpop.eup %15389 }
0x12ed   : > { %v15392_v4 = vpop.eup %15391  ;;  %13925 = vrot.lane.b32.xlu1 %v13924_v2, %s18263_s23  ;;  %v13929_v6 = vpack.i.bf16 %v15386_v63, %v15390_v3 }
0x12ee   : > { %v15394_v7 = vpop.eup %15393  ;;  %v13934_v9 = vpack.i.bf16 %v15388_v1, %v15392_v4 }
0x12ef   : > { %v15396_v8 = vpop.eup %15395  ;;  %13930 = vrot.lane.b32.xlu0 %v13929_v6, %s18263_s23 }
0x12f0   : > { %v15398_v10 = vpop.eup %15397 }
0x12f1   : > { %v15400_v12 = vpop.eup %15399  ;;  %13935 = vrot.lane.b32.xlu1 %v13934_v9, %s18263_s23  ;;  %v13939_v13 = vpack.i.bf16 %v15394_v7, %v15398_v10 }
0x12f2   : > { %v15402_v14 = vpop.eup %15401  ;;  %v13944_v15 = vpack.i.bf16 %v15396_v8, %v15400_v12 }
0x12f3   : > { %13940 = vrot.lane.b32.xlu0 %v13939_v13, %s18263_s23  ;;  %v15404_v16 = vpop.eup %15403 }
0x12f4   : > { %v13949_v17 = vpack.i.bf16 %v15402_v14, %v15404_v16 }
0x12f5   : > { %13945 = vrot.lane.b32.xlu1 %v13944_v15, %s18263_s23 }
0x12f7   : > { %13950 = vrot.lane.b32.xlu0 %v13949_v17, %s18263_s23 }
0x135b   : > { %v13916_v18 = vpop.permute.xlu1 %13915 }
0x135c   : > { %v13918_v19 = vunpack.i.h.bf16 %v13916_v18  ;;  %v13917_v20 = vunpack.i.l.bf16 %v13916_v18 }
0x135d   : > { %v13921_v21 = vpop.permute.xlu0 %13920 }
0x135e   : > { %v16370_v25 = vsel %vm1644_vm4, 0.0, %v13918_v19  ;;  %v16373_v26 = vsel %vm1644_vm4, 0.0, %v13917_v20  ;;  %v13923_v27 = vunpack.i.h.bf16 %v13921_v21  ;;  %v13922_v29 = vunpack.i.l.bf16 %v13921_v21 }
0x135f   : > { %v3857_v32 = vsel %vm18165_vm12, %v16370_v25, 0.0  ;;  %v3856_v33 = vsel %vm18165_vm12, %v16373_v26, 0.0  ;;  %v11880_v34 = vpack.c.bf16 %v16370_v25, %v16373_v26  ;;  %v13926_v35 = vpop.permute.xlu1 %13925 }
0x1360   : > { %v16382_v37 = vsel %vm1644_vm4, 0.0, %v13923_v27  ;;  %v16385_v38 = vsel %vm1644_vm4, 0.0, %v13922_v29  ;;  %v13928_v42 = vunpack.i.h.bf16 %v13926_v35  ;;  %v13927_v43 = vunpack.i.l.bf16 %v13926_v35 }
0x1361   : > { %v3855_v48 = vsel %vm18165_vm12, %v16382_v37, 0.0  ;;  %v3854_v22 = vsel %vm18165_vm12, %v16385_v38, 0.0  ;;  %v11883_v23 = vpack.c.bf16 %v16382_v37, %v16385_v38  ;;  %v13931_v28 = vpop.permute.xlu0 %13930  ;;  %v16393_v49 = vpack.i.bf16 %v3857_v32, %v3856_v33 }
0x1362   : > { %v16396_v50 = vsel %vm1644_vm4, 0.0, %v13928_v42  ;;  %v16399_v51 = vsel %vm1644_vm4, 0.0, %v13927_v43  ;;  %v13933_v53 = vunpack.i.h.bf16 %v13931_v28  ;;  %v13932_v30 = vunpack.i.l.bf16 %v13931_v28 }
0x1363   : > { %v3853_v31 = vsel %vm18165_vm12, %v16396_v50, 0.0  ;;  %v3852_v36 = vsel %vm18165_vm12, %v16399_v51, 0.0  ;;  %v11886_v54 = vpack.c.bf16 %v16396_v50, %v16399_v51  ;;  %13955 = vrot.lane.b32.xlu1 %v16393_v49, %s18265_s7  ;;  %v13936_v39 = vpop.permute.xlu1 %13935  ;;  %v16409_v41 = vpack.i.bf16 %v3855_v48, %v3854_v22 }
0x1364   : > { %v16412_v44 = vsel %vm1644_vm4, 0.0, %v13933_v53  ;;  %v16415_v55 = vsel %vm1644_vm4, 0.0, %v13932_v30  ;;  %v13938_v56 = vunpack.i.h.bf16 %v13936_v39  ;;  %v13937_v45 = vunpack.i.l.bf16 %v13936_v39  ;;  %v15063_v53 = vld [vmem:[%s18278_s22 + $0x4] ss:$20 sps:$4 sm:$0xff]   ;;  %v15072_v30 = vld [vmem:[%s18278_s22 + $0xc] ss:$20 sps:$4 sm:$0xff]  }
0x1365   : > { %v3851_v46 = vsel %vm18165_vm12, %v16412_v44, 0.0  ;;  %v3850_v47 = vsel %vm18165_vm12, %v16415_v55, 0.0  ;;  %v11889_v57 = vpack.c.bf16 %v16412_v44, %v16415_v55  ;;  %13960 = vrot.lane.b32.xlu0 %v16409_v41, %s18265_s7  ;;  %v13941_v58 = vpop.permute.xlu0 %13940  ;;  %v13964_v59 = vpack.i.bf16 %v3853_v31, %v3852_v36  ;;  %4394 = vmatprep.mubr.bf16.mxu1 %v15063_v53  ;;  %v4676_v31 = vld [vmem:[%s18279_s18 + $0x70] sm:$0xff]  ;;  %v4674_v36 = vld [vmem:[%s18279_s18 + $0x60] sm:$0xff]  ;;  %v4675_v39 = vld [vmem:[%s18279_s18 + $0x68] sm:$0xff] }
0x1366   : > { %v16426_v60 = vsel %vm1644_vm4, 0.0, %v13938_v56  ;;  %v16429_v61 = vsel %vm1644_vm4, 0.0, %v13937_v45  ;;  %v13943_v62 = vunpack.i.h.bf16 %v13941_v58  ;;  %v13942_v63 = vunpack.i.l.bf16 %v13941_v58  ;;  %4491 = vmatprep.mubr.bf16.mxu0 %v15072_v30  ;;  %v4673_v56 = vld [vmem:[%s18279_s18 + $0x58] sm:$0xff]  ;;  %v4670_v45 = vld [vmem:[%s18279_s18 + $0x40] sm:$0xff] }
0x1367   : > { %v3849_v1 = vsel %vm18165_vm12, %v16426_v60, 0.0  ;;  %v3848_v2 = vsel %vm18165_vm12, %v16429_v61, 0.0  ;;  %v11892_v3 = vpack.c.bf16 %v16426_v60, %v16429_v61  ;;  %13965 = vrot.lane.b32.xlu1 %v13964_v59, %s18265_s7  ;;  %v13946_v4 = vpop.permute.xlu1 %13945  ;;  %v13969_v6 = vpack.i.bf16 %v3851_v46, %v3850_v47  ;;  %v4671_v46 = vld [vmem:[%s18279_s18 + $0x48] sm:$0xff]  ;;  %v4668_v47 = vld [vmem:[%s18279_s18 + $0x30] sm:$0xff]  ;;  %v4669_v58 = vld [vmem:[%s18279_s18 + $0x38] sm:$0xff] }
0x1368   : > { %v16439_v7 = vsel %vm1644_vm4, 0.0, %v13943_v62  ;;  %v16442_v8 = vsel %vm1644_vm4, 0.0, %v13942_v63  ;;  %v13948_v9 = vunpack.i.h.bf16 %v13946_v4  ;;  %v13947_v10 = vunpack.i.l.bf16 %v13946_v4  ;;  %v4667_v62 = vld [vmem:[%s18279_s18 + $0x28] sm:$0xff]  ;;  %v4664_v63 = vld [vmem:[%s18279_s18 + $0x10] sm:$0xff] }
0x1369   : > { %v3847_v12 = vsel %vm18165_vm12, %v16439_v7, 0.0  ;;  %v3846_v13 = vsel %vm18165_vm12, %v16442_v8, 0.0  ;;  %v11895_v14 = vpack.c.bf16 %v16439_v7, %v16442_v8  ;;  %13970 = vrot.lane.b32.xlu0 %v13969_v6, %s18265_s7  ;;  %v13951_v15 = vpop.permute.xlu0 %13950  ;;  %v13974_v16 = vpack.i.bf16 %v3849_v1, %v3848_v2  ;;  %v4665_v1 = vld [vmem:[%s18279_s18 + $0x18] sm:$0xff]  ;;  %v4662_v2 = vld [vmem:[%s18279_s18] sm:$0xff]  ;;  %v4663_v4 = vld [vmem:[%s18279_s18 + $0x8] sm:$0xff] }
0x136a   : > { %v16452_v17 = vsel %vm1644_vm4, 0.0, %v13948_v9  ;;  %v16455_v18 = vsel %vm1644_vm4, 0.0, %v13947_v10  ;;  %v13953_v19 = vunpack.i.h.bf16 %v13951_v15  ;;  %v13952_v20 = vunpack.i.l.bf16 %v13951_v15  ;;  %v4920_v9 = vld [vmem:[%s18280_s11 + $0x8] sm:$0xff]  ;;  %v4921_v10 = vld [vmem:[%s18280_s11 + $0x10] sm:$0xff] }
0x136b   : > { %v3845_v21 = vsel %vm18165_vm12, %v16452_v17, 0.0  ;;  %v3844_v27 = vsel %vm18165_vm12, %v16455_v18, 0.0  ;;  %v11898_v29 = vpack.c.bf16 %v16452_v17, %v16455_v18  ;;  %13975 = vrot.lane.b32.xlu1 %v13974_v16, %s18265_s7  ;;  %v13979_v32 = vpack.i.bf16 %v3847_v12, %v3846_v13  ;;  %v4922_v12 = vld [vmem:[%s18280_s11 + $0x18] sm:$0xff]  ;;  %v4923_v13 = vld [vmem:[%s18280_s11 + $0x20] sm:$0xff]  ;;  %v4924_v15 = vld [vmem:[%s18280_s11 + $0x28] sm:$0xff] }
0x136c   : > { %v16465_v33 = vsel %vm1644_vm4, 0.0, %v13953_v19  ;;  %v16468_v35 = vsel %vm1644_vm4, 0.0, %v13952_v20  ;;  %v13984_v42 = vpack.i.bf16 %v3845_v21, %v3844_v27  ;;  %v4926_v19 = vld [vmem:[%s18280_s11 + $0x38] sm:$0xff]  ;;  %v4927_v20 = vld [vmem:[%s18280_s11 + $0x40] sm:$0xff]  ;;  %v4928_v21 = vld [vmem:[%s18280_s11 + $0x48] sm:$0xff] }
0x136d   : > { %v3843_v43 = vsel %vm18165_vm12, %v16465_v33, 0.0  ;;  %v3842_v48 = vsel %vm18165_vm12, %v16468_v35, 0.0  ;;  %v11901_v22 = vpack.c.bf16 %v16465_v33, %v16468_v35  ;;  %13980 = vrot.lane.b32.xlu0 %v13979_v32, %s18265_s7  ;;  %v4929_v27 = vld [vmem:[%s18280_s11 + $0x50] sm:$0xff]  ;;  %v15064_v17 = vld [vmem:[%s18278_s22 + $0x2c] ss:$20 sps:$4 sm:$0xff]   ;;  %vm18178_vm12 = vcmask 31744  }
0x136e   : > { %v13989_v28 = vpack.i.bf16 %v3843_v43, %v3842_v48  ;;  %v4930_v48 = vld [vmem:[%s18280_s11 + $0x58] sm:$0xff] }
0x136f   : > { %13985 = vrot.lane.b32.xlu1 %v13984_v42, %s18265_s7 }
0x1371   : > { %13990 = vrot.lane.b32.xlu0 %v13989_v28, %s18265_s7 }
0x1373   : > { %13995 = vrot.lane.b32.xlu1 %v16393_v49, %s18264_s5 }
0x1375   : > { %14000 = vrot.lane.b32.xlu0 %v16393_v49, %s18268_s30 }
0x1377   : > { %14005 = vrot.lane.b32.xlu1 %v16409_v41, %s18264_s5 }
0x1379   : > { %14015 = vrot.lane.b32.xlu0 %v16409_v41, %s18268_s30 }
0x137b   : > { %14010 = vrot.lane.b32.xlu1 %v13964_v59, %s18264_s5 }
0x137d   : > { %14020 = vrot.lane.b32.xlu0 %v13964_v59, %s18268_s30 }
0x137f   : > { %14025 = vrot.lane.b32.xlu1 %v13969_v6, %s18264_s5 }
0x1381   : > { %14030 = vrot.lane.b32.xlu0 %v13969_v6, %s18268_s30 }
0x1383   : > { %14035 = vrot.lane.b32.xlu1 %v13974_v16, %s18264_s5 }
0x1385   : > { %14040 = vrot.lane.b32.xlu0 %v13974_v16, %s18268_s30 }
0x1387   : > { %14045 = vrot.lane.b32.xlu1 %v13979_v32, %s18264_s5 }
0x1389   : > { %14050 = vrot.lane.b32.xlu0 %v13979_v32, %s18268_s30 }
0x138b   : > { %14055 = vrot.lane.b32.xlu1 %v13984_v42, %s18264_s5 }
0x138d   : > { %14060 = vrot.lane.b32.xlu0 %v13984_v42, %s18268_s30 }
0x138f   : > { %14065 = vrot.lane.b32.xlu1 %v13989_v28, %s18264_s5 }
0x1391   : > { %14070 = vrot.lane.b32.xlu0 %v13989_v28, %s18268_s30 }
0x1393   : > { %14075 = vrot.lane.b32.xlu1 %v16393_v49, %s18269_s26  ;;  %v4677_v49 = vld [vmem:[%s18279_s18 + $0x78] sm:$0xff] }
0x1395   : > { %14080 = vrot.lane.b32.xlu0 %v16409_v41, %s18269_s26  ;;  %v4672_v41 = vld [vmem:[%s18279_s18 + $0x50] sm:$0xff] }
0x1397   : > { %14085 = vrot.lane.b32.xlu1 %v13964_v59, %s18269_s26  ;;  %v4666_v59 = vld [vmem:[%s18279_s18 + $0x20] sm:$0xff]  ;;  %s18300_s18 = sld [smem:[#allocation25_spill]] }
0x1399   : > { %14090 = vrot.lane.b32.xlu0 %v13969_v6, %s18269_s26  ;;  %v4919_v6 = vld [vmem:[%s18280_s11] sm:$0xff] }
0x139b   : > { %14095 = vrot.lane.b32.xlu1 %v13974_v16, %s18269_s26  ;;  %v4925_v16 = vld [vmem:[%s18280_s11 + $0x30] sm:$0xff]  ;;  %s18284_s11 = sld [smem:[#allocation22_spill]] }
0x139d   : > { %14100 = vrot.lane.b32.xlu0 %v13979_v32, %s18269_s26 }
0x139f   : > { %14105 = vrot.lane.b32.xlu1 %v13984_v42, %s18269_s26 }
0x13a1   : > { %14110 = vrot.lane.b32.xlu0 %v13989_v28, %s18269_s26 }
0x13a3   : > { %4750 = vperm.xlu1 %13738, %v4676_v31  }
0x13a5   : > { %4755 = vperm.xlu0 %13737, %v4677_v49   ;;  %v18281_v49 = vmov 0 }
0x13a6   : > { %v18282_v49 = vsel %vm16541_vm6, 4294967295, %v18281_v49 }
0x13a7   : > { %4740 = vperm.xlu1 %13738, %v4674_v36   ;;  %18283 = vst [vmem:[#allocation47_spill] sm:$0xff] %v18282_v49 }
0x13a9   : > { %4745 = vperm.xlu0 %13737, %v4675_v39  }
0x13ab   : > { %4730 = vperm.xlu1 %13738, %v4672_v41  }
0x13ad   : > { %4735 = vperm.xlu0 %13737, %v4673_v56  }
0x13af   : > { %4720 = vperm.xlu1 %13738, %v4670_v45  }
0x13b1   : > { %4725 = vperm.xlu0 %13737, %v4671_v46  }
0x13b3   : > { %4710 = vperm.xlu1 %13738, %v4668_v47  }
0x13b5   : > { %4715 = vperm.xlu0 %13737, %v4669_v58  }
0x13b7   : > { %4700 = vperm.xlu1 %13738, %v4666_v59  }
0x13b9   : > { %4705 = vperm.xlu0 %13737, %v4667_v62  }
0x13bb   : > { %4690 = vperm.xlu1 %13738, %v4664_v63  }
0x13bd   : > { %4695 = vperm.xlu0 %13737, %v4665_v1  }
0x13bf   : > { %4680 = vperm.xlu1 %13738, %v4662_v2  }
0x13c1   : > { %4685 = vperm.xlu0 %13737, %v4663_v4  }
0x13c3   : > { %4933 = vperm.xlu1 %13738, %v4919_v6  }
0x13c5   : > { %4938 = vperm.xlu0 %13737, %v4920_v9  }
0x13c7   : > { %4943 = vperm.xlu1 %13738, %v4921_v10  }
0x13c9   : > { %4948 = vperm.xlu0 %13737, %v4922_v12  }
0x13cb   : > { %4953 = vperm.xlu1 %13738, %v4923_v13  }
0x13cd   : > { %4958 = vperm.xlu0 %13737, %v4924_v15  }
0x13cf   : > { %4963 = vperm.xlu1 %13738, %v4925_v16  }
0x13d1   : > { %4968 = vperm.xlu0 %13737, %v4926_v19  }
0x13d3   : > { %4973 = vperm.xlu1 %13738, %v4927_v20  }
0x13d5   : > { %v13956_v32 = vpop.permute.xlu1 %13955  ;;  %4978 = vperm.xlu0 %13737, %v4928_v21  }
0x13d6   : > { %v13958_v42 = vunpack.i.h.bf16 %v13956_v32  ;;  %v13957_v43 = vunpack.i.l.bf16 %v13956_v32 }
0x13d7   : > { %v13961_v28 = vpop.permute.xlu0 %13960  ;;  %4983 = vperm.xlu1 %13738, %v4929_v27  }
0x13d8   : > { %v13963_v53 = vunpack.i.h.bf16 %v13961_v28  ;;  %v13962_v30 = vunpack.i.l.bf16 %v13961_v28  ;;  %v4129_v31 = vpack.c.bf16 %v13958_v42, %v13957_v43 }
0x13d9   : > { %v13966_v36 = vpop.permute.xlu1 %13965  ;;  %4988 = vperm.xlu0 %13737, %v4930_v48  }
0x13da   : > { %v13968_v39 = vunpack.i.h.bf16 %v13966_v36  ;;  %v13967_v41 = vunpack.i.l.bf16 %v13966_v36  ;;  %12328 = vmatprep.subr.bf16.mxu1 %v4129_v31  ;;  %v4128_v56 = vpack.c.bf16 %v13963_v53, %v13962_v30 }
0x13db   : > { %12329 = vmatpush3.bf16.msk.msra.mxu1 %vm16541_vm6, %v11880_v34  ;;  %v13971_v45 = vpop.permute.xlu0 %13970 }
0x13dc   : > { %12330 = vmatprep.subr.bf16.mxu1 %v4128_v56  ;;  %v13973_v47 = vunpack.i.h.bf16 %v13971_v45  ;;  %v13972_v58 = vunpack.i.l.bf16 %v13971_v45  ;;  %v4127_v59 = vpack.c.bf16 %v13968_v39, %v13967_v41 }
0x13dd   : > { %v13976_v46 = vpop.permute.xlu1 %13975 }
0x13de   : > { %v13978_v1 = vunpack.i.h.bf16 %v13976_v46  ;;  %v13977_v25 = vunpack.i.l.bf16 %v13976_v46  ;;  %v4126_v26 = vpack.c.bf16 %v13973_v47, %v13972_v58 }
0x13df   : > { %v13981_v62 = vpop.permute.xlu0 %13980  ;;  %12331 = vmatpush3.bf16.msk.msra.mxu1 %vm16541_vm6, %v11883_v23 }
0x13e0   : > { %12332 = vmatprep.subr.bf16.mxu1 %v4127_v59  ;;  %v13983_v2 = vunpack.i.h.bf16 %v13981_v62  ;;  %v13982_v6 = vunpack.i.l.bf16 %v13981_v62  ;;  %v4125_v9 = vpack.c.bf16 %v13978_v1, %v13977_v25  ;;  %v15061_v62 = vld [vmem:[%s18278_s22] ss:$20 sps:$4 sm:$0xff]  }
0x13e1   : > { %v13986_v63 = vpop.permute.xlu1 %13985 }
0x13e2   : > { %v13987_v12 = vunpack.i.l.bf16 %v13986_v63  ;;  %v4124_v20 = vpack.c.bf16 %v13983_v2, %v13982_v6 }
0x13e3   : > { %12333 = vmatpush3.bf16.msk.msra.mxu1 %vm16541_vm6, %v11886_v54  ;;  %v13991_v34 = vpop.permute.xlu0 %13990  ;;  %v13988_v54 = vunpack.i.h.bf16 %v13986_v63 }
0x13e4   : > { %12334 = vmatprep.subr.bf16.mxu1 %v4126_v26  ;;  %v13993_v27 = vunpack.i.h.bf16 %v13991_v34  ;;  %v13992_v32 = vunpack.i.l.bf16 %v13991_v34 }
0x13e5   : > { %v13996_v4 = vpop.permute.xlu1 %13995  ;;  %v4123_v53 = vpack.c.bf16 %v13988_v54, %v13987_v12 }
0x13e6   : > { %v13998_v37 = vunpack.i.h.bf16 %v13996_v4  ;;  %v13997_v38 = vunpack.i.l.bf16 %v13996_v4  ;;  %v4122_v56 = vpack.c.bf16 %v13993_v27, %v13992_v32 }
0x13e7   : > { %12335 = vmatpush3.bf16.msk.msra.mxu1 %vm16541_vm6, %v11889_v57  ;;  %v14001_v23 = vpop.permute.xlu0 %14000 }
0x13e8   : > { %v14003_v10 = vunpack.i.h.bf16 %v14001_v23  ;;  %v14002_v50 = vunpack.i.l.bf16 %v14001_v23  ;;  %12336 = vmatprep.subr.bf16.mxu1 %v4125_v9  ;;  %v4145_v51 = vpack.c.bf16 %v13998_v37, %v13997_v38  ;;  %v15066_v23 = vld [vmem:[%s18278_s22 + $0x28] ss:$20 sps:$4 sm:$0xff]  }
0x13e9   : > { %v14006_v13 = vpop.permute.xlu1 %14005 }
0x13ea   : > { %v4137_v15 = vpack.c.bf16 %v14003_v10, %v14002_v50  ;;  %v14008_v16 = vunpack.i.h.bf16 %v14006_v13  ;;  %v14007_v19 = vunpack.i.l.bf16 %v14006_v13  ;;  %12392 = vmatprep.subr.bf16.mxu0 %v4145_v51  ;;  %v15067_v50 = vld [vmem:[%s18278_s22 + $0x54] ss:$20 sps:$4 sm:$0xff]  }
0x13eb   : > { %12337 = vmatpush3.bf16.msk.msra.mxu1 %vm16541_vm6, %v11892_v3  ;;  %v14016_v44 = vpop.permute.xlu0 %14015 }
0x13ec   : > { %v14018_v55 = vunpack.i.h.bf16 %v14016_v44  ;;  %v14017_v57 = vunpack.i.l.bf16 %v14016_v44  ;;  %12338 = vmatprep.subr.bf16.mxu1 %v4124_v20  ;;  %12393 = vmatpush3.bf16.msra.mxu0 %v4137_v15  ;;  %v4144_v21 = vpack.c.bf16 %v14008_v16, %v14007_v19 }
0x13ed   : > { %v14011_v42 = vpop.permute.xlu1 %14010 }
0x13ee   : > { %v4136_v43 = vpack.c.bf16 %v14018_v55, %v14017_v57  ;;  %v14013_v48 = vunpack.i.h.bf16 %v14011_v42  ;;  %v14012_v28 = vunpack.i.l.bf16 %v14011_v42  ;;  %12394 = vmatprep.subr.bf16.mxu0 %v4144_v21 }
0x13ef   : > { %12339 = vmatpush3.bf16.msk.msra.mxu1 %vm16541_vm6, %v11895_v14  ;;  %v14021_v60 = vpop.permute.xlu0 %14020 }
0x13f0   : > { %v14023_v61 = vunpack.i.h.bf16 %v14021_v60  ;;  %v14022_v3 = vunpack.i.l.bf16 %v14021_v60  ;;  %12340 = vmatprep.subr.bf16.mxu1 %v4123_v53  ;;  %12395 = vmatpush3.bf16.msra.mxu0 %v4136_v43  ;;  %v4143_v30 = vpack.c.bf16 %v14013_v48, %v14012_v28  ;;  %v15069_v43 = vld [vmem:[%s18278_s22 + $0x50] ss:$20 sps:$4 sm:$0xff]   ;;  %v15070_v28 = vld [vmem:[%s18278_s22 + $0x8] ss:$20 sps:$4 sm:$0xff]  }
0x13f1   : > { %v14026_v31 = vpop.permute.xlu1 %14025 }
0x13f2   : > { %v4135_v36 = vpack.c.bf16 %v14023_v61, %v14022_v3  ;;  %v14028_v39 = vunpack.i.h.bf16 %v14026_v31  ;;  %v14027_v41 = vunpack.i.l.bf16 %v14026_v31  ;;  %12396 = vmatprep.subr.bf16.mxu0 %v4143_v30  ;;  %v15073_v3 = vld [vmem:[%s18278_s22 + $0x7c] ss:$20 sps:$4 sm:$0xff]   ;;  %v15076_v31 = vld [vmem:[%s18278_s22 + $0x34] ss:$20 sps:$4 sm:$0xff]  }
0x13f3   : > { %12341 = vmatpush3.bf16.msk.msra.mxu1 %vm16541_vm6, %v11898_v29  ;;  %v14031_v7 = vpop.permute.xlu0 %14030 }
0x13f4   : > { %v14033_v8 = vunpack.i.h.bf16 %v14031_v7  ;;  %v14032_v14 = vunpack.i.l.bf16 %v14031_v7  ;;  %12342 = vmatprep.subr.bf16.mxu1 %v4122_v56  ;;  %12397 = vmatpush3.bf16.msra.mxu0 %v4135_v36  ;;  %v4142_v45 = vpack.c.bf16 %v14028_v39, %v14027_v41 }
0x13f5   : > { %v14036_v46 = vpop.permute.xlu1 %14035 }
0x13f6   : > { %v4134_v47 = vpack.c.bf16 %v14033_v8, %v14032_v14  ;;  %v14038_v58 = vunpack.i.h.bf16 %v14036_v46  ;;  %v14037_v59 = vunpack.i.l.bf16 %v14036_v46  ;;  %12398 = vmatprep.subr.bf16.mxu0 %v4142_v45  ;;  %v15075_v45 = vld [vmem:[%s18278_s22 + $0x78] ss:$20 sps:$4 sm:$0xff]  }
0x13f7   : > { %v14041_v63 = vpop.permute.xlu0 %14040  ;;  %12343 = vmatpush3.bf16.msk.msra.mxu1 %vm16541_vm6, %v11901_v22 }
0x13f8   : > { %v14043_v18 = vunpack.i.h.bf16 %v14041_v63  ;;  %v14042_v29 = vunpack.i.l.bf16 %v14041_v63  ;;  %12399 = vmatpush3.bf16.msra.mxu0 %v4134_v47  ;;  %v4141_v1 = vpack.c.bf16 %v14038_v58, %v14037_v59  ;;  %v15078_v47 = vld [vmem:[%s18278_s22 + $0x30] ss:$20 sps:$4 sm:$0xff]  }
0x13f9   : > { %v14046_v25 = vpop.permute.xlu1 %14045  ;;  %v15079_v58 = vld [vmem:[%s18278_s22 + $0xa4] ss:$20 sps:$4 sm:$0xff]   ;;  %v15082_v59 = vld [vmem:[%s18278_s22 + $0x5c] ss:$20 sps:$4 sm:$0xff]  }
0x13fa   : > { %v4133_v26 = vpack.c.bf16 %v14043_v18, %v14042_v29  ;;  %v14048_v34 = vunpack.i.h.bf16 %v14046_v25  ;;  %v14047_v2 = vunpack.i.l.bf16 %v14046_v25  ;;  %4395 = vmatmul.mubr.bf16.vlgmr.msra.gmra.mxu1 %v15061_v62  ;;  %12400 = vmatprep.subr.bf16.mxu0 %v4141_v1 }
0x13fb   : > { %v14051_v4 = vpop.permute.xlu0 %14050  ;;  %4402 = vmatprep.mubr.bf16.mxu1 %v15064_v17 }
0x13fc   : > { %v14053_v6 = vunpack.i.h.bf16 %v14051_v4  ;;  %v14052_v33 = vunpack.i.l.bf16 %v14051_v4  ;;  %12401 = vmatpush3.bf16.msra.mxu0 %v4133_v26  ;;  %v4140_v35 = vpack.c.bf16 %v14048_v34, %v14047_v2  ;;  %v15081_v26 = vld [vmem:[%s18278_s22 + $0xa0] ss:$20 sps:$4 sm:$0xff]   ;;  %v15084_v2 = vld [vmem:[%s18278_s22 + $0x58] ss:$20 sps:$4 sm:$0xff]  }
0x13fd   : > { %v14056_v22 = vpop.permute.xlu1 %14055  ;;  %v15085_v4 = vld [vmem:[%s18278_s22 + $0xcc] ss:$20 sps:$4 sm:$0xff]  }
0x13fe   : > { %v4132_v37 = vpack.c.bf16 %v14053_v6, %v14052_v33  ;;  %v14058_v38 = vunpack.i.h.bf16 %v14056_v22  ;;  %v14057_v9 = vunpack.i.l.bf16 %v14056_v22  ;;  %12402 = vmatprep.subr.bf16.mxu0 %v4140_v35  ;;  %v15088_v6 = vld [vmem:[%s18278_s22 + $0x84] ss:$20 sps:$4 sm:$0xff]  }
0x13ff   : > { %v14061_v10 = vpop.permute.xlu0 %14060 }
0x1400   : > { %v14063_v51 = vunpack.i.h.bf16 %v14061_v10  ;;  %v14062_v54 = vunpack.i.l.bf16 %v14061_v10  ;;  %12403 = vmatpush3.bf16.msra.mxu0 %v4132_v37  ;;  %v4139_v12 = vpack.c.bf16 %v14058_v38, %v14057_v9  ;;  %v15087_v10 = vld [vmem:[%s18278_s22 + $0xc8] ss:$20 sps:$4 sm:$0xff]  }
0x1401   : > { %v14066_v13 = vpop.permute.xlu1 %14065 }
0x1402   : > { %v4131_v15 = vpack.c.bf16 %v14063_v51, %v14062_v54  ;;  %v14068_v16 = vunpack.i.h.bf16 %v14066_v13  ;;  %v14067_v19 = vunpack.i.l.bf16 %v14066_v13  ;;  %4403 = vmatmul.mubr.bf16.gmra.mxu1 %v15066_v23  ;;  %12404 = vmatprep.subr.bf16.mxu0 %v4139_v12  ;;  %v15091_v51 = vld [vmem:[%s18278_s22 + $0xf4] ss:$20 sps:$4 sm:$0xff]   ;;  %v15094_v54 = vld [vmem:[%s18278_s22 + $0xac] ss:$20 sps:$4 sm:$0xff]   ;;  %v15093_v13 = vld [vmem:[%s18278_s22 + $0xf0] ss:$20 sps:$4 sm:$0xff]  }
0x1403   : > { %v14071_v20 = vpop.permute.xlu0 %14070  ;;  %4410 = vmatprep.mubr.bf16.mxu1 %v15067_v50  ;;  %v15090_v50 = vld [vmem:[%s18278_s22 + $0x80] ss:$20 sps:$4 sm:$0xff]  }
0x1404   : > { %v14073_v44 = vunpack.i.h.bf16 %v14071_v20  ;;  %v14072_v55 = vunpack.i.l.bf16 %v14071_v20  ;;  %12405 = vmatpush3.bf16.msra.mxu0 %v4131_v15  ;;  %v4138_v57 = vpack.c.bf16 %v14068_v16, %v14067_v19  ;;  %v15096_v15 = vld [vmem:[%s18278_s22 + $0xa8] ss:$20 sps:$4 sm:$0xff]   ;;  %v15099_v20 = vld [vmem:[%s18278_s22 + $0x118] ss:$20 sps:$4 sm:$0xff]  }
0x1405   : > { %v14076_v21 = vpop.permute.xlu1 %14075  ;;  %v15097_v16 = vld [vmem:[%s18278_s22 + $0x11c] ss:$20 sps:$4 sm:$0xff]   ;;  %v15100_v19 = vld [vmem:[%s18278_s22 + $0xd4] ss:$20 sps:$4 sm:$0xff]  }
0x1406   : > { %v4130_v27 = vpack.c.bf16 %v14073_v44, %v14072_v55  ;;  %v14078_v32 = vunpack.i.h.bf16 %v14076_v21  ;;  %v14077_v42 = vunpack.i.l.bf16 %v14076_v21  ;;  %12406 = vmatprep.subr.bf16.mxu0 %v4138_v57  ;;  %v15102_v44 = vld [vmem:[%s18278_s22 + $0xd0] ss:$20 sps:$4 sm:$0xff]   ;;  %v15106_v21 = vld [vmem:[%s18278_s22 + $0x38] ss:$20 sps:$4 sm:$0xff]  }
0x1407   : > { %v14081_v48 = vpop.permute.xlu0 %14080  ;;  %v15103_v55 = vld [vmem:[%s18278_s22 + $0x10] ss:$20 sps:$4 sm:$0xff]  }
0x1408   : > { %v14083_v53 = vunpack.i.h.bf16 %v14081_v48  ;;  %v14082_v60 = vunpack.i.l.bf16 %v14081_v48  ;;  %12407 = vmatpush3.bf16.msra.mxu0 %v4130_v27  ;;  %v4153_v61 = vpack.c.bf16 %v14078_v32, %v14077_v42  ;;  %v15104_v57 = vld [vmem:[%s18278_s22 + $0xfc] ss:$20 sps:$4 sm:$0xff]   ;;  %v15107_v27 = vld [vmem:[%s18278_s22 + $0xf8] ss:$20 sps:$4 sm:$0xff]   ;;  %v15108_v32 = vld [vmem:[%s18278_s22 + $0x60] ss:$20 sps:$4 sm:$0xff]  }
0x1409   : > { %v14086_v30 = vpop.permute.xlu1 %14085  ;;  %v15109_v42 = vld [vmem:[%s18278_s22 + $0x124] ss:$20 sps:$4 sm:$0xff]   ;;  %v15112_v48 = vld [vmem:[%s18278_s22 + $0x120] ss:$20 sps:$4 sm:$0xff]  }
0x140a   : > { %v14088_v36 = vunpack.i.h.bf16 %v14086_v30  ;;  %v14087_v39 = vunpack.i.l.bf16 %v14086_v30  ;;  %4411 = vmatmul.mubr.bf16.gmra.mxu1 %v15069_v43  ;;  %13156 = vmatprep.subr.bf16.mxu1 %v4153_v61  ;;  %v4152_v41 = vpack.c.bf16 %v14083_v53, %v14082_v60  ;;  %v15111_v43 = vld [vmem:[%s18278_s22 + $0x88] ss:$20 sps:$4 sm:$0xff]   ;;  %v15114_v53 = vld [vmem:[%s18278_s22 + $0xd8] ss:$20 sps:$4 sm:$0xff]   ;;  %v15115_v60 = vld [vmem:[%s18278_s22 + $0x100] ss:$20 sps:$4 sm:$0xff]  }
0x140b   : > { %v14091_v56 = vpop.permute.xlu0 %14090  ;;  %4492 = vmatmul.mubr.bf16.vlgmr.msra.gmra.mxu0 %v15070_v28  ;;  %13157 = vmatpush3.bf16.msra.mxu1 %v4153_v61  ;;  %v15113_v28 = vld [vmem:[%s18278_s22 + $0xb0] ss:$20 sps:$4 sm:$0xff]   ;;  %v15116_v61 = vld [vmem:[%s18278_s22 + $0x128] ss:$20 sps:$4 sm:$0xff]   ;;  %s18314_s22 = sld [smem:[#allocation37_spill]] }
0x140c   : > { %13158 = vmatprep.subr.bf16.mxu1 %v4152_v41  ;;  %4418 = vmatprep.mubr.bf16.mxu1 %v15073_v3  ;;  %v14093_v7 = vunpack.i.h.bf16 %v14091_v56  ;;  %v14092_v8 = vunpack.i.l.bf16 %v14091_v56  ;;  %v4151_v14 = vpack.c.bf16 %v14088_v36, %v14087_v39  ;;  %v4661_v3 = vld [vmem:[%s18284_s11] sm:$0x3]  ;;  %s18299_s11 = sld [smem:[#allocation23_spill]] }
0x140d   : > { %4499 = vmatprep.mubr.bf16.mxu0 %v15076_v31  ;;  %v14096_v46 = vpop.permute.xlu1 %14095  ;;  %13657 = vmatprep.subr.msk.bf16.mxu0 %vm1593_vm1, %v4661_v3  ;;  %v4784_v30 = vsel %vm1593_vm1, %v4661_v3, 0 }
0x140e   : > { %v14098_v62 = vunpack.i.h.bf16 %v14096_v46  ;;  %v14097_v63 = vunpack.i.l.bf16 %v14096_v46  ;;  %v4150_v17 = vpack.c.bf16 %v14093_v7, %v14092_v8  ;;  %13189 = vmatpush3.bf16.msra.mxu0 %v4784_v30 }
0x140f   : > { %13159 = vmatpush3.bf16.msra.mxu1 %v4152_v41  ;;  %v14101_v18 = vpop.permute.xlu0 %14100 }
0x1410   : > { %13160 = vmatprep.subr.bf16.mxu1 %v4151_v14  ;;  %v14103_v29 = vunpack.i.h.bf16 %v14101_v18  ;;  %v14102_v1 = vunpack.i.l.bf16 %v14101_v18  ;;  %v4149_v25 = vpack.c.bf16 %v14098_v62, %v14097_v63 }
0x1411   : > { %v14106_v34 = vpop.permute.xlu1 %14105 }
0x1412   : > { %4419 = vmatmul.mubr.bf16.gmra.mxu1 %v15075_v45  ;;  %v14108_v33 = vunpack.i.h.bf16 %v14106_v34  ;;  %v14107_v35 = vunpack.i.l.bf16 %v14106_v34  ;;  %v4148_v22 = vpack.c.bf16 %v14103_v29, %v14102_v1 }
0x1413   : > { %4500 = vmatmul.mubr.bf16.gmra.mxu0 %v15078_v47  ;;  %13161 = vmatpush3.bf16.msra.mxu1 %v4151_v14  ;;  %v14111_v37 = vpop.permute.xlu0 %14110 }
0x1414   : > { %13162 = vmatprep.subr.bf16.mxu1 %v4150_v17  ;;  %4426 = vmatprep.mubr.bf16.mxu1 %v15079_v58  ;;  %v14113_v38 = vunpack.i.h.bf16 %v14111_v37  ;;  %v14112_v9 = vunpack.i.l.bf16 %v14111_v37  ;;  %v4147_v23 = vpack.c.bf16 %v14108_v33, %v14107_v35 }
0x1415   : > { %4507 = vmatprep.mubr.bf16.mxu0 %v15082_v59 }
0x1416   : > { %v4146_v12 = vpack.c.bf16 %v14113_v38, %v14112_v9 }
0x1417   : > { %13163 = vmatpush3.bf16.msra.mxu1 %v4150_v17 }
0x1418   : > { %13164 = vmatprep.subr.bf16.mxu1 %v4149_v25 }
0x141a   : > { %4427 = vmatmul.mubr.bf16.gmra.mxu1 %v15081_v26 }
0x141b   : > { %4508 = vmatmul.mubr.bf16.gmra.mxu0 %v15084_v2  ;;  %13165 = vmatpush3.bf16.msra.mxu1 %v4149_v25 }
0x141c   : > { %13166 = vmatprep.subr.bf16.mxu1 %v4148_v22  ;;  %4434 = vmatprep.mubr.bf16.mxu1 %v15085_v4 }
0x141d   : > { %4515 = vmatprep.mubr.bf16.mxu0 %v15088_v6 }
0x141f   : > { %13167 = vmatpush3.bf16.msra.mxu1 %v4148_v22 }
0x1420   : > { %13168 = vmatprep.subr.bf16.mxu1 %v4147_v23 }
0x1422   : > { %4435 = vmatmul.mubr.bf16.gmra.mxu1 %v15087_v10 }
0x1423   : > { %4516 = vmatmul.mubr.bf16.gmra.mxu0 %v15090_v50  ;;  %13169 = vmatpush3.bf16.msra.mxu1 %v4147_v23 }
0x1424   : > { %13170 = vmatprep.subr.bf16.mxu1 %v4146_v12  ;;  %4442 = vmatprep.mubr.bf16.mxu1 %v15091_v51 }
0x1425   : > { %4523 = vmatprep.mubr.bf16.mxu0 %v15094_v54 }
0x1427   : > { %13171 = vmatpush3.bf16.msra.mxu1 %v4146_v12 }
0x142a   : > { %4443 = vmatmul.mubr.bf16.gmra.mxu1 %v15093_v13 }
0x142b   : > { %4524 = vmatmul.mubr.bf16.gmra.mxu0 %v15096_v15  ;;  %4450 = vmatprep.mubr.bf16.mxu1 %v15097_v16 }
0x142c   : > { %4531 = vmatprep.mubr.bf16.mxu0 %v15100_v19 }
0x1432   : > { %4451 = vmatmul.mubr.bf16.gmra.mxu1 %v15099_v20 }
0x1433   : > { %4532 = vmatmul.mubr.bf16.gmra.mxu0 %v15102_v44  ;;  %13172 = vmatprep.mubr.bf16.mxu1 %v15103_v55 }
0x1434   : > { %4539 = vmatprep.mubr.bf16.mxu0 %v15104_v57 }
0x143a   : > { %13173 = vmatmul.mubr.bf16.vlgmr.msra.gmra.mxu1 %v15106_v21 }
0x143b   : > { %4540 = vmatmul.mubr.bf16.gmra.mxu0 %v15107_v27  ;;  %13176 = vmatprep.mubr.bf16.mxu1 %v15108_v32 }
0x143c   : > { %4547 = vmatprep.mubr.bf16.mxu0 %v15109_v42 }
0x1442   : > { %13177 = vmatmul.mubr.bf16.gmra.mxu1 %v15111_v43 }
0x1443   : > { %4548 = vmatmul.mubr.bf16.gmra.mxu0 %v15112_v48  ;;  %13180 = vmatprep.mubr.bf16.mxu1 %v15113_v28 }
0x144a   : > { %13181 = vmatmul.mubr.bf16.gmra.mxu1 %v15114_v53 }
0x144b   : > { %13184 = vmatprep.mubr.bf16.mxu1 %v15115_v60 }
0x1452   : > { %13185 = vmatmul.mubr.bf16.gmra.mxu1 %v15116_v61 }
0x14ba   : > { %v12344_v31 = vpop.f32.mrf.mxu1 }
0x14bc   : > { %v12345_v36 = vpop.f32.mrf.mxu1 }
0x14bd   : > { %v16626_v39 = vadd.f32 %v12345_v36, %v12344_v31 }
0x14be   : > { %v12347_v41 = vpop.f32.mrf.mxu1 }
0x14c0   : > { %v12348_v56 = vpop.f32.mrf.mxu1 }
0x14c1   : > { %v12349_v11 = vadd.f32 %v12348_v56, %v12347_v41 }
0x14c2   : > { %v12350_v7 = vpop.f32.mrf.mxu1 }
0x14c4   : > { %v12351_v8 = vpop.f32.mrf.mxu1 }
0x14c6   : > { %v12353_v14 = vpop.f32.mrf.mxu1 }
0x14c8   : > { %v12354_v45 = vpop.f32.mrf.mxu1 }
0x14c9   : > { %v12355_v24 = vadd.f32 %v12354_v45, %v12353_v14 }
0x14ca   : > { %v16628_v46 = vpop.f32.mrf.mxu1 }
0x14cb   : > { %v12408_v47 = vpop.f32.mrf.mxu0 }
0x14cc   : > { %v16630_v58 = vpop.f32.mrf.mxu1 }
0x14cd   : > { %v12409_v59 = vpop.f32.mrf.mxu0 }
0x14ce   : > { %v16632_v62 = vpop.f32.mrf.mxu1  ;;  %v12410_v0 = vadd.f32 %v12409_v59, %v12408_v47 }
0x14cf   : > { %v12411_v63 = vpop.f32.mrf.mxu0 }
0x14d0   : > { %v16634_v17 = vpop.f32.mrf.mxu1 }
0x14d1   : > { %v12412_v18 = vpop.f32.mrf.mxu0 }
0x14d2   : > { %v16636_v29 = vpop.f32.mrf.mxu1  ;;  %v12413_v5 = vadd.f32 %v12412_v18, %v12411_v63 }
0x14d3   : > { %v12414_v1 = vpop.f32.mrf.mxu0 }
0x14d4   : > { %v16638_v25 = vpop.f32.mrf.mxu1 }
0x14d5   : > { %v12415_v26 = vpop.f32.mrf.mxu0 }
0x14d6   : > { %v16640_v34 = vpop.f32.mrf.mxu1  ;;  %v12416_v40 = vadd.f32 %v12415_v26, %v12414_v1 }
0x14d7   : > { %v12417_v2 = vpop.f32.mrf.mxu0 }
0x14d8   : > { %v16642_v4 = vpop.f32.mrf.mxu1 }
0x14d9   : > { %v12418_v6 = vpop.f32.mrf.mxu0 }
0x14da   : > { %v16644_v33 = vpop.f32.mrf.mxu1  ;;  %v12419_v31 = vadd.f32 %v12418_v6, %v12417_v2 }
0x14db   : > { %v12420_v35 = vpop.f32.mrf.mxu0 }
0x14dc   : > { %v16646_v22 = vpop.f32.mrf.mxu1 }
0x14dd   : > { %v12421_v37 = vpop.f32.mrf.mxu0 }
0x14de   : > { %v16648_v38 = vpop.f32.mrf.mxu1  ;;  %v12422_v41 = vadd.f32 %v12421_v37, %v12420_v35 }
0x14df   : > { %v12423_v9 = vpop.f32.mrf.mxu0 }
0x14e0   : > { %v16650_v23 = vpop.f32.mrf.mxu1 }
0x14e1   : > { %v12424_v10 = vpop.f32.mrf.mxu0 }
0x14e2   : > { %v16652_v50 = vpop.f32.mrf.mxu1  ;;  %v12425_v56 = vadd.f32 %v12424_v10, %v12423_v9 }
0x14e3   : > { %v12426_v51 = vpop.f32.mrf.mxu0 }
0x14e4   : > { %v16654_v54 = vpop.f32.mrf.mxu1 }
0x14e5   : > { %v12427_v12 = vpop.f32.mrf.mxu0 }
0x14e6   : > { %v16656_v13 = vpop.f32.mrf.mxu1 }
0x14e7   : > { %v12429_v15 = vpop.f32.mrf.mxu0 }
0x14e8   : > { %v16658_v16 = vpop.f32.mrf.mxu1 }
0x14e9   : > { %v12430_v19 = vpop.f32.mrf.mxu0 }
0x14ea   : > { %v16660_v20 = vpop.f32.mrf.mxu1  ;;  %v12431_v14 = vadd.f32 %v12430_v19, %v12429_v15 }
0x14eb   : > { %18285 = vst [vmem:[#allocation48_spill] sm:$0xff] %v16660_v20  ;;  %v16662_v44 = vpop.f32.mrf.mxu0 }
0x14ec   : > { %v16664_v55 = vpop.f32.mrf.mxu1 }
0x14ed   : > { %18286 = vst [vmem:[#allocation49_spill] sm:$0xff] %v16664_v55  ;;  %v16666_v57 = vpop.f32.mrf.mxu0  ;;  %v4494_v55 = vadd.f32 %v12410_v0, %v16626_v39  ;;  %v12367_v0 = vadd.f32 %v16642_v4, %v16640_v34  ;;  %v12428_v39 = vadd.f32 %v12427_v12, %v12426_v51 }
0x14ee   : > { %v16668_v21 = vpop.f32.mrf.mxu1 }
0x14ef   : > { %18287 = vst [vmem:[#allocation50_spill] sm:$0xff] %v16668_v21  ;;  %v16670_v27 = vpop.f32.mrf.mxu0  ;;  %v4521_v26 = vadd.f32 %v12431_v14, %v12367_v0 }
0x14f0   : > { %v16672_v32 = vpop.f32.mrf.mxu1 }
0x14f1   : > { %18288 = vst [vmem:[#allocation51_spill] sm:$0xff] %v16672_v32  ;;  %v12436_v42 = vpop.f32.mrf.mxu0  ;;  %v4505_v32 = vadd.f32 %v12419_v31, %v12355_v24 }
0x14f2   : > { %v16674_v43 = vpop.f32.mrf.mxu1  ;;  %v18293_v14 = vld [vmem:[#allocation48_spill] sm:$0xff] }
0x14f3   : > { %18289 = vst [vmem:[#allocation52_spill] sm:$0xff] %v16674_v43  ;;  %v16676_v48 = vpop.f32.mrf.mxu0 }
0x14f4   : > { %v16678_v28 = vpop.f32.mrf.mxu1 }
0x14f5   : > { %18290 = vst [vmem:[#allocation53_spill] sm:$0xff] %v16678_v28  ;;  %v12439_v53 = vpop.f32.mrf.mxu0  ;;  %v12352_v28 = vadd.f32 %v12351_v8, %v12350_v7 }
0x14f6   : > { %v16680_v60 = vpop.f32.mrf.mxu1 }
0x14f7   : > { %v12441_v61 = vpop.f32.mrf.mxu0  ;;  %v4502_v2 = vadd.f32 %v12416_v40, %v12352_v28  ;;  %v12364_v40 = vadd.f32 %v16638_v25, %v16636_v29  ;;  %v12437_v29 = vadd.f32 %v12436_v42, %v16670_v27 }
0x14f8   : > { %v16682_v3 = vpop.f32.mrf.mxu1 }
0x14f9   : > { %18291 = vst [vmem:[#allocation54_spill] sm:$0xff] %v16682_v3  ;;  %v12442_v30 = vpop.f32.mrf.mxu0  ;;  %v4497_v3 = vadd.f32 %v12413_v5, %v12349_v11  ;;  %v12358_v11 = vadd.f32 %v16630_v58, %v16628_v46  ;;  %v4518_v9 = vadd.f32 %v12428_v39, %v12364_v40 }
0x14fa   : > { %v13174_v36 = vpop.f32.mrf.mxu1  ;;  %v12443_v58 = vadd.f32 %v12442_v30, %v12441_v61  ;;  %v12373_v61 = vadd.f32 %v16650_v23, %v16648_v38  ;;  %v18297_v0 = vld [vmem:[#allocation52_spill] sm:$0xff] }
0x14fb   : > { %v16684_v49 = vpop.f32.mrf.mxu0  ;;  %v4599_v45 = vadd.f32 %v13174_v36, %v4502_v2  ;;  %v4510_v37 = vadd.f32 %v12422_v41, %v12358_v11  ;;  %v18295_v41 = vld [vmem:[#allocation50_spill] sm:$0xff] }
0x14fc   : > { %v4590_v52 = vpop.f32.mrf.mxu1  ;;  %v4529_v42 = vadd.f32 %v12437_v29, %v12373_v61  ;;  %v18298_v39 = vld [vmem:[#allocation53_spill] sm:$0xff] }
0x14fd   : > { %v16686_v43 = vpop.f32.mrf.mxu0  ;;  %v4591_v59 = vadd.f32 %v4590_v52, %v4494_v55  ;;  %v12361_v52 = vadd.f32 %v16634_v17, %v16632_v62  ;;  %v12434_v17 = vadd.f32 %v16666_v57, %v16662_v44  ;;  %v12379_v55 = vadd.f32 %v16658_v16, %v16656_v13 }
0x14fe   : > { %v13175_v21 = vpop.f32.mrf.mxu1  ;;  %v12376_v44 = vadd.f32 %v16654_v54, %v16652_v50  ;;  %v12446_v23 = vadd.f32 %v16686_v43, %v16684_v49  ;;  %v12388_v49 = vadd.f32 %v18298_v39, %v18297_v0 }
0x14ff   : > { %v16689_v20 = vpop.f32.mrf.mxu0  ;;  %v4602_v6 = vadd.f32 %v13175_v21, %v4505_v32  ;;  %v4513_v4 = vadd.f32 %v12425_v56, %v12361_v52  ;;  %v12440_v21 = vadd.f32 %v12439_v53, %v16676_v48  ;;  %v4537_v57 = vadd.f32 %v12443_v58, %v12379_v55  ;;  %v18296_v56 = vld [vmem:[#allocation51_spill] sm:$0xff]  ;;  %v4756_v58 = vpop.permute.xlu0 %4755 }
0x1500   : > { %v4593_v47 = vpop.f32.mrf.mxu1  ;;  %v18292_v2 = vld [vmem:[#allocation54_spill] sm:$0xff] }
0x1501   : > { %v4594_v63 = vadd.f32 %v4593_v47, %v4497_v3  ;;  %v12448_v18 = vpop.f32.mrf.mxu0  ;;  %v4654_v8 = vpack.c.bf16 %v4602_v6, %v4599_v45  ;;  %v12370_v3 = vadd.f32 %v16646_v22, %v16644_v33  ;;  %v4534_v48 = vadd.f32 %v12440_v21, %v12376_v44  ;;  %v18294_v45 = vld [vmem:[#allocation49_spill] sm:$0xff] }
0x1502   : > { %v13178_v1 = vpop.f32.mrf.mxu1  ;;  %v12449_v50 = vadd.f32 %v12448_v18, %v16689_v20  ;;  %v12391_v6 = vadd.f32 %v18292_v2, %v16680_v60 }
0x1503   : > { %v4653_v7 = vpack.c.bf16 %v4594_v63, %v4591_v59  ;;  %v12450_v24 = vpop.f32.mrf.mxu0  ;;  %v4615_v15 = vadd.f32 %v13178_v1, %v4518_v9  ;;  %v4526_v16 = vadd.f32 %v12434_v17, %v12370_v3  ;;  %v12382_v1 = vadd.f32 %v18294_v45, %v18293_v14 }
0x1504   : > { %v4606_v5 = vpop.f32.mrf.mxu1  ;;  %v18301_v9 = vmov 0  }
0x1505   : > { %13190 = vmatprep.mubr.msk.bf16.mxu0 %vm18178_vm12, %v4653_v7  ;;  %v12451_v34 = vpop.f32.mrf.mxu0  ;;  %v4607_v12 = vadd.f32 %v4606_v5, %v4510_v37  ;;  %v12385_v7 = vadd.f32 %v18296_v56, %v18295_v41  ;;  %v4542_v60 = vadd.f32 %v12446_v23, %v12382_v1  ;;  %v15117_v37 = vld [vmem:[%s18299_s11] sm:$0xff]  }
0x1506   : > { %v13179_v35 = vpop.f32.mrf.mxu1  ;;  %13191 = vmatmul.mubr.msk.bf16.vlgmr.msra.gmra.mxu0 %vm18178_vm12, %v4654_v8  ;;  %v12452_v47 = vadd.f32 %v12451_v34, %v12450_v24  ;;  %13222 = vmatprep.mubr.bf16.mxu1 %v15117_v37  ;;  %v5114_v34 = vld [vmem:[%s18300_s18] sm:$0x1]  ;;  %s18302_s18 = sld [smem:[#allocation26_spill]] }
0x1507   : > { %v4618_v10 = vadd.f32 %v13179_v35, %v4521_v26  ;;  %v12453_v25 = vpop.f32.mrf.mxu0  ;;  %v4545_v18 = vadd.f32 %v12449_v50, %v12385_v7  ;;  %13658 = vmatprep.subr.msk.bf16.mxu0 %vm18168_vm0, %v5114_v34 }
0x1508   : > { %v4609_v51 = vpop.f32.mrf.mxu1  ;;  %v4550_v24 = vadd.f32 %v12452_v47, %v12388_v49 }
0x1509   : > { %v4610_v46 = vadd.f32 %v4609_v51, %v4513_v4  ;;  %v4656_v32 = vpack.c.bf16 %v4618_v10, %v4615_v15  ;;  %v12454_v13 = vpop.f32.mrf.mxu0  ;;  %v5134_v4 = vsel %vm18168_vm0, %v5114_v34, 0  ;;  %vm18177_vm0 = vcmask 785408  }
0x150a   : > { %v13182_v62 = vpop.f32.mrf.mxu1  ;;  %v12455_v22 = vadd.f32 %v12454_v13, %v12453_v25  ;;  %13235 = vmatpush3.bf16.msra.mxu0 %v5134_v4  ;;  %v4746_v25 = vpop.permute.xlu0 %4745 }
0x150b   : > { %v4655_v19 = vpack.c.bf16 %v4610_v46, %v4607_v12  ;;  %v4631_v36 = vadd.f32 %v13182_v62, %v4534_v48  ;;  %5621 = vmatprep.subr.bf16.mxu0 %v18301_v9  ;;  %v4751_v62 = vpop.permute.xlu1 %4750 }
0x150c   : > { %v4622_v28 = vpop.f32.mrf.mxu1  ;;  %v4553_v20 = vadd.f32 %v12455_v22, %v12391_v6 }
0x150d   : > { %13194 = vmatprep.mubr.msk.bf16.mxu0 %vm18178_vm12, %v4655_v19  ;;  %v4623_v31 = vadd.f32 %v4622_v28, %v4526_v16 }
0x150e   : > { %v13183_v27 = vpop.f32.mrf.mxu1  ;;  %13195 = vmatmul.mubr.msk.bf16.gmra.mxu0 %vm18178_vm12, %v4656_v32  ;;  %v4736_v28 = vpop.permute.xlu0 %4735 }
0x150f   : > { %v4634_v53 = vadd.f32 %v13183_v27, %v4537_v57  ;;  %v4741_v55 = vpop.permute.xlu1 %4740 }
0x1510   : > { %v4625_v30 = vpop.f32.mrf.mxu1 }
0x1511   : > { %v4626_v33 = vadd.f32 %v4625_v30, %v4529_v42  ;;  %v4658_v59 = vpack.c.bf16 %v4634_v53, %v4631_v36 }
0x1512   : > { %v13186_v38 = vpop.f32.mrf.mxu1  ;;  %v4726_v27 = vpop.permute.xlu0 %4725 }
0x1513   : > { %v4657_v54 = vpack.c.bf16 %v4626_v33, %v4623_v31  ;;  %v4647_v40 = vadd.f32 %v13186_v38, %v4550_v24  ;;  %v4731_v61 = vpop.permute.xlu1 %4730 }
0x1514   : > { %v4638_v63 = vpop.f32.mrf.mxu1 }
0x1515   : > { %13198 = vmatprep.mubr.msk.bf16.mxu0 %vm18178_vm12, %v4657_v54  ;;  %v4639_v11 = vadd.f32 %v4638_v63, %v4542_v60 }
0x1516   : > { %v13187_v43 = vpop.f32.mrf.mxu1  ;;  %13199 = vmatmul.mubr.msk.bf16.gmra.mxu0 %vm18178_vm12, %v4658_v59  ;;  %v4716_v36 = vpop.permute.xlu0 %4715 }
0x1517   : > { %v4650_v8 = vadd.f32 %v13187_v43, %v4553_v20  ;;  %v4721_v42 = vpop.permute.xlu1 %4720 }
0x1518   : > { %v4641_v5 = vpop.f32.mrf.mxu1 }
0x1519   : > { %v4642_v52 = vadd.f32 %v4641_v5, %v4545_v18  ;;  %v4660_v35 = vpack.c.bf16 %v4650_v8, %v4647_v40 }
0x151a   : > { %v4706_v2 = vpop.permute.xlu0 %4705 }
0x151b   : > { %v4659_v26 = vpack.c.bf16 %v4642_v52, %v4639_v11  ;;  %v4711_v23 = vpop.permute.xlu1 %4710 }
0x151d   : > { %13202 = vmatprep.mubr.msk.bf16.mxu0 %vm18178_vm12, %v4659_v26 }
0x151e   : > { %13203 = vmatmul.mubr.msk.bf16.gmra.mxu0 %vm18178_vm12, %v4660_v35  ;;  %v4696_v1 = vpop.permute.xlu0 %4695 }
0x151f   : > { %v4701_v47 = vpop.permute.xlu1 %4700 }
0x1522   : > { %v4686_v24 = vpop.permute.xlu0 %4685 }
0x1523   : > { %v4691_v39 = vpop.permute.xlu1 %4690 }
0x1527   : > { %v4681_v52 = vpop.permute.xlu1 %4680 }
0x15c6   : > { %v16735_v10 = vpop.f32.mrf.mxu0 }
0x15c7   : > { %v4829_v60 = vadd.f32 %v16735_v10, %v4691_v39 }
0x15c8   : > { %v16737_v51 = vpop.f32.mrf.mxu0 }
0x15c9   : > { %v4821_v40 = vadd.f32 %v16737_v51, %v4681_v52 }
0x15ca   : > { %v13193_v12 = vpop.f32.mrf.mxu0 }
0x15cb   : > { %v4832_v49 = vadd.f32 %v13193_v12, %v4696_v1 }
0x15cc   : > { %v16739_v46 = vpop.f32.mrf.mxu0 }
0x15cd   : > { %v4824_v8 = vadd.f32 %v16739_v46, %v4686_v24 }
0x15ce   : > { %v13196_v15 = vpop.f32.mrf.mxu0 }
0x15cf   : > { %v4845_v59 = vadd.f32 %v13196_v15, %v4711_v23 }
0x15d0   : > { %v4836_v17 = vpop.f32.mrf.mxu0 }
0x15d1   : > { %v4837_v56 = vadd.f32 %v4836_v17, %v4701_v47 }
0x15d2   : > { %v13197_v29 = vpop.f32.mrf.mxu0 }
0x15d3   : > { %v4848_v6 = vadd.f32 %v13197_v29, %v4716_v36 }
0x15d4   : > { %v4839_v19 = vpop.f32.mrf.mxu0 }
0x15d5   : > { %v4840_v14 = vadd.f32 %v4839_v19, %v4706_v2  ;;  %v15119_v19 = vld [vmem:[%s18299_s11 + $0x10] sm:$0xff]  }
0x15d6   : > { %v13200_v21 = vpop.f32.mrf.mxu0 }
0x15d7   : > { %v4861_v38 = vadd.f32 %v13200_v21, %v4731_v61  ;;  %v15121_v21 = vld [vmem:[%s18299_s11 + $0x20] sm:$0xff]  }
0x15d8   : > { %v4852_v32 = vpop.f32.mrf.mxu0 }
0x15d9   : > { %v4853_v54 = vadd.f32 %v4852_v32, %v4721_v42  ;;  %v15122_v32 = vld [vmem:[%s18299_s11 + $0x28] sm:$0xff]  }
0x15da   : > { %v13201_v3 = vpop.f32.mrf.mxu0 }
0x15db   : > { %v4864_v33 = vadd.f32 %v13201_v3, %v4736_v28  ;;  %v4939_v28 = vpop.permute.xlu0 %4938  ;;  %v4934_v3 = vpop.permute.xlu1 %4933 }
0x15dc   : > { %v4855_v44 = vpop.f32.mrf.mxu0 }
0x15dd   : > { %v4856_v50 = vadd.f32 %v4855_v44, %v4726_v27 }
0x15de   : > { %v13204_v57 = vpop.f32.mrf.mxu0 }
0x15df   : > { %v4877_v13 = vadd.f32 %v13204_v57, %v4751_v62  ;;  %v4949_v61 = vpop.permute.xlu0 %4948  ;;  %v4944_v44 = vpop.permute.xlu1 %4943 }
0x15e0   : > { %v4868_v16 = vpop.f32.mrf.mxu0 }
0x15e1   : > { %v4869_v48 = vadd.f32 %v4868_v16, %v4741_v55  ;;  %15405 = vtanh.f32 %v4877_v13  ;;  %v15120_v55 = vld [vmem:[%s18299_s11 + $0x18] sm:$0xff]  }
0x15e2   : > { %v13205_v53 = vpop.f32.mrf.mxu0 }
0x15e3   : > { %v4880_v30 = vadd.f32 %v13205_v53, %v4756_v58  ;;  %v4959_v13 = vpop.permute.xlu0 %4958  ;;  %v4954_v42 = vpop.permute.xlu1 %4953 }
0x15e4   : > { %v4871_v31 = vpop.f32.mrf.mxu0 }
0x15e5   : > { %15407 = vtanh.f32 %v4880_v30  ;;  %v4872_v22 = vadd.f32 %v4871_v31, %v4746_v25  ;;  %v15118_v25 = vld [vmem:[%s18299_s11 + $0x8] sm:$0xff]   ;;  %s18303_s11 = sld [smem:[#allocation27_spill]] }
0x15e6   : > { %15409 = vtanh.f32 %v4869_v48 }
0x15e7   : > { %15411 = vtanh.f32 %v4872_v22  ;;  %v4969_v36 = vpop.permute.xlu0 %4968 }
0x15e8   : > { %15413 = vtanh.f32 %v4864_v33 }
0x15e9   : > { %15415 = vtanh.f32 %v4861_v38 }
0x15ea   : > { %15417 = vtanh.f32 %v4856_v50 }
0x15eb   : > { %15419 = vtanh.f32 %v4853_v54  ;;  %v4964_v54 = vpop.permute.xlu1 %4963 }
0x15ec   : > { %15421 = vtanh.f32 %v4848_v6 }
0x15ed   : > { %15423 = vtanh.f32 %v4845_v59  ;;  %v4979_v59 = vpop.permute.xlu0 %4978 }
0x15ee   : > { %v15406_v63 = vpop.eup %15405  ;;  %15425 = vtanh.f32 %v4840_v14 }
0x15ef   : > { %15427 = vtanh.f32 %v4837_v56 }
0x15f0   : > { %15429 = vtanh.f32 %v4832_v49 }
0x15f1   : > { %15431 = vtanh.f32 %v4829_v60  ;;  %v4989_v49 = vpop.permute.xlu0 %4988 }
0x15f2   : > { %v15408_v45 = vpop.eup %15407  ;;  %15433 = vtanh.f32 %v4824_v8 }
0x15f3   : > { %v15410_v41 = vpop.eup %15409  ;;  %v4918_v7 = vpack.c.bf16 %v15408_v45, %v15406_v63  ;;  %15435 = vtanh.f32 %v4821_v40 }
0x15f4   : > { %v15412_v0 = vpop.eup %15411 }
0x15f5   : > { %13206 = vmatprep.subr.bf16.mxu1 %v4918_v7  ;;  %v4917_v20 = vpack.c.bf16 %v15412_v0, %v15410_v41  ;;  %v15414_v43 = vpop.eup %15413  ;;  %v4974_v41 = vpop.permute.xlu1 %4973 }
0x15f6   : > { %13207 = vmatpush3.bf16.msra.mxu1 %v4918_v7  ;;  %v15416_v18 = vpop.eup %15415 }
0x15f7   : > { %13208 = vmatprep.subr.bf16.mxu1 %v4917_v20  ;;  %v4916_v5 = vpack.c.bf16 %v15414_v43, %v15416_v18  ;;  %v15418_v11 = vpop.eup %15417 }
0x15f8   : > { %v15420_v26 = vpop.eup %15419 }
0x15f9   : > { %v4915_v35 = vpack.c.bf16 %v15418_v11, %v15420_v26  ;;  %v15422_v37 = vpop.eup %15421  ;;  %v4984_v60 = vpop.permute.xlu1 %4983 }
0x15fa   : > { %13209 = vmatpush3.bf16.msra.mxu1 %v4917_v20  ;;  %v15424_v34 = vpop.eup %15423 }
0x15fb   : > { %13210 = vmatprep.subr.bf16.mxu1 %v4916_v5  ;;  %v4914_v4 = vpack.c.bf16 %v15422_v37, %v15424_v34  ;;  %v15426_v10 = vpop.eup %15425 }
0x15fc   : > { %v15428_v12 = vpop.eup %15427 }
0x15fd   : > { %v4913_v46 = vpack.c.bf16 %v15426_v10, %v15428_v12  ;;  %v15430_v58 = vpop.eup %15429 }
0x15fe   : > { %13211 = vmatpush3.bf16.msra.mxu1 %v4916_v5  ;;  %v15432_v51 = vpop.eup %15431 }
0x15ff   : > { %13212 = vmatprep.subr.bf16.mxu1 %v4915_v35  ;;  %v4912_v15 = vpack.c.bf16 %v15430_v58, %v15432_v51  ;;  %v15434_v62 = vpop.eup %15433 }
0x1600   : > { %v15436_v17 = vpop.eup %15435 }
0x1601   : > { %v4911_v29 = vpack.c.bf16 %v15434_v62, %v15436_v17 }
0x1602   : > { %13213 = vmatpush3.bf16.msra.mxu1 %v4915_v35 }
0x1603   : > { %13214 = vmatprep.subr.bf16.mxu1 %v4914_v4 }
0x1606   : > { %13215 = vmatpush3.bf16.msra.mxu1 %v4914_v4 }
0x1607   : > { %13216 = vmatprep.subr.bf16.mxu1 %v4913_v46 }
0x160a   : > { %13217 = vmatpush3.bf16.msra.mxu1 %v4913_v46 }
0x160b   : > { %13218 = vmatprep.subr.bf16.mxu1 %v4912_v15 }
0x160e   : > { %13219 = vmatpush3.bf16.msra.mxu1 %v4912_v15 }
0x160f   : > { %13220 = vmatprep.subr.bf16.mxu1 %v4911_v29 }
0x1612   : > { %13221 = vmatpush3.bf16.msra.mxu1 %v4911_v29 }
0x1615   : > { %13223 = vmatmul.mubr.bf16.vlgmr.msra.gmra.mxu1 %v15118_v25 }
0x1616   : > { %13226 = vmatprep.mubr.bf16.mxu1 %v15119_v19 }
0x161d   : > { %13227 = vmatmul.mubr.bf16.gmra.mxu1 %v15120_v55 }
0x161e   : > { %13230 = vmatprep.mubr.bf16.mxu1 %v15121_v21 }
0x1625   : > { %13231 = vmatmul.mubr.bf16.gmra.mxu1 %v15122_v32 }
0x16d5   : > { %v13224_v57 = vpop.f32.mrf.mxu1 }
0x16d6   : > { %v5070_v33 = vadd.f32 %v13224_v57, %v4944_v44  ;;  %v5420_v44 = vld [vmem:[%s18303_s11 + $0x8] sm:$0xff]  ;;  %v5421_v57 = vld [vmem:[%s18303_s11 + $0x10] sm:$0xff] }
0x16d7   : > { %v5061_v27 = vpop.f32.mrf.mxu1 }
0x16d8   : > { %v5062_v30 = vadd.f32 %v5061_v27, %v4934_v3  ;;  %v15131_v3 = vld [vmem:[%s18302_s18 + $0xc] ss:$16 sps:$4 sm:$0xff]  }
0x16d9   : > { %v13225_v16 = vpop.f32.mrf.mxu1  ;;  %v5422_v27 = vld [vmem:[%s18303_s11 + $0x18] sm:$0xff] }
0x16da   : > { %v5073_v48 = vadd.f32 %v13225_v16, %v4949_v61  ;;  %v5419_v61 = vld [vmem:[%s18303_s11] sm:$0xff]  ;;  %v5424_v16 = vld [vmem:[%s18303_s11 + $0x28] sm:$0xff] }
0x16db   : > { %v5064_v53 = vpop.f32.mrf.mxu1 }
0x16dc   : > { %v5065_v31 = vadd.f32 %v5064_v53, %v4939_v28  ;;  %v5109_v23 = vpack.c.bf16 %v5073_v48, %v5070_v33  ;;  %v15125_v28 = vld [vmem:[%s18302_s18 + $0x4] ss:$16 sps:$4 sm:$0xff]   ;;  %v5426_v48 = vld [vmem:[%s18303_s11 + $0x38] sm:$0xff] }
0x16dd   : > { %v13228_v22 = vpop.f32.mrf.mxu1  ;;  %5588 = vmatprep.mubr.bf16.mxu1 %v15125_v28 }
0x16de   : > { %v5108_v38 = vpack.c.bf16 %v5065_v31, %v5062_v30  ;;  %v5086_v45 = vadd.f32 %v13228_v22, %v4964_v54 }
0x16df   : > { %v5077_v50 = vpop.f32.mrf.mxu1 }
0x16e0   : > { %13236 = vmatprep.mubr.msk.bf16.mxu0 %vm1644_vm4, %v5108_v38  ;;  %v5078_v63 = vadd.f32 %v5077_v50, %v4954_v42  ;;  %v5425_v42 = vld [vmem:[%s18303_s11 + $0x30] sm:$0xff] }
0x16e1   : > { %v13229_v2 = vpop.f32.mrf.mxu1  ;;  %13237 = vmatmul.mubr.msk.bf16.vlgmr.msra.gmra.mxu0 %vm1644_vm4, %v5109_v23 }
0x16e2   : > { %v5089_v6 = vadd.f32 %v13229_v2, %v4969_v36 }
0x16e3   : > { %v5080_v47 = vpop.f32.mrf.mxu1 }
0x16e4   : > { %v5081_v14 = vadd.f32 %v5080_v47, %v4959_v13  ;;  %v5111_v7 = vpack.c.bf16 %v5089_v6, %v5086_v45  ;;  %v5423_v13 = vld [vmem:[%s18303_s11 + $0x20] sm:$0xff]  ;;  %s18304_s11 = sld [smem:[#allocation28_spill]] }
0x16e5   : > { %v13232_v1 = vpop.f32.mrf.mxu1 }
0x16e6   : > { %v5110_v56 = vpack.c.bf16 %v5081_v14, %v5078_v63  ;;  %v5102_v8 = vadd.f32 %v13232_v1, %v4984_v60 }
0x16e7   : > { %v5093_v0 = vpop.f32.mrf.mxu1 }
0x16e8   : > { %13240 = vmatprep.mubr.msk.bf16.mxu0 %vm1644_vm4, %v5110_v56  ;;  %v5094_v18 = vadd.f32 %v5093_v0, %v4974_v41 }
0x16e9   : > { %v13233_v39 = vpop.f32.mrf.mxu1  ;;  %13241 = vmatmul.mubr.msk.bf16.gmra.mxu0 %vm1644_vm4, %v5111_v7 }
0x16ea   : > { %v5105_v20 = vadd.f32 %v13233_v39, %v4989_v49 }
0x16eb   : > { %v5096_v43 = vpop.f32.mrf.mxu1 }
0x16ec   : > { %v5097_v24 = vadd.f32 %v5096_v43, %v4979_v59  ;;  %v5113_v11 = vpack.c.bf16 %v5105_v20, %v5102_v8 }
0x16ee   : > { %v5112_v5 = vpack.c.bf16 %v5097_v24, %v5094_v18 }
0x16f0   : > { %13244 = vmatprep.mubr.msk.bf16.mxu0 %vm1644_vm4, %v5112_v5 }
0x16f1   : > { %13245 = vmatmul.mubr.msk.bf16.gmra.mxu0 %vm1644_vm4, %v5113_v11 }
0x16f2   : > { %11939 = vmatprep.mubr.msk.bf16.mxu0 %vm18177_vm0, %v15131_v3 }
0x17a1   : > { %v16755_v52 = vpop.f32.mrf.mxu0 }
0x17a3   : > { %v16757_v40 = vpop.f32.mrf.mxu0 }
0x17a5   : > { %v16759_v26 = vpop.f32.mrf.mxu0 }
0x17a6   : > { %v5390_v37 = vpack.c.bf16 %v16759_v26, %v16755_v52  ;;  %v14134_v21 = vpack.i.bf16 %v16759_v26, %v16755_v52  ;;  %v15128_v52 = vld [vmem:[%s18302_s18 + $0x24] ss:$16 sps:$4 sm:$0xff]  }
0x17a7   : > { %v16761_v35 = vpop.f32.mrf.mxu0 }
0x17a8   : > { %v14149_v32 = vpack.i.bf16 %v16761_v35, %v16757_v40 }
0x17a9   : > { %v16765_v34 = vpop.f32.mrf.mxu0 }
0x17ab   : > { %v16767_v4 = vpop.f32.mrf.mxu0 }
0x17ad   : > { %v16769_v10 = vpop.f32.mrf.mxu0 }
0x17ae   : > { %v5392_v46 = vpack.c.bf16 %v16769_v10, %v16765_v34  ;;  %v14124_v19 = vpack.i.bf16 %v16769_v10, %v16765_v34 }
0x17af   : > { %v16771_v12 = vpop.f32.mrf.mxu0 }
0x17b0   : > { %v14129_v55 = vpack.i.bf16 %v16771_v12, %v16767_v4 }
0x17b1   : > { %v16775_v58 = vpop.f32.mrf.mxu0 }
0x17b3   : > { %v16777_v51 = vpop.f32.mrf.mxu0 }
0x17b5   : > { %v16779_v15 = vpop.f32.mrf.mxu0 }
0x17b6   : > { %v14114_v62 = vpack.i.bf16 %v16779_v15, %v16775_v58  ;;  %v5394_v29 = vpack.c.bf16 %v16779_v15, %v16775_v58 }
0x17b7   : > { %v16783_v17 = vpop.f32.mrf.mxu0 }
0x17b8   : > { %14115 = vrot.lane.b32.xlu1 %v14114_v62, %s18264_s5  ;;  %v14119_v25 = vpack.i.bf16 %v16783_v17, %v16777_v51 }
0x17ba   : > { %14120 = vrot.lane.b32.xlu0 %v14119_v25, %s18264_s5 }
0x17bc   : > { %14125 = vrot.lane.b32.xlu1 %v14124_v19, %s18264_s5 }
0x17be   : > { %14130 = vrot.lane.b32.xlu0 %v14129_v55, %s18264_s5 }
0x17c0   : > { %14135 = vrot.lane.b32.xlu1 %v14134_v21, %s18264_s5 }
0x17c2   : > { %14140 = vrot.lane.b32.xlu0 %v14124_v19, %s18268_s30 }
0x17c4   : > { %14145 = vrot.lane.b32.xlu1 %v14134_v21, %s18265_s7 }
0x17c6   : > { %14150 = vrot.lane.b32.xlu0 %v14149_v32, %s18264_s5 }
0x17c8   : > { %14155 = vrot.lane.b32.xlu1 %v14129_v55, %s18268_s30 }
0x17ca   : > { %14160 = vrot.lane.b32.xlu0 %v14149_v32, %s18265_s7 }
0x17cc   : > { %14165 = vrot.lane.b32.xlu1 %v14114_v62, %s18268_s30 }
0x17ce   : > { %14170 = vrot.lane.b32.xlu0 %v14134_v21, %s18268_s30 }
0x17d0   : > { %14180 = vrot.lane.b32.xlu1 %v14119_v25, %s18268_s30 }
0x17d2   : > { %14175 = vrot.lane.b32.xlu0 %v14149_v32, %s18268_s30 }
0x17d4   : > { %14185 = vrot.lane.b32.xlu1 %v14114_v62, %s18269_s26 }
0x17d6   : > { %14190 = vrot.lane.b32.xlu0 %v14114_v62, %s18265_s7 }
0x17d8   : > { %14195 = vrot.lane.b32.xlu1 %v14119_v25, %s18269_s26 }
0x17da   : > { %14205 = vrot.lane.b32.xlu0 %v14119_v25, %s18265_s7 }
0x17dc   : > { %14200 = vrot.lane.b32.xlu1 %v14124_v19, %s18269_s26 }
0x17de   : > { %14210 = vrot.lane.b32.xlu0 %v14124_v19, %s18265_s7 }
0x17e0   : > { %14215 = vrot.lane.b32.xlu1 %v14129_v55, %s18269_s26 }
0x17e2   : > { %14220 = vrot.lane.b32.xlu0 %v14129_v55, %s18265_s7 }
0x17e4   : > { %14225 = vrot.lane.b32.xlu1 %v14134_v21, %s18269_s26 }
0x17e6   : > { %14230 = vrot.lane.b32.xlu0 %v14149_v32, %s18269_s26 }
0x17e8   : > { %5429 = vperm.xlu1 %13738, %v5419_v61  }
0x17ea   : > { %5434 = vperm.xlu0 %13737, %v5420_v44  }
0x17ec   : > { %5439 = vperm.xlu1 %13738, %v5421_v57  }
0x17ee   : > { %5444 = vperm.xlu0 %13737, %v5422_v27  }
0x17f0   : > { %5449 = vperm.xlu1 %13738, %v5423_v13  }
0x17f2   : > { %5454 = vperm.xlu0 %13737, %v5424_v16  }
0x17f4   : > { %5459 = vperm.xlu1 %13738, %v5425_v42  }
0x17f6   : > { %5464 = vperm.xlu0 %13737, %v5426_v48  }
0x182a   : > { %v14116_v53 = vpop.permute.xlu1 %14115 }
0x182b   : > { %v14118_v30 = vunpack.i.h.bf16 %v14116_v53  ;;  %v14117_v31 = vunpack.i.l.bf16 %v14116_v53 }
0x182c   : > { %v14121_v33 = vpop.permute.xlu0 %14120 }
0x182d   : > { %v5412_v22 = vpack.c.bf16 %v14118_v30, %v14117_v31  ;;  %v14123_v36 = vunpack.i.h.bf16 %v14121_v33  ;;  %v14122_v38 = vunpack.i.l.bf16 %v14121_v33 }
0x182e   : > { %v14126_v23 = vpop.permute.xlu1 %14125 }
0x182f   : > { %5622 = vmatpush1.bf16.msra.mxu0 %v5412_v22  ;;  %v14128_v50 = vunpack.i.h.bf16 %v14126_v23  ;;  %v14127_v54 = vunpack.i.l.bf16 %v14126_v23  ;;  %v5411_v6 = vpack.c.bf16 %v14123_v36, %v14122_v38 }
0x1830   : > { %v14131_v2 = vpop.permute.xlu0 %14130  ;;  %5623 = vmatprep.subr.bf16.mxu0 %v18301_v9 }
0x1831   : > { %v5410_v59 = vpack.c.bf16 %v14128_v50, %v14127_v54  ;;  %v14133_v14 = vunpack.i.h.bf16 %v14131_v2  ;;  %v14132_v45 = vunpack.i.l.bf16 %v14131_v2 }
0x1832   : > { %v14136_v47 = vpop.permute.xlu1 %14135 }
0x1833   : > { %5624 = vmatpush1.bf16.msra.mxu0 %v5411_v6  ;;  %v14138_v49 = vunpack.i.h.bf16 %v14136_v47  ;;  %v14137_v20 = vunpack.i.l.bf16 %v14136_v47  ;;  %v5409_v60 = vpack.c.bf16 %v14133_v14, %v14132_v45  ;;  %v5393_v6 = vpack.c.bf16 %v16783_v17, %v16777_v51 }
0x1834   : > { %v14141_v63 = vpop.permute.xlu0 %14140  ;;  %5625 = vmatprep.subr.bf16.mxu0 %v18301_v9 }
0x1835   : > { %v14143_v1 = vunpack.i.h.bf16 %v14141_v63  ;;  %v14142_v41 = vunpack.i.l.bf16 %v14141_v63  ;;  %v5408_v11 = vpack.c.bf16 %v14138_v49, %v14137_v20  ;;  %v5391_v49 = vpack.c.bf16 %v16771_v12, %v16767_v4 }
0x1836   : > { %v14146_v56 = vpop.permute.xlu1 %14145 }
0x1837   : > { %v14148_v7 = vunpack.i.h.bf16 %v14146_v56  ;;  %v14147_v0 = vunpack.i.l.bf16 %v14146_v56  ;;  %5626 = vmatpush1.bf16.msra.mxu0 %v5410_v59  ;;  %v5404_v39 = vpack.c.bf16 %v14143_v1, %v14142_v41 }
0x1838   : > { %v14151_v43 = vpop.permute.xlu0 %14150  ;;  %5627 = vmatprep.subr.bf16.mxu0 %v18301_v9 }
0x1839   : > { %v5396_v18 = vpack.c.bf16 %v14148_v7, %v14147_v0  ;;  %12502 = vmatprep.subr.bf16.mxu1 %v5404_v39  ;;  %v14153_v62 = vunpack.i.h.bf16 %v14151_v43  ;;  %v14152_v19 = vunpack.i.l.bf16 %v14151_v43 }
0x183a   : > { %v14156_v24 = vpop.permute.xlu1 %14155 }
0x183b   : > { %v14158_v8 = vunpack.i.h.bf16 %v14156_v24  ;;  %v14157_v5 = vunpack.i.l.bf16 %v14156_v24  ;;  %12503 = vmatpush3.bf16.msra.mxu1 %v5396_v18  ;;  %5628 = vmatpush1.bf16.msra.mxu0 %v5409_v60  ;;  %v5407_v27 = vpack.c.bf16 %v14153_v62, %v14152_v19  ;;  %v5389_v62 = vpack.c.bf16 %v16761_v35, %v16757_v40 }
0x183c   : > { %v14161_v25 = vpop.permute.xlu0 %14160  ;;  %5629 = vmatprep.subr.bf16.mxu0 %v18301_v9 }
0x183d   : > { %v14163_v55 = vunpack.i.h.bf16 %v14161_v25  ;;  %v14162_v21 = vunpack.i.l.bf16 %v14161_v25  ;;  %v5403_v32 = vpack.c.bf16 %v14158_v8, %v14157_v5 }
0x183e   : > { %v14166_v28 = vpop.permute.xlu1 %14165 }
0x183f   : > { %v5395_v3 = vpack.c.bf16 %v14163_v55, %v14162_v21  ;;  %12504 = vmatprep.subr.bf16.mxu1 %v5403_v32  ;;  %5630 = vmatpush1.bf16.msra.mxu0 %v5408_v11  ;;  %v14168_v61 = vunpack.i.h.bf16 %v14166_v28  ;;  %v14167_v44 = vunpack.i.l.bf16 %v14166_v28  ;;  %v15123_v21 = vld [vmem:[%s18302_s18] ss:$16 sps:$4 sm:$0xff]  }
0x1840   : > { %v14171_v57 = vpop.permute.xlu0 %14170  ;;  %5631 = vmatprep.subr.bf16.mxu0 %v18301_v9  ;;  %v15126_v28 = vld [vmem:[%s18302_s18 + $0x20] ss:$16 sps:$4 sm:$0xff]  }
0x1841   : > { %v14173_v13 = vunpack.i.h.bf16 %v14171_v57  ;;  %v14172_v16 = vunpack.i.l.bf16 %v14171_v57  ;;  %12505 = vmatpush3.bf16.msra.mxu1 %v5395_v3  ;;  %v5406_v53 = vpack.c.bf16 %v14168_v61, %v14167_v44  ;;  %v15129_v3 = vld [vmem:[%s18302_s18 + $0x8] ss:$16 sps:$4 sm:$0xff]   ;;  %v15134_v61 = vld [vmem:[%s18302_s18 + $0x44] ss:$16 sps:$4 sm:$0xff]   ;;  %v15135_v44 = vld [vmem:[%s18302_s18 + $0x2c] ss:$16 sps:$4 sm:$0xff]  }
0x1842   : > { %v14181_v42 = vpop.permute.xlu1 %14180  ;;  %v15132_v57 = vld [vmem:[%s18302_s18 + $0x40] ss:$16 sps:$4 sm:$0xff]  }
0x1843   : > { %5632 = vmatpush1.bf16.msra.mxu0 %v5407_v27  ;;  %v5402_v48 = vpack.c.bf16 %v14173_v13, %v14172_v16  ;;  %v14183_v31 = vunpack.i.h.bf16 %v14181_v42  ;;  %v14182_v33 = vunpack.i.l.bf16 %v14181_v42  ;;  %v15137_v27 = vld [vmem:[%s18302_s18 + $0x28] ss:$16 sps:$4 sm:$0xff]   ;;  %v15140_v13 = vld [vmem:[%s18302_s18 + $0x64] ss:$16 sps:$4 sm:$0xff]   ;;  %v15141_v16 = vld [vmem:[%s18302_s18 + $0x4c] ss:$16 sps:$4 sm:$0xff]  }
0x1844   : > { %v14176_v30 = vpop.permute.xlu0 %14175  ;;  %5633 = vmatprep.subr.bf16.mxu0 %v18301_v9  ;;  %v15138_v42 = vld [vmem:[%s18302_s18 + $0x60] ss:$16 sps:$4 sm:$0xff]  }
0x1845   : > { %v14178_v22 = vunpack.i.h.bf16 %v14176_v30  ;;  %v14177_v36 = vunpack.i.l.bf16 %v14176_v30  ;;  %12506 = vmatprep.subr.bf16.mxu1 %v5402_v48  ;;  %v5405_v47 = vpack.c.bf16 %v14183_v31, %v14182_v33  ;;  %v15143_v48 = vld [vmem:[%s18302_s18 + $0x48] ss:$16 sps:$4 sm:$0xff]   ;;  %v5698_v31 = vld [vmem:[%s18304_s11] sm:$0x3]  ;;  %s18305_s11 = sld [smem:[#allocation29_spill]] }
0x1846   : > { %v14186_v38 = vpop.permute.xlu1 %14185  ;;  %12507 = vmatpush3.bf16.msra.mxu1 %v5394_v29  ;;  %v15146_v30 = vld [vmem:[%s18302_s18 + $0x68] ss:$16 sps:$4 sm:$0xff]   ;;  %v5712_v33 = vsel %vm1593_vm1, %v5698_v31, 0 }
0x1847   : > { %5634 = vmatpush1.bf16.msra.mxu0 %v5406_v53  ;;  %v5401_v23 = vpack.c.bf16 %v14178_v22, %v14177_v36  ;;  %v14188_v50 = vunpack.i.h.bf16 %v14186_v38  ;;  %v14187_v54 = vunpack.i.l.bf16 %v14186_v38  ;;  %v15144_v53 = vld [vmem:[%s18302_s18 + $0x6c] ss:$16 sps:$4 sm:$0xff]   ;;  %s18306_s18 = sld [smem:[#allocation30_spill]] }
0x1848   : > { %v14191_v2 = vpop.permute.xlu0 %14190  ;;  %5635 = vmatprep.subr.bf16.mxu0 %v18301_v9 }
0x1849   : > { %v14193_v59 = vunpack.i.h.bf16 %v14191_v2  ;;  %v14192_v63 = vunpack.i.l.bf16 %v14191_v2  ;;  %12508 = vmatprep.subr.bf16.mxu1 %v5401_v23  ;;  %v5418_v58 = vpack.c.bf16 %v14188_v50, %v14187_v54 }
0x184a   : > { %v14196_v14 = vpop.permute.xlu1 %14195  ;;  %12509 = vmatpush3.bf16.msra.mxu1 %v5393_v6 }
0x184b   : > { %5636 = vmatpush1.bf16.msra.mxu0 %v5405_v47  ;;  %v5400_v45 = vpack.c.bf16 %v14193_v59, %v14192_v63  ;;  %v14198_v29 = vunpack.i.h.bf16 %v14196_v14  ;;  %v14197_v1 = vunpack.i.l.bf16 %v14196_v14 }
0x184c   : > { %v14206_v15 = vpop.permute.xlu0 %14205  ;;  %5641 = vmatprep.subr.bf16.mxu0 %v18301_v9 }
0x184d   : > { %v14208_v41 = vunpack.i.h.bf16 %v14206_v15  ;;  %v14207_v56 = vunpack.i.l.bf16 %v14206_v15  ;;  %12510 = vmatprep.subr.bf16.mxu1 %v5400_v45  ;;  %v5417_v20 = vpack.c.bf16 %v14198_v29, %v14197_v1 }
0x184e   : > { %v14201_v51 = vpop.permute.xlu1 %14200  ;;  %12511 = vmatpush3.bf16.msra.mxu1 %v5392_v46 }
0x184f   : > { %5642 = vmatpush2.bf16.msra.mxu0 %v5418_v58  ;;  %v5399_v17 = vpack.c.bf16 %v14208_v41, %v14207_v56  ;;  %v14203_v7 = vunpack.i.h.bf16 %v14201_v51  ;;  %v14202_v0 = vunpack.i.l.bf16 %v14201_v51 }
0x1850   : > { %v14211_v39 = vpop.permute.xlu0 %14210  ;;  %5643 = vmatprep.subr.bf16.mxu0 %v18301_v9 }
0x1851   : > { %v14213_v43 = vunpack.i.h.bf16 %v14211_v39  ;;  %v14212_v60 = vunpack.i.l.bf16 %v14211_v39  ;;  %12512 = vmatprep.subr.bf16.mxu1 %v5399_v17  ;;  %v5416_v34 = vpack.c.bf16 %v14203_v7, %v14202_v0 }
0x1852   : > { %v14216_v18 = vpop.permute.xlu1 %14215  ;;  %12513 = vmatpush3.bf16.msra.mxu1 %v5391_v49 }
0x1853   : > { %5644 = vmatpush2.bf16.msra.mxu0 %v5417_v20  ;;  %v5398_v24 = vpack.c.bf16 %v14213_v43, %v14212_v60  ;;  %v14218_v46 = vunpack.i.h.bf16 %v14216_v18  ;;  %v14217_v8 = vunpack.i.l.bf16 %v14216_v18 }
0x1854   : > { %v14221_v10 = vpop.permute.xlu0 %14220  ;;  %5645 = vmatprep.subr.bf16.mxu0 %v18301_v9 }
0x1855   : > { %v14223_v5 = vunpack.i.h.bf16 %v14221_v10  ;;  %v14222_v4 = vunpack.i.l.bf16 %v14221_v10  ;;  %12514 = vmatprep.subr.bf16.mxu1 %v5398_v24  ;;  %v5415_v25 = vpack.c.bf16 %v14218_v46, %v14217_v8 }
0x1856   : > { %v14226_v12 = vpop.permute.xlu1 %14225  ;;  %12515 = vmatpush3.bf16.msra.mxu1 %v5390_v37 }
0x1857   : > { %5646 = vmatpush2.bf16.msra.mxu0 %v5416_v34  ;;  %v5397_v11 = vpack.c.bf16 %v14223_v5, %v14222_v4  ;;  %v14228_v19 = vunpack.i.h.bf16 %v14226_v12  ;;  %v14227_v55 = vunpack.i.l.bf16 %v14226_v12 }
0x1858   : > { %5647 = vmatprep.subr.bf16.mxu0 %v18301_v9  ;;  %v14231_v32 = vpop.permute.xlu0 %14230 }
0x1859   : > { %12516 = vmatprep.subr.bf16.mxu1 %v5397_v11  ;;  %v5414_v26 = vpack.c.bf16 %v14228_v19, %v14227_v55  ;;  %v14233_v37 = vunpack.i.h.bf16 %v14231_v32  ;;  %v14232_v40 = vunpack.i.l.bf16 %v14231_v32 }
0x185a   : > { %12517 = vmatpush3.bf16.msra.mxu1 %v5389_v62 }
0x185b   : > { %5648 = vmatpush2.bf16.msra.mxu0 %v5415_v25  ;;  %v5413_v35 = vpack.c.bf16 %v14233_v37, %v14232_v40  ;;  %13659 = vmatprep.subr.msk.bf16.mxu1 %vm1593_vm1, %v5698_v31 }
0x185c   : > { %5649 = vmatprep.subr.bf16.mxu0 %v18301_v9 }
0x185d   : > { %5589 = vmatmul.mubr.bf16.vlgmr.msra.gmra.mxu1 %v15123_v21 }
0x185e   : > { %5596 = vmatprep.mubr.bf16.mxu1 %v15128_v52  ;;  %13249 = vmatpush3.bf16.msra.mxu1 %v5712_v33 }
0x185f   : > { %5650 = vmatpush2.bf16.msra.mxu0 %v5414_v26 }
0x1860   : > { %5651 = vmatprep.subr.bf16.mxu0 %v18301_v9 }
0x1863   : > { %5652 = vmatpush2.bf16.msra.mxu0 %v5413_v35  ;;  %v5430_v54 = vpop.permute.xlu1 %5429 }
0x1865   : > { %5597 = vmatmul.mubr.bf16.gmra.mxu1 %v15126_v28  ;;  %v5435_v14 = vpop.permute.xlu0 %5434 }
0x1866   : > { %5654 = vmatmul.mubr.bf16.vlgmr.msra.gmra.mxu0 %v15129_v3  ;;  %5604 = vmatprep.mubr.bf16.mxu1 %v15134_v61 }
0x1867   : > { %11940 = vmatprep.mubr.msk.bf16.mxu0 %vm18177_vm0, %v15135_v44  ;;  %v5440_v7 = vpop.permute.xlu1 %5439 }
0x1869   : > { %v5445_v60 = vpop.permute.xlu0 %5444 }
0x186b   : > { %v5450_v11 = vpop.permute.xlu1 %5449 }
0x186d   : > { %5605 = vmatmul.mubr.bf16.gmra.mxu1 %v15132_v57  ;;  %v5455_v32 = vpop.permute.xlu0 %5454 }
0x186e   : > { %5662 = vmatmul.mubr.bf16.gmra.mxu0 %v15137_v27  ;;  %5612 = vmatprep.mubr.bf16.mxu1 %v15140_v13 }
0x186f   : > { %11941 = vmatprep.mubr.msk.bf16.mxu0 %vm18177_vm0, %v15141_v16  ;;  %v5460_v16 = vpop.permute.xlu1 %5459 }
0x1875   : > { %5613 = vmatmul.mubr.bf16.gmra.mxu1 %v15138_v42 }
0x1876   : > { %5670 = vmatmul.mubr.bf16.gmra.mxu0 %v15143_v48 }
0x1877   : > { %11942 = vmatprep.mubr.msk.bf16.mxu0 %vm18177_vm0, %v15144_v53  ;;  %vm18180_vm0 = vcmask 326656  }
0x187e   : > { %5678 = vmatmul.mubr.bf16.gmra.mxu0 %v15146_v30  ;;  %v5465_v30 = vpop.permute.xlu0 %5464 }
0x191d   : > { %v12518_v22 = vpop.f32.mrf.mxu1 }
0x191f   : > { %v12519_v36 = vpop.f32.mrf.mxu1 }
0x1920   : > { %v12520_v23 = vadd.f32 %v12519_v36, %v12518_v22 }
0x1921   : > { %v12521_v38 = vpop.f32.mrf.mxu1 }
0x1922   : > { %v5591_v47 = vadd.f32 %v12520_v23, %v5430_v54 }
0x1923   : > { %v12522_v50 = vpop.f32.mrf.mxu1 }
0x1924   : > { %v12523_v2 = vadd.f32 %v12522_v50, %v12521_v38 }
0x1925   : > { %v12524_v6 = vpop.f32.mrf.mxu1 }
0x1926   : > { %v5655_v59 = vpop.f32.mrf.mxu0  ;;  %v5594_v29 = vadd.f32 %v12523_v2, %v5435_v14 }
0x1927   : > { %v12525_v63 = vpop.f32.mrf.mxu1  ;;  %v5656_v45 = vadd.f32 %v5655_v59, %v5591_v47 }
0x1928   : > { %v5657_v58 = vpop.f32.mrf.mxu0  ;;  %v12526_v1 = vadd.f32 %v12525_v63, %v12524_v6 }
0x1929   : > { %v12527_v15 = vpop.f32.mrf.mxu1  ;;  %15437 = vtanh.f32 %v5656_v45 }
0x192a   : > { %v5658_v41 = vpop.f32.mrf.mxu0  ;;  %v5599_v49 = vadd.f32 %v12526_v1, %v5440_v7 }
0x192b   : > { %v5659_v56 = vadd.f32 %v5658_v41, %v5594_v29  ;;  %v12528_v51 = vpop.f32.mrf.mxu1 }
0x192c   : > { %v5660_v17 = vpop.f32.mrf.mxu0  ;;  %v12529_v0 = vadd.f32 %v12528_v51, %v12527_v15 }
0x192d   : > { %15439 = vtanh.f32 %v5659_v56  ;;  %v12530_v39 = vpop.f32.mrf.mxu1 }
0x192e   : > { %v5663_v20 = vpop.f32.mrf.mxu0  ;;  %v5602_v10 = vadd.f32 %v12529_v0, %v5445_v60  ;;  %v15149_v60 = vld [vmem:[%s18305_s11 + $0x4] ss:$12 sps:$4 sm:$0xff]  }
0x192f   : > { %v12531_v43 = vpop.f32.mrf.mxu1  ;;  %v5664_v18 = vadd.f32 %v5663_v20, %v5599_v49  ;;  %6003 = vmatprep.mubr.bf16.mxu0 %v15149_v60 }
0x1930   : > { %v5665_v24 = vpop.f32.mrf.mxu0  ;;  %v12532_v46 = vadd.f32 %v12531_v43, %v12530_v39 }
0x1931   : > { %v12533_v34 = vpop.f32.mrf.mxu1  ;;  %15441 = vtanh.f32 %v5664_v18  ;;  %v15150_v18 = vld [vmem:[%s18305_s11 + $0x8] ss:$12 sps:$4 sm:$0xff]  }
0x1932   : > { %v5666_v8 = vpop.f32.mrf.mxu0  ;;  %v5607_v19 = vadd.f32 %v12532_v46, %v5450_v11  ;;  %v5912_v24 = vld [vmem:[%s18306_s18 + $0x8] sm:$0xff]  ;;  %v5913_v46 = vld [vmem:[%s18306_s18 + $0x10] sm:$0xff] }
0x1933   : > { %v5667_v5 = vadd.f32 %v5666_v8, %v5602_v10  ;;  %v12534_v4 = vpop.f32.mrf.mxu1  ;;  %v5914_v10 = vld [vmem:[%s18306_s18 + $0x18] sm:$0xff] }
0x1934   : > { %v5668_v12 = vpop.f32.mrf.mxu0  ;;  %v12535_v62 = vadd.f32 %v12534_v4, %v12533_v34  ;;  %v5911_v34 = vld [vmem:[%s18306_s18] sm:$0xff]  ;;  %s18307_s18 = sld [smem:[#allocation31_spill]] }
0x1935   : > { %15443 = vtanh.f32 %v5667_v5  ;;  %v12536_v25 = vpop.f32.mrf.mxu1 }
0x1936   : > { %v5671_v55 = vpop.f32.mrf.mxu0  ;;  %v15438_v37 = vpop.eup %15437  ;;  %v5610_v35 = vadd.f32 %v12535_v62, %v5455_v32 }
0x1937   : > { %v12537_v21 = vpop.f32.mrf.mxu1  ;;  %v5672_v52 = vadd.f32 %v5671_v55, %v5607_v19 }
0x1938   : > { %v5673_v26 = vpop.f32.mrf.mxu0  ;;  %v12538_v3 = vadd.f32 %v12537_v21, %v12536_v25 }
0x1939   : > { %v12539_v40 = vpop.f32.mrf.mxu1  ;;  %15445 = vtanh.f32 %v5672_v52 }
0x193a   : > { %v15440_v28 = vpop.eup %15439  ;;  %v5674_v61 = vpop.f32.mrf.mxu0  ;;  %v5615_v48 = vadd.f32 %v12538_v3, %v5460_v16 }
0x193b   : > { %v5675_v44 = vadd.f32 %v5674_v61, %v5610_v35  ;;  %v12540_v57 = vpop.f32.mrf.mxu1  ;;  %v5694_v27 = vpack.c.bf16 %v15440_v28, %v15438_v37 }
0x193c   : > { %v5676_v13 = vpop.f32.mrf.mxu0  ;;  %v12541_v42 = vadd.f32 %v12540_v57, %v12539_v40 }
0x193d   : > { %15447 = vtanh.f32 %v5675_v44  ;;  %13250 = vmatprep.mubr.msk.bf16.mxu1 %vm18178_vm12, %v5694_v27 }
0x193e   : > { %v5679_v53 = vpop.f32.mrf.mxu0  ;;  %v15442_v22 = vpop.eup %15441  ;;  %v5618_v36 = vadd.f32 %v12541_v42, %v5465_v30 }
0x193f   : > { %v5680_v31 = vadd.f32 %v5679_v53, %v5615_v48 }
0x1940   : > { %v5681_v33 = vpop.f32.mrf.mxu0 }
0x1941   : > { %15449 = vtanh.f32 %v5680_v31 }
0x1942   : > { %v15444_v38 = vpop.eup %15443  ;;  %v5682_v23 = vpop.f32.mrf.mxu0 }
0x1943   : > { %v5695_v50 = vpack.c.bf16 %v15444_v38, %v15442_v22  ;;  %v5683_v54 = vadd.f32 %v5682_v23, %v5618_v36 }
0x1944   : > { %v5684_v2 = vpop.f32.mrf.mxu0 }
0x1945   : > { %15451 = vtanh.f32 %v5683_v54  ;;  %13251 = vmatmul.mubr.msk.bf16.vlgmr.msra.gmra.mxu1 %vm18178_vm12, %v5695_v50 }
0x1946   : > { %v15446_v6 = vpop.eup %15445 }
0x194a   : > { %v15448_v47 = vpop.eup %15447 }
0x194b   : > { %v5696_v59 = vpack.c.bf16 %v15448_v47, %v15446_v6 }
0x194d   : > { %13254 = vmatprep.mubr.msk.bf16.mxu1 %vm18178_vm12, %v5696_v59 }
0x194e   : > { %v15450_v63 = vpop.eup %15449 }
0x1952   : > { %v15452_v14 = vpop.eup %15451 }
0x1953   : > { %v5697_v45 = vpack.c.bf16 %v15452_v14, %v15450_v63 }
0x1955   : > { %13255 = vmatmul.mubr.msk.bf16.gmra.mxu1 %vm18178_vm12, %v5697_v45 }
0x1956   : > { %13266 = vmatprep.mubr.msk.bf16.mxu1 %vm1759_vm10, %v15150_v18 }
0x1a05   : > { %v16884_v58 = vpop.f32.mrf.mxu1 }
0x1a07   : > { %v16886_v15 = vpop.f32.mrf.mxu1 }
0x1a09   : > { %v16888_v29 = vpop.f32.mrf.mxu1 }
0x1a0a   : > { %v5892_v1 = vpack.c.bf16 %v16888_v29, %v16884_v58  ;;  %v14259_v20 = vpack.i.bf16 %v16888_v29, %v16884_v58  ;;  %v15151_v58 = vld [vmem:[%s18305_s11 + $0x20] ss:$12 sps:$4 sm:$0xff]   ;;  %v15152_v29 = vld [vmem:[%s18305_s11 + $0x18] ss:$12 sps:$4 sm:$0xff]  }
0x1a0b   : > { %v16892_v41 = vpop.f32.mrf.mxu1 }
0x1a0c   : > { %v14269_v43 = vpack.i.bf16 %v16892_v41, %v16886_v15 }
0x1a15   : > { %v16894_v56 = vpop.f32.mrf.mxu1 }
0x1a17   : > { %v16896_v51 = vpop.f32.mrf.mxu1 }
0x1a19   : > { %v16898_v17 = vpop.f32.mrf.mxu1 }
0x1a1a   : > { %v14239_v7 = vpack.i.bf16 %v16898_v17, %v16894_v56  ;;  %v5894_v39 = vpack.c.bf16 %v16898_v17, %v16894_v56 }
0x1a1b   : > { %v16902_v0 = vpop.f32.mrf.mxu1 }
0x1a1c   : > { %14240 = vrot.lane.b32.xlu0 %v14239_v7, %s18265_s7  ;;  %14235 = vrot.lane.b32.xlu1 %v14239_v7, %s18264_s5  ;;  %v14254_v49 = vpack.i.bf16 %v16902_v0, %v16896_v51 }
0x1a20   : > { %14255 = vrot.lane.b32.xlu0 %v14254_v49, %s18265_s7  ;;  %14245 = vrot.lane.b32.xlu1 %v14254_v49, %s18264_s5 }
0x1a24   : > { %14260 = vrot.lane.b32.xlu0 %v14259_v20, %s18265_s7  ;;  %14250 = vrot.lane.b32.xlu1 %v14259_v20, %s18264_s5 }
0x1a28   : > { %14270 = vrot.lane.b32.xlu0 %v14269_v43, %s18265_s7  ;;  %14265 = vrot.lane.b32.xlu1 %v14269_v43, %s18264_s5 }
0x1a2c   : > { %14280 = vrot.lane.b32.xlu0 %v14254_v49, %s18268_s30  ;;  %14275 = vrot.lane.b32.xlu1 %v14239_v7, %s18268_s30 }
0x1a30   : > { %14290 = vrot.lane.b32.xlu0 %v14239_v7, %s18269_s26  ;;  %14285 = vrot.lane.b32.xlu1 %v14259_v20, %s18268_s30 }
0x1a34   : > { %14300 = vrot.lane.b32.xlu0 %v14254_v49, %s18269_s26  ;;  %14295 = vrot.lane.b32.xlu1 %v14269_v43, %s18268_s30 }
0x1a38   : > { %14310 = vrot.lane.b32.xlu0 %v14269_v43, %s18269_s26  ;;  %14305 = vrot.lane.b32.xlu1 %v14259_v20, %s18269_s26 }
0x1a3c   : > { %5922 = vperm.xlu0 %13737, %v5912_v24   ;;  %5917 = vperm.xlu1 %13738, %v5911_v34   ;;  %v5893_v24 = vpack.c.bf16 %v16902_v0, %v16896_v51  ;;  %v5891_v0 = vpack.c.bf16 %v16892_v41, %v16886_v15  ;;  %v6075_v15 = vld [vmem:[%s18307_s18] sm:$0xf]  ;;  %s18309_s18 = sld [smem:[#allocation33_spill]] }
0x1a40   : > { %5932 = vperm.xlu0 %13737, %v5914_v10   ;;  %5927 = vperm.xlu1 %13738, %v5913_v46  }
0x1a8e   : > { %v14241_v8 = vpop.permute.xlu0 %14240  ;;  %v14236_v5 = vpop.permute.xlu1 %14235 }
0x1a8f   : > { %v14243_v4 = vunpack.i.h.bf16 %v14241_v8  ;;  %v14242_v12 = vunpack.i.l.bf16 %v14241_v8  ;;  %v14238_v11 = vunpack.i.h.bf16 %v14236_v5  ;;  %v14237_v62 = vunpack.i.l.bf16 %v14236_v5 }
0x1a91   : > { %v5898_v25 = vpack.c.bf16 %v14243_v4, %v14242_v12  ;;  %v5906_v19 = vpack.c.bf16 %v14238_v11, %v14237_v62 }
0x1a92   : > { %v14256_v55 = vpop.permute.xlu0 %14255  ;;  %v14246_v21 = vpop.permute.xlu1 %14245 }
0x1a93   : > { %v14258_v32 = vunpack.i.h.bf16 %v14256_v55  ;;  %v14257_v52 = vunpack.i.l.bf16 %v14256_v55  ;;  %v14248_v26 = vunpack.i.h.bf16 %v14246_v21  ;;  %v14247_v37 = vunpack.i.l.bf16 %v14246_v21  ;;  %12547 = vmatprep.subr.bf16.mxu0 %v5906_v19  ;;  %v15147_v55 = vld [vmem:[%s18305_s11] ss:$12 sps:$4 sm:$0xff]   ;;  %v15154_v21 = vld [vmem:[%s18305_s11 + $0x1c] ss:$12 sps:$4 sm:$0xff]   ;;  %s18310_s11 = sld [smem:[#allocation32_spill]] }
0x1a94   : > { %12548 = vmatpush3.bf16.msra.mxu0 %v5898_v25 }
0x1a95   : > { %v5897_v40 = vpack.c.bf16 %v14258_v32, %v14257_v52  ;;  %v5905_v35 = vpack.c.bf16 %v14248_v26, %v14247_v37  ;;  %v18308_v32 = vmov 0.0  }
0x1a96   : > { %v14261_v28 = vpop.permute.xlu0 %14260  ;;  %v14251_v3 = vpop.permute.xlu1 %14250 }
0x1a97   : > { %v14263_v61 = vunpack.i.h.bf16 %v14261_v28  ;;  %v14262_v44 = vunpack.i.l.bf16 %v14261_v28  ;;  %v14253_v57 = vunpack.i.h.bf16 %v14251_v3  ;;  %v14252_v27 = vunpack.i.l.bf16 %v14251_v3  ;;  %12549 = vmatprep.subr.bf16.mxu0 %v5905_v35 }
0x1a98   : > { %12550 = vmatpush3.bf16.msra.mxu0 %v5897_v40 }
0x1a99   : > { %v5896_v13 = vpack.c.bf16 %v14263_v61, %v14262_v44  ;;  %v5904_v16 = vpack.c.bf16 %v14253_v57, %v14252_v27 }
0x1a9a   : > { %v14271_v42 = vpop.permute.xlu0 %14270  ;;  %v14266_v48 = vpop.permute.xlu1 %14265 }
0x1a9b   : > { %v14273_v53 = vunpack.i.h.bf16 %v14271_v42  ;;  %v14272_v30 = vunpack.i.l.bf16 %v14271_v42  ;;  %v14268_v31 = vunpack.i.h.bf16 %v14266_v48  ;;  %v14267_v33 = vunpack.i.l.bf16 %v14266_v48  ;;  %12551 = vmatprep.subr.bf16.mxu0 %v5904_v16 }
0x1a9c   : > { %12552 = vmatpush3.bf16.msra.mxu0 %v5896_v13 }
0x1a9d   : > { %v5895_v22 = vpack.c.bf16 %v14273_v53, %v14272_v30  ;;  %v5903_v36 = vpack.c.bf16 %v14268_v31, %v14267_v33 }
0x1a9e   : > { %v14281_v38 = vpop.permute.xlu0 %14280  ;;  %v14276_v23 = vpop.permute.xlu1 %14275 }
0x1a9f   : > { %v14283_v50 = vunpack.i.h.bf16 %v14281_v38  ;;  %v14282_v54 = vunpack.i.l.bf16 %v14281_v38  ;;  %v14278_v2 = vunpack.i.h.bf16 %v14276_v23  ;;  %v14277_v6 = vunpack.i.l.bf16 %v14276_v23  ;;  %12553 = vmatprep.subr.bf16.mxu0 %v5903_v36 }
0x1aa0   : > { %12554 = vmatpush3.bf16.msra.mxu0 %v5895_v22 }
0x1aa1   : > { %v5902_v47 = vpack.c.bf16 %v14278_v2, %v14277_v6  ;;  %v5901_v14 = vpack.c.bf16 %v14283_v50, %v14282_v54 }
0x1aa2   : > { %v14291_v59 = vpop.permute.xlu0 %14290  ;;  %v14286_v63 = vpop.permute.xlu1 %14285 }
0x1aa3   : > { %v14293_v45 = vunpack.i.h.bf16 %v14291_v59  ;;  %v14292_v7 = vunpack.i.l.bf16 %v14291_v59  ;;  %v14288_v49 = vunpack.i.h.bf16 %v14286_v63  ;;  %v14287_v20 = vunpack.i.l.bf16 %v14286_v63  ;;  %12555 = vmatprep.subr.bf16.mxu0 %v5902_v47 }
0x1aa4   : > { %12556 = vmatpush3.bf16.msra.mxu0 %v5894_v39 }
0x1aa5   : > { %12557 = vmatprep.subr.bf16.mxu0 %v5901_v14  ;;  %v5910_v43 = vpack.c.bf16 %v14293_v45, %v14292_v7  ;;  %v5900_v34 = vpack.c.bf16 %v14288_v49, %v14287_v20 }
0x1aa6   : > { %v14301_v60 = vpop.permute.xlu0 %14300  ;;  %v14296_v18 = vpop.permute.xlu1 %14295 }
0x1aa7   : > { %v14303_v10 = vunpack.i.h.bf16 %v14301_v60  ;;  %v14302_v46 = vunpack.i.l.bf16 %v14301_v60  ;;  %v14298_v8 = vunpack.i.h.bf16 %v14296_v18  ;;  %v14297_v5 = vunpack.i.l.bf16 %v14296_v18  ;;  %13258 = vmatprep.subr.bf16.mxu1 %v5910_v43 }
0x1aa8   : > { %12558 = vmatpush3.bf16.msra.mxu0 %v5893_v24  ;;  %13259 = vmatpush3.bf16.msra.mxu1 %v5910_v43 }
0x1aa9   : > { %12559 = vmatprep.subr.bf16.mxu0 %v5900_v34  ;;  %v5909_v4 = vpack.c.bf16 %v14303_v10, %v14302_v46  ;;  %v5899_v39 = vpack.c.bf16 %v14298_v8, %v14297_v5  ;;  %v6198_v10 = vld [vmem:[%s18309_s18] sm:$0xff]  ;;  %v6199_v46 = vld [vmem:[%s18309_s18 + $0x8] sm:$0xff]  ;;  %s18311_s18 = sld [smem:[#allocation34_spill]] }
0x1aaa   : > { %v14311_v56 = vpop.permute.xlu0 %14310  ;;  %v14306_v17 = vpop.permute.xlu1 %14305  ;;  %v15157_v8 = vld [vmem:[%s18310_s11 + $0x4] ss:$8 sps:$4 sm:$0xff]  }
0x1aab   : > { %v14313_v12 = vunpack.i.h.bf16 %v14311_v56  ;;  %v14312_v11 = vunpack.i.l.bf16 %v14311_v56  ;;  %v14308_v62 = vunpack.i.h.bf16 %v14306_v17  ;;  %v14307_v25 = vunpack.i.l.bf16 %v14306_v17  ;;  %13260 = vmatprep.subr.bf16.mxu1 %v5909_v4 }
0x1aac   : > { %12560 = vmatpush3.bf16.msra.mxu0 %v5892_v1  ;;  %13261 = vmatpush3.bf16.msra.mxu1 %v5909_v4  ;;  %v6083_v1 = vsel %vm1667_vm8, %v6075_v15, 0 }
0x1aad   : > { %12561 = vmatprep.subr.bf16.mxu0 %v5899_v39  ;;  %v5908_v51 = vpack.c.bf16 %v14308_v62, %v14307_v25  ;;  %v5907_v19 = vpack.c.bf16 %v14313_v12, %v14312_v11 }
0x1aaf   : > { %13262 = vmatprep.subr.bf16.mxu1 %v5908_v51 }
0x1ab0   : > { %12562 = vmatpush3.bf16.msra.mxu0 %v5891_v0  ;;  %13263 = vmatpush3.bf16.msra.mxu1 %v5908_v51 }
0x1ab1   : > { %13264 = vmatprep.subr.bf16.mxu1 %v5907_v19  ;;  %13276 = vmatprep.subr.bf16.mxu0 %v18308_v32 }
0x1ab3   : > { %6004 = vmatmul.mubr.bf16.vlgmr.msra.gmra.mxu0 %v15147_v55 }
0x1ab4   : > { %13265 = vmatpush3.bf16.msra.mxu1 %v5907_v19  ;;  %6011 = vmatprep.mubr.bf16.mxu0 %v15154_v21 }
0x1ab5   : > { %13660 = vmatprep.subr.msk.bf16.mxu1 %vm1667_vm8, %v6075_v15 }
0x1ab7   : > { %13267 = vmatmul.mubr.msk.bf16.vlgmr.msra.gmra.mxu1 %vm1759_vm10, %v15151_v58  ;;  %v5918_v26 = vpop.permute.xlu1 %5917  ;;  %v5923_v44 = vpop.permute.xlu0 %5922 }
0x1ab8   : > { %13271 = vmatpush3.bf16.msra.mxu1 %v6083_v1 }
0x1ab9   : > { %6222 = vmatprep.subr.bf16.mxu1 %v18301_v9 }
0x1abb   : > { %6012 = vmatmul.mubr.bf16.gmra.mxu0 %v15152_v29  ;;  %v5928_v33 = vpop.permute.xlu1 %5927  ;;  %v5933_v50 = vpop.permute.xlu0 %5932 }
0x1abc   : > { %13278 = vmatprep.mubr.msk.bf16.mxu0 %vm15688_vm2, %v18308_v32 }
0x1b73   : > { %v12563_v41 = vpop.f32.mrf.mxu0 }
0x1b75   : > { %v12564_v52 = vpop.f32.mrf.mxu0 }
0x1b76   : > { %v12565_v37 = vadd.f32 %v12564_v52, %v12563_v41 }
0x1b77   : > { %v12566_v40 = vpop.f32.mrf.mxu0  ;;  %v13268_v35 = vpop.f32.mrf.mxu1 }
0x1b78   : > { %v6006_v28 = vadd.f32 %v12565_v37, %v5918_v26 }
0x1b79   : > { %v12567_v3 = vpop.f32.mrf.mxu0  ;;  %v6054_v61 = vpop.f32.mrf.mxu1 }
0x1b7a   : > { %v12568_v57 = vadd.f32 %v12567_v3, %v12566_v40  ;;  %v6055_v27 = vadd.f32 %v6054_v61, %v6006_v28 }
0x1b7b   : > { %v12569_v13 = vpop.f32.mrf.mxu0  ;;  %v13269_v16 = vpop.f32.mrf.mxu1 }
0x1b7c   : > { %v6009_v42 = vadd.f32 %v12568_v57, %v5923_v44  ;;  %15453 = vtanh.f32 %v6055_v27 }
0x1b7d   : > { %v12570_v48 = vpop.f32.mrf.mxu0  ;;  %v6057_v53 = vpop.f32.mrf.mxu1 }
0x1b7e   : > { %v12571_v30 = vadd.f32 %v12570_v48, %v12569_v13  ;;  %v6058_v31 = vadd.f32 %v6057_v53, %v6009_v42  ;;  %v15155_v48 = vld [vmem:[%s18310_s11] ss:$8 sps:$4 sm:$0xff]   ;;  %s18312_s11 = sld [smem:[#allocation36_spill]] }
0x1b7f   : > { %v12572_v22 = vpop.f32.mrf.mxu0  ;;  %v15158_v53 = vld [vmem:[%s18311_s18] sm:$0xff]   ;;  %s18313_s18 = sld [smem:[#allocation35_spill]] }
0x1b80   : > { %v6014_v36 = vadd.f32 %v12571_v30, %v5928_v33  ;;  %15455 = vtanh.f32 %v6058_v31  ;;  %13277 = vmatpush3.bf16.msra.mxu0 %v15158_v53  ;;  %v6610_v53 = vld [vmem:[%s15709_s9] sm:$0x7] }
0x1b81   : > { %v12573_v38 = vpop.f32.mrf.mxu0  ;;  %13282 = vmatprep.subr.bf16.mxu0 %v18308_v32 }
0x1b82   : > { %v12574_v23 = vadd.f32 %v12573_v38, %v12572_v22  ;;  %v6063_v54 = vadd.f32 %v13268_v35, %v6014_v36 }
0x1b84   : > { %v6017_v2 = vadd.f32 %v12574_v23, %v5933_v50  ;;  %15457 = vtanh.f32 %v6063_v54 }
0x1b86   : > { %v6066_v6 = vadd.f32 %v13269_v16, %v6017_v2 }
0x1b88   : > { %15459 = vtanh.f32 %v6066_v6 }
0x1b89   : > { %v15454_v47 = vpop.eup %15453 }
0x1b8d   : > { %v15456_v59 = vpop.eup %15455 }
0x1b8e   : > { %v6073_v63 = vpack.c.bf16 %v15456_v59, %v15454_v47 }
0x1b90   : > { %13272 = vmatprep.mubr.msk.bf16.mxu1 %vm1880_vm13, %v6073_v63 }
0x1b91   : > { %v15458_v14 = vpop.eup %15457 }
0x1b95   : > { %v15460_v45 = vpop.eup %15459 }
0x1b96   : > { %v6074_v7 = vpack.c.bf16 %v15460_v45, %v15458_v14 }
0x1b98   : > { %13273 = vmatmul.mubr.msk.bf16.vlgmr.msra.gmra.mxu1 %vm1880_vm13, %v6074_v7 }
0x1b99   : > { %11959 = vmatprep.mubr.msk.bf16.mxu1 %vm2055_vm14, %v15157_v8 }
0x1c58   : > { %v13274_v49 = vpop.f32.mrf.mxu1 }
0x1c5a   : > { %v16959_v20 = vpop.f32.mrf.mxu1 }
0x1c5c   : > { %v13275_v43 = vpop.f32.mrf.mxu1 }
0x1c5d   : > { %v14314_v60 = vpack.i.bf16 %v13275_v43, %v13274_v49  ;;  %v6189_v24 = vpack.c.bf16 %v13275_v43, %v13274_v49  ;;  %v6350_v49 = vld [vmem:[%s18312_s11] sm:$0xff] }
0x1c5e   : > { %v6122_v18 = vpop.f32.mrf.mxu1 }
0x1c5f   : > { %14315 = vrot.lane.b32.xlu1 %v14314_v60, %s18264_s5  ;;  %v14319_v34 = vpack.i.bf16 %v6122_v18, %v16959_v20  ;;  %v6188_v44 = vpack.c.bf16 %v6122_v18, %v16959_v20 }
0x1c61   : > { %14320 = vrot.lane.b32.xlu0 %v14319_v34, %s18264_s5 }
0x1c63   : > { %14325 = vrot.lane.b32.xlu1 %v14314_v60, %s18268_s30 }
0x1c65   : > { %14330 = vrot.lane.b32.xlu0 %v14319_v34, %s18268_s30 }
0x1c67   : > { %14335 = vrot.lane.b32.xlu1 %v14314_v60, %s18265_s7 }
0x1c69   : > { %14340 = vrot.lane.b32.xlu0 %v14319_v34, %s18265_s7 }
0x1c6b   : > { %14345 = vrot.lane.b32.xlu1 %v14314_v60, %s18269_s26 }
0x1c6d   : > { %14350 = vrot.lane.b32.xlu0 %v14319_v34, %s18269_s26 }
0x1c6f   : > { %6202 = vperm.xlu1 %13738, %v6198_v10  }
0x1c71   : > { %6207 = vperm.xlu0 %13737, %v6199_v46  }
0x1cd1   : > { %v14316_v5 = vpop.permute.xlu1 %14315 }
0x1cd2   : > { %v14318_v4 = vunpack.i.h.bf16 %v14316_v5  ;;  %v14317_v56 = vunpack.i.l.bf16 %v14316_v5 }
0x1cd3   : > { %v14321_v17 = vpop.permute.xlu0 %14320 }
0x1cd4   : > { %v6195_v39 = vpack.c.bf16 %v14318_v4, %v14317_v56  ;;  %v14323_v12 = vunpack.i.h.bf16 %v14321_v17  ;;  %v14322_v11 = vunpack.i.l.bf16 %v14321_v17 }
0x1cd5   : > { %v14326_v62 = vpop.permute.xlu1 %14325 }
0x1cd6   : > { %6223 = vmatpush1.bf16.msra.mxu1 %v6195_v39  ;;  %v6194_v25 = vpack.c.bf16 %v14323_v12, %v14322_v11  ;;  %v14328_v51 = vunpack.i.h.bf16 %v14326_v62  ;;  %v14327_v0 = vunpack.i.l.bf16 %v14326_v62  ;;  %v6318_v62 = vld [vmem:[%s18313_s18] sm:$0xf] }
0x1cd7   : > { %6224 = vmatprep.subr.bf16.mxu1 %v18301_v9  ;;  %v14331_v19 = vpop.permute.xlu0 %14330 }
0x1cd8   : > { %v6193_v55 = vpack.c.bf16 %v14328_v51, %v14327_v0  ;;  %v14333_v21 = vunpack.i.h.bf16 %v14331_v19  ;;  %v14332_v58 = vunpack.i.l.bf16 %v14331_v19  ;;  %v15160_v51 = vld [vmem:[%s18314_s22] sm:$0xff]  }
0x1cd9   : > { %v14336_v29 = vpop.permute.xlu1 %14335 }
0x1cda   : > { %6225 = vmatpush1.bf16.msra.mxu1 %v6194_v25  ;;  %v6192_v15 = vpack.c.bf16 %v14333_v21, %v14332_v58  ;;  %v14338_v1 = vunpack.i.h.bf16 %v14336_v29  ;;  %v14337_v41 = vunpack.i.l.bf16 %v14336_v29  ;;  %v15159_v25 = vld [vmem:[%s18314_s22 + $0x8] sm:$0xff]   ;;  %s18315_s22 = sld [smem:[#allocation38_spill]] }
0x1cdb   : > { %6226 = vmatprep.subr.bf16.mxu1 %v18301_v9  ;;  %v14341_v52 = vpop.permute.xlu0 %14340 }
0x1cdc   : > { %v6191_v26 = vpack.c.bf16 %v14338_v1, %v14337_v41  ;;  %v14343_v37 = vunpack.i.h.bf16 %v14341_v52  ;;  %v14342_v40 = vunpack.i.l.bf16 %v14341_v52 }
0x1cdd   : > { %v14346_v28 = vpop.permute.xlu1 %14345 }
0x1cde   : > { %6227 = vmatpush1.bf16.msra.mxu1 %v6193_v55  ;;  %v6190_v35 = vpack.c.bf16 %v14343_v37, %v14342_v40  ;;  %v14348_v3 = vunpack.i.h.bf16 %v14346_v28  ;;  %v14347_v61 = vunpack.i.l.bf16 %v14346_v28  ;;  %v6612_v40 = vld [vmem:[%s15714_s13] sm:$0x3f] }
0x1cdf   : > { %6228 = vmatprep.subr.bf16.mxu1 %v18301_v9  ;;  %v14351_v57 = vpop.permute.xlu0 %14350 }
0x1ce0   : > { %v6197_v27 = vpack.c.bf16 %v14348_v3, %v14347_v61  ;;  %v14353_v13 = vunpack.i.h.bf16 %v14351_v57  ;;  %v14352_v16 = vunpack.i.l.bf16 %v14351_v57 }
0x1ce2   : > { %6229 = vmatpush1.bf16.msra.mxu1 %v6192_v15  ;;  %v6196_v42 = vpack.c.bf16 %v14353_v13, %v14352_v16 }
0x1ce3   : > { %6230 = vmatprep.subr.bf16.mxu1 %v18301_v9 }
0x1ce6   : > { %6231 = vmatpush1.bf16.msra.mxu1 %v6191_v26 }
0x1ce7   : > { %6232 = vmatprep.subr.bf16.mxu1 %v18301_v9 }
0x1cea   : > { %6233 = vmatpush1.bf16.msra.mxu1 %v6190_v35  ;;  %v6203_v31 = vpop.permute.xlu1 %6202  ;;  %v6477_v35 = vld [vmem:[%s15954_s6] sm:$0xff] }
0x1ceb   : > { %6234 = vmatprep.subr.bf16.mxu1 %v18301_v9 }
0x1cec   : > { %v6208_v36 = vpop.permute.xlu0 %6207 }
0x1cee   : > { %6235 = vmatpush1.bf16.msra.mxu1 %v6189_v24 }
0x1cef   : > { %6236 = vmatprep.subr.bf16.mxu1 %v18301_v9 }
0x1cf2   : > { %6237 = vmatpush1.bf16.msra.mxu1 %v6188_v44 }
0x1cf3   : > { %6250 = vmatprep.subr.bf16.mxu1 %v18301_v9 }
0x1cf6   : > { %6251 = vmatpush2.bf16.msra.mxu1 %v6197_v27 }
0x1cf7   : > { %6252 = vmatprep.subr.bf16.mxu1 %v18301_v9 }
0x1cfa   : > { %6253 = vmatpush2.bf16.msra.mxu1 %v6196_v42  ;;  %v6460_v42 = vld [vmem:[%s18315_s22] sm:$0xf] }
0x1cfb   : > { %13296 = vmatprep.subr.bf16.mxu1 %v18308_v32 }
0x1cfd   : > { %6255 = vmatmul.mubr.bf16.vlgmr.msra.gmra.mxu1 %v15155_v48  ;;  %v18316_v48 = vld [vmem:[#allocation43_spill] sm:$0xff] }
0x1cfe   : > { %13300 = vmatprep.mubr.msk.bf16.mxu1 %vm15688_vm2, %v18308_v32  ;;  %13297 = vmatpush3.bf16.msra.mxu1 %v15159_v25  ;;  %v18319_v25 = vmov 0 }
0x1cff   : > { %13298 = vmatprep.subr.bf16.mxu1 %v18308_v32 }
0x1d02   : > { %13299 = vmatpush3.bf16.msra.mxu1 %v15160_v51 }
0x1d03   : > { %13314 = vmatprep.subr.bf16.mxu1 %v18308_v32 }
0x1dbd   : > { %v6256_v30 = vpop.f32.mrf.mxu1 }
0x1dbe   : > { %v6257_v33 = vadd.f32 %v6256_v30, %v6203_v31 }
0x1dbf   : > { %v6258_v22 = vpop.f32.mrf.mxu1 }
0x1dc0   : > { %15461 = vtanh.f32 %v6257_v33 }
0x1dc1   : > { %v6259_v38 = vpop.f32.mrf.mxu1 }
0x1dc2   : > { %v6260_v23 = vadd.f32 %v6259_v38, %v6208_v36 }
0x1dc3   : > { %v6261_v50 = vpop.f32.mrf.mxu1 }
0x1dc4   : > { %15463 = vtanh.f32 %v6260_v23 }
0x1dcd   : > { %v15462_v54 = vpop.eup %15461 }
0x1dd1   : > { %v15464_v2 = vpop.eup %15463 }
0x1dd2   : > { %v6265_v6 = vpack.c.bf16 %v15464_v2, %v15462_v54 }
0x1dd4   : > { %13279 = vmatmul.mubr.msk.bf16.vlgmr.msra.gmra.mxu0 %vm18179_vm9, %v6265_v6 }
0x1dd5   : > { %13292 = vmatprep.mubr.msk.bf16.mxu0 %vm15688_vm2, %v18308_v32 }
0x1e94   : > { %v6311_v47 = vpop.f32.mrf.mxu0 }
0x1e96   : > { %v13280_v59 = vpop.f32.mrf.mxu0 }
0x1e98   : > { %v6314_v63 = vpop.f32.mrf.mxu0 }
0x1e99   : > { %v14359_v14 = vpack.i.bf16 %v6314_v63, %v6311_v47  ;;  %v6345_v7 = vpack.c.bf16 %v6314_v63, %v6311_v47 }
0x1e9a   : > { %v13281_v45 = vpop.f32.mrf.mxu0 }
0x1e9b   : > { %14360 = vrot.lane.b32.xlu0 %v14359_v14, %s18264_s5  ;;  %14355 = vrot.lane.b32.xlu1 %v14359_v14, %s18269_s26 }
0x1e9f   : > { %14370 = vrot.lane.b32.xlu0 %v14359_v14, %s18265_s7  ;;  %14365 = vrot.lane.b32.xlu1 %v14359_v14, %s18268_s30 }
0x1ea3   : > { %6353 = vperm.xlu1 %13738, %v6350_v49  }
0x1f0d   : > { %v14361_v20 = vpop.permute.xlu0 %14360  ;;  %v14356_v43 = vpop.permute.xlu1 %14355 }
0x1f0e   : > { %v14358_v60 = vunpack.i.h.bf16 %v14356_v43  ;;  %v14357_v18 = vunpack.i.l.bf16 %v14356_v43  ;;  %v14363_v24 = vunpack.i.h.bf16 %v14361_v20  ;;  %v14362_v34 = vunpack.i.l.bf16 %v14361_v20 }
0x1f10   : > { %v6349_v10 = vpack.c.bf16 %v14358_v60, %v14357_v18  ;;  %v6348_v8 = vpack.c.bf16 %v14363_v24, %v14362_v34  ;;  %v6748_v34 = vld [vmem:[%s15724_s21] sm:$0x3f] }
0x1f11   : > { %v14366_v46 = vpop.permute.xlu1 %14365  ;;  %v14371_v56 = vpop.permute.xlu0 %14370 }
0x1f12   : > { %13283 = vmatpush3.bf16.msra.mxu0 %v6349_v10  ;;  %v14368_v5 = vunpack.i.h.bf16 %v14366_v46  ;;  %v14367_v4 = vunpack.i.l.bf16 %v14366_v46  ;;  %v14373_v17 = vunpack.i.h.bf16 %v14371_v56  ;;  %v14372_v39 = vunpack.i.l.bf16 %v14371_v56  ;;  %v6824_v10 = vld [vmem:[%s15739_s3] sm:$0xff]  ;;  %v15161_v46 = vld [vmem:[%s15729_s25 + $0x18] sm:$0xff]  }
0x1f13   : > { %13284 = vmatprep.subr.bf16.mxu0 %v18308_v32 }
0x1f14   : > { %v6347_v12 = vpack.c.bf16 %v14368_v5, %v14367_v4  ;;  %v6346_v11 = vpack.c.bf16 %v14373_v17, %v14372_v39  ;;  %v6880_v5 = vld [vmem:[%s15749_s14 + $0x8] sm:$0xff] }
0x1f16   : > { %13285 = vmatpush3.bf16.msra.mxu0 %v6348_v8  ;;  %v6879_v8 = vld [vmem:[%s15749_s14] sm:$0xff] }
0x1f17   : > { %13286 = vmatprep.subr.bf16.mxu0 %v18308_v32 }
0x1f1a   : > { %13287 = vmatpush3.bf16.msra.mxu0 %v6347_v12 }
0x1f1b   : > { %13288 = vmatprep.subr.bf16.mxu0 %v18308_v32 }
0x1f1e   : > { %13289 = vmatpush3.bf16.msra.mxu0 %v6346_v11  ;;  %v6354_v0 = vpop.permute.xlu1 %6353 }
0x1f1f   : > { %13290 = vmatprep.subr.bf16.mxu0 %v18308_v32 }
0x1f22   : > { %13291 = vmatpush3.bf16.msra.mxu0 %v6345_v7 }
0x1f23   : > { %13304 = vmatprep.subr.bf16.mxu0 %v18308_v32 }
0x1f25   : > { %13293 = vmatmul.mubr.msk.bf16.vlgmr.msra.gmra.mxu0 %vm1981_vm11, %v6318_v62 }
0x1f26   : > { %13310 = vmatprep.mubr.msk.bf16.mxu0 %vm15688_vm2, %v18308_v32 }
0x1fe5   : > { %v6393_v19 = vpop.f32.mrf.mxu0 }
0x1fe6   : > { %v6394_v55 = vadd.f32 %v6393_v19, %v6354_v0 }
0x1fe7   : > { %v13294_v21 = vpop.f32.mrf.mxu0 }
0x1fe8   : > { %15465 = vtanh.f32 %v6394_v55  ;;  %v6537_v55 = vld [vmem:[%s15959_s20] sm:$0x3] }
0x1fe9   : > { %v6396_v58 = vpop.f32.mrf.mxu0 }
0x1feb   : > { %v13295_v29 = vpop.f32.mrf.mxu0 }
0x1ff5   : > { %v15466_v15 = vpop.eup %15465 }
0x1ff6   : > { %v6400_v1 = vpack.c.bf16 %v15466_v15, %v15466_v15 }
0x1ff8   : > { %13301 = vmatmul.mubr.msk.bf16.vlgmr.msra.gmra.mxu1 %vm2055_vm14, %v6400_v1 }
0x1ff9   : > { %13320 = vmatprep.mubr.msk.bf16.mxu1 %vm15688_vm2, %v18308_v32 }
0x20b8   : > { %v6454_v41 = vpop.f32.mrf.mxu1 }
0x20b9   : > { %6465 = vrot.lane.b32.xlu1 %v6454_v41, %s18268_s30  ;;  %6471 = vrot.lane.b32.xlu0 %v6454_v41, %s18269_s26 }
0x20ba   : > { %v13302_v52 = vpop.f32.mrf.mxu1 }
0x20bc   : > { %v6457_v26 = vpop.f32.mrf.mxu1 }
0x20bd   : > { %6462 = vrot.lane.b32.xlu1 %v6454_v41, %s18265_s7  ;;  %6468 = vrot.lane.b32.xlu0 %v6454_v41, %s18264_s5 }
0x20be   : > { %v13303_v37 = vpop.f32.mrf.mxu1 }
0x20bf   : > { %v6671_v37 = vld [vmem:[%s15719_s17] sm:$0x7] }
0x20c1   : > { %6615 = vperm.xlu1 %13738, %v6612_v40   ;;  %6480 = vperm.xlu0 %13737, %v6477_v35   ;;  %v15162_v40 = vld [vmem:[%s15729_s25 + $0x10] sm:$0xff]   ;;  %v15163_v35 = vld [vmem:[%s15729_s25 + $0x8] sm:$0xff]  }
0x212b   : > { %v6472_v28 = vpop.permute.xlu0 %6471  ;;  %v6466_v3 = vpop.permute.xlu1 %6465 }
0x212c   : > { %v6476_v61 = vpack.c.bf16 %v6472_v28, %v6472_v28  ;;  %v15164_v28 = vld [vmem:[%s15729_s25] sm:$0xff]  }
0x212e   : > { %v6488_v44 = vsel %vm1667_vm8, %v6476_v61, 0 }
0x212f   : > { %13305 = vmatpush3.bf16.msra.mxu0 %v6488_v44  ;;  %v6469_v57 = vpop.permute.xlu0 %6468  ;;  %v6463_v13 = vpop.permute.xlu1 %6462 }
0x2130   : > { %v6475_v27 = vpack.c.bf16 %v6469_v57, %v6466_v3  ;;  %13306 = vmatprep.subr.bf16.mxu0 %v18308_v32  ;;  %v6474_v16 = vpack.c.bf16 %v6463_v13, %v6454_v41 }
0x2133   : > { %13307 = vmatpush3.bf16.msra.mxu0 %v6475_v27 }
0x2134   : > { %13308 = vmatprep.subr.bf16.mxu0 %v18308_v32 }
0x2137   : > { %13309 = vmatpush3.bf16.msra.mxu0 %v6474_v16 }
0x2138   : > { %13324 = vmatprep.subr.bf16.mxu0 %v18308_v32 }
0x213a   : > { %13311 = vmatmul.mubr.msk.bf16.vlgmr.msra.gmra.mxu0 %vm18180_vm0, %v6460_v42 }
0x213b   : > { %13325 = vmatpush3.bf16.msra.mxu0 %v18316_v48  ;;  %13326 = vmatprep.mubr.msk.bf16.mxu0 %vm15688_vm2, %v18308_v32 }
0x213c   : > { %13338 = vmatprep.subr.bf16.mxu0 %v18308_v32  ;;  %v6481_v30 = vpop.permute.xlu0 %6480  ;;  %v6616_v23 = vpop.permute.xlu1 %6615 }
0x2142   : > { %13327 = vmatmul.mubr.msk.bf16.vlgmr.msra.gmra.mxu0 %vm1588_vm3, %v6610_v53  ;;  %vm18317_vm3 = vcmask 539648  }
0x2143   : > { %13346 = vmatprep.mubr.msk.bf16.mxu0 %vm15688_vm2, %v18308_v32  ;;  %vm18318_vm12 = vmmov %vm18317_vm3  ;;  %13339 = vmatpush3.bf16.msra.mxu0 %v15161_v46 }
0x2144   : > { %13340 = vmatprep.subr.bf16.mxu0 %v18308_v32 }
0x2147   : > { %13341 = vmatpush3.bf16.msra.mxu0 %v15162_v40 }
0x2148   : > { %13342 = vmatprep.subr.bf16.mxu0 %v18308_v32 }
0x214b   : > { %13343 = vmatpush3.bf16.msra.mxu0 %v15163_v35 }
0x214c   : > { %13344 = vmatprep.subr.bf16.mxu0 %v18308_v32 }
0x214f   : > { %13345 = vmatpush3.bf16.msra.mxu0 %v15164_v28 }
0x2150   : > { %13362 = vmatprep.subr.bf16.mxu0 %v18308_v32 }
0x21fa   : > { %v6524_v31 = vpop.f32.mrf.mxu0 }
0x21fb   : > { %v6525_v33 = vadd.f32 %v6524_v31, %v6481_v30 }
0x21fc   : > { %v13312_v22 = vpop.f32.mrf.mxu0 }
0x21fd   : > { %15467 = vtanh.f32 %v6525_v33 }
0x21fe   : > { %v6527_v36 = vpop.f32.mrf.mxu0 }
0x2200   : > { %v13313_v38 = vpop.f32.mrf.mxu0 }
0x2202   : > { %v6658_v50 = vpop.f32.mrf.mxu0 }
0x2203   : > { %v6659_v54 = vadd.f32 %v6658_v50, %v6616_v23 }
0x2204   : > { %v13328_v2 = vpop.f32.mrf.mxu0 }
0x2205   : > { %15469 = vtanh.f32 %v6659_v54  ;;  %v6822_v54 = vld [vmem:[%s15734_s29] sm:$0xf] }
0x2206   : > { %v6661_v6 = vpop.f32.mrf.mxu0 }
0x2208   : > { %v13329_v47 = vpop.f32.mrf.mxu0 }
0x220a   : > { %v15468_v59 = vpop.eup %15467 }
0x220b   : > { %6532 = vrot.lane.b32.xlu0 %v15468_v59, %s18263_s23 }
0x2212   : > { %v15470_v63 = vpop.eup %15469 }
0x2213   : > { %6666 = vrot.lane.b32.xlu1 %v15470_v63, %s18263_s23 }
0x227d   : > { %v6533_v14 = vpop.permute.xlu0 %6532 }
0x227e   : > { %v6535_v45 = vsel %vm1644_vm4, 0.0, %v6533_v14 }
0x227f   : > { %v6536_v7 = vsel %vm18317_vm3, %v6535_v45, 0.0 }
0x2280   : > { %6548 = vrot.lane.b32.xlu0 %v6536_v7, %s18269_s26  ;;  %6542 = vrot.lane.b32.xlu1 %v6536_v7, %s18268_s30 }
0x2284   : > { %6545 = vrot.lane.b32.xlu0 %v6536_v7, %s18264_s5  ;;  %6539 = vrot.lane.b32.xlu1 %v6536_v7, %s18265_s7  ;;  %v15165_v7 = vld [vmem:[%s15744_s8] sm:$0xff]  }
0x2285   : > { %v6667_v49 = vpop.permute.xlu1 %6666 }
0x2286   : > { %v6669_v20 = vsel %vm1644_vm4, 0.0, %v6667_v49 }
0x2287   : > { %v6670_v43 = vsel %vm18318_vm12, %v6669_v20, 0.0  ;;  %vm15695_vm12 = vmmov 1  }
0x2288   : > { %v6681_v60 = vrot.slane %v6670_v43, 6  ;;  %v6677_v18 = vrot.slane %v6670_v43, 4  ;;  %v6673_v24 = vrot.slane %v6670_v43, 2  ;;  %vm17058_vm9 = vmpackc.low %vm15695_vm12, %vm18317_vm3  ;;  %vm18322_vm12 = vcmask 1045504  }
0x2289   : > { %v18320_v25 = vsel %vm17058_vm9, 4294967295, %v18319_v25  ;;  %vm18323_vm3 = vcmask 1046528  }
0x228a   : > { %6682 = vrot.lane.b32.xlu1 %v6681_v60, %s18264_s5  ;;  %6678 = vrot.lane.b32.xlu0 %v6677_v18, %s18268_s30  ;;  %18321 = vst [vmem:[#allocation54_spill] sm:$0xff] %v18320_v25 }
0x228e   : > { %6685 = vrot.lane.b32.xlu0 %v6670_v43, %s18269_s26  ;;  %6674 = vrot.lane.b32.xlu1 %v6673_v24, %s18265_s7 }
0x2292   : > { %6751 = vperm.xlu0 %13737, %v6748_v34   ;;  %6827 = vperm.xlu1 %13738, %v6824_v10  }
0x2296   : > { %6883 = vperm.xlu0 %13737, %v6879_v8   ;;  %6888 = vperm.xlu1 %13738, %v6880_v5  }
0x22f2   : > { %v6549_v4 = vpop.permute.xlu0 %6548  ;;  %v6543_v56 = vpop.permute.xlu1 %6542 }
0x22f3   : > { %v6553_v17 = vpack.c.bf16 %v6549_v4, %v6549_v4 }
0x22f5   : > { %v6564_v39 = vsel %vm1667_vm8, %v6553_v17, 0 }
0x22f6   : > { %13315 = vmatpush3.bf16.msra.mxu1 %v6564_v39  ;;  %v6546_v12 = vpop.permute.xlu0 %6545  ;;  %v6540_v62 = vpop.permute.xlu1 %6539 }
0x22f7   : > { %v6552_v11 = vpack.c.bf16 %v6546_v12, %v6543_v56  ;;  %13316 = vmatprep.subr.bf16.mxu1 %v18308_v32  ;;  %v11968_v51 = vpack.c.bf16 %v6540_v62, %v6535_v45 }
0x22fa   : > { %13317 = vmatpush3.bf16.msra.mxu1 %v6552_v11 }
0x22fb   : > { %13318 = vmatprep.subr.bf16.mxu1 %v18308_v32 }
0x22fc   : > { %v6679_v0 = vpop.permute.xlu0 %6678  ;;  %v6683_v19 = vpop.permute.xlu1 %6682 }
0x22fd   : > { %v6690_v21 = vsel %vm1593_vm1, %v6679_v0, %v6683_v19 }
0x22fe   : > { %13319 = vmatpush3.bf16.msk.msra.mxu1 %vm17058_vm9, %v11968_v51 }
0x22ff   : > { %13330 = vmatprep.subr.bf16.mxu1 %v18308_v32 }
0x2300   : > { %v6686_v58 = vpop.permute.xlu0 %6685  ;;  %v6675_v29 = vpop.permute.xlu1 %6674 }
0x2301   : > { %v6692_v15 = vpack.c.bf16 %v6686_v58, %v6690_v21  ;;  %13321 = vmatmul.mubr.msk.bf16.vlgmr.msra.gmra.mxu1 %vm18180_vm0, %v6537_v55  ;;  %v6688_v1 = vsel %vm18322_vm12, %v6670_v43, %v6675_v29  ;;  %v6689_v41 = vsel %vm1667_vm8, %v6675_v29, %v6679_v0  ;;  %vm18324_vm0 = vcmask 244736   ;;  %v7045_v55 = vld [vmem:[%s15759_s24 + $0x8] sm:$0xff]  ;;  %v7044_v21 = vld [vmem:[%s15759_s24] sm:$0xff] }
0x2302   : > { %13334 = vmatprep.mubr.msk.bf16.mxu1 %vm15688_vm2, %v18308_v32  ;;  %v6691_v26 = vpack.c.bf16 %v6689_v41, %v6688_v1  ;;  %vm18327_vm12 = vcmask 48128   ;;  %v7118_v58 = vld [vmem:[%s15774_s12 + $0x8] sm:$0xff]  ;;  %v7117_v29 = vld [vmem:[%s15774_s12] sm:$0xff]  ;;  %v7185_v1 = vld [vmem:[%s15784_s27 + $0x10] sm:$0xff] }
0x2303   : > { %v6697_v52 = vsel %vm18323_vm3, %v6692_v15, 0  ;;  %vm18328_vm3 = vcmask 277504   ;;  %v7186_v15 = vld [vmem:[%s15784_s27 + $0x18] sm:$0xff]  ;;  %v7184_v41 = vld [vmem:[%s15784_s27 + $0x8] sm:$0xff] }
0x2304   : > { %13331 = vmatpush3.bf16.msra.mxu1 %v6697_v52  ;;  %v7183_v52 = vld [vmem:[%s15784_s27] sm:$0xff] }
0x2305   : > { %13332 = vmatprep.subr.bf16.mxu1 %v18308_v32 }
0x2308   : > { %13333 = vmatpush3.bf16.msra.mxu1 %v6691_v26 }
0x2309   : > { %13350 = vmatprep.subr.bf16.mxu1 %v18308_v32 }
0x230b   : > { %13335 = vmatmul.mubr.msk.bf16.vlgmr.msra.gmra.mxu1 %vm18324_vm0, %v6671_v37  ;;  %vm18326_vm0 = vcmask 1042432  }
0x230c   : > { %13352 = vmatprep.mubr.msk.bf16.mxu1 %vm15688_vm2, %v18308_v32 }
0x230d   : > { %v6752_v53 = vpop.permute.xlu0 %6751  ;;  %v6828_v2 = vpop.permute.xlu1 %6827 }
0x2311   : > { %v6884_v43 = vpop.permute.xlu0 %6883  ;;  %v6889_v24 = vpop.permute.xlu1 %6888 }
0x23c1   : > { %v17085_v3 = vpop.f32.mrf.mxu1 }
0x23c2   : > { %18325 = vst [vmem:[#allocation48_spill] sm:$0xff] %v17085_v3 }
0x23c3   : > { %v13322_v61 = vpop.f32.mrf.mxu1 }
0x23c5   : > { %v6603_v44 = vpop.f32.mrf.mxu1 }
0x23c7   : > { %v13323_v57 = vpop.f32.mrf.mxu1 }
0x23cb   : > { %v6733_v27 = vpop.f32.mrf.mxu1 }
0x23cc   : > { %v6739_v13 = vpack.c.bf16 %v6733_v27, %v6733_v27 }
0x23cd   : > { %v13336_v16 = vpop.f32.mrf.mxu1 }
0x23ce   : > { %13347 = vmatmul.mubr.msk.bf16.vlgmr.msra.gmra.mxu0 %vm1759_vm10, %v6739_v13 }
0x23cf   : > { %v6736_v42 = vpop.f32.mrf.mxu1  ;;  %13372 = vmatprep.mubr.msk.bf16.mxu0 %vm15688_vm2, %v18308_v32 }
0x23d1   : > { %v13337_v48 = vpop.f32.mrf.mxu1 }
0x248e   : > { %v6815_v30 = vpop.f32.mrf.mxu0 }
0x248f   : > { %v6816_v31 = vadd.f32 %v6815_v30, %v6752_v53 }
0x2490   : > { %v13348_v33 = vpop.f32.mrf.mxu0 }
0x2491   : > { %15471 = vtanh.f32 %v6816_v31  ;;  %v15166_v33 = vld [vmem:[%s15754_s19] sm:$0xff]  }
0x2492   : > { %v6818_v22 = vpop.f32.mrf.mxu0 }
0x2494   : > { %v13349_v36 = vpop.f32.mrf.mxu0 }
0x2495   : > { %v15167_v36 = vld [vmem:[%s18247_s28 + $0x8] sm:$0xff]  }
0x249e   : > { %v15472_v38 = vpop.eup %15471 }
0x249f   : > { %v6823_v23 = vpack.c.bf16 %v15472_v38, %v15472_v38  ;;  %v15168_v38 = vld [vmem:[%s18247_s28] sm:$0xff]  }
0x24a1   : > { %v6834_v50 = vsel %vm18326_vm0, %v6823_v23, 0  ;;  %vm18329_vm0 = vmmov %vm18328_vm3 }
0x24a2   : > { %13351 = vmatpush3.bf16.msra.mxu1 %v6834_v50 }
0x24a3   : > { %13356 = vmatprep.subr.bf16.mxu1 %v18308_v32 }
0x24a5   : > { %13353 = vmatmul.mubr.msk.bf16.vlgmr.msra.gmra.mxu1 %vm18327_vm12, %v6822_v54 }
0x24a6   : > { %13358 = vmatprep.mubr.msk.bf16.mxu1 %vm15688_vm2, %v18308_v32 }
0x2565   : > { %v6870_v6 = vpop.f32.mrf.mxu1 }
0x2566   : > { %v6871_v47 = vadd.f32 %v6870_v6, %v6828_v2 }
0x2567   : > { %v13354_v59 = vpop.f32.mrf.mxu1 }
0x2568   : > { %v6878_v63 = vpack.c.bf16 %v6871_v47, %v6871_v47 }
0x2569   : > { %v6873_v14 = vpop.f32.mrf.mxu1 }
0x256a   : > { %v6900_v45 = vsel %vm1667_vm8, %v6878_v63, 0 }
0x256b   : > { %v13355_v49 = vpop.f32.mrf.mxu1  ;;  %13357 = vmatpush3.bf16.msra.mxu1 %v6900_v45 }
0x256c   : > { %13376 = vmatprep.subr.bf16.mxu1 %v18308_v32 }
0x256e   : > { %13359 = vmatmul.mubr.msk.bf16.vlgmr.msra.gmra.mxu1 %vm1880_vm13, %v15165_v7 }
0x256f   : > { %13380 = vmatprep.mubr.msk.bf16.mxu1 %vm15688_vm2, %v18308_v32  ;;  %13377 = vmatpush3.bf16.msra.mxu1 %v15167_v36 }
0x2570   : > { %13378 = vmatprep.subr.bf16.mxu1 %v18308_v32 }
0x2573   : > { %13379 = vmatpush3.bf16.msra.mxu1 %v15168_v38 }
0x2574   : > { %13384 = vmatprep.subr.bf16.mxu1 %v18308_v32 }
0x262e   : > { %v6936_v20 = vpop.f32.mrf.mxu1 }
0x262f   : > { %v6937_v60 = vadd.f32 %v6936_v20, %v6884_v43 }
0x2630   : > { %v13360_v18 = vpop.f32.mrf.mxu1 }
0x2631   : > { %15473 = vtanh.f32 %v6937_v60 }
0x2632   : > { %v6939_v34 = vpop.f32.mrf.mxu1 }
0x2633   : > { %v6940_v10 = vadd.f32 %v6939_v34, %v6889_v24  ;;  %v15169_v24 = vld [vmem:[%s18251_s1] sm:$0xff]   ;;  %s18339_s1 = sld [smem:[#allocation8_spill]] }
0x2634   : > { %v13361_v46 = vpop.f32.mrf.mxu1  ;;  %v15170_v34 = vld [vmem:[%s18252_s2] sm:$0xff]  }
0x2635   : > { %15475 = vtanh.f32 %v6940_v10 }
0x263e   : > { %v15474_v8 = vpop.eup %15473 }
0x2642   : > { %v15476_v5 = vpop.eup %15475 }
0x2643   : > { %v14374_v4 = vpack.i.bf16 %v15476_v5, %v15474_v8 }
0x2645   : > { %14375 = vrot.lane.b32.xlu0 %v14374_v4, %s18263_s23 }
0x26b7   : > { %v14376_v56 = vpop.permute.xlu0 %14375 }
0x26b8   : > { %v14378_v17 = vunpack.i.h.bf16 %v14376_v56  ;;  %v14377_v39 = vunpack.i.l.bf16 %v14376_v56 }
0x26ba   : > { %v6954_v12 = vsel %vm1644_vm4, 0.0, %v14378_v17  ;;  %v6953_v11 = vsel %vm1644_vm4, 0.0, %v14377_v39 }
0x26bb   : > { %v6956_v62 = vsel %vm18328_vm3, %v6954_v12, 0.0  ;;  %v6955_v51 = vsel %vm18329_vm0, %v6953_v11, 0.0  ;;  %v11984_v0 = vpack.c.bf16 %v6954_v12, %v6953_v11  ;;  %v15171_v11 = vld [vmem:[%s18252_s2 + $0x8] sm:$0xff]   ;;  %vm18334_vm0 = vcmask 146432   ;;  %s18340_s2 = sld [smem:[#allocation9_spill]] }
0x26bc   : > { %v14384_v19 = vpack.i.bf16 %v6956_v62, %v6955_v51 }
0x26be   : > { %14385 = vrot.lane.b32.xlu0 %v14384_v19, %s18264_s5  ;;  %14380 = vrot.lane.b32.xlu1 %v14384_v19, %s18269_s26 }
0x26c2   : > { %14395 = vrot.lane.b32.xlu0 %v14384_v19, %s18265_s7  ;;  %14390 = vrot.lane.b32.xlu1 %v14384_v19, %s18268_s30 }
0x26c6   : > { %7053 = vperm.xlu0 %13737, %v7045_v55   ;;  %7048 = vperm.xlu1 %13738, %v7044_v21  }
0x26ca   : > { %7126 = vperm.xlu0 %13737, %v7118_v58   ;;  %7121 = vperm.xlu1 %13738, %v7117_v29  }
0x26ce   : > { %7204 = vperm.xlu0 %13737, %v7186_v15   ;;  %7199 = vperm.xlu1 %13738, %v7185_v1  }
0x26d2   : > { %7194 = vperm.xlu0 %13737, %v7184_v41   ;;  %7189 = vperm.xlu1 %13738, %v7183_v52  }
0x2730   : > { %v14386_v26 = vpop.permute.xlu0 %14385  ;;  %v14381_v37 = vpop.permute.xlu1 %14380 }
0x2731   : > { %v14383_v40 = vunpack.i.h.bf16 %v14381_v37  ;;  %v14382_v35 = vunpack.i.l.bf16 %v14381_v37  ;;  %v14388_v28 = vunpack.i.h.bf16 %v14386_v26  ;;  %v14387_v61 = vunpack.i.l.bf16 %v14386_v26 }
0x2733   : > { %v6989_v44 = vpack.c.bf16 %v14383_v40, %v14382_v35  ;;  %v6988_v27 = vpack.c.bf16 %v14388_v28, %v14387_v61 }
0x2734   : > { %v14391_v57 = vpop.permute.xlu1 %14390  ;;  %v14396_v42 = vpop.permute.xlu0 %14395 }
0x2735   : > { %13363 = vmatpush3.bf16.msra.mxu0 %v6989_v44  ;;  %v14393_v13 = vunpack.i.h.bf16 %v14391_v57  ;;  %v14392_v16 = vunpack.i.l.bf16 %v14391_v57  ;;  %v14398_v48 = vunpack.i.h.bf16 %v14396_v42  ;;  %v14397_v53 = vunpack.i.l.bf16 %v14396_v42 }
0x2736   : > { %13364 = vmatprep.subr.bf16.mxu0 %v18308_v32 }
0x2737   : > { %v6987_v30 = vpack.c.bf16 %v14393_v13, %v14392_v16  ;;  %v6986_v31 = vpack.c.bf16 %v14398_v48, %v14397_v53 }
0x2739   : > { %13365 = vmatpush3.bf16.msra.mxu0 %v6988_v27 }
0x273a   : > { %13366 = vmatprep.subr.bf16.mxu0 %v18308_v32 }
0x273d   : > { %13367 = vmatpush3.bf16.msra.mxu0 %v6987_v30 }
0x273e   : > { %13368 = vmatprep.subr.bf16.mxu0 %v18308_v32 }
0x2741   : > { %13369 = vmatpush3.bf16.msra.mxu0 %v6986_v31  ;;  %v7049_v59 = vpop.permute.xlu1 %7048  ;;  %v7054_v45 = vpop.permute.xlu0 %7053 }
0x2742   : > { %13370 = vmatprep.subr.bf16.mxu0 %v18308_v32 }
0x2745   : > { %13371 = vmatpush3.bf16.msk.msra.mxu0 %vm16070_vm15, %v11984_v0  ;;  %vm18331_vm15 = vcmask 130048   ;;  %v7127_v8 = vpop.permute.xlu0 %7126  ;;  %v7122_v5 = vpop.permute.xlu1 %7121 }
0x2746   : > { %vm18332_vm12 = vmmov %vm18331_vm15 }
0x2747   : > { %vm18333_vm3 = vmmov %vm18332_vm12 }
0x2748   : > { %13373 = vmatmul.mubr.msk.bf16.vlgmr.msra.gmra.mxu0 %vm1981_vm11, %v15166_v33 }
0x2749   : > { %13392 = vmatprep.mubr.msk.bf16.mxu0 %vm18332_vm12, %v15170_v34  ;;  %v7200_v62 = vpop.permute.xlu1 %7199  ;;  %v7205_v51 = vpop.permute.xlu0 %7204  ;;  %vm18336_vm12 = vmmov %vm18334_vm0  ;;  %v7639_v34 = vld [vmem:[%s18256_s16 + $0x10] sm:$0xff] }
0x274d   : > { %v7190_v21 = vpop.permute.xlu1 %7189  ;;  %v7195_v1 = vpop.permute.xlu0 %7194 }
0x2808   : > { %v7032_v23 = vpop.f32.mrf.mxu0 }
0x280a   : > { %v13374_v50 = vpop.f32.mrf.mxu0 }
0x280c   : > { %v7035_v54 = vpop.f32.mrf.mxu0 }
0x280d   : > { %v7039_v2 = vpack.c.bf16 %v7035_v54, %v7032_v23 }
0x280e   : > { %v13375_v6 = vpop.f32.mrf.mxu0 }
0x280f   : > { %13381 = vmatmul.mubr.msk.bf16.vlgmr.msra.gmra.mxu1 %vm2055_vm14, %v7039_v2  ;;  %v7445_v6 = vld [vmem:[%s18253_s10 + $0x10] sm:$0xff] }
0x2810   : > { %13386 = vmatprep.mubr.msk.bf16.mxu1 %vm15688_vm2, %v18308_v32 }
0x28cf   : > { %v7105_v47 = vpop.f32.mrf.mxu1 }
0x28d0   : > { %v7106_v63 = vadd.f32 %v7105_v47, %v7049_v59  ;;  %v7446_v47 = vld [vmem:[%s18253_s10 + $0x18] sm:$0xff]  ;;  %v7443_v59 = vld [vmem:[%s18253_s10] sm:$0xff] }
0x28d1   : > { %v13382_v14 = vpop.f32.mrf.mxu1 }
0x28d2   : > { %15477 = vtanh.f32 %v7106_v63  ;;  %v7444_v63 = vld [vmem:[%s18253_s10 + $0x8] sm:$0xff]  ;;  %v7540_v14 = vld [vmem:[%s18254_s15 + $0x10] sm:$0xff] }
0x28d3   : > { %v7108_v7 = vpop.f32.mrf.mxu1 }
0x28d4   : > { %v7109_v49 = vadd.f32 %v7108_v7, %v7054_v45  ;;  %v7541_v45 = vld [vmem:[%s18254_s15 + $0x18] sm:$0xff]  ;;  %v7538_v7 = vld [vmem:[%s18254_s15] sm:$0xff] }
0x28d5   : > { %v13383_v20 = vpop.f32.mrf.mxu1 }
0x28d6   : > { %15479 = vtanh.f32 %v7109_v49  ;;  %v7539_v49 = vld [vmem:[%s18254_s15 + $0x8] sm:$0xff] }
0x28d7   : > { %v15174_v20 = vld [vmem:[%s18255_s0 + $0x4] ss:$8 sps:$4 sm:$0xff]  }
0x28df   : > { %v15478_v43 = vpop.eup %15477 }
0x28e3   : > { %v15480_v60 = vpop.eup %15479 }
0x28e4   : > { %v7116_v18 = vpack.c.bf16 %v15480_v60, %v15478_v43  ;;  %v7643_v43 = vld [vmem:[%s18256_s16 + $0x30] sm:$0xff]  ;;  %v7644_v60 = vld [vmem:[%s18256_s16 + $0x38] sm:$0xff] }
0x28e6   : > { %13385 = vmatpush3.bf16.msra.mxu1 %v7116_v18  ;;  %v7641_v18 = vld [vmem:[%s18256_s16 + $0x20] sm:$0xff] }
0x28e7   : > { %7390 = vmatprep.subr.bf16.mxu1 %v18301_v9 }
0x28e9   : > { %13387 = vmatmul.mubr.msk.bf16.vlgmr.msra.gmra.mxu1 %vm18331_vm15, %v15169_v24  ;;  %vm18335_vm15 = vmmov %vm18334_vm0  ;;  %v7642_v24 = vld [vmem:[%s18256_s16 + $0x28] sm:$0xff] }
0x28ea   : > { %12006 = vmatprep.mubr.msk.bf16.mxu1 %vm2055_vm14, %v15174_v20 }
0x29a9   : > { %v7171_v10 = vpop.f32.mrf.mxu1 }
0x29aa   : > { %v7172_v56 = vadd.f32 %v7171_v10, %v7122_v5  ;;  %v7640_v10 = vld [vmem:[%s18256_s16 + $0x18] sm:$0xff] }
0x29ab   : > { %v13388_v46 = vpop.f32.mrf.mxu1 }
0x29ac   : > { %v7637_v46 = vld [vmem:[%s18256_s16] sm:$0xff] }
0x29ad   : > { %v7174_v4 = vpop.f32.mrf.mxu1 }
0x29ae   : > { %v7175_v17 = vadd.f32 %v7174_v4, %v7127_v8  ;;  %v7638_v8 = vld [vmem:[%s18256_s16 + $0x8] sm:$0xff] }
0x29af   : > { %v13389_v39 = vpop.f32.mrf.mxu1 }
0x29b0   : > { %v7182_v12 = vpack.c.bf16 %v7175_v17, %v7172_v56 }
0x29b2   : > { %13390 = vmatprep.subr.bf16.mxu0 %v7182_v12 }
0x29b3   : > { %13391 = vmatpush3.bf16.msra.mxu0 %v7182_v12 }
0x29b6   : > { %13393 = vmatmul.mubr.msk.bf16.vlgmr.msra.gmra.mxu0 %vm18333_vm3, %v15171_v11  ;;  %vm18337_vm3 = vmmov %vm18334_vm0 }
0x2a76   : > { %v13394_v0 = vpop.f32.mrf.mxu0 }
0x2a77   : > { %v7266_v19 = vadd.f32 %v13394_v0, %v7200_v62 }
0x2a78   : > { %v7257_v55 = vpop.f32.mrf.mxu0 }
0x2a79   : > { %v7258_v58 = vadd.f32 %v7257_v55, %v7190_v21  ;;  %15481 = vtanh.f32 %v7266_v19 }
0x2a7a   : > { %v13395_v29 = vpop.f32.mrf.mxu0 }
0x2a7b   : > { %v7269_v15 = vadd.f32 %v13395_v29, %v7205_v51 }
0x2a7c   : > { %v7260_v41 = vpop.f32.mrf.mxu0 }
0x2a7d   : > { %15483 = vtanh.f32 %v7269_v15  ;;  %v7261_v52 = vadd.f32 %v7260_v41, %v7195_v1 }
0x2a7e   : > { %15485 = vtanh.f32 %v7258_v58 }
0x2a7f   : > { %15487 = vtanh.f32 %v7261_v52 }
0x2a86   : > { %v15482_v26 = vpop.eup %15481 }
0x2a8a   : > { %v15484_v37 = vpop.eup %15483 }
0x2a8b   : > { %v15486_v40 = vpop.eup %15485  ;;  %v14399_v35 = vpack.i.bf16 %v15484_v37, %v15482_v26 }
0x2a8c   : > { %v15488_v28 = vpop.eup %15487 }
0x2a8d   : > { %14400 = vrot.lane.b32.xlu1 %v14399_v35, %s18263_s23  ;;  %v14404_v61 = vpack.i.bf16 %v15488_v28, %v15486_v40 }
0x2a8f   : > { %14405 = vrot.lane.b32.xlu0 %v14404_v61, %s18263_s23 }
0x2aff   : > { %v14401_v44 = vpop.permute.xlu1 %14400 }
0x2b00   : > { %v14403_v57 = vunpack.i.h.bf16 %v14401_v44  ;;  %v14402_v27 = vunpack.i.l.bf16 %v14401_v44 }
0x2b01   : > { %v14406_v13 = vpop.permute.xlu0 %14405 }
0x2b02   : > { %v17144_v16 = vsel %vm1644_vm4, 0.0, %v14403_v57  ;;  %v17147_v42 = vsel %vm1644_vm4, 0.0, %v14402_v27  ;;  %v14408_v48 = vunpack.i.h.bf16 %v14406_v13  ;;  %v14407_v53 = vunpack.i.l.bf16 %v14406_v13 }
0x2b03   : > { %v7299_v30 = vsel %vm18334_vm0, %v17144_v16, 0.0  ;;  %v7298_v31 = vsel %vm18335_vm15, %v17147_v42, 0.0  ;;  %v12001_v33 = vpack.c.bf16 %v17144_v16, %v17147_v42  ;;  %vm18344_vm15 = vcmask 80896  }
0x2b04   : > { %v17156_v22 = vsel %vm1644_vm4, 0.0, %v14408_v48  ;;  %v17159_v36 = vsel %vm1644_vm4, 0.0, %v14407_v53  ;;  %v14409_v38 = vpack.i.bf16 %v7299_v30, %v7298_v31  ;;  %v15172_v30 = vld [vmem:[%s18255_s0] ss:$8 sps:$4 sm:$0xff]   ;;  %v15175_v31 = vld [vmem:[%s18255_s0 + $0x14] ss:$8 sps:$4 sm:$0xff]  }
0x2b05   : > { %v7297_v23 = vsel %vm18336_vm12, %v17156_v22, 0.0  ;;  %v7296_v50 = vsel %vm18337_vm3, %v17159_v36, 0.0  ;;  %v12004_v54 = vpack.c.bf16 %v17156_v22, %v17159_v36  ;;  %v15178_v22 = vld [vmem:[%s18339_s1] sm:$0xff]   ;;  %s18343_s1 = sld [smem:[#allocation11_spill]]  ;;  %vm18345_vm12 = vmmov %vm18344_vm15 }
0x2b06   : > { %14410 = vrot.lane.b32.xlu1 %v14409_v38, %s18264_s5  ;;  %v14414_v2 = vpack.i.bf16 %v7297_v23, %v7296_v50  ;;  %13396 = vmatprep.subr.bf16.mxu0 %v15178_v22  ;;  %vm18346_vm3 = vmmov %vm18345_vm12 }
0x2b07   : > { %13397 = vmatpush3.bf16.msra.mxu0 %v15178_v22 }
0x2b08   : > { %14415 = vrot.lane.b32.xlu0 %v14414_v2, %s18264_s5 }
0x2b0a   : > { %14420 = vrot.lane.b32.xlu1 %v14409_v38, %s18268_s30 }
0x2b0c   : > { %14425 = vrot.lane.b32.xlu0 %v14414_v2, %s18268_s30 }
0x2b0e   : > { %14430 = vrot.lane.b32.xlu1 %v14409_v38, %s18265_s7 }
0x2b10   : > { %14435 = vrot.lane.b32.xlu0 %v14414_v2, %s18265_s7 }
0x2b12   : > { %14440 = vrot.lane.b32.xlu1 %v14409_v38, %s18269_s26 }
0x2b14   : > { %14445 = vrot.lane.b32.xlu0 %v14414_v2, %s18269_s26 }
0x2b16   : > { %7459 = vperm.xlu1 %13738, %v7445_v6  }
0x2b18   : > { %7464 = vperm.xlu0 %13737, %v7446_v47  }
0x2b1a   : > { %7449 = vperm.xlu1 %13738, %v7443_v59  }
0x2b1c   : > { %7454 = vperm.xlu0 %13737, %v7444_v63  }
0x2b1e   : > { %7554 = vperm.xlu1 %13738, %v7540_v14   ;;  %v15179_v14 = vld [vmem:[%s18340_s2] sm:$0xff]  }
0x2b20   : > { %7559 = vperm.xlu0 %13737, %v7541_v45  }
0x2b22   : > { %7544 = vperm.xlu1 %13738, %v7538_v7  }
0x2b24   : > { %7549 = vperm.xlu0 %13737, %v7539_v49  }
0x2b26   : > { %7677 = vperm.xlu1 %13738, %v7643_v43  }
0x2b28   : > { %7682 = vperm.xlu0 %13737, %v7644_v60  }
0x2b2a   : > { %7667 = vperm.xlu1 %13738, %v7641_v18  }
0x2b2c   : > { %7672 = vperm.xlu0 %13737, %v7642_v24  }
0x2b2e   : > { %7657 = vperm.xlu1 %13738, %v7639_v34  }
0x2b30   : > { %7662 = vperm.xlu0 %13737, %v7640_v10  }
0x2b32   : > { %7647 = vperm.xlu1 %13738, %v7637_v46  }
0x2b34   : > { %7652 = vperm.xlu0 %13737, %v7638_v8  }
0x2b78   : > { %v14411_v5 = vpop.permute.xlu1 %14410 }
0x2b79   : > { %v14413_v4 = vunpack.i.h.bf16 %v14411_v5  ;;  %v14412_v56 = vunpack.i.l.bf16 %v14411_v5 }
0x2b7a   : > { %v14416_v17 = vpop.permute.xlu0 %14415 }
0x2b7b   : > { %v7363_v39 = vpack.c.bf16 %v14413_v4, %v14412_v56  ;;  %v14418_v12 = vunpack.i.h.bf16 %v14416_v17  ;;  %v14417_v11 = vunpack.i.l.bf16 %v14416_v17 }
0x2b7c   : > { %v14421_v62 = vpop.permute.xlu1 %14420 }
0x2b7d   : > { %7391 = vmatpush1.bf16.msra.mxu1 %v7363_v39  ;;  %v7362_v51 = vpack.c.bf16 %v14418_v12, %v14417_v11  ;;  %v14423_v0 = vunpack.i.h.bf16 %v14421_v62  ;;  %v14422_v19 = vunpack.i.l.bf16 %v14421_v62  ;;  %v15180_v11 = vld [vmem:[%s18340_s2 + $0x8] sm:$0xff]   ;;  %v15181_v62 = vld [vmem:[%s18343_s1] sm:$0xff]   ;;  %s18354_s2 = sld [smem:[#allocation19_spill]] }
0x2b7e   : > { %7392 = vmatprep.subr.bf16.mxu1 %v18301_v9  ;;  %v14426_v55 = vpop.permute.xlu0 %14425 }
0x2b7f   : > { %v7361_v21 = vpack.c.bf16 %v14423_v0, %v14422_v19  ;;  %v14428_v58 = vunpack.i.h.bf16 %v14426_v55  ;;  %v14427_v29 = vunpack.i.l.bf16 %v14426_v55 }
0x2b80   : > { %v14431_v15 = vpop.permute.xlu1 %14430 }
0x2b81   : > { %7393 = vmatpush1.bf16.msra.mxu1 %v7362_v51  ;;  %v7360_v1 = vpack.c.bf16 %v14428_v58, %v14427_v29  ;;  %v14433_v41 = vunpack.i.h.bf16 %v14431_v15  ;;  %v14432_v52 = vunpack.i.l.bf16 %v14431_v15 }
0x2b82   : > { %7394 = vmatprep.subr.bf16.mxu1 %v18301_v9  ;;  %v14436_v26 = vpop.permute.xlu0 %14435 }
0x2b83   : > { %v7359_v37 = vpack.c.bf16 %v14433_v41, %v14432_v52  ;;  %v14438_v40 = vunpack.i.h.bf16 %v14436_v26  ;;  %v14437_v35 = vunpack.i.l.bf16 %v14436_v26 }
0x2b84   : > { %v14441_v61 = vpop.permute.xlu1 %14440 }
0x2b85   : > { %7395 = vmatpush1.bf16.msra.mxu1 %v7361_v21  ;;  %v7358_v28 = vpack.c.bf16 %v14438_v40, %v14437_v35  ;;  %v14443_v57 = vunpack.i.h.bf16 %v14441_v61  ;;  %v14442_v27 = vunpack.i.l.bf16 %v14441_v61  ;;  %v15182_v35 = vld [vmem:[%s18343_s1 + $0x8] sm:$0xff]   ;;  %v15184_v61 = vld [vmem:[%s18343_s1 + $0x18] sm:$0xff]  }
0x2b86   : > { %7396 = vmatprep.subr.bf16.mxu1 %v18301_v9  ;;  %v14446_v13 = vpop.permute.xlu0 %14445 }
0x2b87   : > { %v7365_v16 = vpack.c.bf16 %v14443_v57, %v14442_v27  ;;  %v14448_v42 = vunpack.i.h.bf16 %v14446_v13  ;;  %v14447_v48 = vunpack.i.l.bf16 %v14446_v13 }
0x2b89   : > { %7397 = vmatpush1.bf16.msra.mxu1 %v7360_v1  ;;  %v7364_v53 = vpack.c.bf16 %v14448_v42, %v14447_v48 }
0x2b8a   : > { %7398 = vmatprep.subr.bf16.mxu1 %v18301_v9 }
0x2b8d   : > { %7399 = vmatpush1.bf16.msra.mxu1 %v7359_v37 }
0x2b8e   : > { %7400 = vmatprep.subr.bf16.mxu1 %v18301_v9 }
0x2b91   : > { %7401 = vmatpush1.bf16.msra.mxu1 %v7358_v28  ;;  %v7460_v45 = vpop.permute.xlu1 %7459  ;;  %v15183_v28 = vld [vmem:[%s18343_s1 + $0x10] sm:$0xff]   ;;  %s18353_s1 = sld [smem:[#allocation17_spill]] }
0x2b92   : > { %7402 = vmatprep.subr.bf16.mxu1 %v18301_v9 }
0x2b93   : > { %v7465_v7 = vpop.permute.xlu0 %7464 }
0x2b95   : > { %12002 = vmatpush1.bf16.msk.msra.mxu1 %vm16152_vm7, %v12001_v33  ;;  %v15177_v33 = vld [vmem:[%s18255_s0 + $0x10] ss:$8 sps:$4 sm:$0xff]   ;;  %v7450_v60 = vpop.permute.xlu1 %7449  ;;  %s18352_s0 = sld [smem:[#allocation14_spill]] }
0x2b96   : > { %7404 = vmatprep.subr.bf16.mxu1 %v18301_v9 }
0x2b97   : > { %v7455_v10 = vpop.permute.xlu0 %7454 }
0x2b99   : > { %12005 = vmatpush1.bf16.msk.msra.mxu1 %vm16152_vm7, %v12004_v54  ;;  %vm18341_vm7 = vcmask 130048   ;;  %v7555_v51 = vpop.permute.xlu1 %7554 }
0x2b9a   : > { %7418 = vmatprep.subr.bf16.mxu1 %v18301_v9  ;;  %vm18342_vm0 = vmmov %vm18341_vm7 }
0x2b9b   : > { %v7560_v0 = vpop.permute.xlu0 %7559 }
0x2b9d   : > { %7419 = vmatpush2.bf16.msra.mxu1 %v7365_v16  ;;  %v7545_v58 = vpop.permute.xlu1 %7544 }
0x2b9e   : > { %7420 = vmatprep.subr.bf16.mxu1 %v18301_v9 }
0x2b9f   : > { %v7550_v1 = vpop.permute.xlu0 %7549 }
0x2ba1   : > { %7421 = vmatpush2.bf16.msra.mxu1 %v7364_v53  ;;  %v7678_v57 = vpop.permute.xlu1 %7677 }
0x2ba3   : > { %v7683_v44 = vpop.permute.xlu0 %7682 }
0x2ba4   : > { %7423 = vmatmul.mubr.bf16.vlgmr.msra.gmra.mxu1 %v15172_v30 }
0x2ba5   : > { %12007 = vmatprep.mubr.msk.bf16.mxu1 %vm2055_vm14, %v15175_v31  ;;  %v7668_v42 = vpop.permute.xlu1 %7667 }
0x2ba7   : > { %v7673_v13 = vpop.permute.xlu0 %7672 }
0x2ba9   : > { %v7658_v22 = vpop.permute.xlu1 %7657 }
0x2bab   : > { %v7663_v30 = vpop.permute.xlu0 %7662 }
0x2bac   : > { %7431 = vmatmul.mubr.bf16.gmra.mxu1 %v15177_v33 }
0x2c64   : > { %v7424_v36 = vpop.f32.mrf.mxu1 }
0x2c66   : > { %v7426_v38 = vpop.f32.mrf.mxu1 }
0x2c68   : > { %v7427_v23 = vpop.f32.mrf.mxu1 }
0x2c69   : > { %v7439_v50 = vpack.c.bf16 %v7427_v23, %v7424_v36 }
0x2c6a   : > { %v7429_v54 = vpop.f32.mrf.mxu1 }
0x2c6b   : > { %13398 = vmatprep.mubr.msk.bf16.mxu0 %vm18341_vm7, %v7439_v50  ;;  %vm18347_vm7 = vmmov %vm18346_vm3 }
0x2c6c   : > { %v7432_v2 = vpop.f32.mrf.mxu1 }
0x2c6e   : > { %v7434_v6 = vpop.f32.mrf.mxu1 }
0x2c70   : > { %v7435_v47 = vpop.f32.mrf.mxu1 }
0x2c71   : > { %v7440_v59 = vpack.c.bf16 %v7435_v47, %v7432_v2  ;;  %v7653_v2 = vpop.permute.xlu0 %7652 }
0x2c72   : > { %v7437_v63 = vpop.f32.mrf.mxu1 }
0x2c73   : > { %13399 = vmatmul.mubr.msk.bf16.vlgmr.msra.gmra.mxu0 %vm18342_vm0, %v7440_v59  ;;  %vm18348_vm0 = vmmov %vm18346_vm3 }
0x2c74   : > { %13406 = vmatprep.mubr.msk.bf16.mxu0 %vm2055_vm14, %v15179_v14  ;;  %v7648_v14 = vpop.permute.xlu1 %7647 }
0x2d33   : > { %v13400_v49 = vpop.f32.mrf.mxu0 }
0x2d34   : > { %v7522_v20 = vadd.f32 %v13400_v49, %v7460_v45 }
0x2d35   : > { %v7513_v43 = vpop.f32.mrf.mxu0 }
0x2d36   : > { %v7514_v18 = vadd.f32 %v7513_v43, %v7450_v60  ;;  %15489 = vtanh.f32 %v7522_v20 }
0x2d37   : > { %v13401_v24 = vpop.f32.mrf.mxu0 }
0x2d38   : > { %v7525_v34 = vadd.f32 %v13401_v24, %v7465_v7 }
0x2d39   : > { %v7516_v46 = vpop.f32.mrf.mxu0 }
0x2d3a   : > { %15491 = vtanh.f32 %v7525_v34  ;;  %v7517_v8 = vadd.f32 %v7516_v46, %v7455_v10 }
0x2d3b   : > { %15493 = vtanh.f32 %v7514_v18 }
0x2d3c   : > { %15495 = vtanh.f32 %v7517_v8 }
0x2d43   : > { %v15490_v5 = vpop.eup %15489 }
0x2d47   : > { %v15492_v4 = vpop.eup %15491 }
0x2d48   : > { %v15494_v56 = vpop.eup %15493  ;;  %v7537_v17 = vpack.c.bf16 %v15492_v4, %v15490_v5 }
0x2d49   : > { %v15496_v39 = vpop.eup %15495 }
0x2d4a   : > { %13402 = vmatprep.subr.bf16.mxu0 %v7537_v17  ;;  %v7536_v12 = vpack.c.bf16 %v15496_v39, %v15494_v56 }
0x2d4b   : > { %13403 = vmatpush3.bf16.msra.mxu0 %v7537_v17 }
0x2d4c   : > { %13404 = vmatprep.subr.bf16.mxu0 %v7536_v12 }
0x2d4f   : > { %13405 = vmatpush3.bf16.msra.mxu0 %v7536_v12 }
0x2d52   : > { %13407 = vmatmul.mubr.msk.bf16.vlgmr.msra.gmra.mxu0 %vm2055_vm14, %v15180_v11 }
0x2d53   : > { %13414 = vmatprep.mubr.msk.bf16.mxu0 %vm2055_vm14, %v15181_v62 }
0x2e12   : > { %v13408_v19 = vpop.f32.mrf.mxu0 }
0x2e13   : > { %v7621_v29 = vadd.f32 %v13408_v19, %v7555_v51 }
0x2e14   : > { %v7612_v55 = vpop.f32.mrf.mxu0 }
0x2e15   : > { %v7613_v52 = vadd.f32 %v7612_v55, %v7545_v58 }
0x2e16   : > { %v13409_v21 = vpop.f32.mrf.mxu0 }
0x2e17   : > { %v7624_v15 = vadd.f32 %v13409_v21, %v7560_v0 }
0x2e18   : > { %v7615_v41 = vpop.f32.mrf.mxu0 }
0x2e19   : > { %v7636_v26 = vpack.c.bf16 %v7624_v15, %v7621_v29  ;;  %v7616_v37 = vadd.f32 %v7615_v41, %v7550_v1 }
0x2e1b   : > { %v7635_v40 = vpack.c.bf16 %v7616_v37, %v7613_v52  ;;  %13410 = vmatprep.subr.bf16.mxu0 %v7636_v26 }
0x2e1c   : > { %13411 = vmatpush3.bf16.msra.mxu0 %v7636_v26 }
0x2e1d   : > { %13412 = vmatprep.subr.bf16.mxu0 %v7635_v40 }
0x2e20   : > { %13413 = vmatpush3.bf16.msra.mxu0 %v7635_v40 }
0x2e23   : > { %13415 = vmatmul.mubr.msk.bf16.vlgmr.msra.gmra.mxu0 %vm2055_vm14, %v15182_v35 }
0x2e24   : > { %13418 = vmatprep.mubr.msk.bf16.mxu0 %vm2055_vm14, %v15183_v28 }
0x2e2b   : > { %13419 = vmatmul.mubr.msk.bf16.gmra.mxu0 %vm2055_vm14, %v15184_v61 }
0x2ee3   : > { %v13416_v27 = vpop.f32.mrf.mxu0 }
0x2ee4   : > { %v7760_v6 = vadd.f32 %v13416_v27, %v7658_v22 }
0x2ee5   : > { %v7751_v16 = vpop.f32.mrf.mxu0 }
0x2ee6   : > { %v7752_v45 = vadd.f32 %v7751_v16, %v7648_v14  ;;  %v8339_v14 = vld [vmem:[%s18353_s1 + $0x30] sm:$0xff] }
0x2ee7   : > { %v13417_v48 = vpop.f32.mrf.mxu0 }
0x2ee8   : > { %v7763_v33 = vadd.f32 %v13417_v48, %v7663_v30 }
0x2ee9   : > { %v7754_v53 = vpop.f32.mrf.mxu0 }
0x2eea   : > { %15497 = vtanh.f32 %v7763_v33  ;;  %v7755_v59 = vadd.f32 %v7754_v53, %v7653_v2  ;;  %v8190_v2 = vld [vmem:[%s18352_s0 + $0x28] sm:$0xff] }
0x2eeb   : > { %v13420_v31 = vpop.f32.mrf.mxu0 }
0x2eec   : > { %v7776_v36 = vadd.f32 %v13420_v31, %v7678_v57 }
0x2eed   : > { %v7767_v38 = vpop.f32.mrf.mxu0 }
0x2eee   : > { %v7768_v23 = vadd.f32 %v7767_v38, %v7668_v42  ;;  %15499 = vtanh.f32 %v7776_v36  ;;  %v15187_v36 = vld [vmem:[%s18266_s4 + $0x4] ss:$12 sps:$4 sm:$0xff]  }
0x2eef   : > { %v13421_v50 = vpop.f32.mrf.mxu0  ;;  %8082 = vmatprep.mubr.bf16.mxu0 %v15187_v36  ;;  %v8191_v38 = vld [vmem:[%s18352_s0 + $0x30] sm:$0xff] }
0x2ef0   : > { %v7779_v54 = vadd.f32 %v13421_v50, %v7683_v44  ;;  %v8192_v50 = vld [vmem:[%s18352_s0 + $0x38] sm:$0xff] }
0x2ef1   : > { %v7770_v47 = vpop.f32.mrf.mxu0 }
0x2ef2   : > { %15501 = vtanh.f32 %v7779_v54  ;;  %v7771_v63 = vadd.f32 %v7770_v47, %v7673_v13  ;;  %v8189_v54 = vld [vmem:[%s18352_s0 + $0x20] sm:$0xff]  ;;  %v8188_v47 = vld [vmem:[%s18352_s0 + $0x18] sm:$0xff] }
0x2ef3   : > { %15503 = vtanh.f32 %v7768_v23  ;;  %v15191_v23 = vld [vmem:[%s18266_s4 + $0x8] ss:$12 sps:$4 sm:$0xff]  }
0x2ef4   : > { %15505 = vtanh.f32 %v7771_v63  ;;  %13430 = vmatprep.mubr.msk.bf16.mxu1 %vm1759_vm10, %v15191_v23  ;;  %v8186_v63 = vld [vmem:[%s18352_s0 + $0x8] sm:$0xff] }
0x2ef5   : > { %15507 = vtanh.f32 %v7760_v6  ;;  %v8187_v6 = vld [vmem:[%s18352_s0 + $0x10] sm:$0xff] }
0x2ef6   : > { %15509 = vtanh.f32 %v7755_v59  ;;  %v8185_v59 = vld [vmem:[%s18352_s0] sm:$0xff]  ;;  %s18356_s0 = sld [smem:[#allocation15_spill]] }
0x2ef7   : > { %15511 = vtanh.f32 %v7752_v45  ;;  %v15498_v7 = vpop.eup %15497  ;;  %v8340_v45 = vld [vmem:[%s18353_s1 + $0x38] sm:$0xff] }
0x2efb   : > { %v15500_v49 = vpop.eup %15499 }
0x2eff   : > { %v15502_v20 = vpop.eup %15501 }
0x2f00   : > { %v15504_v43 = vpop.eup %15503  ;;  %v14449_v60 = vpack.i.bf16 %v15502_v20, %v15500_v49  ;;  %v8338_v49 = vld [vmem:[%s18353_s1 + $0x28] sm:$0xff]  ;;  %v8335_v20 = vld [vmem:[%s18353_s1 + $0x10] sm:$0xff] }
0x2f01   : > { %v15506_v18 = vpop.eup %15505 }
0x2f02   : > { %v15508_v24 = vpop.eup %15507  ;;  %14450 = vrot.lane.b32.xlu1 %v14449_v60, %s18263_s23  ;;  %v14454_v34 = vpack.i.bf16 %v15506_v18, %v15504_v43  ;;  %v8336_v43 = vld [vmem:[%s18353_s1 + $0x18] sm:$0xff]  ;;  %v8333_v60 = vld [vmem:[%s18353_s1] sm:$0xff]  ;;  %v8334_v18 = vld [vmem:[%s18353_s1 + $0x8] sm:$0xff] }
0x2f03   : > { %v15510_v10 = vpop.eup %15509  ;;  %v14459_v46 = vpack.i.bf16 %v15498_v7, %v15508_v24  ;;  %v8337_v7 = vld [vmem:[%s18353_s1 + $0x20] sm:$0xff]  ;;  %v8512_v24 = vld [vmem:[%s18354_s2 + $0x70] sm:$0xff]  ;;  %s18358_s1 = sld [smem:[#allocation18_spill]] }
0x2f04   : > { %14455 = vrot.lane.b32.xlu0 %v14454_v34, %s18263_s23  ;;  %v15512_v8 = vpop.eup %15511  ;;  %v8513_v34 = vld [vmem:[%s18354_s2 + $0x78] sm:$0xff] }
0x2f05   : > { %v14464_v5 = vpack.i.bf16 %v15510_v10, %v15512_v8  ;;  %v8510_v10 = vld [vmem:[%s18354_s2 + $0x60] sm:$0xff]  ;;  %v8508_v8 = vld [vmem:[%s18354_s2 + $0x50] sm:$0xff] }
0x2f06   : > { %14460 = vrot.lane.b32.xlu1 %v14459_v46, %s18263_s23  ;;  %v8511_v46 = vld [vmem:[%s18354_s2 + $0x68] sm:$0xff] }
0x2f08   : > { %14465 = vrot.lane.b32.xlu0 %v14464_v5, %s18263_s23  ;;  %v8509_v5 = vld [vmem:[%s18354_s2 + $0x58] sm:$0xff] }
0x2f74   : > { %v14451_v4 = vpop.permute.xlu1 %14450 }
0x2f75   : > { %v14453_v56 = vunpack.i.h.bf16 %v14451_v4  ;;  %v14452_v17 = vunpack.i.l.bf16 %v14451_v4  ;;  %v8506_v4 = vld [vmem:[%s18354_s2 + $0x40] sm:$0xff] }
0x2f76   : > { %v14456_v39 = vpop.permute.xlu0 %14455 }
0x2f77   : > { %v17236_v12 = vsel %vm1644_vm4, 0.0, %v14453_v56  ;;  %v17239_v11 = vsel %vm1644_vm4, 0.0, %v14452_v17  ;;  %v14458_v62 = vunpack.i.h.bf16 %v14456_v39  ;;  %v14457_v51 = vunpack.i.l.bf16 %v14456_v39  ;;  %v8507_v56 = vld [vmem:[%s18354_s2 + $0x48] sm:$0xff]  ;;  %v8504_v17 = vld [vmem:[%s18354_s2 + $0x30] sm:$0xff]  ;;  %v8505_v39 = vld [vmem:[%s18354_s2 + $0x38] sm:$0xff] }
0x2f78   : > { %v7837_v0 = vsel %vm18344_vm15, %v17236_v12, 0.0  ;;  %v7836_v19 = vsel %vm18345_vm12, %v17239_v11, 0.0  ;;  %v12036_v55 = vpack.c.bf16 %v17236_v12, %v17239_v11  ;;  %v14461_v21 = vpop.permute.xlu1 %14460  ;;  %vm18349_vm15 = vmmov %vm18348_vm0 }
0x2f79   : > { %v17248_v58 = vsel %vm1644_vm4, 0.0, %v14458_v62  ;;  %v17251_v29 = vsel %vm1644_vm4, 0.0, %v14457_v51  ;;  %v14463_v15 = vunpack.i.h.bf16 %v14461_v21  ;;  %v14462_v1 = vunpack.i.l.bf16 %v14461_v21  ;;  %vm18350_vm12 = vmmov %vm18348_vm0  ;;  %v8502_v62 = vld [vmem:[%s18354_s2 + $0x20] sm:$0xff]  ;;  %v8503_v51 = vld [vmem:[%s18354_s2 + $0x28] sm:$0xff] }
0x2f7a   : > { %v7835_v41 = vsel %vm18346_vm3, %v17248_v58, 0.0  ;;  %v7834_v52 = vsel %vm18347_vm7, %v17251_v29, 0.0  ;;  %v12039_v26 = vpack.c.bf16 %v17248_v58, %v17251_v29  ;;  %v14466_v37 = vpop.permute.xlu0 %14465  ;;  %v14469_v40 = vpack.i.bf16 %v7837_v0, %v7836_v19  ;;  %vm18351_vm3 = vmmov %vm18348_vm0  ;;  %v8500_v0 = vld [vmem:[%s18354_s2 + $0x10] sm:$0xff]  ;;  %v8501_v19 = vld [vmem:[%s18354_s2 + $0x18] sm:$0xff] }
0x2f7b   : > { %v17260_v35 = vsel %vm1644_vm4, 0.0, %v14463_v15  ;;  %v17263_v28 = vsel %vm1644_vm4, 0.0, %v14462_v1  ;;  %v14468_v61 = vunpack.i.h.bf16 %v14466_v37  ;;  %v14467_v44 = vunpack.i.l.bf16 %v14466_v37  ;;  %v8498_v21 = vld [vmem:[%s18354_s2] sm:$0xff]  ;;  %v8499_v15 = vld [vmem:[%s18354_s2 + $0x8] sm:$0xff]  ;;  %s18375_s2 = sld [smem:[#allocation24_spill]] }
0x2f7c   : > { %v12042_v57 = vpack.c.bf16 %v17260_v35, %v17263_v28  ;;  %14470 = vrot.lane.b32.xlu1 %v14469_v40, %s18264_s5  ;;  %14475 = vrot.lane.b32.xlu0 %v14469_v40, %s18265_s7  ;;  %v14479_v42 = vpack.i.bf16 %v7835_v41, %v7834_v52  ;;  %v7833_v48 = vsel %vm18348_vm0, %v17260_v35, 0.0  ;;  %v7832_v53 = vsel %vm18349_vm15, %v17263_v28, 0.0  ;;  %v15190_v35 = vld [vmem:[%s18266_s4 + $0x1c] ss:$12 sps:$4 sm:$0xff]  }
0x2f7d   : > { %v17269_v27 = vsel %vm1644_vm4, 0.0, %v14468_v61  ;;  %v17272_v13 = vsel %vm1644_vm4, 0.0, %v14467_v44  ;;  %v14484_v30 = vpack.i.bf16 %v7833_v48, %v7832_v53 }
0x2f7e   : > { %v12045_v16 = vpack.c.bf16 %v17269_v27, %v17272_v13  ;;  %v7831_v31 = vsel %vm18350_vm12, %v17269_v27, 0.0  ;;  %v7830_v33 = vsel %vm18351_vm3, %v17272_v13, 0.0  ;;  %v15195_v27 = vld [vmem:[%s18266_s4 + $0x34] ss:$12 sps:$4 sm:$0xff]   ;;  %v15197_v13 = vld [vmem:[%s18266_s4 + $0x50] ss:$12 sps:$4 sm:$0xff]  }
0x2f7f   : > { %v14499_v22 = vpack.i.bf16 %v7831_v31, %v7830_v33 }
0x2f80   : > { %14480 = vrot.lane.b32.xlu1 %v14479_v42, %s18264_s5  ;;  %14490 = vrot.lane.b32.xlu0 %v14479_v42, %s18265_s7 }
0x2f84   : > { %14485 = vrot.lane.b32.xlu1 %v14484_v30, %s18264_s5  ;;  %14495 = vrot.lane.b32.xlu0 %v14484_v30, %s18265_s7 }
0x2f88   : > { %14500 = vrot.lane.b32.xlu1 %v14499_v22, %s18264_s5  ;;  %14505 = vrot.lane.b32.xlu0 %v14499_v22, %s18265_s7 }
0x2f8c   : > { %14510 = vrot.lane.b32.xlu1 %v14469_v40, %s18268_s30  ;;  %14515 = vrot.lane.b32.xlu0 %v14479_v42, %s18268_s30 }
0x2f90   : > { %14520 = vrot.lane.b32.xlu1 %v14484_v30, %s18268_s30  ;;  %14525 = vrot.lane.b32.xlu0 %v14499_v22, %s18268_s30 }
0x2f94   : > { %14530 = vrot.lane.b32.xlu1 %v14469_v40, %s18269_s26  ;;  %14535 = vrot.lane.b32.xlu0 %v14479_v42, %s18269_s26 }
0x2f98   : > { %14540 = vrot.lane.b32.xlu1 %v14484_v30, %s18269_s26  ;;  %14545 = vrot.lane.b32.xlu0 %v14499_v22, %s18269_s26 }
0x2f9c   : > { %8225 = vperm.xlu1 %13738, %v8191_v38   ;;  %8230 = vperm.xlu0 %13737, %v8192_v50  }
0x2fa0   : > { %8215 = vperm.xlu1 %13738, %v8189_v54   ;;  %8220 = vperm.xlu0 %13737, %v8190_v2  }
0x2fa4   : > { %8205 = vperm.xlu1 %13738, %v8187_v6   ;;  %8210 = vperm.xlu0 %13737, %v8188_v47  }
0x2fa8   : > { %8195 = vperm.xlu1 %13738, %v8185_v59   ;;  %8200 = vperm.xlu0 %13737, %v8186_v63  }
0x2fac   : > { %8373 = vperm.xlu1 %13738, %v8339_v14   ;;  %8378 = vperm.xlu0 %13737, %v8340_v45  }
0x2fb0   : > { %8363 = vperm.xlu1 %13738, %v8337_v7   ;;  %8368 = vperm.xlu0 %13737, %v8338_v49  }
0x2fb4   : > { %8353 = vperm.xlu1 %13738, %v8335_v20   ;;  %8358 = vperm.xlu0 %13737, %v8336_v43  }
0x2fb8   : > { %8343 = vperm.xlu1 %13738, %v8333_v60   ;;  %8348 = vperm.xlu0 %13737, %v8334_v18  }
0x2fbc   : > { %8586 = vperm.xlu1 %13738, %v8512_v24   ;;  %8591 = vperm.xlu0 %13737, %v8513_v34  }
0x2fc0   : > { %8576 = vperm.xlu1 %13738, %v8510_v10   ;;  %8581 = vperm.xlu0 %13737, %v8511_v46  }
0x2fc4   : > { %8566 = vperm.xlu1 %13738, %v8508_v8   ;;  %8571 = vperm.xlu0 %13737, %v8509_v5  }
0x2fc8   : > { %8556 = vperm.xlu1 %13738, %v8506_v4   ;;  %8561 = vperm.xlu0 %13737, %v8507_v56  }
0x2fcc   : > { %8546 = vperm.xlu1 %13738, %v8504_v17   ;;  %8551 = vperm.xlu0 %13737, %v8505_v39  }
0x2fd0   : > { %8536 = vperm.xlu1 %13738, %v8502_v62   ;;  %8541 = vperm.xlu0 %13737, %v8503_v51  }
0x2fd4   : > { %8526 = vperm.xlu1 %13738, %v8500_v0   ;;  %8531 = vperm.xlu0 %13737, %v8501_v19  }
0x2fd8   : > { %8516 = vperm.xlu1 %13738, %v8498_v21   ;;  %8521 = vperm.xlu0 %13737, %v8499_v15  }
0x2fee   : > { %v14471_v1 = vpop.permute.xlu1 %14470  ;;  %v14476_v37 = vpop.permute.xlu0 %14475 }
0x2fef   : > { %v14473_v41 = vunpack.i.h.bf16 %v14471_v1  ;;  %v14472_v52 = vunpack.i.l.bf16 %v14471_v1  ;;  %v14478_v40 = vunpack.i.h.bf16 %v14476_v37  ;;  %v14477_v61 = vunpack.i.l.bf16 %v14476_v37 }
0x2ff1   : > { %v7973_v44 = vpack.c.bf16 %v14473_v41, %v14472_v52  ;;  %v7965_v48 = vpack.c.bf16 %v14478_v40, %v14477_v61 }
0x2ff2   : > { %v14481_v42 = vpop.permute.xlu1 %14480  ;;  %v14491_v31 = vpop.permute.xlu0 %14490 }
0x2ff3   : > { %v14483_v53 = vunpack.i.h.bf16 %v14481_v42  ;;  %v14482_v30 = vunpack.i.l.bf16 %v14481_v42  ;;  %12644 = vmatprep.subr.bf16.mxu0 %v7973_v44  ;;  %v14493_v33 = vunpack.i.h.bf16 %v14491_v31  ;;  %v14492_v22 = vunpack.i.l.bf16 %v14491_v31  ;;  %v15188_v31 = vld [vmem:[%s18266_s4 + $0x18] ss:$12 sps:$4 sm:$0xff]  }
0x2ff4   : > { %12645 = vmatpush3.bf16.msra.mxu0 %v7965_v48 }
0x2ff5   : > { %v7972_v36 = vpack.c.bf16 %v14483_v53, %v14482_v30  ;;  %v7964_v23 = vpack.c.bf16 %v14493_v33, %v14492_v22  ;;  %v15185_v30 = vld [vmem:[%s18266_s4] ss:$12 sps:$4 sm:$0xff]   ;;  %v15196_v33 = vld [vmem:[%s18266_s4 + $0x38] ss:$12 sps:$4 sm:$0xff]  }
0x2ff6   : > { %v14486_v38 = vpop.permute.xlu1 %14485  ;;  %v14496_v2 = vpop.permute.xlu0 %14495  ;;  %v15200_v22 = vld [vmem:[%s18266_s4 + $0x4c] ss:$12 sps:$4 sm:$0xff]  }
0x2ff7   : > { %v14488_v50 = vunpack.i.h.bf16 %v14486_v38  ;;  %v14487_v54 = vunpack.i.l.bf16 %v14486_v38  ;;  %12646 = vmatprep.subr.bf16.mxu0 %v7972_v36  ;;  %v14498_v6 = vunpack.i.h.bf16 %v14496_v2  ;;  %v14497_v47 = vunpack.i.l.bf16 %v14496_v2  ;;  %v15198_v36 = vld [vmem:[%s18266_s4 + $0x48] ss:$12 sps:$4 sm:$0xff]   ;;  %v8184_v38 = vld [vmem:[%s18356_s0] sm:$0xf]  ;;  %s18357_s0 = sld [smem:[#allocation16_spill]] }
0x2ff8   : > { %12647 = vmatpush3.bf16.msra.mxu0 %v7964_v23  ;;  %v8246_v23 = vsel %vm1667_vm8, %v8184_v38, 0 }
0x2ff9   : > { %v7971_v59 = vpack.c.bf16 %v14488_v50, %v14487_v54  ;;  %v7963_v14 = vpack.c.bf16 %v14498_v6, %v14497_v47 }
0x2ffa   : > { %v14501_v63 = vpop.permute.xlu1 %14500  ;;  %v14506_v49 = vpop.permute.xlu0 %14505 }
0x2ffb   : > { %v14503_v45 = vunpack.i.h.bf16 %v14501_v63  ;;  %v14502_v7 = vunpack.i.l.bf16 %v14501_v63  ;;  %12648 = vmatprep.subr.bf16.mxu0 %v7971_v59  ;;  %v14508_v20 = vunpack.i.h.bf16 %v14506_v49  ;;  %v14507_v43 = vunpack.i.l.bf16 %v14506_v49 }
0x2ffc   : > { %12649 = vmatpush3.bf16.msra.mxu0 %v7963_v14 }
0x2ffd   : > { %v7970_v60 = vpack.c.bf16 %v14503_v45, %v14502_v7  ;;  %v7962_v24 = vpack.c.bf16 %v14508_v20, %v14507_v43 }
0x2ffe   : > { %v14511_v18 = vpop.permute.xlu1 %14510  ;;  %v14516_v46 = vpop.permute.xlu0 %14515 }
0x2fff   : > { %v14513_v34 = vunpack.i.h.bf16 %v14511_v18  ;;  %v14512_v10 = vunpack.i.l.bf16 %v14511_v18  ;;  %12650 = vmatprep.subr.bf16.mxu0 %v7970_v60  ;;  %v14518_v8 = vunpack.i.h.bf16 %v14516_v46  ;;  %v14517_v5 = vunpack.i.l.bf16 %v14516_v46 }
0x3000   : > { %12651 = vmatpush3.bf16.msra.mxu0 %v7962_v24 }
0x3001   : > { %v7969_v4 = vpack.c.bf16 %v14513_v34, %v14512_v10  ;;  %v7968_v51 = vpack.c.bf16 %v14518_v8, %v14517_v5 }
0x3002   : > { %v14521_v56 = vpop.permute.xlu1 %14520  ;;  %v14526_v17 = vpop.permute.xlu0 %14525 }
0x3003   : > { %12652 = vmatprep.subr.bf16.mxu0 %v7969_v4  ;;  %v14523_v39 = vunpack.i.h.bf16 %v14521_v56  ;;  %v14522_v62 = vunpack.i.l.bf16 %v14521_v56  ;;  %v14528_v1 = vunpack.i.h.bf16 %v14526_v17  ;;  %v14527_v41 = vunpack.i.l.bf16 %v14526_v17 }
0x3004   : > { %12653 = vmatpush3.bf16.msk.msra.mxu0 %vm16293_vm5, %v12036_v55 }
0x3005   : > { %12654 = vmatprep.subr.bf16.mxu0 %v7968_v51  ;;  %v7967_v37 = vpack.c.bf16 %v14523_v39, %v14522_v62  ;;  %v7966_v53 = vpack.c.bf16 %v14528_v1, %v14527_v41 }
0x3006   : > { %v14531_v19 = vpop.permute.xlu1 %14530  ;;  %v14536_v52 = vpop.permute.xlu0 %14535 }
0x3007   : > { %v14533_v21 = vunpack.i.h.bf16 %v14531_v19  ;;  %v14532_v15 = vunpack.i.l.bf16 %v14531_v19  ;;  %v14538_v40 = vunpack.i.h.bf16 %v14536_v52  ;;  %v14537_v61 = vunpack.i.l.bf16 %v14536_v52 }
0x3008   : > { %12655 = vmatpush3.bf16.msk.msra.mxu0 %vm16293_vm5, %v12039_v26 }
0x3009   : > { %v7977_v12 = vpack.c.bf16 %v14533_v21, %v14532_v15  ;;  %12656 = vmatprep.subr.bf16.mxu0 %v7967_v37  ;;  %v7976_v42 = vpack.c.bf16 %v14538_v40, %v14537_v61 }
0x300a   : > { %v14541_v11 = vpop.permute.xlu1 %14540  ;;  %v14546_v48 = vpop.permute.xlu0 %14545 }
0x300b   : > { %v14543_v55 = vunpack.i.h.bf16 %v14541_v11  ;;  %v14542_v44 = vunpack.i.l.bf16 %v14541_v11  ;;  %13422 = vmatprep.subr.bf16.mxu1 %v7977_v12  ;;  %v14548_v58 = vunpack.i.h.bf16 %v14546_v48  ;;  %v14547_v29 = vunpack.i.l.bf16 %v14546_v48 }
0x300c   : > { %13423 = vmatpush3.bf16.msra.mxu1 %v7977_v12  ;;  %12657 = vmatpush3.bf16.msk.msra.mxu0 %vm16293_vm5, %v12042_v57  ;;  %v15192_v57 = vld [vmem:[%s18266_s4 + $0x20] ss:$12 sps:$4 sm:$0xff]  }
0x300d   : > { %13424 = vmatprep.subr.bf16.mxu1 %v7976_v42  ;;  %12658 = vmatprep.subr.bf16.mxu0 %v7966_v53  ;;  %v7975_v26 = vpack.c.bf16 %v14543_v55, %v14542_v44  ;;  %v7974_v28 = vpack.c.bf16 %v14548_v58, %v14547_v29  ;;  %v15201_v58 = vld [vmem:[%s18357_s0] sm:$0xff]  }
0x3010   : > { %13425 = vmatpush3.bf16.msra.mxu1 %v7976_v42  ;;  %12659 = vmatpush3.bf16.msk.msra.mxu0 %vm16293_vm5, %v12045_v16  ;;  %v15193_v16 = vld [vmem:[%s18266_s4 + $0x30] ss:$12 sps:$4 sm:$0xff]   ;;  %vm18359_vm5 = vcmask 48128  }
0x3011   : > { %13426 = vmatprep.subr.bf16.mxu1 %v7975_v26  ;;  %vm18360_vm7 = vmmov %vm18359_vm5 }
0x3012   : > { %vm18361_vm0 = vmmov %vm18359_vm5 }
0x3013   : > { %8083 = vmatmul.mubr.bf16.vlgmr.msra.gmra.mxu0 %v15185_v30  ;;  %vm18362_vm15 = vmmov %vm18361_vm0 }
0x3014   : > { %13427 = vmatpush3.bf16.msra.mxu1 %v7975_v26  ;;  %8090 = vmatprep.mubr.bf16.mxu0 %v15190_v35  ;;  %vm18363_vm12 = vmmov %vm18361_vm0 }
0x3015   : > { %13428 = vmatprep.subr.bf16.mxu1 %v7974_v28  ;;  %vm18364_vm3 = vmmov %vm18361_vm0 }
0x3017   : > { %v8231_v30 = vpop.permute.xlu0 %8230  ;;  %v8226_v35 = vpop.permute.xlu1 %8225 }
0x3018   : > { %13429 = vmatpush3.bf16.msra.mxu1 %v7974_v28 }
0x3019   : > { %13661 = vmatprep.subr.msk.bf16.mxu1 %vm1667_vm8, %v8184_v38 }
0x301b   : > { %13431 = vmatmul.mubr.msk.bf16.vlgmr.msra.gmra.mxu1 %vm1759_vm10, %v15192_v57  ;;  %8091 = vmatmul.mubr.bf16.gmra.mxu0 %v15188_v31  ;;  %v8221_v57 = vpop.permute.xlu0 %8220 }
0x301c   : > { %13434 = vmatprep.mubr.msk.bf16.mxu1 %vm1759_vm10, %v15196_v33  ;;  %8098 = vmatprep.mubr.bf16.mxu0 %v15195_v27  ;;  %v8216_v33 = vpop.permute.xlu1 %8215 }
0x301d   : > { %13439 = vmatpush3.bf16.msra.mxu1 %v8246_v23 }
0x3023   : > { %13435 = vmatmul.mubr.msk.bf16.gmra.mxu1 %vm1759_vm10, %v15197_v13  ;;  %8099 = vmatmul.mubr.bf16.gmra.mxu0 %v15193_v16 }
0x3024   : > { %8106 = vmatprep.mubr.bf16.mxu0 %v15200_v22  ;;  %v8211_v22 = vpop.permute.xlu0 %8210 }
0x302b   : > { %8107 = vmatmul.mubr.bf16.gmra.mxu0 %v15198_v36 }
0x30d3   : > { %v12660_v50 = vpop.f32.mrf.mxu0 }
0x30d5   : > { %v12661_v54 = vpop.f32.mrf.mxu0 }
0x30d6   : > { %v12662_v7 = vadd.f32 %v12661_v54, %v12660_v50  ;;  %v8206_v50 = vpop.permute.xlu1 %8205 }
0x30d7   : > { %v12663_v2 = vpop.f32.mrf.mxu0 }
0x30d9   : > { %v12664_v6 = vpop.f32.mrf.mxu0 }
0x30da   : > { %v12665_v49 = vadd.f32 %v12664_v6, %v12663_v2 }
0x30db   : > { %v13432_v47 = vpop.f32.mrf.mxu1  ;;  %v12666_v59 = vpop.f32.mrf.mxu0 }
0x30dd   : > { %v8149_v63 = vpop.f32.mrf.mxu1  ;;  %v12667_v14 = vpop.f32.mrf.mxu0 }
0x30de   : > { %v12668_v43 = vadd.f32 %v12667_v14, %v12666_v59  ;;  %v8150_v18 = vadd.f32 %v12662_v7, %v8149_v63  ;;  %v8201_v59 = vpop.permute.xlu0 %8200  ;;  %v8196_v14 = vpop.permute.xlu1 %8195 }
0x30df   : > { %v13433_v45 = vpop.f32.mrf.mxu1  ;;  %v12669_v20 = vpop.f32.mrf.mxu0 }
0x30e0   : > { %v8158_v4 = vadd.f32 %v13432_v47, %v12668_v43 }
0x30e1   : > { %v8152_v60 = vpop.f32.mrf.mxu1  ;;  %v12670_v24 = vpop.f32.mrf.mxu0 }
0x30e2   : > { %v8153_v34 = vadd.f32 %v12665_v49, %v8152_v60  ;;  %v12671_v10 = vadd.f32 %v12670_v24, %v12669_v20 }
0x30e3   : > { %v13436_v46 = vpop.f32.mrf.mxu1  ;;  %v12672_v5 = vpop.f32.mrf.mxu0 }
0x30e4   : > { %v8180_v8 = vpack.c.bf16 %v8153_v34, %v8150_v18  ;;  %v8161_v56 = vadd.f32 %v13433_v45, %v12671_v10 }
0x30e5   : > { %v8165_v17 = vpop.f32.mrf.mxu1  ;;  %v12673_v39 = vpop.f32.mrf.mxu0 }
0x30e6   : > { %13440 = vmatprep.mubr.msk.bf16.mxu1 %vm1880_vm13, %v8180_v8  ;;  %v8181_v62 = vpack.c.bf16 %v8161_v56, %v8158_v4  ;;  %v12674_v19 = vadd.f32 %v12673_v39, %v12672_v5  ;;  %v15202_v4 = vld [vmem:[%s18357_s0 + $0x8] sm:$0xff]   ;;  %v15203_v56 = vld [vmem:[%s18357_s0 + $0x10] sm:$0xff]   ;;  %v15205_v39 = vld [vmem:[%s18358_s1] sm:$0xff]  }
0x30e7   : > { %v13437_v51 = vpop.f32.mrf.mxu1  ;;  %v12675_v0 = vpop.f32.mrf.mxu0  ;;  %13472 = vmatprep.mubr.msk.bf16.mxu0 %vm1759_vm10, %v15205_v39 }
0x30e8   : > { %13441 = vmatmul.mubr.msk.bf16.vlgmr.msra.gmra.mxu1 %vm1880_vm13, %v8181_v62  ;;  %v8166_v52 = vadd.f32 %v12674_v19, %v8165_v17  ;;  %v15204_v17 = vld [vmem:[%s18357_s0 + $0x18] sm:$0xff]   ;;  %v8374_v19 = vpop.permute.xlu1 %8373  ;;  %s18372_s0 = sld [smem:[#allocation20_spill]] }
0x30e9   : > { %v12676_v21 = vpop.f32.mrf.mxu0  ;;  %v8168_v15 = vpop.f32.mrf.mxu1 }
0x30ea   : > { %v12677_v1 = vadd.f32 %v12676_v21, %v12675_v0 }
0x30eb   : > { %v12678_v41 = vpop.f32.mrf.mxu0 }
0x30ec   : > { %v8169_v37 = vadd.f32 %v12677_v1, %v8168_v15 }
0x30ed   : > { %v12679_v40 = vpop.f32.mrf.mxu0 }
0x30ee   : > { %v8182_v61 = vpack.c.bf16 %v8169_v37, %v8166_v52  ;;  %v12680_v11 = vadd.f32 %v12679_v40, %v12678_v41  ;;  %v8364_v52 = vpop.permute.xlu1 %8363 }
0x30ef   : > { %v12681_v12 = vpop.f32.mrf.mxu0 }
0x30f0   : > { %13444 = vmatprep.mubr.msk.bf16.mxu1 %vm1880_vm13, %v8182_v61  ;;  %v8174_v42 = vadd.f32 %v13436_v46, %v12680_v11 }
0x30f1   : > { %v12682_v55 = vpop.f32.mrf.mxu0 }
0x30f2   : > { %v12683_v44 = vadd.f32 %v12682_v55, %v12681_v12 }
0x30f4   : > { %v8177_v48 = vadd.f32 %v13437_v51, %v12683_v44  ;;  %v8379_v51 = vpop.permute.xlu0 %8378 }
0x30f6   : > { %v8183_v53 = vpack.c.bf16 %v8177_v48, %v8174_v42 }
0x30f8   : > { %13445 = vmatmul.mubr.msk.bf16.gmra.mxu1 %vm1880_vm13, %v8183_v53  ;;  %v8369_v1 = vpop.permute.xlu0 %8368  ;;  %v8354_v53 = vpop.permute.xlu1 %8353 }
0x30f9   : > { %13456 = vmatprep.mubr.msk.bf16.mxu1 %vm1759_vm10, %v15201_v58 }
0x30fc   : > { %v8359_v11 = vpop.permute.xlu0 %8358 }
0x31a8   : > { %v13442_v29 = vpop.f32.mrf.mxu1 }
0x31a9   : > { %v8291_v47 = vadd.f32 %v13442_v29, %v8206_v50 }
0x31aa   : > { %v8282_v26 = vpop.f32.mrf.mxu1 }
0x31ab   : > { %v8283_v45 = vadd.f32 %v8282_v26, %v8196_v14 }
0x31ac   : > { %v13443_v28 = vpop.f32.mrf.mxu1 }
0x31ad   : > { %v8294_v2 = vadd.f32 %v13443_v28, %v8211_v22  ;;  %v15209_v22 = vld [vmem:[%s18358_s1 + $0x20] sm:$0xff]  }
0x31ae   : > { %v8285_v31 = vpop.f32.mrf.mxu1 }
0x31af   : > { %v8286_v63 = vadd.f32 %v8285_v31, %v8201_v59 }
0x31b8   : > { %v13446_v27 = vpop.f32.mrf.mxu1 }
0x31b9   : > { %v8307_v13 = vadd.f32 %v13446_v27, %v8226_v35  ;;  %v15206_v27 = vld [vmem:[%s18358_s1 + $0x8] sm:$0xff]  }
0x31ba   : > { %v8298_v16 = vpop.f32.mrf.mxu1 }
0x31bb   : > { %v8299_v36 = vadd.f32 %v8298_v16, %v8216_v33  ;;  %15513 = vtanh.f32 %v8307_v13  ;;  %v15207_v13 = vld [vmem:[%s18358_s1 + $0x10] sm:$0xff]   ;;  %v15208_v16 = vld [vmem:[%s18358_s1 + $0x18] sm:$0xff]  }
0x31bc   : > { %v13447_v38 = vpop.f32.mrf.mxu1 }
0x31bd   : > { %v8310_v23 = vadd.f32 %v13447_v38, %v8231_v30  ;;  %v8349_v30 = vpop.permute.xlu0 %8348  ;;  %v15211_v38 = vld [vmem:[%s18358_s1 + $0x30] sm:$0xff]  }
0x31be   : > { %v8301_v54 = vpop.f32.mrf.mxu1 }
0x31bf   : > { %15515 = vtanh.f32 %v8310_v23  ;;  %v8302_v6 = vadd.f32 %v8301_v54, %v8221_v57  ;;  %v8344_v57 = vpop.permute.xlu1 %8343  ;;  %v15212_v23 = vld [vmem:[%s18358_s1 + $0x38] sm:$0xff]  }
0x31c0   : > { %15517 = vtanh.f32 %v8299_v36  ;;  %v15210_v36 = vld [vmem:[%s18358_s1 + $0x28] sm:$0xff]   ;;  %s18374_s1 = sld [smem:[#allocation21_spill]] }
0x31c1   : > { %15519 = vtanh.f32 %v8302_v6  ;;  %v8592_v50 = vpop.permute.xlu0 %8591 }
0x31c2   : > { %15521 = vtanh.f32 %v8294_v2 }
0x31c3   : > { %15523 = vtanh.f32 %v8291_v47  ;;  %v8587_v54 = vpop.permute.xlu1 %8586 }
0x31c4   : > { %15525 = vtanh.f32 %v8286_v63 }
0x31c5   : > { %15527 = vtanh.f32 %v8283_v45  ;;  %v8582_v6 = vpop.permute.xlu0 %8581 }
0x31c7   : > { %v8577_v59 = vpop.permute.xlu1 %8576 }
0x31c8   : > { %v15514_v7 = vpop.eup %15513 }
0x31c9   : > { %v8572_v45 = vpop.permute.xlu0 %8571 }
0x31cc   : > { %v15516_v49 = vpop.eup %15515 }
0x31cd   : > { %v15518_v20 = vpop.eup %15517  ;;  %v8332_v43 = vpack.c.bf16 %v15516_v49, %v15514_v7  ;;  %v8567_v49 = vpop.permute.xlu1 %8566 }
0x31ce   : > { %v15520_v60 = vpop.eup %15519 }
0x31cf   : > { %13448 = vmatprep.subr.bf16.mxu1 %v8332_v43  ;;  %v8331_v18 = vpack.c.bf16 %v15520_v60, %v15518_v20  ;;  %v15522_v24 = vpop.eup %15521  ;;  %v8562_v60 = vpop.permute.xlu0 %8561 }
0x31d0   : > { %13449 = vmatpush3.bf16.msra.mxu1 %v8332_v43  ;;  %v15524_v34 = vpop.eup %15523 }
0x31d1   : > { %13450 = vmatprep.subr.bf16.mxu1 %v8331_v18  ;;  %v8330_v10 = vpack.c.bf16 %v15522_v24, %v15524_v34  ;;  %v15526_v46 = vpop.eup %15525  ;;  %v8557_v24 = vpop.permute.xlu1 %8556 }
0x31d2   : > { %v15528_v8 = vpop.eup %15527 }
0x31d3   : > { %v8329_v5 = vpack.c.bf16 %v15526_v46, %v15528_v8  ;;  %v8552_v46 = vpop.permute.xlu0 %8551 }
0x31d4   : > { %13451 = vmatpush3.bf16.msra.mxu1 %v8331_v18 }
0x31d5   : > { %13452 = vmatprep.subr.bf16.mxu1 %v8330_v10 }
0x31d7   : > { %v8542_v39 = vpop.permute.xlu0 %8541 }
0x31d8   : > { %13453 = vmatpush3.bf16.msra.mxu1 %v8330_v10 }
0x31d9   : > { %13454 = vmatprep.subr.bf16.mxu1 %v8329_v5 }
0x31dc   : > { %13455 = vmatpush3.bf16.msra.mxu1 %v8329_v5  ;;  %v8547_v5 = vpop.permute.xlu1 %8546 }
0x31df   : > { %13457 = vmatmul.mubr.msk.bf16.vlgmr.msra.gmra.mxu1 %vm1759_vm10, %v15202_v4 }
0x31e0   : > { %13460 = vmatprep.mubr.msk.bf16.mxu1 %vm1759_vm10, %v15203_v56 }
0x31e7   : > { %13461 = vmatmul.mubr.msk.bf16.gmra.mxu1 %vm1759_vm10, %v15204_v17 }
0x329f   : > { %v13458_v62 = vpop.f32.mrf.mxu1 }
0x32a0   : > { %v8456_v26 = vadd.f32 %v13458_v62, %v8354_v53 }
0x32a1   : > { %v8447_v0 = vpop.f32.mrf.mxu1 }
0x32a2   : > { %v8448_v31 = vadd.f32 %v8447_v0, %v8344_v57  ;;  %v8537_v0 = vpop.permute.xlu1 %8536 }
0x32a3   : > { %v13459_v21 = vpop.f32.mrf.mxu1 }
0x32a4   : > { %v8459_v58 = vadd.f32 %v13459_v21, %v8359_v11 }
0x32a5   : > { %v8450_v15 = vpop.f32.mrf.mxu1 }
0x32a6   : > { %v8495_v35 = vpack.c.bf16 %v8459_v58, %v8456_v26  ;;  %v8451_v28 = vadd.f32 %v8450_v15, %v8349_v30  ;;  %v8527_v11 = vpop.permute.xlu1 %8526 }
0x32a7   : > { %v13462_v41 = vpop.f32.mrf.mxu1 }
0x32a8   : > { %v8472_v61 = vadd.f32 %v13462_v41, %v8374_v19  ;;  %v8494_v33 = vpack.c.bf16 %v8451_v28, %v8448_v31 }
0x32a9   : > { %v8463_v37 = vpop.f32.mrf.mxu1 }
0x32aa   : > { %v8464_v44 = vadd.f32 %v8463_v37, %v8364_v52  ;;  %v8517_v26 = vpop.permute.xlu1 %8516 }
0x32ab   : > { %v13463_v40 = vpop.f32.mrf.mxu1 }
0x32ac   : > { %v8475_v12 = vadd.f32 %v13463_v40, %v8379_v51  ;;  %v8532_v40 = vpop.permute.xlu0 %8531 }
0x32ad   : > { %v8466_v55 = vpop.f32.mrf.mxu1 }
0x32ae   : > { %v8497_v42 = vpack.c.bf16 %v8475_v12, %v8472_v61  ;;  %v8467_v48 = vadd.f32 %v8466_v55, %v8369_v1 }
0x32b0   : > { %v8496_v29 = vpack.c.bf16 %v8467_v48, %v8464_v44  ;;  %13464 = vmatprep.subr.bf16.mxu0 %v8497_v42  ;;  %v8522_v53 = vpop.permute.xlu0 %8521 }
0x32b1   : > { %13465 = vmatpush3.bf16.msra.mxu0 %v8497_v42 }
0x32b2   : > { %13466 = vmatprep.subr.bf16.mxu0 %v8496_v29 }
0x32b5   : > { %13467 = vmatpush3.bf16.msra.mxu0 %v8496_v29 }
0x32b6   : > { %13468 = vmatprep.subr.bf16.mxu0 %v8495_v35 }
0x32b9   : > { %13469 = vmatpush3.bf16.msra.mxu0 %v8495_v35 }
0x32ba   : > { %13470 = vmatprep.subr.bf16.mxu0 %v8494_v33 }
0x32bd   : > { %13471 = vmatpush3.bf16.msra.mxu0 %v8494_v33 }
0x32c0   : > { %13473 = vmatmul.mubr.msk.bf16.vlgmr.msra.gmra.mxu0 %vm1759_vm10, %v15206_v27 }
0x32c1   : > { %13476 = vmatprep.mubr.msk.bf16.mxu0 %vm1759_vm10, %v15207_v13 }
0x32c8   : > { %13477 = vmatmul.mubr.msk.bf16.gmra.mxu0 %vm1759_vm10, %v15208_v16 }
0x32c9   : > { %13480 = vmatprep.mubr.msk.bf16.mxu0 %vm1759_vm10, %v15209_v22 }
0x32d0   : > { %13481 = vmatmul.mubr.msk.bf16.gmra.mxu0 %vm1759_vm10, %v15210_v36 }
0x32d1   : > { %13484 = vmatprep.mubr.msk.bf16.mxu0 %vm1759_vm10, %v15211_v38 }
0x32d8   : > { %13485 = vmatmul.mubr.msk.bf16.gmra.mxu0 %vm1759_vm10, %v15212_v23 }
0x3380   : > { %v13474_v2 = vpop.f32.mrf.mxu0 }
0x3381   : > { %v8701_v58 = vadd.f32 %v13474_v2, %v8527_v11 }
0x3382   : > { %v8692_v47 = vpop.f32.mrf.mxu0 }
0x3383   : > { %v8693_v30 = vadd.f32 %v8692_v47, %v8517_v26 }
0x3384   : > { %v13475_v63 = vpop.f32.mrf.mxu0 }
0x3385   : > { %v8704_v42 = vadd.f32 %v13475_v63, %v8532_v40 }
0x3386   : > { %v8695_v14 = vpop.f32.mrf.mxu0 }
0x3387   : > { %v8696_v29 = vadd.f32 %v8695_v14, %v8522_v53 }
0x3388   : > { %v13478_v7 = vpop.f32.mrf.mxu0 }
0x3389   : > { %v8717_v55 = vadd.f32 %v13478_v7, %v8547_v5 }
0x338a   : > { %v8708_v20 = vpop.f32.mrf.mxu0 }
0x338b   : > { %v8709_v48 = vadd.f32 %v8708_v20, %v8537_v0 }
0x338c   : > { %v13479_v43 = vpop.f32.mrf.mxu0 }
0x338d   : > { %v8720_v61 = vadd.f32 %v13479_v43, %v8552_v46 }
0x338e   : > { %v8711_v18 = vpop.f32.mrf.mxu0 }
0x338f   : > { %v8712_v44 = vadd.f32 %v8711_v18, %v8542_v39 }
0x3390   : > { %v13482_v34 = vpop.f32.mrf.mxu0 }
0x3391   : > { %v8733_v1 = vadd.f32 %v13482_v34, %v8567_v49 }
0x3392   : > { %v8724_v10 = vpop.f32.mrf.mxu0 }
0x3393   : > { %v8725_v12 = vadd.f32 %v8724_v10, %v8557_v24 }
0x3394   : > { %v13483_v8 = vpop.f32.mrf.mxu0 }
0x3395   : > { %v8736_v17 = vadd.f32 %v13483_v8, %v8572_v45 }
0x3396   : > { %v8727_v4 = vpop.f32.mrf.mxu0 }
0x3397   : > { %15529 = vtanh.f32 %v8736_v17  ;;  %v8728_v52 = vadd.f32 %v8727_v4, %v8562_v60 }
0x3398   : > { %v13486_v56 = vpop.f32.mrf.mxu0 }
0x3399   : > { %v8749_v62 = vadd.f32 %v13486_v56, %v8587_v54 }
0x339a   : > { %v8740_v51 = vpop.f32.mrf.mxu0 }
0x339b   : > { %v8741_v19 = vadd.f32 %v8740_v51, %v8577_v59  ;;  %15531 = vtanh.f32 %v8749_v62 }
0x339c   : > { %v13487_v21 = vpop.f32.mrf.mxu0 }
0x339d   : > { %v8752_v15 = vadd.f32 %v13487_v21, %v8592_v50 }
0x339e   : > { %v8743_v41 = vpop.f32.mrf.mxu0 }
0x339f   : > { %15533 = vtanh.f32 %v8752_v15  ;;  %v8744_v37 = vadd.f32 %v8743_v41, %v8582_v6 }
0x33a0   : > { %15535 = vtanh.f32 %v8741_v19 }
0x33a1   : > { %15537 = vtanh.f32 %v8744_v37 }
0x33a2   : > { %15539 = vtanh.f32 %v8733_v1 }
0x33a3   : > { %15541 = vtanh.f32 %v8728_v52 }
0x33a4   : > { %15543 = vtanh.f32 %v8720_v61  ;;  %v15530_v35 = vpop.eup %15529 }
0x33a5   : > { %15545 = vtanh.f32 %v8725_v12 }
0x33a6   : > { %15547 = vtanh.f32 %v8717_v55 }
0x33a7   : > { %15549 = vtanh.f32 %v8712_v44 }
0x33a8   : > { %15551 = vtanh.f32 %v8704_v42  ;;  %v15532_v28 = vpop.eup %15531 }
0x33a9   : > { %15553 = vtanh.f32 %v8709_v48 }
0x33aa   : > { %15555 = vtanh.f32 %v8701_v58 }
0x33ab   : > { %15557 = vtanh.f32 %v8696_v29 }
0x33ac   : > { %v15534_v57 = vpop.eup %15533  ;;  %15559 = vtanh.f32 %v8693_v30 }
0x33ad   : > { %v15536_v31 = vpop.eup %15535  ;;  %v14549_v33 = vpack.i.bf16 %v15534_v57, %v15532_v28 }
0x33ae   : > { %v15538_v27 = vpop.eup %15537 }
0x33af   : > { %v15540_v13 = vpop.eup %15539  ;;  %14550 = vrot.lane.b32.xlu1 %v14549_v33, %s18263_s23  ;;  %v14554_v16 = vpack.i.bf16 %v15538_v27, %v15536_v31 }
0x33b0   : > { %v15542_v22 = vpop.eup %15541  ;;  %v14559_v38 = vpack.i.bf16 %v15530_v35, %v15540_v13 }
0x33b1   : > { %v15544_v36 = vpop.eup %15543  ;;  %14555 = vrot.lane.b32.xlu0 %v14554_v16, %s18263_s23 }
0x33b2   : > { %v15546_v23 = vpop.eup %15545 }
0x33b3   : > { %v15548_v50 = vpop.eup %15547  ;;  %14560 = vrot.lane.b32.xlu1 %v14559_v38, %s18263_s23  ;;  %v14564_v54 = vpack.i.bf16 %v15542_v22, %v15546_v23 }
0x33b4   : > { %v15550_v2 = vpop.eup %15549  ;;  %v14569_v47 = vpack.i.bf16 %v15544_v36, %v15548_v50 }
0x33b5   : > { %v15552_v6 = vpop.eup %15551  ;;  %14565 = vrot.lane.b32.xlu0 %v14564_v54, %s18263_s23 }
0x33b6   : > { %v15554_v59 = vpop.eup %15553 }
0x33b7   : > { %v15556_v63 = vpop.eup %15555  ;;  %14570 = vrot.lane.b32.xlu1 %v14569_v47, %s18263_s23  ;;  %v14574_v14 = vpack.i.bf16 %v15550_v2, %v15554_v59 }
0x33b8   : > { %v15558_v45 = vpop.eup %15557  ;;  %v14579_v7 = vpack.i.bf16 %v15552_v6, %v15556_v63 }
0x33b9   : > { %14575 = vrot.lane.b32.xlu0 %v14574_v14, %s18263_s23  ;;  %v15560_v49 = vpop.eup %15559 }
0x33ba   : > { %v14584_v20 = vpack.i.bf16 %v15558_v45, %v15560_v49 }
0x33bb   : > { %14580 = vrot.lane.b32.xlu1 %v14579_v7, %s18263_s23 }
0x33bd   : > { %14585 = vrot.lane.b32.xlu0 %v14584_v20, %s18263_s23 }
0x3421   : > { %v14551_v43 = vpop.permute.xlu1 %14550 }
0x3422   : > { %v14553_v60 = vunpack.i.h.bf16 %v14551_v43  ;;  %v14552_v18 = vunpack.i.l.bf16 %v14551_v43 }
0x3423   : > { %v14556_v24 = vpop.permute.xlu0 %14555 }
0x3424   : > { %v17407_v34 = vsel %vm1644_vm4, 0.0, %v14553_v60  ;;  %v17410_v10 = vsel %vm1644_vm4, 0.0, %v14552_v18  ;;  %v14558_v46 = vunpack.i.h.bf16 %v14556_v24  ;;  %v14557_v8 = vunpack.i.l.bf16 %v14556_v24 }
0x3425   : > { %v8866_v5 = vsel %vm18359_vm5, %v17407_v34, 0.0  ;;  %v8865_v4 = vsel %vm18360_vm7, %v17410_v10, 0.0  ;;  %v12120_v56 = vpack.c.bf16 %v17407_v34, %v17410_v10  ;;  %v14561_v17 = vpop.permute.xlu1 %14560  ;;  %vm18365_vm5 = vmmov %vm18361_vm0 }
0x3426   : > { %v17419_v39 = vsel %vm1644_vm4, 0.0, %v14558_v46  ;;  %v17422_v62 = vsel %vm1644_vm4, 0.0, %v14557_v8  ;;  %v14563_v51 = vunpack.i.h.bf16 %v14561_v17  ;;  %v14562_v0 = vunpack.i.l.bf16 %v14561_v17  ;;  %vm18366_vm7 = vmmov %vm18361_vm0 }
0x3427   : > { %v8864_v19 = vsel %vm18361_vm0, %v17419_v39, 0.0  ;;  %v8863_v21 = vsel %vm18362_vm15, %v17422_v62, 0.0  ;;  %v12123_v15 = vpack.c.bf16 %v17419_v39, %v17422_v62  ;;  %v14566_v1 = vpop.permute.xlu0 %14565  ;;  %v17430_v41 = vpack.i.bf16 %v8866_v5, %v8865_v4  ;;  %vm18367_vm15 = vmmov %vm18361_vm0 }
0x3428   : > { %v17433_v52 = vsel %vm1644_vm4, 0.0, %v14563_v51  ;;  %v17436_v37 = vsel %vm1644_vm4, 0.0, %v14562_v0  ;;  %v14568_v40 = vunpack.i.h.bf16 %v14566_v1  ;;  %v14567_v61 = vunpack.i.l.bf16 %v14566_v1  ;;  %v15224_v1 = vld [vmem:[%s18372_s0 + $0xc] ss:$20 sps:$4 sm:$0xff]  }
0x3429   : > { %v8862_v12 = vsel %vm18363_vm12, %v17433_v52, 0.0  ;;  %v8861_v11 = vsel %vm18364_vm3, %v17436_v37, 0.0  ;;  %v12126_v55 = vpack.c.bf16 %v17433_v52, %v17436_v37  ;;  %14590 = vrot.lane.b32.xlu1 %v17430_v41, %s18265_s7  ;;  %v14571_v44 = vpop.permute.xlu1 %14570  ;;  %v17446_v42 = vpack.i.bf16 %v8864_v19, %v8863_v21  ;;  %vm18368_vm12 = vmmov %vm18361_vm0  ;;  %v15215_v21 = vld [vmem:[%s18372_s0 + $0x4] ss:$20 sps:$4 sm:$0xff]   ;;  %9500 = vmatprep.mubr.bf16.mxu0 %v15224_v1 }
0x342a   : > { %v17449_v48 = vsel %vm1644_vm4, 0.0, %v14568_v40  ;;  %v17452_v53 = vsel %vm1644_vm4, 0.0, %v14567_v61  ;;  %v14573_v58 = vunpack.i.h.bf16 %v14571_v44  ;;  %v14572_v29 = vunpack.i.l.bf16 %v14571_v44  ;;  %vm18369_vm3 = vmmov %vm18361_vm0  ;;  %9403 = vmatprep.mubr.bf16.mxu1 %v15215_v21  ;;  %v9685_v40 = vld [vmem:[%s18374_s1 + $0x70] sm:$0xff]  ;;  %v9683_v61 = vld [vmem:[%s18374_s1 + $0x60] sm:$0xff] }
0x342b   : > { %v8860_v26 = vsel %vm18365_vm5, %v17449_v48, 0.0  ;;  %v8859_v30 = vsel %vm18366_vm7, %v17452_v53, 0.0  ;;  %v12129_v35 = vpack.c.bf16 %v17449_v48, %v17452_v53  ;;  %14595 = vrot.lane.b32.xlu0 %v17446_v42, %s18265_s7  ;;  %v14576_v28 = vpop.permute.xlu0 %14575  ;;  %v14599_v57 = vpack.i.bf16 %v8862_v12, %v8861_v11  ;;  %vm18370_vm5 = vmmov %vm18361_vm0  ;;  %v9684_v12 = vld [vmem:[%s18374_s1 + $0x68] sm:$0xff]  ;;  %v9681_v11 = vld [vmem:[%s18374_s1 + $0x50] sm:$0xff] }
0x342c   : > { %v17463_v31 = vsel %vm1644_vm4, 0.0, %v14573_v58  ;;  %v17466_v33 = vsel %vm1644_vm4, 0.0, %v14572_v29  ;;  %v14578_v27 = vunpack.i.h.bf16 %v14576_v28  ;;  %v14577_v13 = vunpack.i.l.bf16 %v14576_v28  ;;  %vm18371_vm7 = vmmov %vm18361_vm0  ;;  %v9682_v44 = vld [vmem:[%s18374_s1 + $0x58] sm:$0xff]  ;;  %v9680_v58 = vld [vmem:[%s18374_s1 + $0x48] sm:$0xff] }
0x342d   : > { %v8858_v16 = vsel %vm18361_vm0, %v17463_v31, 0.0  ;;  %v8857_v22 = vsel %vm18367_vm15, %v17466_v33, 0.0  ;;  %v12132_v36 = vpack.c.bf16 %v17463_v31, %v17466_v33  ;;  %14600 = vrot.lane.b32.xlu1 %v14599_v57, %s18265_s7  ;;  %v14581_v38 = vpop.permute.xlu1 %14580  ;;  %v14604_v23 = vpack.i.bf16 %v8860_v26, %v8859_v30  ;;  %vm18373_vm15 = vmmov %vm18361_vm0  ;;  %v9677_v29 = vld [vmem:[%s18374_s1 + $0x30] sm:$0xff]  ;;  %v9678_v26 = vld [vmem:[%s18374_s1 + $0x38] sm:$0xff] }
0x342e   : > { %v17476_v50 = vsel %vm1644_vm4, 0.0, %v14578_v27  ;;  %v17479_v54 = vsel %vm1644_vm4, 0.0, %v14577_v13  ;;  %v14583_v2 = vunpack.i.h.bf16 %v14581_v38  ;;  %v14582_v6 = vunpack.i.l.bf16 %v14581_v38  ;;  %v9675_v30 = vld [vmem:[%s18374_s1 + $0x20] sm:$0xff]  ;;  %v9676_v28 = vld [vmem:[%s18374_s1 + $0x28] sm:$0xff]  ;;  %v9674_v27 = vld [vmem:[%s18374_s1 + $0x18] sm:$0xff] }
0x342f   : > { %v8856_v47 = vsel %vm18368_vm12, %v17476_v50, 0.0  ;;  %v8855_v59 = vsel %vm18369_vm3, %v17479_v54, 0.0  ;;  %v12135_v63 = vpack.c.bf16 %v17476_v50, %v17479_v54  ;;  %14605 = vrot.lane.b32.xlu0 %v14604_v23, %s18265_s7  ;;  %v14586_v14 = vpop.permute.xlu0 %14585  ;;  %v14609_v45 = vpack.i.bf16 %v8858_v16, %v8857_v22  ;;  %v9671_v13 = vld [vmem:[%s18374_s1] sm:$0xff]  ;;  %v9672_v16 = vld [vmem:[%s18374_s1 + $0x8] sm:$0xff] }
0x3430   : > { %v17489_v7 = vsel %vm1644_vm4, 0.0, %v14583_v2  ;;  %v17492_v49 = vsel %vm1644_vm4, 0.0, %v14582_v6  ;;  %v14588_v20 = vunpack.i.h.bf16 %v14586_v14  ;;  %v14587_v43 = vunpack.i.l.bf16 %v14586_v14  ;;  %v9927_v22 = vld [vmem:[%s18375_s2] sm:$0xff]  ;;  %v9928_v38 = vld [vmem:[%s18375_s2 + $0x8] sm:$0xff]  ;;  %v9930_v2 = vld [vmem:[%s18375_s2 + $0x18] sm:$0xff] }
0x3431   : > { %v8854_v60 = vsel %vm18370_vm5, %v17489_v7, 0.0  ;;  %v8853_v18 = vsel %vm18371_vm7, %v17492_v49, 0.0  ;;  %v12138_v24 = vpack.c.bf16 %v17489_v7, %v17492_v49  ;;  %14610 = vrot.lane.b32.xlu1 %v14609_v45, %s18265_s7  ;;  %v14614_v46 = vpack.i.bf16 %v8856_v47, %v8855_v59  ;;  %v9931_v6 = vld [vmem:[%s18375_s2 + $0x20] sm:$0xff]  ;;  %v9932_v47 = vld [vmem:[%s18375_s2 + $0x28] sm:$0xff]  ;;  %v9933_v59 = vld [vmem:[%s18375_s2 + $0x30] sm:$0xff] }
0x3432   : > { %v17502_v8 = vsel %vm1644_vm4, 0.0, %v14588_v20  ;;  %v17505_v5 = vsel %vm1644_vm4, 0.0, %v14587_v43  ;;  %v14619_v4 = vpack.i.bf16 %v8854_v60, %v8853_v18  ;;  %v9934_v14 = vld [vmem:[%s18375_s2 + $0x38] sm:$0xff]  ;;  %v9936_v20 = vld [vmem:[%s18375_s2 + $0x48] sm:$0xff]  ;;  %v9937_v43 = vld [vmem:[%s18375_s2 + $0x50] sm:$0xff] }
0x3433   : > { %v8852_v17 = vsel %vm18361_vm0, %v17502_v8, 0.0  ;;  %v8851_v51 = vsel %vm18373_vm15, %v17505_v5, 0.0  ;;  %v12141_v0 = vpack.c.bf16 %v17502_v8, %v17505_v5  ;;  %14615 = vrot.lane.b32.xlu0 %v14614_v46, %s18265_s7  ;;  %v15218_v7 = vld [vmem:[%s18372_s0 + $0x2c] ss:$20 sps:$4 sm:$0xff]  }
0x3434   : > { %v14624_v19 = vpack.i.bf16 %v8852_v17, %v8851_v51 }
0x3435   : > { %14620 = vrot.lane.b32.xlu1 %v14619_v4, %s18265_s7 }
0x3437   : > { %14625 = vrot.lane.b32.xlu0 %v14624_v19, %s18265_s7 }
0x3439   : > { %14630 = vrot.lane.b32.xlu1 %v17430_v41, %s18264_s5 }
0x343b   : > { %14635 = vrot.lane.b32.xlu0 %v17430_v41, %s18268_s30 }
0x343d   : > { %14640 = vrot.lane.b32.xlu1 %v17446_v42, %s18264_s5 }
0x343f   : > { %14650 = vrot.lane.b32.xlu0 %v17446_v42, %s18268_s30 }
0x3441   : > { %14645 = vrot.lane.b32.xlu1 %v14599_v57, %s18264_s5 }
0x3443   : > { %14655 = vrot.lane.b32.xlu0 %v14599_v57, %s18268_s30 }
0x3445   : > { %14660 = vrot.lane.b32.xlu1 %v14604_v23, %s18264_s5 }
0x3447   : > { %14665 = vrot.lane.b32.xlu0 %v14604_v23, %s18268_s30 }
0x3449   : > { %14670 = vrot.lane.b32.xlu1 %v14609_v45, %s18264_s5 }
0x344b   : > { %14675 = vrot.lane.b32.xlu0 %v14609_v45, %s18268_s30 }
0x344d   : > { %14680 = vrot.lane.b32.xlu1 %v14614_v46, %s18264_s5 }
0x344f   : > { %14685 = vrot.lane.b32.xlu0 %v14614_v46, %s18268_s30 }
0x3451   : > { %14690 = vrot.lane.b32.xlu1 %v14619_v4, %s18264_s5 }
0x3453   : > { %14695 = vrot.lane.b32.xlu0 %v14619_v4, %s18268_s30 }
0x3455   : > { %14700 = vrot.lane.b32.xlu1 %v14624_v19, %s18264_s5 }
0x3457   : > { %14705 = vrot.lane.b32.xlu0 %v14624_v19, %s18268_s30 }
0x3459   : > { %14710 = vrot.lane.b32.xlu1 %v17430_v41, %s18269_s26  ;;  %v9686_v41 = vld [vmem:[%s18374_s1 + $0x78] sm:$0xff] }
0x345b   : > { %14715 = vrot.lane.b32.xlu0 %v17446_v42, %s18269_s26  ;;  %v9679_v42 = vld [vmem:[%s18374_s1 + $0x40] sm:$0xff] }
0x345d   : > { %14720 = vrot.lane.b32.xlu1 %v14599_v57, %s18269_s26  ;;  %v9673_v57 = vld [vmem:[%s18374_s1 + $0x10] sm:$0xff]  ;;  %s18377_s1 = sld [smem:[#allocation22_spill]] }
0x345f   : > { %14725 = vrot.lane.b32.xlu0 %v14604_v23, %s18269_s26  ;;  %v9929_v23 = vld [vmem:[%s18375_s2 + $0x10] sm:$0xff] }
0x3461   : > { %14730 = vrot.lane.b32.xlu1 %v14609_v45, %s18269_s26  ;;  %v9935_v45 = vld [vmem:[%s18375_s2 + $0x40] sm:$0xff] }
0x3463   : > { %14735 = vrot.lane.b32.xlu0 %v14614_v46, %s18269_s26 }
0x3465   : > { %14740 = vrot.lane.b32.xlu1 %v14619_v4, %s18269_s26  ;;  %v9938_v4 = vld [vmem:[%s18375_s2 + $0x58] sm:$0xff] }
0x3467   : > { %14745 = vrot.lane.b32.xlu0 %v14624_v19, %s18269_s26 }
0x3469   : > { %9759 = vperm.xlu1 %13738, %v9685_v40  }
0x346b   : > { %9764 = vperm.xlu0 %13737, %v9686_v41  }
0x346d   : > { %9749 = vperm.xlu1 %13738, %v9683_v61  }
0x346f   : > { %9754 = vperm.xlu0 %13737, %v9684_v12  }
0x3471   : > { %9739 = vperm.xlu1 %13738, %v9681_v11  }
0x3473   : > { %9744 = vperm.xlu0 %13737, %v9682_v44  }
0x3475   : > { %9729 = vperm.xlu1 %13738, %v9679_v42  }
0x3477   : > { %9734 = vperm.xlu0 %13737, %v9680_v58  }
0x3479   : > { %9719 = vperm.xlu1 %13738, %v9677_v29  }
0x347b   : > { %9724 = vperm.xlu0 %13737, %v9678_v26  }
0x347d   : > { %9709 = vperm.xlu1 %13738, %v9675_v30  }
0x347f   : > { %9714 = vperm.xlu0 %13737, %v9676_v28  }
0x3481   : > { %9699 = vperm.xlu1 %13738, %v9673_v57  }
0x3483   : > { %9704 = vperm.xlu0 %13737, %v9674_v27  }
0x3485   : > { %9689 = vperm.xlu1 %13738, %v9671_v13  }
0x3487   : > { %9694 = vperm.xlu0 %13737, %v9672_v16  }
0x3489   : > { %9941 = vperm.xlu1 %13738, %v9927_v22  }
0x348b   : > { %9946 = vperm.xlu0 %13737, %v9928_v38  }
0x348d   : > { %9951 = vperm.xlu1 %13738, %v9929_v23  }
0x348f   : > { %9956 = vperm.xlu0 %13737, %v9930_v2  }
0x3491   : > { %9961 = vperm.xlu1 %13738, %v9931_v6  }
0x3493   : > { %9966 = vperm.xlu0 %13737, %v9932_v47  }
0x3495   : > { %9971 = vperm.xlu1 %13738, %v9933_v59  }
0x3497   : > { %9976 = vperm.xlu0 %13737, %v9934_v14  }
0x3499   : > { %9981 = vperm.xlu1 %13738, %v9935_v45  }
0x349b   : > { %v14591_v60 = vpop.permute.xlu1 %14590  ;;  %9986 = vperm.xlu0 %13737, %v9936_v20  }
0x349c   : > { %v14593_v18 = vunpack.i.h.bf16 %v14591_v60  ;;  %v14592_v46 = vunpack.i.l.bf16 %v14591_v60 }
0x349d   : > { %v14596_v17 = vpop.permute.xlu0 %14595  ;;  %9991 = vperm.xlu1 %13738, %v9937_v43  }
0x349e   : > { %v14598_v51 = vunpack.i.h.bf16 %v14596_v17  ;;  %v14597_v19 = vunpack.i.l.bf16 %v14596_v17  ;;  %v9138_v21 = vpack.c.bf16 %v14593_v18, %v14592_v46 }
0x349f   : > { %v14601_v1 = vpop.permute.xlu1 %14600  ;;  %9996 = vperm.xlu0 %13737, %v9938_v4  }
0x34a0   : > { %v14603_v40 = vunpack.i.h.bf16 %v14601_v1  ;;  %v14602_v41 = vunpack.i.l.bf16 %v14601_v1  ;;  %12717 = vmatprep.subr.bf16.mxu1 %v9138_v21  ;;  %v9137_v61 = vpack.c.bf16 %v14598_v51, %v14597_v19 }
0x34a1   : > { %12718 = vmatpush3.bf16.msk.msra.mxu1 %vm16541_vm6, %v12120_v56  ;;  %v14606_v11 = vpop.permute.xlu0 %14605 }
0x34a2   : > { %12719 = vmatprep.subr.bf16.mxu1 %v9137_v61  ;;  %v14608_v42 = vunpack.i.h.bf16 %v14606_v11  ;;  %v14607_v58 = vunpack.i.l.bf16 %v14606_v11  ;;  %v9136_v29 = vpack.c.bf16 %v14603_v40, %v14602_v41 }
0x34a3   : > { %v14611_v44 = vpop.permute.xlu1 %14610 }
0x34a4   : > { %v14613_v28 = vunpack.i.h.bf16 %v14611_v44  ;;  %v14612_v34 = vunpack.i.l.bf16 %v14611_v44  ;;  %v9135_v10 = vpack.c.bf16 %v14608_v42, %v14607_v58  ;;  %v15213_v58 = vld [vmem:[%s18372_s0] ss:$20 sps:$4 sm:$0xff]  }
0x34a5   : > { %v14616_v26 = vpop.permute.xlu0 %14615  ;;  %12720 = vmatpush3.bf16.msk.msra.mxu1 %vm16541_vm6, %v12123_v15 }
0x34a6   : > { %12721 = vmatprep.subr.bf16.mxu1 %v9136_v29  ;;  %v14618_v57 = vunpack.i.h.bf16 %v14616_v26  ;;  %v14617_v13 = vunpack.i.l.bf16 %v14616_v26  ;;  %v9134_v16 = vpack.c.bf16 %v14613_v28, %v14612_v34 }
0x34a7   : > { %v14621_v30 = vpop.permute.xlu1 %14620 }
0x34a8   : > { %v14622_v38 = vunpack.i.l.bf16 %v14621_v30  ;;  %v9133_v59 = vpack.c.bf16 %v14618_v57, %v14617_v13 }
0x34a9   : > { %12722 = vmatpush3.bf16.msk.msra.mxu1 %vm16541_vm6, %v12126_v55  ;;  %v14626_v56 = vpop.permute.xlu0 %14625  ;;  %v14623_v55 = vunpack.i.h.bf16 %v14621_v30 }
0x34aa   : > { %12723 = vmatprep.subr.bf16.mxu1 %v9135_v10  ;;  %v14628_v45 = vunpack.i.h.bf16 %v14626_v56  ;;  %v14627_v20 = vunpack.i.l.bf16 %v14626_v56 }
0x34ab   : > { %v14631_v27 = vpop.permute.xlu1 %14630  ;;  %v9132_v4 = vpack.c.bf16 %v14623_v55, %v14622_v38 }
0x34ac   : > { %v14633_v39 = vunpack.i.h.bf16 %v14631_v27  ;;  %v14632_v62 = vunpack.i.l.bf16 %v14631_v27  ;;  %v9131_v40 = vpack.c.bf16 %v14628_v45, %v14627_v20  ;;  %v15219_v45 = vld [vmem:[%s18372_s0 + $0x50] ss:$20 sps:$4 sm:$0xff]  }
0x34ad   : > { %12724 = vmatpush3.bf16.msk.msra.mxu1 %vm16541_vm6, %v12129_v35  ;;  %v14636_v15 = vpop.permute.xlu0 %14635 }
0x34ae   : > { %v14638_v22 = vunpack.i.h.bf16 %v14636_v15  ;;  %v14637_v52 = vunpack.i.l.bf16 %v14636_v15  ;;  %12725 = vmatprep.subr.bf16.mxu1 %v9134_v16  ;;  %v9154_v37 = vpack.c.bf16 %v14633_v39, %v14632_v62  ;;  %v15216_v39 = vld [vmem:[%s18372_s0 + $0x28] ss:$20 sps:$4 sm:$0xff]  }
0x34af   : > { %v14641_v23 = vpop.permute.xlu1 %14640  ;;  %v15221_v16 = vld [vmem:[%s18372_s0 + $0x54] ss:$20 sps:$4 sm:$0xff]  }
0x34b0   : > { %v9146_v2 = vpack.c.bf16 %v14638_v22, %v14637_v52  ;;  %v14643_v6 = vunpack.i.h.bf16 %v14641_v23  ;;  %v14642_v47 = vunpack.i.l.bf16 %v14641_v23  ;;  %12781 = vmatprep.subr.bf16.mxu0 %v9154_v37 }
0x34b1   : > { %12726 = vmatpush3.bf16.msk.msra.mxu1 %vm16541_vm6, %v12132_v36  ;;  %v14651_v48 = vpop.permute.xlu0 %14650 }
0x34b2   : > { %v14653_v53 = vunpack.i.h.bf16 %v14651_v48  ;;  %v14652_v35 = vunpack.i.l.bf16 %v14651_v48  ;;  %12727 = vmatprep.subr.bf16.mxu1 %v9133_v59  ;;  %12782 = vmatpush3.bf16.msra.mxu0 %v9146_v2  ;;  %v9153_v14 = vpack.c.bf16 %v14643_v6, %v14642_v47 }
0x34b3   : > { %v14646_v43 = vpop.permute.xlu1 %14645 }
0x34b4   : > { %v9145_v60 = vpack.c.bf16 %v14653_v53, %v14652_v35  ;;  %v14648_v18 = vunpack.i.h.bf16 %v14646_v43  ;;  %v14647_v46 = vunpack.i.l.bf16 %v14646_v43  ;;  %12783 = vmatprep.subr.bf16.mxu0 %v9153_v14  ;;  %v15222_v43 = vld [vmem:[%s18372_s0 + $0x8] ss:$20 sps:$4 sm:$0xff]  }
0x34b5   : > { %12728 = vmatpush3.bf16.msk.msra.mxu1 %vm16541_vm6, %v12135_v63  ;;  %v14656_v31 = vpop.permute.xlu0 %14655 }
0x34b6   : > { %v14658_v33 = vunpack.i.h.bf16 %v14656_v31  ;;  %v14657_v36 = vunpack.i.l.bf16 %v14656_v31  ;;  %12729 = vmatprep.subr.bf16.mxu1 %v9132_v4  ;;  %12784 = vmatpush3.bf16.msra.mxu0 %v9145_v60  ;;  %v9152_v17 = vpack.c.bf16 %v14648_v18, %v14647_v46  ;;  %v15227_v4 = vld [vmem:[%s18372_s0 + $0x7c] ss:$20 sps:$4 sm:$0xff]  }
0x34b7   : > { %v14661_v51 = vpop.permute.xlu1 %14660 }
0x34b8   : > { %v9144_v19 = vpack.c.bf16 %v14658_v33, %v14657_v36  ;;  %v14663_v21 = vunpack.i.h.bf16 %v14661_v51  ;;  %v14662_v1 = vunpack.i.l.bf16 %v14661_v51  ;;  %12785 = vmatprep.subr.bf16.mxu0 %v9152_v17  ;;  %v15230_v33 = vld [vmem:[%s18372_s0 + $0x34] ss:$20 sps:$4 sm:$0xff]  }
0x34b9   : > { %12730 = vmatpush3.bf16.msk.msra.mxu1 %vm16541_vm6, %v12138_v24  ;;  %v14666_v50 = vpop.permute.xlu0 %14665 }
0x34ba   : > { %v14668_v54 = vunpack.i.h.bf16 %v14666_v50  ;;  %v14667_v63 = vunpack.i.l.bf16 %v14666_v50  ;;  %12731 = vmatprep.subr.bf16.mxu1 %v9131_v40  ;;  %12786 = vmatpush3.bf16.msra.mxu0 %v9144_v19  ;;  %v9151_v41 = vpack.c.bf16 %v14663_v21, %v14662_v1  ;;  %v15225_v50 = vld [vmem:[%s18372_s0 + $0x78] ss:$20 sps:$4 sm:$0xff]  }
0x34bb   : > { %v14671_v61 = vpop.permute.xlu1 %14670 }
0x34bc   : > { %v9143_v11 = vpack.c.bf16 %v14668_v54, %v14667_v63  ;;  %v14673_v44 = vunpack.i.h.bf16 %v14671_v61  ;;  %v14672_v42 = vunpack.i.l.bf16 %v14671_v61  ;;  %12787 = vmatprep.subr.bf16.mxu0 %v9151_v41  ;;  %v15228_v63 = vld [vmem:[%s18372_s0 + $0x30] ss:$20 sps:$4 sm:$0xff]  }
0x34bd   : > { %v14676_v29 = vpop.permute.xlu0 %14675  ;;  %12732 = vmatpush3.bf16.msk.msra.mxu1 %vm16541_vm6, %v12141_v0  ;;  %v15233_v41 = vld [vmem:[%s18372_s0 + $0xa4] ss:$20 sps:$4 sm:$0xff]   ;;  %v15236_v61 = vld [vmem:[%s18372_s0 + $0x5c] ss:$20 sps:$4 sm:$0xff]   ;;  %vm18385_vm6 = vcmask 31744  }
0x34be   : > { %v14678_v49 = vunpack.i.h.bf16 %v14676_v29  ;;  %v14677_v24 = vunpack.i.l.bf16 %v14676_v29  ;;  %12788 = vmatpush3.bf16.msra.mxu0 %v9143_v11  ;;  %v9150_v26 = vpack.c.bf16 %v14673_v44, %v14672_v42  ;;  %vm18386_vm12 = vmmov %vm18385_vm6 }
0x34bf   : > { %v14681_v30 = vpop.permute.xlu1 %14680  ;;  %vm18387_vm3 = vmmov %vm18385_vm6 }
0x34c0   : > { %v9142_v28 = vpack.c.bf16 %v14678_v49, %v14677_v24  ;;  %v14683_v34 = vunpack.i.h.bf16 %v14681_v30  ;;  %v14682_v10 = vunpack.i.l.bf16 %v14681_v30  ;;  %9404 = vmatmul.mubr.bf16.vlgmr.msra.gmra.mxu1 %v15213_v58  ;;  %12789 = vmatprep.subr.bf16.mxu0 %v9150_v26  ;;  %v15231_v24 = vld [vmem:[%s18372_s0 + $0xa0] ss:$20 sps:$4 sm:$0xff]   ;;  %v15234_v30 = vld [vmem:[%s18372_s0 + $0x58] ss:$20 sps:$4 sm:$0xff]   ;;  %vm18388_vm5 = vmmov %vm18387_vm3 }
0x34c1   : > { %v14686_v56 = vpop.permute.xlu0 %14685  ;;  %9411 = vmatprep.mubr.bf16.mxu1 %v15218_v7  ;;  %vm18394_vm7 = vmmov %vm18387_vm3 }
0x34c2   : > { %v14688_v57 = vunpack.i.h.bf16 %v14686_v56  ;;  %v14687_v8 = vunpack.i.l.bf16 %v14686_v56  ;;  %12790 = vmatpush3.bf16.msra.mxu0 %v9142_v28  ;;  %v9149_v5 = vpack.c.bf16 %v14683_v34, %v14682_v10  ;;  %v15239_v28 = vld [vmem:[%s18372_s0 + $0xcc] ss:$20 sps:$4 sm:$0xff]   ;;  %v15242_v34 = vld [vmem:[%s18372_s0 + $0x84] ss:$20 sps:$4 sm:$0xff]   ;;  %vm18398_vm0 = vmmov %vm18387_vm3 }
0x34c3   : > { %v14691_v0 = vpop.permute.xlu1 %14690  ;;  %vm18400_vm15 = vmmov %vm18398_vm0 }
0x34c4   : > { %v9141_v12 = vpack.c.bf16 %v14688_v57, %v14687_v8  ;;  %v14693_v27 = vunpack.i.h.bf16 %v14691_v0  ;;  %v14692_v13 = vunpack.i.l.bf16 %v14691_v0  ;;  %12791 = vmatprep.subr.bf16.mxu0 %v9149_v5 }
0x34c5   : > { %v14696_v62 = vpop.permute.xlu0 %14695 }
0x34c6   : > { %v14698_v15 = vunpack.i.h.bf16 %v14696_v62  ;;  %v14697_v22 = vunpack.i.l.bf16 %v14696_v62  ;;  %12792 = vmatpush3.bf16.msra.mxu0 %v9141_v12  ;;  %v9148_v52 = vpack.c.bf16 %v14693_v27, %v14692_v13  ;;  %v15237_v27 = vld [vmem:[%s18372_s0 + $0xc8] ss:$20 sps:$4 sm:$0xff]   ;;  %v15240_v13 = vld [vmem:[%s18372_s0 + $0x80] ss:$20 sps:$4 sm:$0xff]  }
0x34c7   : > { %v14701_v37 = vpop.permute.xlu1 %14700  ;;  %v15248_v62 = vld [vmem:[%s18372_s0 + $0xac] ss:$20 sps:$4 sm:$0xff]  }
0x34c8   : > { %v9140_v55 = vpack.c.bf16 %v14698_v15, %v14697_v22  ;;  %v14703_v38 = vunpack.i.h.bf16 %v14701_v37  ;;  %v14702_v23 = vunpack.i.l.bf16 %v14701_v37  ;;  %9412 = vmatmul.mubr.bf16.gmra.mxu1 %v15216_v39  ;;  %12793 = vmatprep.subr.bf16.mxu0 %v9148_v52  ;;  %v15245_v39 = vld [vmem:[%s18372_s0 + $0xf4] ss:$20 sps:$4 sm:$0xff]   ;;  %v15243_v15 = vld [vmem:[%s18372_s0 + $0xf0] ss:$20 sps:$4 sm:$0xff]  }
0x34c9   : > { %v14706_v2 = vpop.permute.xlu0 %14705  ;;  %9419 = vmatprep.mubr.bf16.mxu1 %v15221_v16  ;;  %v15246_v22 = vld [vmem:[%s18372_s0 + $0xa8] ss:$20 sps:$4 sm:$0xff]  }
0x34ca   : > { %v14708_v6 = vunpack.i.h.bf16 %v14706_v2  ;;  %v14707_v47 = vunpack.i.l.bf16 %v14706_v2  ;;  %12794 = vmatpush3.bf16.msra.mxu0 %v9140_v55  ;;  %v9147_v59 = vpack.c.bf16 %v14703_v38, %v14702_v23  ;;  %v15251_v52 = vld [vmem:[%s18372_s0 + $0x11c] ss:$20 sps:$4 sm:$0xff]   ;;  %v15254_v37 = vld [vmem:[%s18372_s0 + $0xd4] ss:$20 sps:$4 sm:$0xff]   ;;  %v15249_v55 = vld [vmem:[%s18372_s0 + $0x118] ss:$20 sps:$4 sm:$0xff]  }
0x34cb   : > { %v14711_v48 = vpop.permute.xlu1 %14710  ;;  %v15252_v38 = vld [vmem:[%s18372_s0 + $0xd0] ss:$20 sps:$4 sm:$0xff]  }
0x34cc   : > { %v9139_v53 = vpack.c.bf16 %v14708_v6, %v14707_v47  ;;  %v14713_v35 = vunpack.i.h.bf16 %v14711_v48  ;;  %v14712_v14 = vunpack.i.l.bf16 %v14711_v48  ;;  %12795 = vmatprep.subr.bf16.mxu0 %v9147_v59  ;;  %v15255_v23 = vld [vmem:[%s18372_s0 + $0x10] ss:$20 sps:$4 sm:$0xff]   ;;  %v15259_v6 = vld [vmem:[%s18372_s0 + $0x38] ss:$20 sps:$4 sm:$0xff]   ;;  %v15260_v59 = vld [vmem:[%s18372_s0 + $0x60] ss:$20 sps:$4 sm:$0xff]  }
0x34cd   : > { %v14716_v20 = vpop.permute.xlu0 %14715  ;;  %v15258_v2 = vld [vmem:[%s18372_s0 + $0xfc] ss:$20 sps:$4 sm:$0xff]   ;;  %v15256_v47 = vld [vmem:[%s18372_s0 + $0xf8] ss:$20 sps:$4 sm:$0xff]  }
0x34ce   : > { %v14718_v60 = vunpack.i.h.bf16 %v14716_v20  ;;  %v14717_v18 = vunpack.i.l.bf16 %v14716_v20  ;;  %12796 = vmatpush3.bf16.msra.mxu0 %v9139_v53  ;;  %v9162_v46 = vpack.c.bf16 %v14713_v35, %v14712_v14  ;;  %v15263_v48 = vld [vmem:[%s18372_s0 + $0x124] ss:$20 sps:$4 sm:$0xff]   ;;  %v15264_v53 = vld [vmem:[%s18372_s0 + $0x88] ss:$20 sps:$4 sm:$0xff]   ;;  %v15261_v35 = vld [vmem:[%s18372_s0 + $0x120] ss:$20 sps:$4 sm:$0xff]  }
0x34cf   : > { %v14721_v31 = vpop.permute.xlu1 %14720  ;;  %v15265_v14 = vld [vmem:[%s18372_s0 + $0xb0] ss:$20 sps:$4 sm:$0xff]   ;;  %v15267_v20 = vld [vmem:[%s18372_s0 + $0x100] ss:$20 sps:$4 sm:$0xff]  }
0x34d0   : > { %v14723_v36 = vunpack.i.h.bf16 %v14721_v31  ;;  %v14722_v17 = vunpack.i.l.bf16 %v14721_v31  ;;  %9420 = vmatmul.mubr.bf16.gmra.mxu1 %v15219_v45  ;;  %13488 = vmatprep.subr.bf16.mxu1 %v9162_v46  ;;  %v9161_v51 = vpack.c.bf16 %v14718_v60, %v14717_v18  ;;  %v15266_v45 = vld [vmem:[%s18372_s0 + $0xd8] ss:$20 sps:$4 sm:$0xff]   ;;  %v9670_v60 = vld [vmem:[%s18377_s1] sm:$0x3]  ;;  %s18397_s1 = sld [smem:[#allocation23_spill]] }
0x34d1   : > { %v14726_v19 = vpop.permute.xlu0 %14725  ;;  %9501 = vmatmul.mubr.bf16.vlgmr.msra.gmra.mxu0 %v15222_v43  ;;  %13489 = vmatpush3.bf16.msra.mxu1 %v9162_v46  ;;  %v15268_v43 = vld [vmem:[%s18372_s0 + $0x128] ss:$20 sps:$4 sm:$0xff]   ;;  %v9792_v18 = vsel %vm1593_vm1, %v9670_v60, 0  ;;  %s18399_s0 = sld [smem:[#allocation25_spill]] }
0x34d2   : > { %13490 = vmatprep.subr.bf16.mxu1 %v9161_v51  ;;  %9427 = vmatprep.mubr.bf16.mxu1 %v15227_v4  ;;  %v14728_v21 = vunpack.i.h.bf16 %v14726_v19  ;;  %v14727_v1 = vunpack.i.l.bf16 %v14726_v19  ;;  %v9160_v40 = vpack.c.bf16 %v14723_v36, %v14722_v17 }
0x34d3   : > { %9508 = vmatprep.mubr.bf16.mxu0 %v15230_v33  ;;  %v14731_v54 = vpop.permute.xlu1 %14730  ;;  %13662 = vmatprep.subr.msk.bf16.mxu0 %vm1593_vm1, %v9670_v60 }
0x34d4   : > { %v14733_v11 = vunpack.i.h.bf16 %v14731_v54  ;;  %v14732_v44 = vunpack.i.l.bf16 %v14731_v54  ;;  %v9159_v42 = vpack.c.bf16 %v14728_v21, %v14727_v1  ;;  %13521 = vmatpush3.bf16.msra.mxu0 %v9792_v18 }
0x34d5   : > { %13491 = vmatpush3.bf16.msra.mxu1 %v9161_v51  ;;  %v14736_v58 = vpop.permute.xlu0 %14735 }
0x34d6   : > { %13492 = vmatprep.subr.bf16.mxu1 %v9160_v40  ;;  %v14738_v29 = vunpack.i.h.bf16 %v14736_v58  ;;  %v14737_v7 = vunpack.i.l.bf16 %v14736_v58  ;;  %v9158_v49 = vpack.c.bf16 %v14733_v11, %v14732_v44 }
0x34d7   : > { %v14741_v26 = vpop.permute.xlu1 %14740 }
0x34d8   : > { %9428 = vmatmul.mubr.bf16.gmra.mxu1 %v15225_v50  ;;  %v14743_v10 = vunpack.i.h.bf16 %v14741_v26  ;;  %v14742_v56 = vunpack.i.l.bf16 %v14741_v26  ;;  %v9157_v57 = vpack.c.bf16 %v14738_v29, %v14737_v7 }
0x34d9   : > { %9509 = vmatmul.mubr.bf16.gmra.mxu0 %v15228_v63  ;;  %13493 = vmatpush3.bf16.msra.mxu1 %v9160_v40  ;;  %v14746_v8 = vpop.permute.xlu0 %14745 }
0x34da   : > { %13494 = vmatprep.subr.bf16.mxu1 %v9159_v42  ;;  %9435 = vmatprep.mubr.bf16.mxu1 %v15233_v41  ;;  %v14748_v5 = vunpack.i.h.bf16 %v14746_v8  ;;  %v14747_v0 = vunpack.i.l.bf16 %v14746_v8  ;;  %v9156_v12 = vpack.c.bf16 %v14743_v10, %v14742_v56 }
0x34db   : > { %9516 = vmatprep.mubr.bf16.mxu0 %v15236_v61 }
0x34dc   : > { %v9155_v16 = vpack.c.bf16 %v14748_v5, %v14747_v0 }
0x34dd   : > { %13495 = vmatpush3.bf16.msra.mxu1 %v9159_v42 }
0x34de   : > { %13496 = vmatprep.subr.bf16.mxu1 %v9158_v49 }
0x34e0   : > { %9436 = vmatmul.mubr.bf16.gmra.mxu1 %v15231_v24 }
0x34e1   : > { %9517 = vmatmul.mubr.bf16.gmra.mxu0 %v15234_v30  ;;  %13497 = vmatpush3.bf16.msra.mxu1 %v9158_v49 }
0x34e2   : > { %13498 = vmatprep.subr.bf16.mxu1 %v9157_v57  ;;  %9443 = vmatprep.mubr.bf16.mxu1 %v15239_v28 }
0x34e3   : > { %9524 = vmatprep.mubr.bf16.mxu0 %v15242_v34 }
0x34e5   : > { %13499 = vmatpush3.bf16.msra.mxu1 %v9157_v57 }
0x34e6   : > { %13500 = vmatprep.subr.bf16.mxu1 %v9156_v12 }
0x34e8   : > { %9444 = vmatmul.mubr.bf16.gmra.mxu1 %v15237_v27 }
0x34e9   : > { %9525 = vmatmul.mubr.bf16.gmra.mxu0 %v15240_v13  ;;  %13501 = vmatpush3.bf16.msra.mxu1 %v9156_v12 }
0x34ea   : > { %13502 = vmatprep.subr.bf16.mxu1 %v9155_v16  ;;  %9451 = vmatprep.mubr.bf16.mxu1 %v15245_v39 }
0x34eb   : > { %9532 = vmatprep.mubr.bf16.mxu0 %v15248_v62 }
0x34ed   : > { %13503 = vmatpush3.bf16.msra.mxu1 %v9155_v16 }
0x34f0   : > { %9452 = vmatmul.mubr.bf16.gmra.mxu1 %v15243_v15 }
0x34f1   : > { %9533 = vmatmul.mubr.bf16.gmra.mxu0 %v15246_v22  ;;  %9459 = vmatprep.mubr.bf16.mxu1 %v15251_v52 }
0x34f2   : > { %9540 = vmatprep.mubr.bf16.mxu0 %v15254_v37 }
0x34f8   : > { %9460 = vmatmul.mubr.bf16.gmra.mxu1 %v15249_v55 }
0x34f9   : > { %9541 = vmatmul.mubr.bf16.gmra.mxu0 %v15252_v38  ;;  %13504 = vmatprep.mubr.bf16.mxu1 %v15255_v23 }
0x34fa   : > { %9548 = vmatprep.mubr.bf16.mxu0 %v15258_v2 }
0x3500   : > { %13505 = vmatmul.mubr.bf16.vlgmr.msra.gmra.mxu1 %v15259_v6 }
0x3501   : > { %9549 = vmatmul.mubr.bf16.gmra.mxu0 %v15256_v47  ;;  %13508 = vmatprep.mubr.bf16.mxu1 %v15260_v59 }
0x3502   : > { %9556 = vmatprep.mubr.bf16.mxu0 %v15263_v48 }
0x3508   : > { %13509 = vmatmul.mubr.bf16.gmra.mxu1 %v15264_v53 }
0x3509   : > { %9557 = vmatmul.mubr.bf16.gmra.mxu0 %v15261_v35  ;;  %13512 = vmatprep.mubr.bf16.mxu1 %v15265_v14 }
0x3510   : > { %13513 = vmatmul.mubr.bf16.gmra.mxu1 %v15266_v45 }
0x3511   : > { %13516 = vmatprep.mubr.bf16.mxu1 %v15267_v20 }
0x3518   : > { %13517 = vmatmul.mubr.bf16.gmra.mxu1 %v15268_v43 }
0x3580   : > { %v12733_v46 = vpop.f32.mrf.mxu1 }
0x3582   : > { %v12734_v4 = vpop.f32.mrf.mxu1 }
0x3583   : > { %v17657_v31 = vadd.f32 %v12734_v4, %v12733_v46 }
0x3584   : > { %v12736_v33 = vpop.f32.mrf.mxu1 }
0x3586   : > { %v12737_v36 = vpop.f32.mrf.mxu1 }
0x3587   : > { %v12738_v9 = vadd.f32 %v12737_v36, %v12736_v33 }
0x3588   : > { %v12739_v17 = vpop.f32.mrf.mxu1 }
0x358a   : > { %v12740_v51 = vpop.f32.mrf.mxu1 }
0x358c   : > { %v12742_v19 = vpop.f32.mrf.mxu1 }
0x358e   : > { %v12743_v21 = vpop.f32.mrf.mxu1 }
0x358f   : > { %v12744_v3 = vadd.f32 %v12743_v21, %v12742_v19 }
0x3590   : > { %v17659_v1 = vpop.f32.mrf.mxu1 }
0x3591   : > { %v12797_v40 = vpop.f32.mrf.mxu0 }
0x3592   : > { %v17661_v50 = vpop.f32.mrf.mxu1 }
0x3593   : > { %v12798_v54 = vpop.f32.mrf.mxu0 }
0x3594   : > { %v17663_v63 = vpop.f32.mrf.mxu1  ;;  %v12799_v18 = vadd.f32 %v12798_v54, %v12797_v40 }
0x3595   : > { %v12800_v41 = vpop.f32.mrf.mxu0 }
0x3596   : > { %v17665_v61 = vpop.f32.mrf.mxu1 }
0x3597   : > { %v12801_v11 = vpop.f32.mrf.mxu0 }
0x3598   : > { %v17667_v44 = vpop.f32.mrf.mxu1  ;;  %v12802_v46 = vadd.f32 %v12801_v11, %v12800_v41 }
0x3599   : > { %v12803_v42 = vpop.f32.mrf.mxu0 }
0x359a   : > { %v17669_v58 = vpop.f32.mrf.mxu1 }
0x359b   : > { %v12804_v29 = vpop.f32.mrf.mxu0 }
0x359c   : > { %v17671_v7 = vpop.f32.mrf.mxu1  ;;  %v12805_v25 = vadd.f32 %v12804_v29, %v12803_v42 }
0x359d   : > { %v12806_v49 = vpop.f32.mrf.mxu0 }
0x359e   : > { %v17673_v24 = vpop.f32.mrf.mxu1 }
0x359f   : > { %v12807_v26 = vpop.f32.mrf.mxu0 }
0x35a0   : > { %v17675_v30 = vpop.f32.mrf.mxu1  ;;  %v12808_v43 = vadd.f32 %v12807_v26, %v12806_v49 }
0x35a1   : > { %v12809_v28 = vpop.f32.mrf.mxu0 }
0x35a2   : > { %v17677_v34 = vpop.f32.mrf.mxu1 }
0x35a3   : > { %v12810_v10 = vpop.f32.mrf.mxu0 }
0x35a4   : > { %v17679_v56 = vpop.f32.mrf.mxu1  ;;  %v12811_v33 = vadd.f32 %v12810_v10, %v12809_v28 }
0x35a5   : > { %v12812_v57 = vpop.f32.mrf.mxu0 }
0x35a6   : > { %v17681_v8 = vpop.f32.mrf.mxu1 }
0x35a7   : > { %v12813_v5 = vpop.f32.mrf.mxu0 }
0x35a8   : > { %v17683_v0 = vpop.f32.mrf.mxu1  ;;  %v12814_v36 = vadd.f32 %v12813_v5, %v12812_v57 }
0x35a9   : > { %v12815_v12 = vpop.f32.mrf.mxu0 }
0x35aa   : > { %v17685_v27 = vpop.f32.mrf.mxu1 }
0x35ab   : > { %v12816_v13 = vpop.f32.mrf.mxu0 }
0x35ac   : > { %v17687_v39 = vpop.f32.mrf.mxu1 }
0x35ad   : > { %v12818_v62 = vpop.f32.mrf.mxu0 }
0x35ae   : > { %v17689_v16 = vpop.f32.mrf.mxu1 }
0x35af   : > { %v12819_v15 = vpop.f32.mrf.mxu0 }
0x35b0   : > { %v17691_v22 = vpop.f32.mrf.mxu1  ;;  %v12820_v19 = vadd.f32 %v12819_v15, %v12818_v62 }
0x35b1   : > { %18378 = vst [vmem:[#allocation49_spill] sm:$0xff] %v17691_v22  ;;  %v17693_v52 = vpop.f32.mrf.mxu0 }
0x35b2   : > { %v17695_v37 = vpop.f32.mrf.mxu1 }
0x35b3   : > { %18379 = vst [vmem:[#allocation50_spill] sm:$0xff] %v17695_v37  ;;  %v17697_v55 = vpop.f32.mrf.mxu0  ;;  %v9503_v37 = vadd.f32 %v12799_v18, %v17657_v31  ;;  %v12817_v31 = vadd.f32 %v12816_v13, %v12815_v12 }
0x35b4   : > { %v17699_v38 = vpop.f32.mrf.mxu1 }
0x35b5   : > { %18380 = vst [vmem:[#allocation51_spill] sm:$0xff] %v17699_v38  ;;  %v17701_v23 = vpop.f32.mrf.mxu0 }
0x35b6   : > { %v17703_v2 = vpop.f32.mrf.mxu1 }
0x35b7   : > { %18381 = vst [vmem:[#allocation52_spill] sm:$0xff] %v17703_v2  ;;  %v12825_v6 = vpop.f32.mrf.mxu0  ;;  %v9514_v2 = vadd.f32 %v12808_v43, %v12744_v3  ;;  %v12756_v3 = vadd.f32 %v17673_v24, %v17671_v7 }
0x35b8   : > { %v17705_v47 = vpop.f32.mrf.mxu1 }
0x35b9   : > { %18382 = vst [vmem:[#allocation53_spill] sm:$0xff] %v17705_v47  ;;  %v17707_v59 = vpop.f32.mrf.mxu0  ;;  %v9530_v28 = vadd.f32 %v12820_v19, %v12756_v3  ;;  %v18390_v19 = vld [vmem:[#allocation49_spill] sm:$0xff] }
0x35ba   : > { %v17709_v48 = vpop.f32.mrf.mxu1 }
0x35bb   : > { %18383 = vst [vmem:[#allocation43_spill] sm:$0xff] %v17709_v48  ;;  %v12828_v53 = vpop.f32.mrf.mxu0  ;;  %v12741_v48 = vadd.f32 %v12740_v51, %v12739_v17 }
0x35bc   : > { %v17711_v35 = vpop.f32.mrf.mxu1 }
0x35bd   : > { %v12830_v14 = vpop.f32.mrf.mxu0  ;;  %v9511_v49 = vadd.f32 %v12805_v25, %v12741_v48  ;;  %v12753_v25 = vadd.f32 %v17669_v58, %v17667_v44  ;;  %v12826_v44 = vadd.f32 %v12825_v6, %v17701_v23 }
0x35be   : > { %v17713_v45 = vpop.f32.mrf.mxu1 }
0x35bf   : > { %18384 = vst [vmem:[#allocation44_spill] sm:$0xff] %v17713_v45  ;;  %v12831_v20 = vpop.f32.mrf.mxu0  ;;  %v9506_v45 = vadd.f32 %v12802_v46, %v12738_v9  ;;  %v12747_v9 = vadd.f32 %v17661_v50, %v17659_v1  ;;  %v9527_v5 = vadd.f32 %v12817_v31, %v12753_v25 }
0x35c0   : > { %v13506_v60 = vpop.f32.mrf.mxu1  ;;  %v12832_v50 = vadd.f32 %v12831_v20, %v12830_v14  ;;  %v12762_v14 = vadd.f32 %v17681_v8, %v17679_v56  ;;  %v18395_v3 = vld [vmem:[#allocation53_spill] sm:$0xff] }
0x35c1   : > { %v17715_v4 = vpop.f32.mrf.mxu0  ;;  %v9608_v21 = vadd.f32 %v13506_v60, %v9511_v49  ;;  %v9519_v57 = vadd.f32 %v12811_v33, %v12747_v9  ;;  %v12759_v60 = vadd.f32 %v17677_v34, %v17675_v30  ;;  %v18392_v33 = vld [vmem:[#allocation51_spill] sm:$0xff] }
0x35c2   : > { %v9599_v32 = vpop.f32.mrf.mxu1  ;;  %v9538_v6 = vadd.f32 %v12826_v44, %v12762_v14  ;;  %v18396_v31 = vld [vmem:[#allocation43_spill] sm:$0xff] }
0x35c3   : > { %v17717_v47 = vpop.f32.mrf.mxu0  ;;  %v9600_v54 = vadd.f32 %v9599_v32, %v9503_v37  ;;  %v12750_v32 = vadd.f32 %v17665_v61, %v17663_v63  ;;  %v12823_v61 = vadd.f32 %v17697_v55, %v17693_v52  ;;  %v12765_v52 = vadd.f32 %v17685_v27, %v17683_v0 }
0x35c4   : > { %v13507_v38 = vpop.f32.mrf.mxu1  ;;  %v12835_v8 = vadd.f32 %v17717_v47, %v17715_v4  ;;  %v12777_v47 = vadd.f32 %v18396_v31, %v18395_v3 }
0x35c5   : > { %v17720_v22 = vpop.f32.mrf.mxu0  ;;  %v9611_v26 = vadd.f32 %v13507_v38, %v9514_v2  ;;  %v9522_v24 = vadd.f32 %v12814_v36, %v12750_v32  ;;  %v12768_v38 = vadd.f32 %v17689_v16, %v17687_v39  ;;  %v12829_v2 = vadd.f32 %v12828_v53, %v17707_v59  ;;  %v18393_v36 = vld [vmem:[#allocation52_spill] sm:$0xff] }
0x35c6   : > { %v9602_v40 = vpop.f32.mrf.mxu1  ;;  %v9535_v16 = vadd.f32 %v12823_v61, %v12759_v60  ;;  %v18389_v49 = vld [vmem:[#allocation44_spill] sm:$0xff] }
0x35c7   : > { %v9603_v41 = vadd.f32 %v9602_v40, %v9506_v45  ;;  %v12837_v11 = vpop.f32.mrf.mxu0  ;;  %v9663_v51 = vpack.c.bf16 %v9611_v26, %v9608_v21  ;;  %v9546_v55 = vadd.f32 %v12832_v50, %v12768_v38  ;;  %v9543_v59 = vadd.f32 %v12829_v2, %v12765_v52  ;;  %v18391_v21 = vld [vmem:[#allocation50_spill] sm:$0xff]  ;;  %v9765_v50 = vpop.permute.xlu0 %9764 }
0x35c8   : > { %v13510_v42 = vpop.f32.mrf.mxu1  ;;  %v12838_v0 = vadd.f32 %v12837_v11, %v17720_v22  ;;  %v12780_v26 = vadd.f32 %v18389_v49, %v17711_v35 }
0x35c9   : > { %v9662_v29 = vpack.c.bf16 %v9603_v41, %v9600_v54  ;;  %v12839_v17 = vpop.f32.mrf.mxu0  ;;  %v9624_v15 = vadd.f32 %v13510_v42, %v9527_v5  ;;  %v12771_v42 = vadd.f32 %v18391_v21, %v18390_v19  ;;  %v18404_v5 = vmov 0  }
0x35ca   : > { %v9615_v43 = vpop.f32.mrf.mxu1 }
0x35cb   : > { %13522 = vmatprep.mubr.msk.bf16.mxu0 %vm18385_vm6, %v9662_v29  ;;  %v12840_v7 = vpop.f32.mrf.mxu0  ;;  %v9616_v62 = vadd.f32 %v9615_v43, %v9519_v57  ;;  %v12774_v29 = vadd.f32 %v18393_v36, %v18392_v33  ;;  %v9551_v35 = vadd.f32 %v12835_v8, %v12771_v42  ;;  %vm18401_vm6 = vmmov %vm18398_vm0  ;;  %v15269_v57 = vld [vmem:[%s18397_s1] sm:$0xff]  }
0x35cc   : > { %v13511_v10 = vpop.f32.mrf.mxu1  ;;  %13523 = vmatmul.mubr.msk.bf16.vlgmr.msra.gmra.mxu0 %vm18386_vm12, %v9663_v51  ;;  %v12841_v40 = vadd.f32 %v12840_v7, %v12839_v17  ;;  %13554 = vmatprep.mubr.bf16.mxu1 %v15269_v57  ;;  %v10122_v7 = vld [vmem:[%s18399_s0] sm:$0x1]  ;;  %vm18402_vm12 = vcmask 1040384   ;;  %s18405_s0 = sld [smem:[#allocation26_spill]] }
0x35cd   : > { %v9627_v12 = vadd.f32 %v13511_v10, %v9530_v28  ;;  %v12842_v58 = vpop.f32.mrf.mxu0  ;;  %v9554_v11 = vadd.f32 %v12838_v0, %v12774_v29  ;;  %13663 = vmatprep.subr.msk.bf16.mxu0 %vm18402_vm12, %v10122_v7 }
0x35ce   : > { %v9618_v13 = vpop.f32.mrf.mxu1  ;;  %v9559_v17 = vadd.f32 %v12841_v40, %v12777_v47 }
0x35cf   : > { %v9619_v1 = vadd.f32 %v9618_v13, %v9522_v24  ;;  %v9665_v48 = vpack.c.bf16 %v9627_v12, %v9624_v15  ;;  %v12843_v39 = vpop.f32.mrf.mxu0 }
0x35d0   : > { %v13514_v63 = vpop.f32.mrf.mxu1  ;;  %v12844_v34 = vadd.f32 %v12843_v39, %v12842_v58  ;;  %v9755_v58 = vpop.permute.xlu0 %9754 }
0x35d1   : > { %v9664_v37 = vpack.c.bf16 %v9619_v1, %v9616_v62  ;;  %v9640_v46 = vadd.f32 %v13514_v63, %v9543_v59  ;;  %v9760_v63 = vpop.permute.xlu1 %9759 }
0x35d2   : > { %v9631_v45 = vpop.f32.mrf.mxu1  ;;  %v9562_v22 = vadd.f32 %v12844_v34, %v12780_v26 }
0x35d3   : > { %13526 = vmatprep.mubr.msk.bf16.mxu0 %vm18387_vm3, %v9664_v37  ;;  %v9632_v18 = vadd.f32 %v9631_v45, %v9535_v16  ;;  %vm18403_vm3 = vmmov %vm18402_vm12 }
0x35d4   : > { %v13515_v23 = vpop.f32.mrf.mxu1  ;;  %13527 = vmatmul.mubr.msk.bf16.gmra.mxu0 %vm18388_vm5, %v9665_v48  ;;  %v10142_v24 = vsel %vm18403_vm3, %v10122_v7, 0  ;;  %v9745_v45 = vpop.permute.xlu0 %9744  ;;  %vm18407_vm5 = vcmask 785408  }
0x35d5   : > { %v9643_v53 = vadd.f32 %v13515_v23, %v9546_v55  ;;  %13567 = vmatpush3.bf16.msra.mxu0 %v10142_v24  ;;  %v9750_v38 = vpop.permute.xlu1 %9749 }
0x35d6   : > { %v9634_v20 = vpop.f32.mrf.mxu1  ;;  %10628 = vmatprep.subr.bf16.mxu0 %v18404_v5 }
0x35d7   : > { %v9635_v30 = vadd.f32 %v9634_v20, %v9538_v6  ;;  %v9667_v54 = vpack.c.bf16 %v9643_v53, %v9640_v46 }
0x35d8   : > { %v13518_v56 = vpop.f32.mrf.mxu1  ;;  %v9735_v23 = vpop.permute.xlu0 %9734 }
0x35d9   : > { %v9666_v27 = vpack.c.bf16 %v9635_v30, %v9632_v18  ;;  %v9656_v25 = vadd.f32 %v13518_v56, %v9559_v17  ;;  %v9740_v14 = vpop.permute.xlu1 %9739 }
0x35da   : > { %v9647_v41 = vpop.f32.mrf.mxu1 }
0x35db   : > { %13530 = vmatprep.mubr.msk.bf16.mxu0 %vm18394_vm7, %v9666_v27  ;;  %v9648_v9 = vadd.f32 %v9647_v41, %v9551_v35  ;;  %vm18408_vm7 = vmmov %vm18407_vm5 }
0x35dc   : > { %v13519_v4 = vpop.f32.mrf.mxu1  ;;  %13531 = vmatmul.mubr.msk.bf16.gmra.mxu0 %vm18398_vm0, %v9667_v54  ;;  %v9725_v46 = vpop.permute.xlu0 %9724  ;;  %vm18410_vm0 = vmmov %vm18407_vm5 }
0x35dd   : > { %v9659_v51 = vadd.f32 %v13519_v4, %v9562_v22  ;;  %v9730_v6 = vpop.permute.xlu1 %9729 }
0x35de   : > { %v9650_v43 = vpop.f32.mrf.mxu1 }
0x35df   : > { %v9651_v32 = vadd.f32 %v9650_v43, %v9554_v11  ;;  %v9669_v10 = vpack.c.bf16 %v9659_v51, %v9656_v25 }
0x35e0   : > { %v9715_v49 = vpop.permute.xlu0 %9714 }
0x35e1   : > { %v9668_v28 = vpack.c.bf16 %v9651_v32, %v9648_v9  ;;  %v9720_v8 = vpop.permute.xlu1 %9719 }
0x35e3   : > { %13534 = vmatprep.mubr.msk.bf16.mxu0 %vm18400_vm15, %v9668_v28  ;;  %vm18411_vm15 = vmmov %vm18410_vm0 }
0x35e4   : > { %13535 = vmatmul.mubr.msk.bf16.gmra.mxu0 %vm18401_vm6, %v9669_v10  ;;  %v9705_v42 = vpop.permute.xlu0 %9704 }
0x35e5   : > { %v9710_v40 = vpop.permute.xlu1 %9709 }
0x35e8   : > { %v9695_v17 = vpop.permute.xlu0 %9694 }
0x35e9   : > { %v9700_v31 = vpop.permute.xlu1 %9699 }
0x35ed   : > { %v9690_v32 = vpop.permute.xlu1 %9689 }
0x368c   : > { %v17766_v12 = vpop.f32.mrf.mxu0 }
0x368d   : > { %v9837_v35 = vadd.f32 %v17766_v12, %v9700_v31 }
0x368e   : > { %v17768_v13 = vpop.f32.mrf.mxu0 }
0x368f   : > { %v9829_v25 = vadd.f32 %v17768_v13, %v9690_v32 }
0x3690   : > { %v13525_v62 = vpop.f32.mrf.mxu0 }
0x3691   : > { %v9840_v47 = vadd.f32 %v13525_v62, %v9705_v42 }
0x3692   : > { %v17770_v1 = vpop.f32.mrf.mxu0 }
0x3693   : > { %v9832_v51 = vadd.f32 %v17770_v1, %v9695_v17 }
0x3694   : > { %v13528_v15 = vpop.f32.mrf.mxu0 }
0x3695   : > { %v9853_v54 = vadd.f32 %v13528_v15, %v9720_v8 }
0x3696   : > { %v9844_v61 = vpop.f32.mrf.mxu0 }
0x3697   : > { %v9845_v36 = vadd.f32 %v9844_v61, %v9710_v40 }
0x3698   : > { %v13529_v44 = vpop.f32.mrf.mxu0 }
0x3699   : > { %v9856_v26 = vadd.f32 %v13529_v44, %v9725_v46 }
0x369a   : > { %v9847_v37 = vpop.f32.mrf.mxu0 }
0x369b   : > { %v9848_v19 = vadd.f32 %v9847_v37, %v9715_v49  ;;  %v15271_v37 = vld [vmem:[%s18397_s1 + $0x10] sm:$0xff]  }
0x369c   : > { %v13532_v2 = vpop.f32.mrf.mxu0 }
0x369d   : > { %v9869_v56 = vadd.f32 %v13532_v2, %v9740_v14  ;;  %v15273_v2 = vld [vmem:[%s18397_s1 + $0x20] sm:$0xff]  }
0x369e   : > { %v9860_v48 = vpop.f32.mrf.mxu0 }
0x369f   : > { %v9861_v27 = vadd.f32 %v9860_v48, %v9730_v6  ;;  %v15274_v48 = vld [vmem:[%s18397_s1 + $0x28] sm:$0xff]  }
0x36a0   : > { %v13533_v60 = vpop.f32.mrf.mxu0 }
0x36a1   : > { %v9872_v30 = vadd.f32 %v13533_v60, %v9745_v45  ;;  %v9947_v45 = vpop.permute.xlu0 %9946  ;;  %v9942_v60 = vpop.permute.xlu1 %9941 }
0x36a2   : > { %v9863_v52 = vpop.f32.mrf.mxu0 }
0x36a3   : > { %v9864_v0 = vadd.f32 %v9863_v52, %v9735_v23 }
0x36a4   : > { %v13536_v55 = vpop.f32.mrf.mxu0 }
0x36a5   : > { %v9885_v39 = vadd.f32 %v13536_v55, %v9760_v63  ;;  %v9957_v14 = vpop.permute.xlu0 %9956  ;;  %v9952_v52 = vpop.permute.xlu1 %9951 }
0x36a6   : > { %v9876_v16 = vpop.f32.mrf.mxu0 }
0x36a7   : > { %v9877_v59 = vadd.f32 %v9876_v16, %v9750_v38  ;;  %15561 = vtanh.f32 %v9885_v39  ;;  %v15272_v38 = vld [vmem:[%s18397_s1 + $0x18] sm:$0xff]  }
0x36a8   : > { %v13537_v53 = vpop.f32.mrf.mxu0 }
0x36a9   : > { %v9888_v20 = vadd.f32 %v13537_v53, %v9765_v50  ;;  %v9967_v39 = vpop.permute.xlu0 %9966  ;;  %v9962_v6 = vpop.permute.xlu1 %9961 }
0x36aa   : > { %v9879_v18 = vpop.f32.mrf.mxu0 }
0x36ab   : > { %15563 = vtanh.f32 %v9888_v20  ;;  %v9880_v34 = vadd.f32 %v9879_v18, %v9755_v58  ;;  %v15270_v58 = vld [vmem:[%s18397_s1 + $0x8] sm:$0xff]   ;;  %s18406_s1 = sld [smem:[#allocation27_spill]] }
0x36ac   : > { %15565 = vtanh.f32 %v9877_v59 }
0x36ad   : > { %15567 = vtanh.f32 %v9880_v34  ;;  %v9977_v46 = vpop.permute.xlu0 %9976 }
0x36ae   : > { %15569 = vtanh.f32 %v9872_v30 }
0x36af   : > { %15571 = vtanh.f32 %v9869_v56 }
0x36b0   : > { %15573 = vtanh.f32 %v9864_v0 }
0x36b1   : > { %15575 = vtanh.f32 %v9861_v27  ;;  %v9972_v27 = vpop.permute.xlu1 %9971 }
0x36b2   : > { %15577 = vtanh.f32 %v9856_v26 }
0x36b3   : > { %15579 = vtanh.f32 %v9853_v54  ;;  %v9987_v54 = vpop.permute.xlu0 %9986 }
0x36b4   : > { %v15562_v41 = vpop.eup %15561  ;;  %15581 = vtanh.f32 %v9848_v19 }
0x36b5   : > { %15583 = vtanh.f32 %v9845_v36 }
0x36b6   : > { %15585 = vtanh.f32 %v9840_v47 }
0x36b7   : > { %15587 = vtanh.f32 %v9837_v35  ;;  %v9997_v47 = vpop.permute.xlu0 %9996 }
0x36b8   : > { %v15564_v21 = vpop.eup %15563  ;;  %15589 = vtanh.f32 %v9832_v51 }
0x36b9   : > { %v15566_v33 = vpop.eup %15565  ;;  %v9926_v29 = vpack.c.bf16 %v15564_v21, %v15562_v41  ;;  %15591 = vtanh.f32 %v9829_v25 }
0x36ba   : > { %v15568_v3 = vpop.eup %15567 }
0x36bb   : > { %13538 = vmatprep.subr.bf16.mxu1 %v9926_v29  ;;  %v9925_v22 = vpack.c.bf16 %v15568_v3, %v15566_v33  ;;  %v15570_v4 = vpop.eup %15569  ;;  %v9982_v33 = vpop.permute.xlu1 %9981 }
0x36bc   : > { %13539 = vmatpush3.bf16.msra.mxu1 %v9926_v29  ;;  %v15572_v11 = vpop.eup %15571 }
0x36bd   : > { %13540 = vmatprep.subr.bf16.mxu1 %v9925_v22  ;;  %v9924_v43 = vpack.c.bf16 %v15570_v4, %v15572_v11  ;;  %v15574_v9 = vpop.eup %15573 }
0x36be   : > { %v15576_v28 = vpop.eup %15575 }
0x36bf   : > { %v9923_v10 = vpack.c.bf16 %v15574_v9, %v15576_v28  ;;  %v15578_v57 = vpop.eup %15577  ;;  %v9992_v35 = vpop.permute.xlu1 %9991 }
0x36c0   : > { %13541 = vmatpush3.bf16.msra.mxu1 %v9925_v22  ;;  %v15580_v7 = vpop.eup %15579 }
0x36c1   : > { %13542 = vmatprep.subr.bf16.mxu1 %v9924_v43  ;;  %v9922_v24 = vpack.c.bf16 %v15578_v57, %v15580_v7  ;;  %v15582_v12 = vpop.eup %15581 }
0x36c2   : > { %v15584_v62 = vpop.eup %15583 }
0x36c3   : > { %v9921_v1 = vpack.c.bf16 %v15582_v12, %v15584_v62  ;;  %v15586_v50 = vpop.eup %15585 }
0x36c4   : > { %13543 = vmatpush3.bf16.msra.mxu1 %v9924_v43  ;;  %v15588_v13 = vpop.eup %15587 }
0x36c5   : > { %13544 = vmatprep.subr.bf16.mxu1 %v9923_v10  ;;  %v9920_v15 = vpack.c.bf16 %v15586_v50, %v15588_v13  ;;  %v15590_v63 = vpop.eup %15589 }
0x36c6   : > { %v15592_v61 = vpop.eup %15591 }
0x36c7   : > { %v9919_v44 = vpack.c.bf16 %v15590_v63, %v15592_v61 }
0x36c8   : > { %13545 = vmatpush3.bf16.msra.mxu1 %v9923_v10 }
0x36c9   : > { %13546 = vmatprep.subr.bf16.mxu1 %v9922_v24 }
0x36cc   : > { %13547 = vmatpush3.bf16.msra.mxu1 %v9922_v24 }
0x36cd   : > { %13548 = vmatprep.subr.bf16.mxu1 %v9921_v1 }
0x36d0   : > { %13549 = vmatpush3.bf16.msra.mxu1 %v9921_v1 }
0x36d1   : > { %13550 = vmatprep.subr.bf16.mxu1 %v9920_v15 }
0x36d4   : > { %13551 = vmatpush3.bf16.msra.mxu1 %v9920_v15 }
0x36d5   : > { %13552 = vmatprep.subr.bf16.mxu1 %v9919_v44 }
0x36d8   : > { %13553 = vmatpush3.bf16.msra.mxu1 %v9919_v44 }
0x36db   : > { %13555 = vmatmul.mubr.bf16.vlgmr.msra.gmra.mxu1 %v15270_v58 }
0x36dc   : > { %13558 = vmatprep.mubr.bf16.mxu1 %v15271_v37 }
0x36e3   : > { %13559 = vmatmul.mubr.bf16.gmra.mxu1 %v15272_v38 }
0x36e4   : > { %13562 = vmatprep.mubr.bf16.mxu1 %v15273_v2 }
0x36eb   : > { %13563 = vmatmul.mubr.bf16.gmra.mxu1 %v15274_v48 }
0x379b   : > { %v13556_v55 = vpop.f32.mrf.mxu1 }
0x379c   : > { %v10078_v30 = vadd.f32 %v13556_v55, %v9952_v52  ;;  %v15283_v52 = vld [vmem:[%s18405_s0 + $0xc] ss:$16 sps:$4 sm:$0xff]   ;;  %v10427_v55 = vld [vmem:[%s18406_s1] sm:$0xff] }
0x379d   : > { %v10069_v23 = vpop.f32.mrf.mxu1 }
0x379e   : > { %v10070_v20 = vadd.f32 %v10069_v23, %v9942_v60  ;;  %v10428_v23 = vld [vmem:[%s18406_s1 + $0x8] sm:$0xff] }
0x379f   : > { %v13557_v16 = vpop.f32.mrf.mxu1 }
0x37a0   : > { %v10081_v59 = vadd.f32 %v13557_v16, %v9957_v14  ;;  %v15277_v14 = vld [vmem:[%s18405_s0 + $0x4] ss:$16 sps:$4 sm:$0xff]   ;;  %v10430_v16 = vld [vmem:[%s18406_s1 + $0x18] sm:$0xff] }
0x37a1   : > { %v10072_v53 = vpop.f32.mrf.mxu1  ;;  %10595 = vmatprep.mubr.bf16.mxu1 %v15277_v14 }
0x37a2   : > { %v10073_v18 = vadd.f32 %v10072_v53, %v9947_v45  ;;  %v10117_v8 = vpack.c.bf16 %v10081_v59, %v10078_v30  ;;  %v10432_v59 = vld [vmem:[%s18406_s1 + $0x28] sm:$0xff]  ;;  %v10433_v53 = vld [vmem:[%s18406_s1 + $0x30] sm:$0xff] }
0x37a3   : > { %v13560_v34 = vpop.f32.mrf.mxu1 }
0x37a4   : > { %v10116_v56 = vpack.c.bf16 %v10073_v18, %v10070_v20  ;;  %v10094_v21 = vadd.f32 %v13560_v34, %v9972_v27  ;;  %v10434_v20 = vld [vmem:[%s18406_s1 + $0x38] sm:$0xff] }
0x37a5   : > { %v10085_v0 = vpop.f32.mrf.mxu1 }
0x37a6   : > { %13568 = vmatprep.mubr.msk.bf16.mxu0 %vm1644_vm4, %v10116_v56  ;;  %v10086_v41 = vadd.f32 %v10085_v0, %v9962_v6  ;;  %v10431_v6 = vld [vmem:[%s18406_s1 + $0x20] sm:$0xff] }
0x37a7   : > { %v13561_v49 = vpop.f32.mrf.mxu1  ;;  %13569 = vmatmul.mubr.msk.bf16.vlgmr.msra.gmra.mxu0 %vm1644_vm4, %v10117_v8 }
0x37a8   : > { %v10097_v26 = vadd.f32 %v13561_v49, %v9977_v46 }
0x37a9   : > { %v10088_v40 = vpop.f32.mrf.mxu1 }
0x37aa   : > { %v10089_v19 = vadd.f32 %v10088_v40, %v9967_v39  ;;  %v10119_v29 = vpack.c.bf16 %v10097_v26, %v10094_v21  ;;  %v10429_v39 = vld [vmem:[%s18406_s1 + $0x10] sm:$0xff]  ;;  %s18409_s1 = sld [smem:[#allocation28_spill]] }
0x37ab   : > { %v13564_v42 = vpop.f32.mrf.mxu1 }
0x37ac   : > { %v10118_v36 = vpack.c.bf16 %v10089_v19, %v10086_v41  ;;  %v10110_v51 = vadd.f32 %v13564_v42, %v9992_v35 }
0x37ad   : > { %v10101_v3 = vpop.f32.mrf.mxu1 }
0x37ae   : > { %13572 = vmatprep.mubr.msk.bf16.mxu0 %vm1644_vm4, %v10118_v36  ;;  %v10102_v11 = vadd.f32 %v10101_v3, %v9982_v33 }
0x37af   : > { %v13565_v31 = vpop.f32.mrf.mxu1  ;;  %13573 = vmatmul.mubr.msk.bf16.gmra.mxu0 %vm1644_vm4, %v10119_v29 }
0x37b0   : > { %v10113_v22 = vadd.f32 %v13565_v31, %v9997_v47 }
0x37b1   : > { %v10104_v4 = vpop.f32.mrf.mxu1 }
0x37b2   : > { %v10105_v17 = vadd.f32 %v10104_v4, %v9987_v54  ;;  %v10121_v9 = vpack.c.bf16 %v10113_v22, %v10110_v51 }
0x37b4   : > { %v10120_v43 = vpack.c.bf16 %v10105_v17, %v10102_v11 }
0x37b6   : > { %13576 = vmatprep.mubr.msk.bf16.mxu0 %vm1644_vm4, %v10120_v43 }
0x37b7   : > { %13577 = vmatmul.mubr.msk.bf16.gmra.mxu0 %vm1644_vm4, %v10121_v9 }
0x37b8   : > { %12179 = vmatprep.mubr.msk.bf16.mxu0 %vm18407_vm5, %v15283_v52 }
0x3867   : > { %v17786_v32 = vpop.f32.mrf.mxu0 }
0x3869   : > { %v17788_v25 = vpop.f32.mrf.mxu0 }
0x386b   : > { %v17790_v28 = vpop.f32.mrf.mxu0 }
0x386c   : > { %v10398_v57 = vpack.c.bf16 %v17790_v28, %v17786_v32  ;;  %v14769_v45 = vpack.i.bf16 %v17790_v28, %v17786_v32  ;;  %v15280_v32 = vld [vmem:[%s18405_s0 + $0x24] ss:$16 sps:$4 sm:$0xff]  }
0x386d   : > { %v17792_v10 = vpop.f32.mrf.mxu0 }
0x386e   : > { %v10397_v24 = vpack.c.bf16 %v17792_v10, %v17788_v25  ;;  %v14784_v60 = vpack.i.bf16 %v17792_v10, %v17788_v25  ;;  %v15278_v25 = vld [vmem:[%s18405_s0 + $0x20] ss:$16 sps:$4 sm:$0xff]   ;;  %v15281_v10 = vld [vmem:[%s18405_s0 + $0x8] ss:$16 sps:$4 sm:$0xff]  }
0x386f   : > { %v17796_v7 = vpop.f32.mrf.mxu0 }
0x3871   : > { %v17800_v12 = vpop.f32.mrf.mxu0 }
0x3873   : > { %v17802_v62 = vpop.f32.mrf.mxu0 }
0x3874   : > { %v10400_v50 = vpack.c.bf16 %v17802_v62, %v17796_v7  ;;  %v14759_v2 = vpack.i.bf16 %v17802_v62, %v17796_v7 }
0x3875   : > { %v17804_v1 = vpop.f32.mrf.mxu0 }
0x3876   : > { %v10399_v15 = vpack.c.bf16 %v17804_v1, %v17800_v12  ;;  %v14764_v48 = vpack.i.bf16 %v17804_v1, %v17800_v12 }
0x3877   : > { %v17808_v13 = vpop.f32.mrf.mxu0 }
0x3879   : > { %v17812_v63 = vpop.f32.mrf.mxu0 }
0x387b   : > { %v17814_v61 = vpop.f32.mrf.mxu0 }
0x387c   : > { %v14749_v44 = vpack.i.bf16 %v17814_v61, %v17808_v13  ;;  %v10402_v37 = vpack.c.bf16 %v17814_v61, %v17808_v13 }
0x387d   : > { %v17818_v58 = vpop.f32.mrf.mxu0 }
0x387e   : > { %14750 = vrot.lane.b32.xlu1 %v14749_v44, %s18264_s5  ;;  %v14754_v38 = vpack.i.bf16 %v17818_v58, %v17812_v63 }
0x3880   : > { %14755 = vrot.lane.b32.xlu0 %v14754_v38, %s18264_s5 }
0x3882   : > { %14760 = vrot.lane.b32.xlu1 %v14759_v2, %s18264_s5 }
0x3884   : > { %14765 = vrot.lane.b32.xlu0 %v14764_v48, %s18264_s5 }
0x3886   : > { %14770 = vrot.lane.b32.xlu1 %v14769_v45, %s18264_s5 }
0x3888   : > { %14775 = vrot.lane.b32.xlu0 %v14759_v2, %s18268_s30 }
0x388a   : > { %14780 = vrot.lane.b32.xlu1 %v14769_v45, %s18265_s7 }
0x388c   : > { %14785 = vrot.lane.b32.xlu0 %v14784_v60, %s18264_s5 }
0x388e   : > { %14790 = vrot.lane.b32.xlu1 %v14764_v48, %s18268_s30 }
0x3890   : > { %14795 = vrot.lane.b32.xlu0 %v14784_v60, %s18265_s7 }
0x3892   : > { %14800 = vrot.lane.b32.xlu1 %v14749_v44, %s18268_s30 }
0x3894   : > { %14805 = vrot.lane.b32.xlu0 %v14769_v45, %s18268_s30 }
0x3896   : > { %14815 = vrot.lane.b32.xlu1 %v14754_v38, %s18268_s30 }
0x3898   : > { %14810 = vrot.lane.b32.xlu0 %v14784_v60, %s18268_s30 }
0x389a   : > { %14820 = vrot.lane.b32.xlu1 %v14749_v44, %s18269_s26 }
0x389c   : > { %14825 = vrot.lane.b32.xlu0 %v14749_v44, %s18265_s7 }
0x389e   : > { %14830 = vrot.lane.b32.xlu1 %v14754_v38, %s18269_s26 }
0x38a0   : > { %14840 = vrot.lane.b32.xlu0 %v14754_v38, %s18265_s7 }
0x38a2   : > { %14835 = vrot.lane.b32.xlu1 %v14759_v2, %s18269_s26 }
0x38a4   : > { %14845 = vrot.lane.b32.xlu0 %v14759_v2, %s18265_s7 }
0x38a6   : > { %14850 = vrot.lane.b32.xlu1 %v14764_v48, %s18269_s26 }
0x38a8   : > { %14855 = vrot.lane.b32.xlu0 %v14764_v48, %s18265_s7 }
0x38aa   : > { %14860 = vrot.lane.b32.xlu1 %v14769_v45, %s18269_s26 }
0x38ac   : > { %14865 = vrot.lane.b32.xlu0 %v14784_v60, %s18269_s26 }
0x38ae   : > { %10437 = vperm.xlu1 %13738, %v10427_v55  }
0x38b0   : > { %10442 = vperm.xlu0 %13737, %v10428_v23  }
0x38b2   : > { %10447 = vperm.xlu1 %13738, %v10429_v39  }
0x38b4   : > { %10452 = vperm.xlu0 %13737, %v10430_v16  }
0x38b6   : > { %10457 = vperm.xlu1 %13738, %v10431_v6  }
0x38b8   : > { %10462 = vperm.xlu0 %13737, %v10432_v59  }
0x38ba   : > { %10467 = vperm.xlu1 %13738, %v10433_v53  }
0x38bc   : > { %10472 = vperm.xlu0 %13737, %v10434_v20  }
0x38f0   : > { %v14751_v18 = vpop.permute.xlu1 %14750 }
0x38f1   : > { %v14753_v30 = vunpack.i.h.bf16 %v14751_v18  ;;  %v14752_v34 = vunpack.i.l.bf16 %v14751_v18 }
0x38f2   : > { %v14756_v46 = vpop.permute.xlu0 %14755 }
0x38f3   : > { %v10420_v56 = vpack.c.bf16 %v14753_v30, %v14752_v34  ;;  %v14758_v8 = vunpack.i.h.bf16 %v14756_v46  ;;  %v14757_v0 = vunpack.i.l.bf16 %v14756_v46 }
0x38f4   : > { %v14761_v27 = vpop.permute.xlu1 %14760 }
0x38f5   : > { %10629 = vmatpush1.bf16.msra.mxu0 %v10420_v56  ;;  %v14763_v49 = vunpack.i.h.bf16 %v14761_v27  ;;  %v14762_v26 = vunpack.i.l.bf16 %v14761_v27  ;;  %v10419_v54 = vpack.c.bf16 %v14758_v8, %v14757_v0 }
0x38f6   : > { %v14766_v40 = vpop.permute.xlu0 %14765  ;;  %10630 = vmatprep.subr.bf16.mxu0 %v18404_v5 }
0x38f7   : > { %v10418_v19 = vpack.c.bf16 %v14763_v49, %v14762_v26  ;;  %v14768_v42 = vunpack.i.h.bf16 %v14766_v40  ;;  %v14767_v33 = vunpack.i.l.bf16 %v14766_v40 }
0x38f8   : > { %v14771_v41 = vpop.permute.xlu1 %14770 }
0x38f9   : > { %10631 = vmatpush1.bf16.msra.mxu0 %v10419_v54  ;;  %v14773_v4 = vunpack.i.h.bf16 %v14771_v41  ;;  %v14772_v35 = vunpack.i.l.bf16 %v14771_v41  ;;  %v10417_v17 = vpack.c.bf16 %v14768_v42, %v14767_v33 }
0x38fa   : > { %v14776_v21 = vpop.permute.xlu0 %14775  ;;  %10632 = vmatprep.subr.bf16.mxu0 %v18404_v5 }
0x38fb   : > { %v14778_v36 = vunpack.i.h.bf16 %v14776_v21  ;;  %v14777_v29 = vunpack.i.l.bf16 %v14776_v21  ;;  %v10416_v38 = vpack.c.bf16 %v14773_v4, %v14772_v35 }
0x38fc   : > { %v14781_v3 = vpop.permute.xlu1 %14780 }
0x38fd   : > { %v10412_v31 = vpack.c.bf16 %v14778_v36, %v14777_v29  ;;  %v14783_v47 = vunpack.i.h.bf16 %v14781_v3  ;;  %v14782_v22 = vunpack.i.l.bf16 %v14781_v3  ;;  %10633 = vmatpush1.bf16.msra.mxu0 %v10418_v19  ;;  %v10401_v19 = vpack.c.bf16 %v17818_v58, %v17812_v63 }
0x38fe   : > { %v14786_v11 = vpop.permute.xlu0 %14785  ;;  %10634 = vmatprep.subr.bf16.mxu0 %v18404_v5 }
0x38ff   : > { %v10404_v51 = vpack.c.bf16 %v14783_v47, %v14782_v22  ;;  %12891 = vmatprep.subr.bf16.mxu1 %v10412_v31  ;;  %v14788_v2 = vunpack.i.h.bf16 %v14786_v11  ;;  %v14787_v45 = vunpack.i.l.bf16 %v14786_v11 }
0x3900   : > { %v14791_v43 = vpop.permute.xlu1 %14790 }
0x3901   : > { %v14793_v9 = vunpack.i.h.bf16 %v14791_v43  ;;  %v14792_v44 = vunpack.i.l.bf16 %v14791_v43  ;;  %12892 = vmatpush3.bf16.msra.mxu1 %v10404_v51  ;;  %10635 = vmatpush1.bf16.msra.mxu0 %v10417_v17  ;;  %v10415_v59 = vpack.c.bf16 %v14788_v2, %v14787_v45 }
0x3902   : > { %v14796_v48 = vpop.permute.xlu0 %14795  ;;  %10636 = vmatprep.subr.bf16.mxu0 %v18404_v5 }
0x3903   : > { %v10411_v60 = vpack.c.bf16 %v14793_v9, %v14792_v44  ;;  %v14798_v14 = vunpack.i.h.bf16 %v14796_v48  ;;  %v14797_v52 = vunpack.i.l.bf16 %v14796_v48 }
0x3904   : > { %v14801_v55 = vpop.permute.xlu1 %14800 }
0x3905   : > { %v10403_v23 = vpack.c.bf16 %v14798_v14, %v14797_v52  ;;  %12893 = vmatprep.subr.bf16.mxu1 %v10411_v60  ;;  %10637 = vmatpush1.bf16.msra.mxu0 %v10416_v38  ;;  %v14803_v39 = vunpack.i.h.bf16 %v14801_v55  ;;  %v14802_v16 = vunpack.i.l.bf16 %v14801_v55  ;;  %v15275_v60 = vld [vmem:[%s18405_s0] ss:$16 sps:$4 sm:$0xff]  }
0x3906   : > { %v14806_v6 = vpop.permute.xlu0 %14805  ;;  %10638 = vmatprep.subr.bf16.mxu0 %v18404_v5 }
0x3907   : > { %v14808_v53 = vunpack.i.h.bf16 %v14806_v6  ;;  %v14807_v20 = vunpack.i.l.bf16 %v14806_v6  ;;  %12894 = vmatpush3.bf16.msra.mxu1 %v10403_v23  ;;  %v10414_v34 = vpack.c.bf16 %v14803_v39, %v14802_v16  ;;  %v15287_v23 = vld [vmem:[%s18405_s0 + $0x2c] ss:$16 sps:$4 sm:$0xff]   ;;  %v15284_v39 = vld [vmem:[%s18405_s0 + $0x40] ss:$16 sps:$4 sm:$0xff]   ;;  %v15289_v16 = vld [vmem:[%s18405_s0 + $0x28] ss:$16 sps:$4 sm:$0xff]  }
0x3908   : > { %v14816_v18 = vpop.permute.xlu1 %14815  ;;  %v15292_v6 = vld [vmem:[%s18405_s0 + $0x64] ss:$16 sps:$4 sm:$0xff]  }
0x3909   : > { %v10410_v30 = vpack.c.bf16 %v14808_v53, %v14807_v20  ;;  %10639 = vmatpush1.bf16.msra.mxu0 %v10415_v59  ;;  %v14818_v56 = vunpack.i.h.bf16 %v14816_v18  ;;  %v14817_v8 = vunpack.i.l.bf16 %v14816_v18  ;;  %v15293_v59 = vld [vmem:[%s18405_s0 + $0x4c] ss:$16 sps:$4 sm:$0xff]   ;;  %v15290_v53 = vld [vmem:[%s18405_s0 + $0x60] ss:$16 sps:$4 sm:$0xff]   ;;  %v15295_v20 = vld [vmem:[%s18405_s0 + $0x48] ss:$16 sps:$4 sm:$0xff]  }
0x390a   : > { %v14811_v46 = vpop.permute.xlu0 %14810  ;;  %10640 = vmatprep.subr.bf16.mxu0 %v18404_v5  ;;  %v15296_v18 = vld [vmem:[%s18405_s0 + $0x6c] ss:$16 sps:$4 sm:$0xff]  }
0x390b   : > { %v14813_v0 = vunpack.i.h.bf16 %v14811_v46  ;;  %v14812_v27 = vunpack.i.l.bf16 %v14811_v46  ;;  %12895 = vmatprep.subr.bf16.mxu1 %v10410_v30  ;;  %v10413_v21 = vpack.c.bf16 %v14818_v56, %v14817_v8  ;;  %v15298_v30 = vld [vmem:[%s18405_s0 + $0x68] ss:$16 sps:$4 sm:$0xff]  }
0x390c   : > { %v14821_v49 = vpop.permute.xlu1 %14820  ;;  %12896 = vmatpush3.bf16.msra.mxu1 %v10402_v37 }
0x390d   : > { %v10409_v26 = vpack.c.bf16 %v14813_v0, %v14812_v27  ;;  %10641 = vmatpush1.bf16.msra.mxu0 %v10414_v34  ;;  %v14823_v40 = vunpack.i.h.bf16 %v14821_v49  ;;  %v14822_v54 = vunpack.i.l.bf16 %v14821_v49  ;;  %v10705_v34 = vld [vmem:[%s18409_s1] sm:$0x3]  ;;  %s18416_s1 = sld [smem:[#allocation29_spill]] }
0x390e   : > { %v14826_v41 = vpop.permute.xlu0 %14825  ;;  %10642 = vmatprep.subr.bf16.mxu0 %v18404_v5  ;;  %v10719_v46 = vsel %vm1593_vm1, %v10705_v34, 0 }
0x390f   : > { %v14828_v42 = vunpack.i.h.bf16 %v14826_v41  ;;  %v14827_v33 = vunpack.i.l.bf16 %v14826_v41  ;;  %12897 = vmatprep.subr.bf16.mxu1 %v10409_v26  ;;  %v10426_v13 = vpack.c.bf16 %v14823_v40, %v14822_v54 }
0x3910   : > { %v14831_v36 = vpop.permute.xlu1 %14830  ;;  %12898 = vmatpush3.bf16.msra.mxu1 %v10401_v19 }
0x3911   : > { %v10408_v29 = vpack.c.bf16 %v14828_v42, %v14827_v33  ;;  %10643 = vmatpush1.bf16.msra.mxu0 %v10413_v21  ;;  %v14833_v37 = vunpack.i.h.bf16 %v14831_v36  ;;  %v14832_v3 = vunpack.i.l.bf16 %v14831_v36 }
0x3912   : > { %v14841_v61 = vpop.permute.xlu0 %14840  ;;  %10648 = vmatprep.subr.bf16.mxu0 %v18404_v5 }
0x3913   : > { %v14843_v31 = vunpack.i.h.bf16 %v14841_v61  ;;  %v14842_v47 = vunpack.i.l.bf16 %v14841_v61  ;;  %12899 = vmatprep.subr.bf16.mxu1 %v10408_v29  ;;  %v10425_v11 = vpack.c.bf16 %v14833_v37, %v14832_v3 }
0x3914   : > { %v14836_v63 = vpop.permute.xlu1 %14835  ;;  %12900 = vmatpush3.bf16.msra.mxu1 %v10400_v50 }
0x3915   : > { %v10407_v58 = vpack.c.bf16 %v14843_v31, %v14842_v47  ;;  %10649 = vmatpush2.bf16.msra.mxu0 %v10426_v13  ;;  %v14838_v22 = vunpack.i.h.bf16 %v14836_v63  ;;  %v14837_v4 = vunpack.i.l.bf16 %v14836_v63 }
0x3916   : > { %v14846_v35 = vpop.permute.xlu0 %14845  ;;  %10650 = vmatprep.subr.bf16.mxu0 %v18404_v5 }
0x3917   : > { %v14848_v17 = vunpack.i.h.bf16 %v14846_v35  ;;  %v14847_v51 = vunpack.i.l.bf16 %v14846_v35  ;;  %12901 = vmatprep.subr.bf16.mxu1 %v10407_v58  ;;  %v10424_v7 = vpack.c.bf16 %v14838_v22, %v14837_v4 }
0x3918   : > { %v14851_v43 = vpop.permute.xlu1 %14850  ;;  %12902 = vmatpush3.bf16.msra.mxu1 %v10399_v15 }
0x3919   : > { %v10406_v9 = vpack.c.bf16 %v14848_v17, %v14847_v51  ;;  %10651 = vmatpush2.bf16.msra.mxu0 %v10425_v11  ;;  %v14853_v50 = vunpack.i.h.bf16 %v14851_v43  ;;  %v14852_v44 = vunpack.i.l.bf16 %v14851_v43 }
0x391a   : > { %v14856_v62 = vpop.permute.xlu0 %14855  ;;  %10652 = vmatprep.subr.bf16.mxu0 %v18404_v5 }
0x391b   : > { %v14858_v38 = vunpack.i.h.bf16 %v14856_v62  ;;  %v14857_v2 = vunpack.i.l.bf16 %v14856_v62  ;;  %12903 = vmatprep.subr.bf16.mxu1 %v10406_v9  ;;  %v10423_v1 = vpack.c.bf16 %v14853_v50, %v14852_v44 }
0x391c   : > { %v14861_v48 = vpop.permute.xlu1 %14860  ;;  %12904 = vmatpush3.bf16.msra.mxu1 %v10398_v57 }
0x391d   : > { %v10405_v12 = vpack.c.bf16 %v14858_v38, %v14857_v2  ;;  %10653 = vmatpush2.bf16.msra.mxu0 %v10424_v7  ;;  %v14863_v15 = vunpack.i.h.bf16 %v14861_v48  ;;  %v14862_v45 = vunpack.i.l.bf16 %v14861_v48 }
0x391e   : > { %10654 = vmatprep.subr.bf16.mxu0 %v18404_v5  ;;  %v14866_v14 = vpop.permute.xlu0 %14865 }
0x391f   : > { %12905 = vmatprep.subr.bf16.mxu1 %v10405_v12  ;;  %v10422_v28 = vpack.c.bf16 %v14863_v15, %v14862_v45  ;;  %v14868_v57 = vunpack.i.h.bf16 %v14866_v14  ;;  %v14867_v52 = vunpack.i.l.bf16 %v14866_v14 }
0x3920   : > { %12906 = vmatpush3.bf16.msra.mxu1 %v10397_v24  ;;  %v15286_v24 = vld [vmem:[%s18405_s0 + $0x44] ss:$16 sps:$4 sm:$0xff]   ;;  %s18417_s0 = sld [smem:[#allocation30_spill]] }
0x3921   : > { %10655 = vmatpush2.bf16.msra.mxu0 %v10423_v1  ;;  %v10421_v55 = vpack.c.bf16 %v14868_v57, %v14867_v52  ;;  %13664 = vmatprep.subr.msk.bf16.mxu1 %vm1593_vm1, %v10705_v34  ;;  %vm18412_vm1 = vmmov %vm18401_vm6 }
0x3922   : > { %10656 = vmatprep.subr.bf16.mxu0 %v18404_v5  ;;  %vm18413_vm6 = vmmov %vm18412_vm1 }
0x3923   : > { %10596 = vmatmul.mubr.bf16.vlgmr.msra.gmra.mxu1 %v15275_v60  ;;  %vm18414_vm12 = vmmov %vm18412_vm1 }
0x3924   : > { %10603 = vmatprep.mubr.bf16.mxu1 %v15280_v32  ;;  %13581 = vmatpush3.bf16.msra.mxu1 %v10719_v46  ;;  %vm18415_vm3 = vmmov %vm18412_vm1 }
0x3925   : > { %10657 = vmatpush2.bf16.msra.mxu0 %v10422_v28 }
0x3926   : > { %10658 = vmatprep.subr.bf16.mxu0 %v18404_v5 }
0x3929   : > { %10659 = vmatpush2.bf16.msra.mxu0 %v10421_v55  ;;  %v10438_v26 = vpop.permute.xlu1 %10437 }
0x392b   : > { %10604 = vmatmul.mubr.bf16.gmra.mxu1 %v15278_v25  ;;  %v10443_v42 = vpop.permute.xlu0 %10442 }
0x392c   : > { %10661 = vmatmul.mubr.bf16.vlgmr.msra.gmra.mxu0 %v15281_v10  ;;  %10611 = vmatprep.mubr.bf16.mxu1 %v15286_v24 }
0x392d   : > { %12180 = vmatprep.mubr.msk.bf16.mxu0 %vm18408_vm7, %v15287_v23  ;;  %v10448_v63 = vpop.permute.xlu1 %10447 }
0x392f   : > { %v10453_v17 = vpop.permute.xlu0 %10452 }
0x3931   : > { %v10458_v48 = vpop.permute.xlu1 %10457 }
0x3933   : > { %10612 = vmatmul.mubr.bf16.gmra.mxu1 %v15284_v39  ;;  %v10463_v14 = vpop.permute.xlu0 %10462 }
0x3934   : > { %10669 = vmatmul.mubr.bf16.gmra.mxu0 %v15289_v16  ;;  %10619 = vmatprep.mubr.bf16.mxu1 %v15292_v6 }
0x3935   : > { %12181 = vmatprep.mubr.msk.bf16.mxu0 %vm18410_vm0, %v15293_v59  ;;  %v10468_v59 = vpop.permute.xlu1 %10467 }
0x393b   : > { %10620 = vmatmul.mubr.bf16.gmra.mxu1 %v15290_v53 }
0x393c   : > { %10677 = vmatmul.mubr.bf16.gmra.mxu0 %v15295_v20 }
0x393d   : > { %12182 = vmatprep.mubr.msk.bf16.mxu0 %vm18411_vm15, %v15296_v18 }
0x3944   : > { %10685 = vmatmul.mubr.bf16.gmra.mxu0 %v15298_v30  ;;  %v10473_v30 = vpop.permute.xlu0 %10472 }
0x39e3   : > { %v12907_v56 = vpop.f32.mrf.mxu1 }
0x39e5   : > { %v12908_v8 = vpop.f32.mrf.mxu1 }
0x39e6   : > { %v12909_v27 = vadd.f32 %v12908_v8, %v12907_v56 }
0x39e7   : > { %v12910_v0 = vpop.f32.mrf.mxu1 }
0x39e8   : > { %v10598_v41 = vadd.f32 %v12909_v27, %v10438_v26 }
0x39e9   : > { %v12911_v49 = vpop.f32.mrf.mxu1 }
0x39ea   : > { %v12912_v40 = vadd.f32 %v12911_v49, %v12910_v0 }
0x39eb   : > { %v12913_v54 = vpop.f32.mrf.mxu1 }
0x39ec   : > { %v10662_v19 = vpop.f32.mrf.mxu0  ;;  %v10601_v13 = vadd.f32 %v12912_v40, %v10443_v42 }
0x39ed   : > { %v12914_v21 = vpop.f32.mrf.mxu1  ;;  %v10663_v33 = vadd.f32 %v10662_v19, %v10598_v41 }
0x39ee   : > { %v10664_v36 = vpop.f32.mrf.mxu0  ;;  %v12915_v61 = vadd.f32 %v12914_v21, %v12913_v54 }
0x39ef   : > { %v12916_v29 = vpop.f32.mrf.mxu1  ;;  %15593 = vtanh.f32 %v10663_v33 }
0x39f0   : > { %v10665_v37 = vpop.f32.mrf.mxu0  ;;  %v10606_v4 = vadd.f32 %v12915_v61, %v10448_v63 }
0x39f1   : > { %v10666_v3 = vadd.f32 %v10665_v37, %v10601_v13  ;;  %v12917_v31 = vpop.f32.mrf.mxu1 }
0x39f2   : > { %v10667_v47 = vpop.f32.mrf.mxu0  ;;  %v12918_v58 = vadd.f32 %v12917_v31, %v12916_v29 }
0x39f3   : > { %15595 = vtanh.f32 %v10666_v3  ;;  %v12919_v22 = vpop.f32.mrf.mxu1 }
0x39f4   : > { %v10670_v35 = vpop.f32.mrf.mxu0  ;;  %v10609_v7 = vadd.f32 %v12918_v58, %v10453_v17 }
0x39f5   : > { %v12920_v11 = vpop.f32.mrf.mxu1  ;;  %v10671_v51 = vadd.f32 %v10670_v35, %v10606_v4 }
0x39f6   : > { %v10672_v43 = vpop.f32.mrf.mxu0  ;;  %v12921_v62 = vadd.f32 %v12920_v11, %v12919_v22 }
0x39f7   : > { %v12922_v9 = vpop.f32.mrf.mxu1  ;;  %15597 = vtanh.f32 %v10671_v51  ;;  %v15301_v51 = vld [vmem:[%s18416_s1 + $0x4] ss:$12 sps:$4 sm:$0xff]   ;;  %v15302_v43 = vld [vmem:[%s18416_s1 + $0x8] ss:$12 sps:$4 sm:$0xff]  }
0x39f8   : > { %v10673_v50 = vpop.f32.mrf.mxu0  ;;  %v10614_v15 = vadd.f32 %v12921_v62, %v10458_v48  ;;  %11010 = vmatprep.mubr.bf16.mxu0 %v15301_v51  ;;  %v10921_v62 = vld [vmem:[%s18417_s0 + $0x18] sm:$0xff] }
0x39f9   : > { %v10674_v44 = vadd.f32 %v10673_v50, %v10609_v7  ;;  %v12923_v38 = vpop.f32.mrf.mxu1  ;;  %v10918_v7 = vld [vmem:[%s18417_s0] sm:$0xff]  ;;  %v10920_v50 = vld [vmem:[%s18417_s0 + $0x10] sm:$0xff] }
0x39fa   : > { %v10675_v2 = vpop.f32.mrf.mxu0  ;;  %v12924_v12 = vadd.f32 %v12923_v38, %v12922_v9  ;;  %v10919_v9 = vld [vmem:[%s18417_s0 + $0x8] sm:$0xff]  ;;  %s18418_s0 = sld [smem:[#allocation31_spill]] }
0x39fb   : > { %15599 = vtanh.f32 %v10674_v44  ;;  %v12925_v1 = vpop.f32.mrf.mxu1 }
0x39fc   : > { %v10678_v45 = vpop.f32.mrf.mxu0  ;;  %v15594_v57 = vpop.eup %15593  ;;  %v10617_v55 = vadd.f32 %v12924_v12, %v10463_v14 }
0x39fd   : > { %v12926_v60 = vpop.f32.mrf.mxu1  ;;  %v10679_v32 = vadd.f32 %v10678_v45, %v10614_v15 }
0x39fe   : > { %v10680_v28 = vpop.f32.mrf.mxu0  ;;  %v12927_v10 = vadd.f32 %v12926_v60, %v12925_v1 }
0x39ff   : > { %v12928_v52 = vpop.f32.mrf.mxu1  ;;  %15601 = vtanh.f32 %v10679_v32 }
0x3a00   : > { %v15596_v25 = vpop.eup %15595  ;;  %v10681_v24 = vpop.f32.mrf.mxu0  ;;  %v10622_v20 = vadd.f32 %v12927_v10, %v10468_v59 }
0x3a01   : > { %v10682_v23 = vadd.f32 %v10681_v24, %v10617_v55  ;;  %v12929_v39 = vpop.f32.mrf.mxu1  ;;  %v10701_v16 = vpack.c.bf16 %v15596_v25, %v15594_v57 }
0x3a02   : > { %v10683_v6 = vpop.f32.mrf.mxu0  ;;  %v12930_v53 = vadd.f32 %v12929_v39, %v12928_v52 }
0x3a03   : > { %15603 = vtanh.f32 %v10682_v23  ;;  %13582 = vmatprep.mubr.msk.bf16.mxu1 %vm18412_vm1, %v10701_v16 }
0x3a04   : > { %v10686_v18 = vpop.f32.mrf.mxu0  ;;  %v15598_v56 = vpop.eup %15597  ;;  %v10625_v8 = vadd.f32 %v12930_v53, %v10473_v30 }
0x3a05   : > { %v10687_v34 = vadd.f32 %v10686_v18, %v10622_v20 }
0x3a06   : > { %v10688_v46 = vpop.f32.mrf.mxu0 }
0x3a07   : > { %15605 = vtanh.f32 %v10687_v34 }
0x3a08   : > { %v15600_v0 = vpop.eup %15599  ;;  %v10689_v27 = vpop.f32.mrf.mxu0 }
0x3a09   : > { %v10702_v49 = vpack.c.bf16 %v15600_v0, %v15598_v56  ;;  %v10690_v26 = vadd.f32 %v10689_v27, %v10625_v8 }
0x3a0a   : > { %v10691_v40 = vpop.f32.mrf.mxu0 }
0x3a0b   : > { %15607 = vtanh.f32 %v10690_v26  ;;  %13583 = vmatmul.mubr.msk.bf16.vlgmr.msra.gmra.mxu1 %vm18413_vm6, %v10702_v49 }
0x3a0c   : > { %v15602_v54 = vpop.eup %15601 }
0x3a10   : > { %v15604_v41 = vpop.eup %15603 }
0x3a11   : > { %v10703_v19 = vpack.c.bf16 %v15604_v41, %v15602_v54 }
0x3a13   : > { %13586 = vmatprep.mubr.msk.bf16.mxu1 %vm18414_vm12, %v10703_v19 }
0x3a14   : > { %v15606_v21 = vpop.eup %15605 }
0x3a18   : > { %v15608_v42 = vpop.eup %15607 }
0x3a19   : > { %v10704_v33 = vpack.c.bf16 %v15608_v42, %v15606_v21 }
0x3a1b   : > { %13587 = vmatmul.mubr.msk.bf16.gmra.mxu1 %vm18415_vm3, %v10704_v33 }
0x3a1c   : > { %13598 = vmatprep.mubr.msk.bf16.mxu1 %vm1759_vm10, %v15302_v43 }
0x3acb   : > { %v17921_v36 = vpop.f32.mrf.mxu1 }
0x3acd   : > { %v17923_v29 = vpop.f32.mrf.mxu1 }
0x3acf   : > { %v17925_v13 = vpop.f32.mrf.mxu1 }
0x3ad0   : > { %v10899_v37 = vpack.c.bf16 %v17925_v13, %v17921_v36  ;;  %v14894_v11 = vpack.i.bf16 %v17925_v13, %v17921_v36  ;;  %v15303_v36 = vld [vmem:[%s18416_s1 + $0x20] ss:$12 sps:$4 sm:$0xff]   ;;  %v15304_v13 = vld [vmem:[%s18416_s1 + $0x18] ss:$12 sps:$4 sm:$0xff]  }
0x3ad1   : > { %v17927_v61 = vpop.f32.mrf.mxu1 }
0x3ad2   : > { %v10898_v3 = vpack.c.bf16 %v17927_v61, %v17923_v29  ;;  %v14904_v17 = vpack.i.bf16 %v17927_v61, %v17923_v29 }
0x3adb   : > { %v17933_v31 = vpop.f32.mrf.mxu1 }
0x3add   : > { %v17935_v47 = vpop.f32.mrf.mxu1 }
0x3adf   : > { %v17937_v63 = vpop.f32.mrf.mxu1 }
0x3ae0   : > { %v14874_v58 = vpack.i.bf16 %v17937_v63, %v17933_v31  ;;  %v10901_v4 = vpack.c.bf16 %v17937_v63, %v17933_v31 }
0x3ae1   : > { %v17941_v22 = vpop.f32.mrf.mxu1 }
0x3ae2   : > { %14875 = vrot.lane.b32.xlu0 %v14874_v58, %s18265_s7  ;;  %14870 = vrot.lane.b32.xlu1 %v14874_v58, %s18264_s5  ;;  %v14889_v35 = vpack.i.bf16 %v17941_v22, %v17935_v47 }
0x3ae6   : > { %14890 = vrot.lane.b32.xlu0 %v14889_v35, %s18265_s7  ;;  %14880 = vrot.lane.b32.xlu1 %v14889_v35, %s18264_s5 }
0x3aea   : > { %14895 = vrot.lane.b32.xlu0 %v14894_v11, %s18265_s7  ;;  %14885 = vrot.lane.b32.xlu1 %v14894_v11, %s18264_s5 }
0x3aee   : > { %14905 = vrot.lane.b32.xlu0 %v14904_v17, %s18265_s7  ;;  %14900 = vrot.lane.b32.xlu1 %v14904_v17, %s18264_s5 }
0x3af2   : > { %14915 = vrot.lane.b32.xlu0 %v14889_v35, %s18268_s30  ;;  %14910 = vrot.lane.b32.xlu1 %v14874_v58, %s18268_s30 }
0x3af6   : > { %14925 = vrot.lane.b32.xlu0 %v14874_v58, %s18269_s26  ;;  %14920 = vrot.lane.b32.xlu1 %v14894_v11, %s18268_s30 }
0x3afa   : > { %14935 = vrot.lane.b32.xlu0 %v14889_v35, %s18269_s26  ;;  %14930 = vrot.lane.b32.xlu1 %v14904_v17, %s18268_s30 }
0x3afe   : > { %14945 = vrot.lane.b32.xlu0 %v14904_v17, %s18269_s26  ;;  %14940 = vrot.lane.b32.xlu1 %v14894_v11, %s18269_s26 }
0x3b02   : > { %10929 = vperm.xlu0 %13737, %v10919_v9   ;;  %10924 = vperm.xlu1 %13738, %v10918_v7  }
0x3b06   : > { %10939 = vperm.xlu0 %13737, %v10921_v62   ;;  %10934 = vperm.xlu1 %13738, %v10920_v50   ;;  %v10900_v62 = vpack.c.bf16 %v17941_v22, %v17935_v47 }
0x3b54   : > { %v14876_v44 = vpop.permute.xlu0 %14875  ;;  %v14871_v38 = vpop.permute.xlu1 %14870 }
0x3b55   : > { %v14878_v2 = vunpack.i.h.bf16 %v14876_v44  ;;  %v14877_v48 = vunpack.i.l.bf16 %v14876_v44  ;;  %v14873_v12 = vunpack.i.h.bf16 %v14871_v38  ;;  %v14872_v1 = vunpack.i.l.bf16 %v14871_v38 }
0x3b57   : > { %v10905_v15 = vpack.c.bf16 %v14878_v2, %v14877_v48  ;;  %v10913_v45 = vpack.c.bf16 %v14873_v12, %v14872_v1 }
0x3b58   : > { %v14891_v60 = vpop.permute.xlu0 %14890  ;;  %v14881_v14 = vpop.permute.xlu1 %14880 }
0x3b59   : > { %v14893_v32 = vunpack.i.h.bf16 %v14891_v60  ;;  %v14892_v28 = vunpack.i.l.bf16 %v14891_v60  ;;  %v14883_v57 = vunpack.i.h.bf16 %v14881_v14  ;;  %v14882_v52 = vunpack.i.l.bf16 %v14881_v14  ;;  %12936 = vmatprep.subr.bf16.mxu0 %v10913_v45  ;;  %v15299_v60 = vld [vmem:[%s18416_s1] ss:$12 sps:$4 sm:$0xff]   ;;  %v15306_v14 = vld [vmem:[%s18416_s1 + $0x1c] ss:$12 sps:$4 sm:$0xff]   ;;  %s18421_s1 = sld [smem:[#allocation32_spill]] }
0x3b5a   : > { %12937 = vmatpush3.bf16.msra.mxu0 %v10905_v15 }
0x3b5b   : > { %v10904_v55 = vpack.c.bf16 %v14893_v32, %v14892_v28  ;;  %v10912_v25 = vpack.c.bf16 %v14883_v57, %v14882_v52  ;;  %v18419_v32 = vmov 0.0  }
0x3b5c   : > { %v14896_v10 = vpop.permute.xlu0 %14895  ;;  %v14886_v24 = vpop.permute.xlu1 %14885 }
0x3b5d   : > { %v14898_v23 = vunpack.i.h.bf16 %v14896_v10  ;;  %v14897_v39 = vunpack.i.l.bf16 %v14896_v10  ;;  %v14888_v16 = vunpack.i.h.bf16 %v14886_v24  ;;  %v14887_v6 = vunpack.i.l.bf16 %v14886_v24  ;;  %12938 = vmatprep.subr.bf16.mxu0 %v10912_v25 }
0x3b5e   : > { %12939 = vmatpush3.bf16.msra.mxu0 %v10904_v55 }
0x3b5f   : > { %v10903_v59 = vpack.c.bf16 %v14898_v23, %v14897_v39  ;;  %v10911_v53 = vpack.c.bf16 %v14888_v16, %v14887_v6 }
0x3b60   : > { %v14906_v20 = vpop.permute.xlu0 %14905  ;;  %v14901_v18 = vpop.permute.xlu1 %14900 }
0x3b61   : > { %v14908_v30 = vunpack.i.h.bf16 %v14906_v20  ;;  %v14907_v34 = vunpack.i.l.bf16 %v14906_v20  ;;  %v14903_v46 = vunpack.i.h.bf16 %v14901_v18  ;;  %v14902_v56 = vunpack.i.l.bf16 %v14901_v18  ;;  %12940 = vmatprep.subr.bf16.mxu0 %v10911_v53 }
0x3b62   : > { %12941 = vmatpush3.bf16.msra.mxu0 %v10903_v59 }
0x3b63   : > { %v10902_v8 = vpack.c.bf16 %v14908_v30, %v14907_v34  ;;  %v10910_v0 = vpack.c.bf16 %v14903_v46, %v14902_v56 }
0x3b64   : > { %v14916_v27 = vpop.permute.xlu0 %14915  ;;  %v14911_v49 = vpop.permute.xlu1 %14910 }
0x3b65   : > { %v14918_v26 = vunpack.i.h.bf16 %v14916_v27  ;;  %v14917_v40 = vunpack.i.l.bf16 %v14916_v27  ;;  %v14913_v54 = vunpack.i.h.bf16 %v14911_v49  ;;  %v14912_v41 = vunpack.i.l.bf16 %v14911_v49  ;;  %12942 = vmatprep.subr.bf16.mxu0 %v10910_v0 }
0x3b66   : > { %12943 = vmatpush3.bf16.msra.mxu0 %v10902_v8 }
0x3b67   : > { %v10909_v19 = vpack.c.bf16 %v14913_v54, %v14912_v41  ;;  %v10908_v21 = vpack.c.bf16 %v14918_v26, %v14917_v40 }
0x3b68   : > { %v14926_v42 = vpop.permute.xlu0 %14925  ;;  %v14921_v33 = vpop.permute.xlu1 %14920 }
0x3b69   : > { %v14928_v58 = vunpack.i.h.bf16 %v14926_v42  ;;  %v14927_v35 = vunpack.i.l.bf16 %v14926_v42  ;;  %v14923_v11 = vunpack.i.h.bf16 %v14921_v33  ;;  %v14922_v17 = vunpack.i.l.bf16 %v14921_v33  ;;  %12944 = vmatprep.subr.bf16.mxu0 %v10909_v19 }
0x3b6a   : > { %12945 = vmatpush3.bf16.msra.mxu0 %v10901_v4 }
0x3b6b   : > { %v10917_v51 = vpack.c.bf16 %v14928_v58, %v14927_v35  ;;  %12946 = vmatprep.subr.bf16.mxu0 %v10908_v21  ;;  %v10907_v43 = vpack.c.bf16 %v14923_v11, %v14922_v17 }
0x3b6c   : > { %v14936_v9 = vpop.permute.xlu0 %14935  ;;  %v14931_v7 = vpop.permute.xlu1 %14930 }
0x3b6d   : > { %v14938_v50 = vunpack.i.h.bf16 %v14936_v9  ;;  %v14937_v44 = vunpack.i.l.bf16 %v14936_v9  ;;  %v14933_v38 = vunpack.i.h.bf16 %v14931_v7  ;;  %v14932_v2 = vunpack.i.l.bf16 %v14931_v7  ;;  %13590 = vmatprep.subr.bf16.mxu1 %v10917_v51 }
0x3b6e   : > { %12947 = vmatpush3.bf16.msra.mxu0 %v10900_v62  ;;  %13591 = vmatpush3.bf16.msra.mxu1 %v10917_v51 }
0x3b6f   : > { %v10916_v48 = vpack.c.bf16 %v14938_v50, %v14937_v44  ;;  %12948 = vmatprep.subr.bf16.mxu0 %v10907_v43  ;;  %v10906_v31 = vpack.c.bf16 %v14933_v38, %v14932_v2  ;;  %v15309_v44 = vld [vmem:[%s18421_s1 + $0x4] ss:$8 sps:$4 sm:$0xff]  }
0x3b70   : > { %v14946_v63 = vpop.permute.xlu0 %14945  ;;  %v14941_v4 = vpop.permute.xlu1 %14940 }
0x3b71   : > { %v14948_v12 = vunpack.i.h.bf16 %v14946_v63  ;;  %v14947_v1 = vunpack.i.l.bf16 %v14946_v63  ;;  %v14943_v15 = vunpack.i.h.bf16 %v14941_v4  ;;  %v14942_v45 = vunpack.i.l.bf16 %v14941_v4  ;;  %13592 = vmatprep.subr.bf16.mxu1 %v10916_v48 }
0x3b72   : > { %12949 = vmatpush3.bf16.msra.mxu0 %v10899_v37  ;;  %13593 = vmatpush3.bf16.msra.mxu1 %v10916_v48  ;;  %v11082_v37 = vld [vmem:[%s18418_s0] sm:$0xf]  ;;  %s18420_s0 = sld [smem:[#allocation33_spill]] }
0x3b73   : > { %v10915_v47 = vpack.c.bf16 %v14943_v15, %v14942_v45  ;;  %12950 = vmatprep.subr.bf16.mxu0 %v10906_v31  ;;  %v10914_v22 = vpack.c.bf16 %v14948_v12, %v14947_v1  ;;  %v11090_v29 = vsel %vm1667_vm8, %v11082_v37, 0 }
0x3b75   : > { %13594 = vmatprep.subr.bf16.mxu1 %v10915_v47 }
0x3b76   : > { %12951 = vmatpush3.bf16.msra.mxu0 %v10898_v3  ;;  %13595 = vmatpush3.bf16.msra.mxu1 %v10915_v47 }
0x3b77   : > { %13596 = vmatprep.subr.bf16.mxu1 %v10914_v22  ;;  %13608 = vmatprep.subr.bf16.mxu0 %v18419_v32 }
0x3b78   : > { %v11205_v62 = vld [vmem:[%s18420_s0] sm:$0xff]  ;;  %v11206_v50 = vld [vmem:[%s18420_s0 + $0x8] sm:$0xff]  ;;  %s18422_s0 = sld [smem:[#allocation34_spill]] }
0x3b79   : > { %11011 = vmatmul.mubr.bf16.vlgmr.msra.gmra.mxu0 %v15299_v60 }
0x3b7a   : > { %13597 = vmatpush3.bf16.msra.mxu1 %v10914_v22  ;;  %11018 = vmatprep.mubr.bf16.mxu0 %v15306_v14 }
0x3b7b   : > { %13665 = vmatprep.subr.msk.bf16.mxu1 %vm1667_vm8, %v11082_v37 }
0x3b7d   : > { %13599 = vmatmul.mubr.msk.bf16.vlgmr.msra.gmra.mxu1 %vm1759_vm10, %v15303_v36  ;;  %v10925_v28 = vpop.permute.xlu1 %10924  ;;  %v10930_v23 = vpop.permute.xlu0 %10929  ;;  %vm18423_vm10 = vcmask 130048  }
0x3b7e   : > { %13603 = vmatpush3.bf16.msra.mxu1 %v11090_v29 }
0x3b7f   : > { %11229 = vmatprep.subr.bf16.mxu1 %v18404_v5 }
0x3b81   : > { %11019 = vmatmul.mubr.bf16.gmra.mxu0 %v15304_v13  ;;  %v10935_v46 = vpop.permute.xlu1 %10934  ;;  %v10940_v49 = vpop.permute.xlu0 %10939 }
0x3b82   : > { %13610 = vmatprep.mubr.msk.bf16.mxu0 %vm15688_vm2, %v18419_v32 }
0x3c39   : > { %v12952_v61 = vpop.f32.mrf.mxu0 }
0x3c3b   : > { %v12953_v3 = vpop.f32.mrf.mxu0 }
0x3c3c   : > { %v12954_v57 = vadd.f32 %v12953_v3, %v12952_v61 }
0x3c3d   : > { %v12955_v52 = vpop.f32.mrf.mxu0  ;;  %v13600_v55 = vpop.f32.mrf.mxu1 }
0x3c3e   : > { %v11013_v25 = vadd.f32 %v12954_v57, %v10925_v28 }
0x3c3f   : > { %v12956_v10 = vpop.f32.mrf.mxu0  ;;  %v11061_v24 = vpop.f32.mrf.mxu1 }
0x3c40   : > { %v12957_v39 = vadd.f32 %v12956_v10, %v12955_v52  ;;  %v11062_v16 = vadd.f32 %v11061_v24, %v11013_v25 }
0x3c41   : > { %v12958_v6 = vpop.f32.mrf.mxu0  ;;  %v13601_v59 = vpop.f32.mrf.mxu1 }
0x3c42   : > { %v11016_v53 = vadd.f32 %v12957_v39, %v10930_v23  ;;  %15609 = vtanh.f32 %v11062_v16 }
0x3c43   : > { %v12959_v20 = vpop.f32.mrf.mxu0  ;;  %v11064_v18 = vpop.f32.mrf.mxu1 }
0x3c44   : > { %v12960_v30 = vadd.f32 %v12959_v20, %v12958_v6  ;;  %v11065_v34 = vadd.f32 %v11064_v18, %v11016_v53  ;;  %v15307_v20 = vld [vmem:[%s18421_s1] ss:$8 sps:$4 sm:$0xff]   ;;  %s18428_s1 = sld [smem:[#allocation42_spill]] }
0x3c45   : > { %v12961_v56 = vpop.f32.mrf.mxu0  ;;  %v15310_v18 = vld [vmem:[%s18422_s0] sm:$0xff]   ;;  %s18424_s0 = sld [smem:[#allocation37_spill]] }
0x3c46   : > { %v11021_v8 = vadd.f32 %v12960_v30, %v10935_v46  ;;  %15611 = vtanh.f32 %v11065_v34  ;;  %13609 = vmatpush3.bf16.msra.mxu0 %v15310_v18 }
0x3c47   : > { %v12962_v0 = vpop.f32.mrf.mxu0  ;;  %13614 = vmatprep.subr.bf16.mxu0 %v18419_v32 }
0x3c48   : > { %v12963_v27 = vadd.f32 %v12962_v0, %v12961_v56  ;;  %v11070_v26 = vadd.f32 %v13600_v55, %v11021_v8 }
0x3c4a   : > { %v11024_v40 = vadd.f32 %v12963_v27, %v10940_v49  ;;  %15613 = vtanh.f32 %v11070_v26 }
0x3c4c   : > { %v11073_v54 = vadd.f32 %v13601_v59, %v11024_v40 }
0x3c4e   : > { %15615 = vtanh.f32 %v11073_v54 }
0x3c4f   : > { %v15610_v41 = vpop.eup %15609 }
0x3c53   : > { %v15612_v19 = vpop.eup %15611 }
0x3c54   : > { %v11080_v21 = vpack.c.bf16 %v15612_v19, %v15610_v41 }
0x3c56   : > { %13604 = vmatprep.mubr.msk.bf16.mxu1 %vm1880_vm13, %v11080_v21 }
0x3c57   : > { %v15614_v42 = vpop.eup %15613 }
0x3c5b   : > { %v15616_v33 = vpop.eup %15615 }
0x3c5c   : > { %v11081_v58 = vpack.c.bf16 %v15616_v33, %v15614_v42 }
0x3c5e   : > { %13605 = vmatmul.mubr.msk.bf16.vlgmr.msra.gmra.mxu1 %vm1880_vm13, %v11081_v58  ;;  %v11357_v58 = vld [vmem:[%s18312_s11] sm:$0xff]  ;;  %vm6606_vm13 = vcmask 518144  }
0x3c5f   : > { %12199 = vmatprep.mubr.msk.bf16.mxu1 %vm2055_vm14, %v15309_v44 }
0x3d1e   : > { %v13606_v35 = vpop.f32.mrf.mxu1 }
0x3d20   : > { %v17999_v11 = vpop.f32.mrf.mxu1 }
0x3d22   : > { %v13607_v17 = vpop.f32.mrf.mxu1 }
0x3d23   : > { %v14949_v51 = vpack.i.bf16 %v13607_v17, %v13606_v35  ;;  %v11196_v9 = vpack.c.bf16 %v13607_v17, %v13606_v35 }
0x3d24   : > { %v11129_v43 = vpop.f32.mrf.mxu1 }
0x3d25   : > { %14950 = vrot.lane.b32.xlu1 %v14949_v51, %s18264_s5  ;;  %v14954_v7 = vpack.i.bf16 %v11129_v43, %v17999_v11  ;;  %v11195_v23 = vpack.c.bf16 %v11129_v43, %v17999_v11 }
0x3d27   : > { %14955 = vrot.lane.b32.xlu0 %v14954_v7, %s18264_s5 }
0x3d29   : > { %14960 = vrot.lane.b32.xlu1 %v14949_v51, %s18268_s30 }
0x3d2b   : > { %14965 = vrot.lane.b32.xlu0 %v14954_v7, %s18268_s30 }
0x3d2d   : > { %14970 = vrot.lane.b32.xlu1 %v14949_v51, %s18265_s7 }
0x3d2f   : > { %14975 = vrot.lane.b32.xlu0 %v14954_v7, %s18265_s7 }
0x3d31   : > { %14980 = vrot.lane.b32.xlu1 %v14949_v51, %s18269_s26 }
0x3d33   : > { %14985 = vrot.lane.b32.xlu0 %v14954_v7, %s18269_s26 }
0x3d35   : > { %11209 = vperm.xlu1 %13738, %v11205_v62  }
0x3d37   : > { %11214 = vperm.xlu0 %13737, %v11206_v50  }
0x3d97   : > { %v14951_v38 = vpop.permute.xlu1 %14950 }
0x3d98   : > { %v14953_v2 = vunpack.i.h.bf16 %v14951_v38  ;;  %v14952_v48 = vunpack.i.l.bf16 %v14951_v38 }
0x3d99   : > { %v14956_v31 = vpop.permute.xlu0 %14955 }
0x3d9a   : > { %v11202_v63 = vpack.c.bf16 %v14953_v2, %v14952_v48  ;;  %v14958_v4 = vunpack.i.h.bf16 %v14956_v31  ;;  %v14957_v12 = vunpack.i.l.bf16 %v14956_v31 }
0x3d9b   : > { %v14961_v1 = vpop.permute.xlu1 %14960 }
0x3d9c   : > { %11230 = vmatpush1.bf16.msra.mxu1 %v11202_v63  ;;  %v11201_v15 = vpack.c.bf16 %v14958_v4, %v14957_v12  ;;  %v14963_v45 = vunpack.i.h.bf16 %v14961_v1  ;;  %v14962_v47 = vunpack.i.l.bf16 %v14961_v1  ;;  %v11325_v12 = vld [vmem:[%s18313_s18] sm:$0xf]  ;;  %v15311_v1 = vld [vmem:[%s18424_s0 + $0x8] sm:$0xff]  }
0x3d9d   : > { %11231 = vmatprep.subr.bf16.mxu1 %v18404_v5  ;;  %v14966_v22 = vpop.permute.xlu0 %14965 }
0x3d9e   : > { %v11200_v60 = vpack.c.bf16 %v14963_v45, %v14962_v47  ;;  %v14968_v14 = vunpack.i.h.bf16 %v14966_v22  ;;  %v14967_v36 = vunpack.i.l.bf16 %v14966_v22 }
0x3d9f   : > { %v14971_v13 = vpop.permute.xlu1 %14970 }
0x3da0   : > { %11232 = vmatpush1.bf16.msra.mxu1 %v11201_v15  ;;  %v11199_v37 = vpack.c.bf16 %v14968_v14, %v14967_v36  ;;  %v14973_v29 = vunpack.i.h.bf16 %v14971_v13  ;;  %v14972_v61 = vunpack.i.l.bf16 %v14971_v13  ;;  %v15312_v15 = vld [vmem:[%s18424_s0] sm:$0xff]   ;;  %s18426_s0 = sld [smem:[#allocation39_spill]] }
0x3da1   : > { %11233 = vmatprep.subr.bf16.mxu1 %v18404_v5  ;;  %v14976_v3 = vpop.permute.xlu0 %14975 }
0x3da2   : > { %v11198_v28 = vpack.c.bf16 %v14973_v29, %v14972_v61  ;;  %v14978_v57 = vunpack.i.h.bf16 %v14976_v3  ;;  %v14977_v52 = vunpack.i.l.bf16 %v14976_v3 }
0x3da3   : > { %v14981_v25 = vpop.permute.xlu1 %14980 }
0x3da4   : > { %11234 = vmatpush1.bf16.msra.mxu1 %v11200_v60  ;;  %v11197_v55 = vpack.c.bf16 %v14978_v57, %v14977_v52  ;;  %v14983_v10 = vunpack.i.h.bf16 %v14981_v25  ;;  %v14982_v24 = vunpack.i.l.bf16 %v14981_v25  ;;  %v11484_v57 = vld [vmem:[%s15954_s6] sm:$0xff] }
0x3da5   : > { %11235 = vmatprep.subr.bf16.mxu1 %v18404_v5  ;;  %v14986_v39 = vpop.permute.xlu0 %14985 }
0x3da6   : > { %v11204_v16 = vpack.c.bf16 %v14983_v10, %v14982_v24  ;;  %v14988_v6 = vunpack.i.h.bf16 %v14986_v39  ;;  %v14987_v59 = vunpack.i.l.bf16 %v14986_v39 }
0x3da8   : > { %11236 = vmatpush1.bf16.msra.mxu1 %v11199_v37  ;;  %v11203_v53 = vpack.c.bf16 %v14988_v6, %v14987_v59  ;;  %v11467_v6 = vld [vmem:[%s18315_s22] sm:$0xf] }
0x3da9   : > { %11237 = vmatprep.subr.bf16.mxu1 %v18404_v5 }
0x3dac   : > { %11238 = vmatpush1.bf16.msra.mxu1 %v11198_v28 }
0x3dad   : > { %11239 = vmatprep.subr.bf16.mxu1 %v18404_v5 }
0x3db0   : > { %11240 = vmatpush1.bf16.msra.mxu1 %v11197_v55  ;;  %v11210_v34 = vpop.permute.xlu1 %11209 }
0x3db1   : > { %11241 = vmatprep.subr.bf16.mxu1 %v18404_v5 }
0x3db2   : > { %v11215_v8 = vpop.permute.xlu0 %11214 }
0x3db4   : > { %11242 = vmatpush1.bf16.msra.mxu1 %v11196_v9 }
0x3db5   : > { %11243 = vmatprep.subr.bf16.mxu1 %v18404_v5 }
0x3db8   : > { %11244 = vmatpush1.bf16.msra.mxu1 %v11195_v23 }
0x3db9   : > { %11257 = vmatprep.subr.bf16.mxu1 %v18404_v5 }
0x3dbc   : > { %11258 = vmatpush2.bf16.msra.mxu1 %v11204_v16 }
0x3dbd   : > { %11259 = vmatprep.subr.bf16.mxu1 %v18404_v5 }
0x3dc0   : > { %11260 = vmatpush2.bf16.msra.mxu1 %v11203_v53 }
0x3dc1   : > { %13628 = vmatprep.subr.bf16.mxu1 %v18419_v32 }
0x3dc3   : > { %11262 = vmatmul.mubr.bf16.vlgmr.msra.gmra.mxu1 %v15307_v20 }
0x3dc4   : > { %13632 = vmatprep.mubr.msk.bf16.mxu1 %vm15688_vm2, %v18419_v32  ;;  %13629 = vmatpush3.bf16.msra.mxu1 %v15311_v1 }
0x3dc5   : > { %13630 = vmatprep.subr.bf16.mxu1 %v18419_v32 }
0x3dc8   : > { %13631 = vmatpush3.bf16.msra.mxu1 %v15312_v15 }
0x3dc9   : > { %13646 = vmatprep.subr.bf16.mxu1 %v18419_v32 }
0x3e83   : > { %v11263_v30 = vpop.f32.mrf.mxu1 }
0x3e84   : > { %v11264_v46 = vadd.f32 %v11263_v30, %v11210_v34 }
0x3e85   : > { %v11265_v56 = vpop.f32.mrf.mxu1 }
0x3e86   : > { %15617 = vtanh.f32 %v11264_v46 }
0x3e87   : > { %v11266_v0 = vpop.f32.mrf.mxu1 }
0x3e88   : > { %v11267_v5 = vadd.f32 %v11266_v0, %v11215_v8 }
0x3e89   : > { %v11268_v27 = vpop.f32.mrf.mxu1 }
0x3e8a   : > { %15619 = vtanh.f32 %v11267_v5  ;;  %v11560_v5 = vld [vmem:[%s18426_s0] sm:$0x7] }
0x3e8b   : > { %v6554_v27 = vld [vmem:[%s18426_s0] sm:$0x7] }
0x3e93   : > { %v15618_v49 = vpop.eup %15617 }
0x3e97   : > { %v15620_v26 = vpop.eup %15619 }
0x3e98   : > { %v11272_v40 = vpack.c.bf16 %v15620_v26, %v15618_v49 }
0x3e9a   : > { %13611 = vmatmul.mubr.msk.bf16.vlgmr.msra.gmra.mxu0 %vm18423_vm10, %v11272_v40 }
0x3e9b   : > { %13624 = vmatprep.mubr.msk.bf16.mxu0 %vm15688_vm2, %v18419_v32 }
0x3f5a   : > { %v11318_v54 = vpop.f32.mrf.mxu0 }
0x3f5c   : > { %v13612_v41 = vpop.f32.mrf.mxu0 }
0x3f5e   : > { %v11321_v19 = vpop.f32.mrf.mxu0 }
0x3f5f   : > { %v14994_v21 = vpack.i.bf16 %v11321_v19, %v11318_v54  ;;  %v11352_v33 = vpack.c.bf16 %v11321_v19, %v11318_v54 }
0x3f60   : > { %v13613_v42 = vpop.f32.mrf.mxu0 }
0x3f61   : > { %14995 = vrot.lane.b32.xlu0 %v14994_v21, %s18264_s5  ;;  %14990 = vrot.lane.b32.xlu1 %v14994_v21, %s18269_s26 }
0x3f65   : > { %15005 = vrot.lane.b32.xlu0 %v14994_v21, %s18265_s7  ;;  %15000 = vrot.lane.b32.xlu1 %v14994_v21, %s18268_s30 }
0x3f69   : > { %11360 = vperm.xlu1 %13738, %v11357_v58   ;;  %v11543_v58 = vld [vmem:[%s15959_s20] sm:$0x3] }
0x3fd3   : > { %v14996_v35 = vpop.permute.xlu0 %14995  ;;  %v14991_v11 = vpop.permute.xlu1 %14990 }
0x3fd4   : > { %v14993_v17 = vunpack.i.h.bf16 %v14991_v11  ;;  %v14992_v51 = vunpack.i.l.bf16 %v14991_v11  ;;  %v14998_v43 = vunpack.i.h.bf16 %v14996_v35  ;;  %v14997_v9 = vunpack.i.l.bf16 %v14996_v35  ;;  %v18433_v11 = vld [vmem:[#allocation48_spill] sm:$0xff] }
0x3fd6   : > { %v11356_v7 = vpack.c.bf16 %v14993_v17, %v14992_v51  ;;  %v11355_v50 = vpack.c.bf16 %v14998_v43, %v14997_v9 }
0x3fd7   : > { %v15001_v62 = vpop.permute.xlu1 %15000  ;;  %v15006_v2 = vpop.permute.xlu0 %15005 }
0x3fd8   : > { %13615 = vmatpush3.bf16.msra.mxu0 %v11356_v7  ;;  %v15003_v44 = vunpack.i.h.bf16 %v15001_v62  ;;  %v15002_v38 = vunpack.i.l.bf16 %v15001_v62  ;;  %v15008_v48 = vunpack.i.h.bf16 %v15006_v2  ;;  %v15007_v31 = vunpack.i.l.bf16 %v15006_v2 }
0x3fd9   : > { %13616 = vmatprep.subr.bf16.mxu0 %v18419_v32 }
0x3fda   : > { %v11354_v63 = vpack.c.bf16 %v15003_v44, %v15002_v38  ;;  %v11353_v4 = vpack.c.bf16 %v15008_v48, %v15007_v31 }
0x3fdc   : > { %13617 = vmatpush3.bf16.msra.mxu0 %v11355_v50 }
0x3fdd   : > { %13618 = vmatprep.subr.bf16.mxu0 %v18419_v32 }
0x3fe0   : > { %13619 = vmatpush3.bf16.msra.mxu0 %v11354_v63 }
0x3fe1   : > { %13620 = vmatprep.subr.bf16.mxu0 %v18419_v32 }
0x3fe4   : > { %13621 = vmatpush3.bf16.msra.mxu0 %v11353_v4  ;;  %v11361_v45 = vpop.permute.xlu1 %11360 }
0x3fe5   : > { %13622 = vmatprep.subr.bf16.mxu0 %v18419_v32 }
0x3fe8   : > { %13623 = vmatpush3.bf16.msra.mxu0 %v11352_v33 }
0x3fe9   : > { %13636 = vmatprep.subr.bf16.mxu0 %v18419_v32 }
0x3feb   : > { %13625 = vmatmul.mubr.msk.bf16.vlgmr.msra.gmra.mxu0 %vm1981_vm11, %v11325_v12  ;;  %vm18427_vm11 = vcmask 539648  }
0x3fec   : > { %13642 = vmatprep.mubr.msk.bf16.mxu0 %vm15688_vm2, %v18419_v32 }
0x40ab   : > { %v11400_v47 = vpop.f32.mrf.mxu0 }
0x40ac   : > { %v11401_v22 = vadd.f32 %v11400_v47, %v11361_v45 }
0x40ad   : > { %v13626_v60 = vpop.f32.mrf.mxu0 }
0x40ae   : > { %15621 = vtanh.f32 %v11401_v22 }
0x40af   : > { %v11403_v14 = vpop.f32.mrf.mxu0 }
0x40b1   : > { %v13627_v36 = vpop.f32.mrf.mxu0 }
0x40bb   : > { %v15622_v13 = vpop.eup %15621 }
0x40bc   : > { %v11407_v37 = vpack.c.bf16 %v15622_v13, %v15622_v13 }
0x40be   : > { %13633 = vmatmul.mubr.msk.bf16.vlgmr.msra.gmra.mxu1 %vm2055_vm14, %v11407_v37 }
0x40bf   : > { %13652 = vmatprep.mubr.msk.bf16.mxu1 %vm15688_vm2, %v18419_v32  ;;  %vm18425_vm2 = vcmask 326656  }
0x417e   : > { %v11461_v29 = vpop.f32.mrf.mxu1 }
0x417f   : > { %11472 = vrot.lane.b32.xlu1 %v11461_v29, %s18268_s30  ;;  %11478 = vrot.lane.b32.xlu0 %v11461_v29, %s18269_s26 }
0x4180   : > { %v13634_v61 = vpop.f32.mrf.mxu1 }
0x4182   : > { %v11464_v3 = vpop.f32.mrf.mxu1 }
0x4183   : > { %11469 = vrot.lane.b32.xlu1 %v11461_v29, %s18265_s7  ;;  %11475 = vrot.lane.b32.xlu0 %v11461_v29, %s18264_s5 }
0x4184   : > { %v13635_v28 = vpop.f32.mrf.mxu1 }
0x4187   : > { %11487 = vperm.xlu0 %13737, %v11484_v57  }
0x41f1   : > { %v11479_v52 = vpop.permute.xlu0 %11478  ;;  %v11473_v55 = vpop.permute.xlu1 %11472 }
0x41f2   : > { %v11483_v25 = vpack.c.bf16 %v11479_v52, %v11479_v52 }
0x41f4   : > { %v11494_v10 = vsel %vm1667_vm8, %v11483_v25, 0 }
0x41f5   : > { %13637 = vmatpush3.bf16.msra.mxu0 %v11494_v10  ;;  %v11476_v24 = vpop.permute.xlu0 %11475  ;;  %v11470_v39 = vpop.permute.xlu1 %11469 }
0x41f6   : > { %v11482_v23 = vpack.c.bf16 %v11476_v24, %v11473_v55  ;;  %13638 = vmatprep.subr.bf16.mxu0 %v18419_v32  ;;  %v11481_v16 = vpack.c.bf16 %v11470_v39, %v11461_v29 }
0x41f9   : > { %13639 = vmatpush3.bf16.msra.mxu0 %v11482_v23 }
0x41fa   : > { %13640 = vmatprep.subr.bf16.mxu0 %v18419_v32 }
0x41fd   : > { %13641 = vmatpush3.bf16.msra.mxu0 %v11481_v16 }
0x4200   : > { %13643 = vmatmul.mubr.msk.bf16.vlgmr.msra.gmra.mxu0 %vm18425_vm2, %v11467_v6 }
0x4202   : > { %v11488_v59 = vpop.permute.xlu0 %11487 }
0x42c0   : > { %v11530_v53 = vpop.f32.mrf.mxu0 }
0x42c1   : > { %v11531_v20 = vadd.f32 %v11530_v53, %v11488_v59 }
0x42c2   : > { %v13644_v18 = vpop.f32.mrf.mxu0 }
0x42c3   : > { %15623 = vtanh.f32 %v11531_v20 }
0x42c4   : > { %v11533_v30 = vpop.f32.mrf.mxu0 }
0x42c6   : > { %v13645_v34 = vpop.f32.mrf.mxu0 }
0x42d0   : > { %v15624_v46 = vpop.eup %15623 }
0x42d1   : > { %11538 = vrot.lane.b32.xlu1 %v15624_v46, %s18263_s23  ;;  %s18429_s23 = sld [smem:[#allocation40_spill]] }
0x4343   : > { %v11539_v56 = vpop.permute.xlu1 %11538 }
0x4344   : > { %v11541_v8 = vsel %vm1644_vm4, 0.0, %v11539_v56  ;;  %vm18431_vm4 = vmmov %vm18425_vm2 }
0x4345   : > { %v11542_v0 = vsel %vm18427_vm11, %v11541_v8, 0.0 }
0x4346   : > { %11548 = vrot.lane.b32.xlu1 %v11542_v0, %s18268_s30  ;;  %11554 = vrot.lane.b32.xlu0 %v11542_v0, %s18269_s26 }
0x434a   : > { %11545 = vrot.lane.b32.xlu1 %v11542_v0, %s18265_s7  ;;  %11551 = vrot.lane.b32.xlu0 %v11542_v0, %s18264_s5  ;;  %s18432_s5 = sshll.u32 %s18428_s1, 2 }
0x434b   : > { %s1576_s30 = scalar_lea.vmem %s18429_s23, %s18432_s5 }
0x434e   : > { %11563 = vperm.xlu1 %13738, %v11560_v5   ;;  %6557 = vperm.xlu0 %13737, %v6554_v27  }
0x43b8   : > { %v11555_v49 = vpop.permute.xlu0 %11554  ;;  %v11549_v26 = vpop.permute.xlu1 %11548 }
0x43b9   : > { %v11559_v40 = vpack.c.bf16 %v11555_v49, %v11555_v49 }
0x43bb   : > { %v11570_v54 = vsel %vm1667_vm8, %v11559_v40, 0 }
0x43bc   : > { %13647 = vmatpush3.bf16.msra.mxu1 %v11570_v54  ;;  %v11552_v41 = vpop.permute.xlu0 %11551  ;;  %v11546_v21 = vpop.permute.xlu1 %11545 }
0x43bd   : > { %v11558_v19 = vpack.c.bf16 %v11552_v41, %v11549_v26  ;;  %13648 = vmatprep.subr.bf16.mxu1 %v18419_v32  ;;  %v12208_v42 = vpack.c.bf16 %v11546_v21, %v11541_v8 }
0x43c0   : > { %13649 = vmatpush3.bf16.msra.mxu1 %v11558_v19 }
0x43c1   : > { %13650 = vmatprep.subr.bf16.mxu1 %v18419_v32 }
0x43c4   : > { %13651 = vmatpush3.bf16.msk.msra.mxu1 %vm17058_vm9, %v12208_v42 }
0x43c7   : > { %13653 = vmatmul.mubr.msk.bf16.vlgmr.msra.gmra.mxu1 %vm18431_vm4, %v11543_v58 }
0x43c9   : > { %v6558_v35 = vpop.permute.xlu0 %6557  ;;  %v11564_v51 = vpop.permute.xlu1 %11563 }
0x43ca   : > { %v6601_v17 = vadd.f32 %v18433_v11, %v6558_v35 }
0x43cc   : > { %6607 = vst.msk [vmem:[%s1576_s30] sm:$0x7] %vm6606_vm13, %v6601_v17 }
0x4487   : > { %v11606_v43 = vpop.f32.mrf.mxu1 }
0x4488   : > { %v11607_v9 = vadd.f32 %v11606_v43, %v11564_v51 }
0x4489   : > { %v13654_v7 = vpop.f32.mrf.mxu1 }
0x448a   : > { %12211 = vst.msk [vmem:[%s1576_s30 + $0x4] sm:$0x7] %vm6606_vm13, %v11607_v9 }
0x448b   : > { %v11609_v32 = vpop.f32.mrf.mxu1 }
0x448d   : > { %v13655_v62 = vpop.f32.mrf.mxu1 }
0x448e PF: > { %s18434_s7 = sld [smem:[#allocation41_spill]] }
0x4494   : > { %s117_s7 = sadd.s32 1, %s18434_s7  }
0x4495   : > { %p114_p4 = scmp.ge.s32.totalorder %s117_s7, 4  }
0x4497   :  { %116 = sbr.rel (!%p114_p4) target bundleno = 98 (0x62), region = 317 }

</bundles_post_ra>
